<compile_context>
chip_gen: v7x
topology: tpu7x:2x2x1
jax: 0.10.0
libtpu: 0.0.40
codegen_flags: <defaults>
</compile_context>

<pallas_src>
import jax
import jax.numpy as jnp
from jax import lax
from jax.experimental import pallas as pl
from jax.experimental.pallas import tpu as pltpu

BN_EPS = 1e-5
ALPHA = 0.05
_HI = jax.lax.Precision.HIGHEST  # host-side param folding / reference only


def _fold_bn(gamma, beta, mean, var):
    scale = gamma / jnp.sqrt(var + BN_EPS)
    shift = beta - mean * scale
    return scale, shift


# ----------------------------------------------------------------------------
# Kernel 1: spatial+fuse+BN (pre-folded) -> temporal convs -> shrinkage-mapped
#           covariance, for a block of Bblk samples per grid step.
# ----------------------------------------------------------------------------
def make_front_kernel(*, T, Ct, m, D, Bblk, ksizes, denom, alpha, has_tail):
    n_blocks = len(ksizes)
    L = Bblk * T
    PAD = 128                       # one lane tile each side -> aligned concat
    c_gram = (1.0 - alpha) / denom
    c_mu = alpha / (float(D) * denom)

    def kernel(x_ref, arep_ref, crep_ref, *rest):
        wt_refs = rest[0:2 * n_blocks:2]          # (Ct, k_i), BN scale folded
        sh_refs = rest[1:2 * n_blocks:2]          # (Ct, 1)   BN shift
        wb_ref = rest[2 * n_blocks]               # (D, m)
        wtw_ref = rest[2 * n_blocks + 1]          # (m, m) = Wb^T Wb
        out_ref = rest[2 * n_blocks + 2]          # (m, Bblk*m) lane-dense slab

        # Collapsed spatial branches + BN + fuse conv + BN + group replication:
        # one wide MXU matmul for the whole batch block.
        xr = (jnp.dot(arep_ref[...], x_ref[...],
                      preferred_element_type=jnp.float32)
              + crep_ref[...])                                     # (Ct, L)

        # Padded *value* (no scratch ref).  PAD = 128 keeps the concat aligned.
        zpad = jnp.zeros((Ct, PAD), jnp.float32)
        xp = jnp.concatenate([zpad, xr, zpad], axis=1)             # (Ct, L+2P)

        # per-lane position inside its own sample (sample stride = T)
        jpos = lax.broadcasted_iota(jnp.int32, (1, L), 1) % T

        wts = [wt_refs[i][...] for i in range(n_blocks)]
        shs = [sh_refs[i][...] for i in range(n_blocks)]
        wb_full = wb_ref[...]
        wtw = wtw_ref[...]

        # Temporal depthwise convs over output positions j = 0..T-1 for every
        # sample: one lane-shifted, boundary-masked copy per *unique* source
        # offset, shared by all branches (madds on the VPU).
        h_acc = [None] * n_blocks
        offsets = sorted({dt - (k // 2) for k in ksizes for dt in range(k)})
        for s in offsets:
            sl = xp[:, PAD + s:PAD + s + L]                        # (Ct, L)
            valid = jnp.logical_and(jpos + s >= 0, jpos + s < T)
            sl = jnp.where(valid, sl, 0.0)
            for i, k in enumerate(ksizes):
                dt = s + k // 2
                if 0 <= dt < k:
                    term = wts[i][:, dt:dt + 1] * sl
                    h_acc[i] = term if h_acc[i] is None else h_acc[i] + term

        # Project each branch onto the bilinear map; keep sum(h^2) as a
        # per-lane partial (single cross-lane reduce per sample later).
        g_main = jnp.zeros((m, L), jnp.float32)
        ss_main = jnp.zeros((1, L), jnp.float32)
        for i in range(n_blocks):
            h_i = h_acc[i] + shs[i]                                # (Ct, L)
            wb_i = wb_full[i * Ct:(i + 1) * Ct, :]                 # (Ct, m)
            g_main = g_main + lax.dot_general(
                wb_i, h_i, (((0,), (0,)), ((), ())),
                preferred_element_type=jnp.float32)                # (m, L)
            ss_main = ss_main + jnp.sum(h_i * h_i, axis=0, keepdims=True)

        # Per-sample:  mapped = (1-a)/denom * g g^T + a*sumsq/(D*denom) * WtW.
        # (even kernel sizes produce one extra conv column j = T -> "tail")
        pieces = []
        for b in range(Bblk):
            gb = g_main[:, b * T:(b + 1) * T]                      # (m, T)
            gram = lax.dot_general(gb, gb, (((1,), (1,)), ((), ())),
                                   preferred_element_type=jnp.float32)
            ssb = jnp.sum(ss_main[:, b * T:(b + 1) * T])
            if has_tail:
                tails = []
                for i, k in enumerate(ksizes):
                    p = k // 2
                    src = xr[:, (b + 1) * T - p:(b + 1) * T]       # (Ct, p)
                    ht = (jnp.sum(wts[i][:, :p] * src, axis=1, keepdims=True)
                          + shs[i])                                # (Ct, 1)
                    tails.append(ht)
                htail = jnp.concatenate(tails, axis=0)             # (D, 1)
                gtail = lax.dot_general(wb_full, htail,
                                        (((0,), (0,)), ((), ())),
                                        preferred_element_type=jnp.float32)
                gram = gram + lax.dot_general(
                    gtail, gtail, (((1,), (1,)), ((), ())),
                    preferred_element_type=jnp.float32)
                ssb = ssb + jnp.sum(htail * htail)
            pieces.append(c_gram * gram + (c_mu * ssb) * wtw)      # (m, m)

        # lane-dense (m, Bblk*m) writeback (single unmasked store)
        out_ref[...] = jnp.concatenate(pieces, axis=1).astype(out_ref.dtype)

    return kernel


# ----------------------------------------------------------------------------
# Kernel 2: V diag(log clamp(lam)) V^T + upper-triangle FC, whole batch at once
# ----------------------------------------------------------------------------
def make_logm_fc_kernel(nc, ncp):
    def kernel(ev_ref, v_ref, wcls_ref, b_ref, out_ref):
        ev = ev_ref[...]                                   # (B, m)
        v = v_ref[...]                                     # (B, m, m)
        Bb = ev.shape[0]
        le = jnp.log(jnp.maximum(ev, 1e-6))
        scaled = v * le[:, None, :]                        # scale eig columns
        # batched MXU matmul: logm[b] = scaled[b] @ v[b]^T
        logm = lax.dot_general(scaled, v, (((2,), (2,)), ((0,), (0,))),
                               preferred_element_type=jnp.float32)  # (B,m,m)
        # FC weights stored densely per class at upper-triangle positions
        # (zero below the diagonal), so triu gather becomes a contraction.
        wcls = wcls_ref[...]                               # (nc, m, m)
        cols = []
        for n in range(nc):
            t = jnp.sum(logm * wcls[n][None, :, :], axis=2)        # (B, m)
            cols.append(jnp.sum(t, axis=1, keepdims=True))         # (B, 1)
        pad = jnp.zeros((Bb, ncp - nc), jnp.float32)
        out = jnp.concatenate(cols + [pad], axis=1) + b_ref[...]   # (B, ncp)
        out_ref[...] = out.astype(out_ref.dtype)

    return kernel


# ----------------------------------------------------------------------------
# Wrappers (pallas_call plumbing)
# ----------------------------------------------------------------------------
def _pick_batch_block(B, m, T):
    """Largest batch block that keeps x and output blocks lane-aligned,
    preferring >= 2 grid steps (v7x megacore)."""
    def ok(c):
        if B % c:
            return False
        lanes_ok = ((c * m) % 128 == 0) or (c == B)
        x_ok = ((c * T) % 128 == 0) or (c == B)
        return lanes_ok and x_ok

    for c in range(B // 2, 0, -1):
        if ok(c):
            return c
    if ok(B):
        return B
    return None


def fused_front(x, fp, cfg):
    B, C, T = x.shape
    Ct = cfg["temporal_channels"]
    m = cfg["mapped_dim"]
    ksizes = tuple(cfg["temporal_kernel_sizes"])
    D = fp["Wb"].shape[0]
    pads = [k // 2 for k in ksizes]
    out_ws = [T + 2 * p - k + 1 for k, p in zip(ksizes, pads)]
    if len(set(out_ws)) != 1:
        raise ValueError("temporal branches must produce equal output widths")
    out_w = out_ws[0]
    has_tail = out_w == T + 1          # even kernel sizes -> one extra column
    denom = float(cfg["time_length"] - 1)

    bblk = _pick_batch_block(B, m, T)
    if bblk is None:
        raise ValueError("could not pick a lane-aligned batch block")
    grid = (B // bblk,)

    kernel = make_front_kernel(T=T, Ct=Ct, m=m, D=D, Bblk=bblk, ksizes=ksizes,
                               denom=denom, alpha=ALPHA, has_tail=has_tail)

    # lane-stacked batch: (B, C, T) -> (C, B*T)   (layout plumbing, plain JAX)
    xs = jnp.transpose(x, (1, 0, 2)).reshape(C, B * T)

    in_specs = [
        pl.BlockSpec((C, bblk * T), lambda g: (0, g)),
        pl.BlockSpec((Ct, C), lambda g: (0, 0)),
        pl.BlockSpec((Ct, 1), lambda g: (0, 0)),
    ]
    args = [xs, fp["Arep"], fp["crep"]]
    for i, k in enumerate(ksizes):
        in_specs.append(pl.BlockSpec((Ct, k), lambda g: (0, 0)))
        in_specs.append(pl.BlockSpec((Ct, 1), lambda g: (0, 0)))
        args.append(fp["wt"][i])
        args.append(fp["sh"][i])
    in_specs.append(pl.BlockSpec((D, m), lambda g: (0, 0)))
    in_specs.append(pl.BlockSpec((m, m), lambda g: (0, 0)))
    args.append(fp["Wb"])
    args.append(fp["WtW"])

    out = pl.pallas_call(
        kernel,
        out_shape=jax.ShapeDtypeStruct((m, B * m), jnp.float32),
        grid=grid,
        in_specs=in_specs,
        out_specs=pl.BlockSpec((m, bblk * m), lambda g: (0, g)),
        compiler_params=pltpu.CompilerParams(dimension_semantics=("parallel",)),
    )(*args)
    # (m, B*m) -> (B, m, m)  (wrapper-side layout plumbing)
    return jnp.transpose(out.reshape(m, B, m), (1, 0, 2))


def logm_fc(eigvals, eigvecs, wcls, bias_pad, nc):
    B, m = eigvals.shape
    ncp = bias_pad.shape[1]
    assert nc <= ncp
    out = pl.pallas_call(
        make_logm_fc_kernel(nc=nc, ncp=ncp),
        out_shape=jax.ShapeDtypeStruct((B, ncp), jnp.float32),
    )(eigvals, eigvecs, wcls, bias_pad)
    return out[:, :nc]


def starnet_forward(x, fused_params, cfg):
    mapped_cov = fused_front(x, fused_params, cfg)            # (B, m, m)
    # TODO(synk): symmetric eigendecomposition has no Pallas equivalent; JAX glue.
    eigvals, eigvecs = jnp.linalg.eigh(mapped_cov)
    return logm_fc(eigvals, eigvecs, fused_params["Wcls"],
                   fused_params["bias_pad"], cfg["num_classes"])


# ----------------------------------------------------------------------------
# Parameters: raw (mirrors the PyTorch module) + one-time algebraic folding
# ----------------------------------------------------------------------------
def init_params(key, cfg):
    C = cfg["num_channels"]
    F = cfg["fusion_channels"]
    Ct = cfg["temporal_channels"]
    m = cfg["mapped_dim"]
    nc = cfg["num_classes"]
    keys = iter(jax.random.split(key, 64))

    def bn(n):
        gamma = 1.0 + 0.1 * jax.random.normal(next(keys), (n,), jnp.float32)
        beta = 0.1 * jax.random.normal(next(keys), (n,), jnp.float32)
        mean = 0.1 * jax.random.normal(next(keys), (n,), jnp.float32)
        var = 1.0 + 0.1 * jax.random.uniform(next(keys), (n,), jnp.float32)
        return _fold_bn(gamma, beta, mean, var)

    params = {"spatial": [], "temporal": []}
    spatial_dims = []
    for k in cfg["spatial_kernel_sizes"]:
        out_h = C - k + 1
        oc = max(1, cfg["spatial_expansion"] // out_h)
        spatial_dims.append(oc * out_h)
        w = 0.1 * jax.random.normal(next(keys), (oc, k), jnp.float32)
        scale, shift = bn(oc)
        params["spatial"].append({"w": w, "scale": scale, "shift": shift})

    h_total = sum(spatial_dims)
    wf = 0.1 * jax.random.normal(next(keys), (F, h_total), jnp.float32)
    sf, shf = bn(F)
    params["fuse"] = {"w": wf, "scale": sf, "shift": shf}

    for k in cfg["temporal_kernel_sizes"]:
        w = 0.1 * jax.random.normal(next(keys), (Ct, k), jnp.float32)
        scale, shift = bn(Ct)
        params["temporal"].append({"w": w, "scale": scale, "shift": shift})

    D = Ct * len(cfg["temporal_kernel_sizes"])
    raw = 0.01 * jax.random.normal(next(keys), (D, m), jnp.float32)
    q, _ = jnp.linalg.qr(raw)                 # mirrors _initialize_bilinear
    params["bilinear"] = q[:, :m]

    nfeat = m * (m + 1) // 2
    params["fc_w"] = 0.1 * jax.random.normal(next(keys), (nfeat, nc), jnp.float32)
    params["fc_b"] = 0.01 * jax.random.normal(next(keys), (nc,), jnp.float32)
    return params


def prepare_fused_params(params, cfg):
    """One-time algebraic folding of all affine stages (plain JAX, f32-exact)."""
    C = cfg["num_channels"]
    F = cfg["fusion_channels"]
    Ct = cfg["temporal_channels"]
    m = cfg["mapped_dim"]
    nc = cfg["num_classes"]
    if Ct % F != 0:
        raise ValueError("temporal_channels must be a multiple of fusion_channels")

    # spatial branches + BN -> row-affine map M, d  (x_spatial = M x + d)
    M_rows, d_rows = [], []
    for i, k in enumerate(cfg["spatial_kernel_sizes"]):
        p = params["spatial"][i]
        w = p["w"]                                   # (oc, k)
        oc = w.shape[0]
        out_h = C - k + 1
        Mi = jnp.zeros((oc, out_h, C), jnp.float32)
        for h in range(out_h):
            Mi = Mi.at[:, h, h:h + k].set(w)
        Mi = Mi * p["scale"][:, None, None]
        M_rows.append(Mi.reshape(oc * out_h, C))     # row order (o, h) = .view()
        d_rows.append(jnp.broadcast_to(p["shift"][:, None], (oc, out_h)).reshape(-1))
    M = jnp.concatenate(M_rows, axis=0)              # (H_total, C)
    d = jnp.concatenate(d_rows, axis=0)              # (H_total,)

    # fuse conv + BN folded on top:  x_fused = A x + cvec
    pf = params["fuse"]
    A = pf["scale"][:, None] * jnp.dot(pf["w"], M, precision=_HI)       # (F, C)
    cvec = pf["scale"] * jnp.dot(pf["w"], d, precision=_HI) + pf["shift"]

    # replicate so temporal output channel o reads input group o // mult
    mult = Ct // F
    Arep = jnp.repeat(A, mult, axis=0)               # (Ct, C)
    crep = jnp.repeat(cvec, mult, axis=0)[:, None]   # (Ct, 1)

    # temporal depthwise convs: fold BN scale into weights, keep shift
    wt, sh = [], []
    for i, _ in enumerate(cfg["temporal_kernel_sizes"]):
        p = params["temporal"][i]
        wt.append(p["w"] * p["scale"][:, None])      # (Ct, k)
        sh.append(p["shift"][:, None])               # (Ct, 1)

    Wb = params["bilinear"]                          # (D, m)
    WtW = jnp.dot(Wb.T, Wb, precision=_HI)           # (m, m)

    # fc weights as per-class dense (m, m) masks, zero below the diagonal
    iu = jnp.triu_indices(m)
    Wtmp = jnp.zeros((m, m, nc), jnp.float32).at[iu[0], iu[1], :].set(params["fc_w"])
    Wcls = jnp.transpose(Wtmp, (2, 0, 1))            # (nc, m, m)

    NCP = 128                                        # lane-dense padded classes
    bias_pad = jnp.zeros((1, NCP), jnp.float32).at[0, :nc].set(params["fc_b"])

    return dict(Arep=Arep, crep=crep, wt=wt, sh=sh, Wb=Wb, WtW=WtW,
                Wcls=Wcls, bias_pad=bias_pad)


# ----------------------------------------------------------------------------
# Pure-JAX reference (mirrors the PyTorch module op-by-op) for the self-check
# ----------------------------------------------------------------------------
def reference_forward(x, params, cfg):
    B, C, T = x.shape
    feats = []
    for i, k in enumerate(cfg["spatial_kernel_sizes"]):
        p = params["spatial"][i]
        w = p["w"]
        oc = w.shape[0]
        out_h = C - k + 1
        conv = jnp.zeros((B, oc, out_h, T), jnp.float32)
        for dk in range(k):
            conv = conv + w[:, dk][None, :, None, None] * x[:, None, dk:dk + out_h, :]
        conv = conv * p["scale"][None, :, None, None] + p["shift"][None, :, None, None]
        feats.append(conv.reshape(B, oc * out_h, T))
    xs = jnp.concatenate(feats, axis=1)

    pf = params["fuse"]
    xf = jnp.einsum("fh,bht->bft", pf["w"], xs, precision=_HI)
    xf = xf * pf["scale"][None, :, None] + pf["shift"][None, :, None]

    Ct = cfg["temporal_channels"]
    F = cfg["fusion_channels"]
    mult = Ct // F
    hs = []
    for i, k in enumerate(cfg["temporal_kernel_sizes"]):
        p = params["temporal"][i]
        w = p["w"]
        pad = k // 2
        xpad = jnp.pad(xf, ((0, 0), (0, 0), (pad, pad)))
        xrep = jnp.repeat(xpad, mult, axis=1)
        out_w = T + 2 * pad - k + 1
        conv = jnp.zeros((B, Ct, out_w), jnp.float32)
        for dt in range(k):
            conv = conv + w[:, dt][None, :, None] * xrep[:, :, dt:dt + out_w]
        conv = conv * p["scale"][None, :, None] + p["shift"][None, :, None]
        hs.append(conv)
    h = jnp.concatenate(hs, axis=1)

    denom = cfg["time_length"] - 1
    cov = jnp.einsum("bdt,bet->bde", h, h, precision=_HI) / denom
    Dd = h.shape[1]
    mu = jnp.trace(cov, axis1=1, axis2=2) / Dd
    cov = (1 - ALPHA) * cov + ALPHA * mu[:, None, None] * jnp.eye(Dd, dtype=jnp.float32)[None]
    W = params["bilinear"]
    mapped = jnp.einsum("dm,bde,en->bmn", W, cov, W, precision=_HI)
    evals, evecs = jnp.linalg.eigh(mapped)
    le = jnp.log(jnp.maximum(evals, 1e-6))
    logm = jnp.einsum("bik,bk,bjk->bij", evecs, le, evecs, precision=_HI)
    iu = jnp.triu_indices(cfg["mapped_dim"])
    feat = logm[:, iu[0], iu[1]]
    return jnp.dot(feat, params["fc_w"], precision=_HI) + params["fc_b"]


if __name__ == "__main__":
    cfg = dict(
        num_channels=8,
        time_length=128,
        fusion_channels=8,
        temporal_channels=16,
        temporal_kernel_sizes=[8, 4],
        spatial_kernel_sizes=[1, 3],
        spatial_expansion=16,
        mapped_dim=16,
        num_classes=4,
    )
    if cfg["temporal_channels"] % cfg["fusion_channels"] != 0:
        cfg["temporal_channels"] = cfg["fusion_channels"]

    key = jax.random.PRNGKey(0)
    kx, kp = jax.random.split(key)
    B = 16
    # PyTorch input would be (B, 1, C, T); here (B, C, T).
    x = jax.random.normal(kx, (B, cfg["num_channels"], cfg["time_length"]),
                          jnp.float32)

    params = init_params(kp, cfg)
    fused = prepare_fused_params(params, cfg)

    fwd = jax.jit(lambda xx, pp: starnet_forward(xx, pp, cfg))
    out = fwd(x, fused)
    jax.block_until_ready(out)
    assert out.shape == (B, cfg["num_classes"]), out.shape
    assert bool(jnp.all(jnp.isfinite(out)))

    # correctness self-check against a pure-JAX mirror of the PyTorch module
    ref = jax.jit(lambda xx: reference_forward(xx, params, cfg))(x)
    jax.block_until_ready(ref)
    max_err = float(jnp.max(jnp.abs(out - ref)))
    assert bool(jnp.allclose(out, ref, rtol=2e-2, atol=2e-2)), (
        f"kernel/reference mismatch, max abs err = {max_err}")

    print("KERNEL_OK")
</pallas_src>

<mosaic_0001>
module attributes {stable_mosaic.version = 11 : i64} {
  func.func @kernel(%arg0: i32, %arg1: memref<8x1024xf32, #tpu.memory_space<vmem>>, %arg2: memref<16x8xf32, #tpu.memory_space<vmem>>, %arg3: memref<16x1xf32, #tpu.memory_space<vmem>>, %arg4: memref<16x8xf32, #tpu.memory_space<vmem>>, %arg5: memref<16x1xf32, #tpu.memory_space<vmem>>, %arg6: memref<16x4xf32, #tpu.memory_space<vmem>>, %arg7: memref<16x1xf32, #tpu.memory_space<vmem>>, %arg8: memref<32x16xf32, #tpu.memory_space<vmem>>, %arg9: memref<16x16xf32, #tpu.memory_space<vmem>>, %arg10: memref<16x128xf32, #tpu.memory_space<vmem>>) attributes {dimension_semantics = [#tpu.dimension_semantics<parallel>], iteration_bounds = array<i64: 2>, scalar_prefetch = 0 : i64, scratch_operands = 0 : i64, tpu.core_type = #tpu.core_type<tc>, window_params = [{transform_indices = @transform_0, window_bounds = array<i64: 8, 1024>}, {pipeline_mode = #tpu.pipeline_mode<synchronous>, transform_indices = @transform_1, window_bounds = array<i64: 16, 8>}, {pipeline_mode = #tpu.pipeline_mode<synchronous>, transform_indices = @transform_2, window_bounds = array<i64: 16, 1>}, {pipeline_mode = #tpu.pipeline_mode<synchronous>, transform_indices = @transform_3, window_bounds = array<i64: 16, 8>}, {pipeline_mode = #tpu.pipeline_mode<synchronous>, transform_indices = @transform_4, window_bounds = array<i64: 16, 1>}, {pipeline_mode = #tpu.pipeline_mode<synchronous>, transform_indices = @transform_5, window_bounds = array<i64: 16, 4>}, {pipeline_mode = #tpu.pipeline_mode<synchronous>, transform_indices = @transform_6, window_bounds = array<i64: 16, 1>}, {pipeline_mode = #tpu.pipeline_mode<synchronous>, transform_indices = @transform_7, window_bounds = array<i64: 32, 16>}, {pipeline_mode = #tpu.pipeline_mode<synchronous>, transform_indices = @transform_8, window_bounds = array<i64: 16, 16>}, {transform_indices = @transform_9, window_bounds = array<i64: 16, 128>}]} {
    %c0 = arith.constant 0 : index
    %c0_0 = arith.constant 0 : index
    %0 = vector.load %arg2[%c0, %c0_0] : memref<16x8xf32, #tpu.memory_space<vmem>>, vector<16x8xf32>
    %c0_1 = arith.constant 0 : index
    %c0_2 = arith.constant 0 : index
    %1 = vector.load %arg1[%c0_1, %c0_2] : memref<8x1024xf32, #tpu.memory_space<vmem>>, vector<8x1024xf32>
    %cst = arith.constant dense<0.000000e+00> : vector<16x1024xf32>
    %2 = tpu.matmul %0, %1, %cst {dimension_numbers = #tpu.dot_dimension_numbers<[1], [0], [0], [1], [0, 0, 1, 1], [], []>} : vector<16x8xf32>, vector<8x1024xf32>, vector<16x1024xf32> -> vector<16x1024xf32>
    %c0_3 = arith.constant 0 : index
    %c0_4 = arith.constant 0 : index
    %3 = vector.load %arg3[%c0_3, %c0_4] : memref<16x1xf32, #tpu.memory_space<vmem>>, vector<16x1xf32>
    %4 = vector.broadcast %3 : vector<16x1xf32> to vector<16x1024xf32>
    %5 = arith.addf %2, %4 : vector<16x1024xf32>
    %cst_5 = arith.constant 0.000000e+00 : f32
    %6 = vector.broadcast %cst_5 : f32 to vector<16x128xf32>
    %7 = tpu.concatenate %6, %5, %6 in 1 : vector<16x128xf32>, vector<16x1024xf32>, vector<16x128xf32> -> vector<16x1280xf32>
    %8 = tpu.iota {dimensions = array<i32: 1>} : vector<1x1024xi32>
    %c128_i32 = arith.constant 128 : i32
    %c0_i32 = arith.constant 0 : i32
    %9 = arith.cmpi eq, %c128_i32, %c0_i32 : i32
    %c1_i32 = arith.constant 1 : i32
    %10 = arith.select %9, %c1_i32, %c128_i32 : i32
    %11 = vector.broadcast %10 : i32 to vector<1x1024xi32>
    %12 = arith.remsi %8, %11 : vector<1x1024xi32>
    %c0_i32_6 = arith.constant 0 : i32
    %13 = vector.broadcast %c0_i32_6 : i32 to vector<1x1024xi32>
    %14 = arith.cmpi ne, %12, %13 : vector<1x1024xi32>
    %c0_i32_7 = arith.constant 0 : i32
    %15 = vector.broadcast %c0_i32_7 : i32 to vector<1x1024xi32>
    %16 = arith.cmpi slt, %12, %15 : vector<1x1024xi32>
    %c0_i32_8 = arith.constant 0 : i32
    %17 = arith.cmpi slt, %10, %c0_i32_8 : i32
    %18 = vector.broadcast %17 : i1 to vector<1x1024xi1>
    %19 = vector.broadcast %18 : vector<1x1024xi1> to vector<1x1024xi1>
    %20 = arith.xori %16, %19 : vector<1x1024xi1>
    %21 = arith.andi %20, %14 : vector<1x1024xi1>
    %22 = vector.broadcast %10 : i32 to vector<1x1024xi32>
    %23 = arith.addi %12, %22 : vector<1x1024xi32>
    %24 = arith.select %21, %23, %12 : vector<1x1024xi1>, vector<1x1024xi32>
    %c0_9 = arith.constant 0 : index
    %c0_10 = arith.constant 0 : index
    %25 = vector.load %arg4[%c0_9, %c0_10] : memref<16x8xf32, #tpu.memory_space<vmem>>, vector<16x8xf32>
    %c0_11 = arith.constant 0 : index
    %c0_12 = arith.constant 0 : index
    %26 = vector.load %arg6[%c0_11, %c0_12] : memref<16x4xf32, #tpu.memory_space<vmem>>, vector<16x4xf32>
    %c0_13 = arith.constant 0 : index
    %c0_14 = arith.constant 0 : index
    %27 = vector.load %arg5[%c0_13, %c0_14] : memref<16x1xf32, #tpu.memory_space<vmem>>, vector<16x1xf32>
    %c0_15 = arith.constant 0 : index
    %c0_16 = arith.constant 0 : index
    %28 = vector.load %arg7[%c0_15, %c0_16] : memref<16x1xf32, #tpu.memory_space<vmem>>, vector<16x1xf32>
    %c0_17 = arith.constant 0 : index
    %c0_18 = arith.constant 0 : index
    %29 = vector.load %arg8[%c0_17, %c0_18] : memref<32x16xf32, #tpu.memory_space<vmem>>, vector<32x16xf32>
    %c0_19 = arith.constant 0 : index
    %c0_20 = arith.constant 0 : index
    %30 = vector.load %arg9[%c0_19, %c0_20] : memref<16x16xf32, #tpu.memory_space<vmem>>, vector<16x16xf32>
    %31 = vector.extract_strided_slice %7 {offsets = [0, 124], sizes = [16, 1024], strides = [1, 1]} : vector<16x1280xf32> to vector<16x1024xf32>
    %c-4_i32 = arith.constant -4 : i32
    %32 = vector.broadcast %c-4_i32 : i32 to vector<1x1024xi32>
    %33 = arith.addi %24, %32 : vector<1x1024xi32>
    %c0_i32_21 = arith.constant 0 : i32
    %34 = vector.broadcast %c0_i32_21 : i32 to vector<1x1024xi32>
    %35 = arith.cmpi sge, %33, %34 : vector<1x1024xi32>
    %c-4_i32_22 = arith.constant -4 : i32
    %36 = vector.broadcast %c-4_i32_22 : i32 to vector<1x1024xi32>
    %37 = arith.addi %24, %36 : vector<1x1024xi32>
    %c128_i32_23 = arith.constant 128 : i32
    %38 = vector.broadcast %c128_i32_23 : i32 to vector<1x1024xi32>
    %39 = arith.cmpi slt, %37, %38 : vector<1x1024xi32>
    %40 = arith.andi %35, %39 : vector<1x1024xi1>
    %cst_24 = arith.constant 0.000000e+00 : f32
    %41 = vector.shape_cast %40 : vector<1x1024xi1> to vector<1x1024xi1>
    %42 = vector.broadcast %41 : vector<1x1024xi1> to vector<16x1024xi1>
    %43 = vector.broadcast %cst_24 : f32 to vector<16x1024xf32>
    %44 = arith.select %42, %31, %43 : vector<16x1024xi1>, vector<16x1024xf32>
    %45 = vector.extract_strided_slice %25 {offsets = [0, 0], sizes = [16, 1], strides = [1, 1]} : vector<16x8xf32> to vector<16x1xf32>
    %46 = vector.broadcast %45 : vector<16x1xf32> to vector<16x1024xf32>
    %47 = arith.mulf %46, %44 : vector<16x1024xf32>
    %48 = vector.extract_strided_slice %7 {offsets = [0, 125], sizes = [16, 1024], strides = [1, 1]} : vector<16x1280xf32> to vector<16x1024xf32>
    %c-3_i32 = arith.constant -3 : i32
    %49 = vector.broadcast %c-3_i32 : i32 to vector<1x1024xi32>
    %50 = arith.addi %24, %49 : vector<1x1024xi32>
    %c0_i32_25 = arith.constant 0 : i32
    %51 = vector.broadcast %c0_i32_25 : i32 to vector<1x1024xi32>
    %52 = arith.cmpi sge, %50, %51 : vector<1x1024xi32>
    %c-3_i32_26 = arith.constant -3 : i32
    %53 = vector.broadcast %c-3_i32_26 : i32 to vector<1x1024xi32>
    %54 = arith.addi %24, %53 : vector<1x1024xi32>
    %c128_i32_27 = arith.constant 128 : i32
    %55 = vector.broadcast %c128_i32_27 : i32 to vector<1x1024xi32>
    %56 = arith.cmpi slt, %54, %55 : vector<1x1024xi32>
    %57 = arith.andi %52, %56 : vector<1x1024xi1>
    %cst_28 = arith.constant 0.000000e+00 : f32
    %58 = vector.shape_cast %57 : vector<1x1024xi1> to vector<1x1024xi1>
    %59 = vector.broadcast %58 : vector<1x1024xi1> to vector<16x1024xi1>
    %60 = vector.broadcast %cst_28 : f32 to vector<16x1024xf32>
    %61 = arith.select %59, %48, %60 : vector<16x1024xi1>, vector<16x1024xf32>
    %62 = vector.extract_strided_slice %25 {offsets = [0, 1], sizes = [16, 1], strides = [1, 1]} : vector<16x8xf32> to vector<16x1xf32>
    %63 = vector.broadcast %62 : vector<16x1xf32> to vector<16x1024xf32>
    %64 = arith.mulf %63, %61 : vector<16x1024xf32>
    %65 = arith.addf %47, %64 : vector<16x1024xf32>
    %66 = vector.extract_strided_slice %7 {offsets = [0, 126], sizes = [16, 1024], strides = [1, 1]} : vector<16x1280xf32> to vector<16x1024xf32>
    %c-2_i32 = arith.constant -2 : i32
    %67 = vector.broadcast %c-2_i32 : i32 to vector<1x1024xi32>
    %68 = arith.addi %24, %67 : vector<1x1024xi32>
    %c0_i32_29 = arith.constant 0 : i32
    %69 = vector.broadcast %c0_i32_29 : i32 to vector<1x1024xi32>
    %70 = arith.cmpi sge, %68, %69 : vector<1x1024xi32>
    %c-2_i32_30 = arith.constant -2 : i32
    %71 = vector.broadcast %c-2_i32_30 : i32 to vector<1x1024xi32>
    %72 = arith.addi %24, %71 : vector<1x1024xi32>
    %c128_i32_31 = arith.constant 128 : i32
    %73 = vector.broadcast %c128_i32_31 : i32 to vector<1x1024xi32>
    %74 = arith.cmpi slt, %72, %73 : vector<1x1024xi32>
    %75 = arith.andi %70, %74 : vector<1x1024xi1>
    %cst_32 = arith.constant 0.000000e+00 : f32
    %76 = vector.shape_cast %75 : vector<1x1024xi1> to vector<1x1024xi1>
    %77 = vector.broadcast %76 : vector<1x1024xi1> to vector<16x1024xi1>
    %78 = vector.broadcast %cst_32 : f32 to vector<16x1024xf32>
    %79 = arith.select %77, %66, %78 : vector<16x1024xi1>, vector<16x1024xf32>
    %80 = vector.extract_strided_slice %25 {offsets = [0, 2], sizes = [16, 1], strides = [1, 1]} : vector<16x8xf32> to vector<16x1xf32>
    %81 = vector.broadcast %80 : vector<16x1xf32> to vector<16x1024xf32>
    %82 = arith.mulf %81, %79 : vector<16x1024xf32>
    %83 = arith.addf %65, %82 : vector<16x1024xf32>
    %84 = vector.extract_strided_slice %26 {offsets = [0, 0], sizes = [16, 1], strides = [1, 1]} : vector<16x4xf32> to vector<16x1xf32>
    %85 = vector.broadcast %84 : vector<16x1xf32> to vector<16x1024xf32>
    %86 = arith.mulf %85, %79 : vector<16x1024xf32>
    %87 = vector.extract_strided_slice %7 {offsets = [0, 127], sizes = [16, 1024], strides = [1, 1]} : vector<16x1280xf32> to vector<16x1024xf32>
    %c-1_i32 = arith.constant -1 : i32
    %88 = vector.broadcast %c-1_i32 : i32 to vector<1x1024xi32>
    %89 = arith.addi %24, %88 : vector<1x1024xi32>
    %c0_i32_33 = arith.constant 0 : i32
    %90 = vector.broadcast %c0_i32_33 : i32 to vector<1x1024xi32>
    %91 = arith.cmpi sge, %89, %90 : vector<1x1024xi32>
    %c-1_i32_34 = arith.constant -1 : i32
    %92 = vector.broadcast %c-1_i32_34 : i32 to vector<1x1024xi32>
    %93 = arith.addi %24, %92 : vector<1x1024xi32>
    %c128_i32_35 = arith.constant 128 : i32
    %94 = vector.broadcast %c128_i32_35 : i32 to vector<1x1024xi32>
    %95 = arith.cmpi slt, %93, %94 : vector<1x1024xi32>
    %96 = arith.andi %91, %95 : vector<1x1024xi1>
    %cst_36 = arith.constant 0.000000e+00 : f32
    %97 = vector.shape_cast %96 : vector<1x1024xi1> to vector<1x1024xi1>
    %98 = vector.broadcast %97 : vector<1x1024xi1> to vector<16x1024xi1>
    %99 = vector.broadcast %cst_36 : f32 to vector<16x1024xf32>
    %100 = arith.select %98, %87, %99 : vector<16x1024xi1>, vector<16x1024xf32>
    %101 = vector.extract_strided_slice %25 {offsets = [0, 3], sizes = [16, 1], strides = [1, 1]} : vector<16x8xf32> to vector<16x1xf32>
    %102 = vector.broadcast %101 : vector<16x1xf32> to vector<16x1024xf32>
    %103 = arith.mulf %102, %100 : vector<16x1024xf32>
    %104 = arith.addf %83, %103 : vector<16x1024xf32>
    %105 = vector.extract_strided_slice %26 {offsets = [0, 1], sizes = [16, 1], strides = [1, 1]} : vector<16x4xf32> to vector<16x1xf32>
    %106 = vector.broadcast %105 : vector<16x1xf32> to vector<16x1024xf32>
    %107 = arith.mulf %106, %100 : vector<16x1024xf32>
    %108 = arith.addf %86, %107 : vector<16x1024xf32>
    %109 = vector.extract_strided_slice %7 {offsets = [0, 128], sizes = [16, 1024], strides = [1, 1]} : vector<16x1280xf32> to vector<16x1024xf32>
    %c0_i32_37 = arith.constant 0 : i32
    %110 = vector.broadcast %c0_i32_37 : i32 to vector<1x1024xi32>
    %111 = arith.addi %24, %110 : vector<1x1024xi32>
    %c0_i32_38 = arith.constant 0 : i32
    %112 = vector.broadcast %c0_i32_38 : i32 to vector<1x1024xi32>
    %113 = arith.cmpi sge, %111, %112 : vector<1x1024xi32>
    %c0_i32_39 = arith.constant 0 : i32
    %114 = vector.broadcast %c0_i32_39 : i32 to vector<1x1024xi32>
    %115 = arith.addi %24, %114 : vector<1x1024xi32>
    %c128_i32_40 = arith.constant 128 : i32
    %116 = vector.broadcast %c128_i32_40 : i32 to vector<1x1024xi32>
    %117 = arith.cmpi slt, %115, %116 : vector<1x1024xi32>
    %118 = arith.andi %113, %117 : vector<1x1024xi1>
    %cst_41 = arith.constant 0.000000e+00 : f32
    %119 = vector.shape_cast %118 : vector<1x1024xi1> to vector<1x1024xi1>
    %120 = vector.broadcast %119 : vector<1x1024xi1> to vector<16x1024xi1>
    %121 = vector.broadcast %cst_41 : f32 to vector<16x1024xf32>
    %122 = arith.select %120, %109, %121 : vector<16x1024xi1>, vector<16x1024xf32>
    %123 = vector.extract_strided_slice %25 {offsets = [0, 4], sizes = [16, 1], strides = [1, 1]} : vector<16x8xf32> to vector<16x1xf32>
    %124 = vector.broadcast %123 : vector<16x1xf32> to vector<16x1024xf32>
    %125 = arith.mulf %124, %122 : vector<16x1024xf32>
    %126 = arith.addf %104, %125 : vector<16x1024xf32>
    %127 = vector.extract_strided_slice %26 {offsets = [0, 2], sizes = [16, 1], strides = [1, 1]} : vector<16x4xf32> to vector<16x1xf32>
    %128 = vector.broadcast %127 : vector<16x1xf32> to vector<16x1024xf32>
    %129 = arith.mulf %128, %122 : vector<16x1024xf32>
    %130 = arith.addf %108, %129 : vector<16x1024xf32>
    %131 = vector.extract_strided_slice %7 {offsets = [0, 129], sizes = [16, 1024], strides = [1, 1]} : vector<16x1280xf32> to vector<16x1024xf32>
    %c1_i32_42 = arith.constant 1 : i32
    %132 = vector.broadcast %c1_i32_42 : i32 to vector<1x1024xi32>
    %133 = arith.addi %24, %132 : vector<1x1024xi32>
    %c0_i32_43 = arith.constant 0 : i32
    %134 = vector.broadcast %c0_i32_43 : i32 to vector<1x1024xi32>
    %135 = arith.cmpi sge, %133, %134 : vector<1x1024xi32>
    %c1_i32_44 = arith.constant 1 : i32
    %136 = vector.broadcast %c1_i32_44 : i32 to vector<1x1024xi32>
    %137 = arith.addi %24, %136 : vector<1x1024xi32>
    %c128_i32_45 = arith.constant 128 : i32
    %138 = vector.broadcast %c128_i32_45 : i32 to vector<1x1024xi32>
    %139 = arith.cmpi slt, %137, %138 : vector<1x1024xi32>
    %140 = arith.andi %135, %139 : vector<1x1024xi1>
    %cst_46 = arith.constant 0.000000e+00 : f32
    %141 = vector.shape_cast %140 : vector<1x1024xi1> to vector<1x1024xi1>
    %142 = vector.broadcast %141 : vector<1x1024xi1> to vector<16x1024xi1>
    %143 = vector.broadcast %cst_46 : f32 to vector<16x1024xf32>
    %144 = arith.select %142, %131, %143 : vector<16x1024xi1>, vector<16x1024xf32>
    %145 = vector.extract_strided_slice %25 {offsets = [0, 5], sizes = [16, 1], strides = [1, 1]} : vector<16x8xf32> to vector<16x1xf32>
    %146 = vector.broadcast %145 : vector<16x1xf32> to vector<16x1024xf32>
    %147 = arith.mulf %146, %144 : vector<16x1024xf32>
    %148 = arith.addf %126, %147 : vector<16x1024xf32>
    %149 = vector.extract_strided_slice %26 {offsets = [0, 3], sizes = [16, 1], strides = [1, 1]} : vector<16x4xf32> to vector<16x1xf32>
    %150 = vector.broadcast %149 : vector<16x1xf32> to vector<16x1024xf32>
    %151 = arith.mulf %150, %144 : vector<16x1024xf32>
    %152 = arith.addf %130, %151 : vector<16x1024xf32>
    %153 = vector.extract_strided_slice %7 {offsets = [0, 130], sizes = [16, 1024], strides = [1, 1]} : vector<16x1280xf32> to vector<16x1024xf32>
    %c2_i32 = arith.constant 2 : i32
    %154 = vector.broadcast %c2_i32 : i32 to vector<1x1024xi32>
    %155 = arith.addi %24, %154 : vector<1x1024xi32>
    %c0_i32_47 = arith.constant 0 : i32
    %156 = vector.broadcast %c0_i32_47 : i32 to vector<1x1024xi32>
    %157 = arith.cmpi sge, %155, %156 : vector<1x1024xi32>
    %c2_i32_48 = arith.constant 2 : i32
    %158 = vector.broadcast %c2_i32_48 : i32 to vector<1x1024xi32>
    %159 = arith.addi %24, %158 : vector<1x1024xi32>
    %c128_i32_49 = arith.constant 128 : i32
    %160 = vector.broadcast %c128_i32_49 : i32 to vector<1x1024xi32>
    %161 = arith.cmpi slt, %159, %160 : vector<1x1024xi32>
    %162 = arith.andi %157, %161 : vector<1x1024xi1>
    %cst_50 = arith.constant 0.000000e+00 : f32
    %163 = vector.shape_cast %162 : vector<1x1024xi1> to vector<1x1024xi1>
    %164 = vector.broadcast %163 : vector<1x1024xi1> to vector<16x1024xi1>
    %165 = vector.broadcast %cst_50 : f32 to vector<16x1024xf32>
    %166 = arith.select %164, %153, %165 : vector<16x1024xi1>, vector<16x1024xf32>
    %167 = vector.extract_strided_slice %25 {offsets = [0, 6], sizes = [16, 1], strides = [1, 1]} : vector<16x8xf32> to vector<16x1xf32>
    %168 = vector.broadcast %167 : vector<16x1xf32> to vector<16x1024xf32>
    %169 = arith.mulf %168, %166 : vector<16x1024xf32>
    %170 = arith.addf %148, %169 : vector<16x1024xf32>
    %171 = vector.extract_strided_slice %7 {offsets = [0, 131], sizes = [16, 1024], strides = [1, 1]} : vector<16x1280xf32> to vector<16x1024xf32>
    %c3_i32 = arith.constant 3 : i32
    %172 = vector.broadcast %c3_i32 : i32 to vector<1x1024xi32>
    %173 = arith.addi %24, %172 : vector<1x1024xi32>
    %c0_i32_51 = arith.constant 0 : i32
    %174 = vector.broadcast %c0_i32_51 : i32 to vector<1x1024xi32>
    %175 = arith.cmpi sge, %173, %174 : vector<1x1024xi32>
    %c3_i32_52 = arith.constant 3 : i32
    %176 = vector.broadcast %c3_i32_52 : i32 to vector<1x1024xi32>
    %177 = arith.addi %24, %176 : vector<1x1024xi32>
    %c128_i32_53 = arith.constant 128 : i32
    %178 = vector.broadcast %c128_i32_53 : i32 to vector<1x1024xi32>
    %179 = arith.cmpi slt, %177, %178 : vector<1x1024xi32>
    %180 = arith.andi %175, %179 : vector<1x1024xi1>
    %cst_54 = arith.constant 0.000000e+00 : f32
    %181 = vector.shape_cast %180 : vector<1x1024xi1> to vector<1x1024xi1>
    %182 = vector.broadcast %181 : vector<1x1024xi1> to vector<16x1024xi1>
    %183 = vector.broadcast %cst_54 : f32 to vector<16x1024xf32>
    %184 = arith.select %182, %171, %183 : vector<16x1024xi1>, vector<16x1024xf32>
    %185 = vector.extract_strided_slice %25 {offsets = [0, 7], sizes = [16, 1], strides = [1, 1]} : vector<16x8xf32> to vector<16x1xf32>
    %186 = vector.broadcast %185 : vector<16x1xf32> to vector<16x1024xf32>
    %187 = arith.mulf %186, %184 : vector<16x1024xf32>
    %188 = arith.addf %170, %187 : vector<16x1024xf32>
    %cst_55 = arith.constant 0.000000e+00 : f32
    %189 = vector.broadcast %cst_55 : f32 to vector<16x1024xf32>
    %cst_56 = arith.constant 0.000000e+00 : f32
    %190 = vector.broadcast %cst_56 : f32 to vector<1x1024xf32>
    %191 = vector.broadcast %27 : vector<16x1xf32> to vector<16x1024xf32>
    %192 = arith.addf %188, %191 : vector<16x1024xf32>
    %193 = vector.extract_strided_slice %29 {offsets = [0, 0], sizes = [16, 16], strides = [1, 1]} : vector<32x16xf32> to vector<16x16xf32>
    %cst_57 = arith.constant dense<0.000000e+00> : vector<16x1024xf32>
    %194 = tpu.matmul %193, %192, %cst_57 {dimension_numbers = #tpu.dot_dimension_numbers<[0], [0], [1], [1], [0, 1, 1, 1], [], []>} : vector<16x16xf32>, vector<16x1024xf32>, vector<16x1024xf32> -> vector<16x1024xf32>
    %195 = arith.addf %189, %194 : vector<16x1024xf32>
    %196 = arith.mulf %192, %192 : vector<16x1024xf32>
    %cst_58 = arith.constant dense<0.000000e+00> : vector<1024xf32>
    %197 = vector.multi_reduction <add>, %196, %cst_58 [0] : vector<16x1024xf32> to vector<1024xf32>
    %198 = vector.shape_cast %197 : vector<1024xf32> to vector<1x1024xf32>
    %199 = arith.addf %190, %198 : vector<1x1024xf32>
    %200 = vector.broadcast %28 : vector<16x1xf32> to vector<16x1024xf32>
    %201 = arith.addf %152, %200 : vector<16x1024xf32>
    %202 = vector.extract_strided_slice %29 {offsets = [16, 0], sizes = [16, 16], strides = [1, 1]} : vector<32x16xf32> to vector<16x16xf32>
    %cst_59 = arith.constant dense<0.000000e+00> : vector<16x1024xf32>
    %203 = tpu.matmul %202, %201, %cst_59 {dimension_numbers = #tpu.dot_dimension_numbers<[0], [0], [1], [1], [0, 1, 1, 1], [], []>} : vector<16x16xf32>, vector<16x1024xf32>, vector<16x1024xf32> -> vector<16x1024xf32>
    %204 = arith.addf %195, %203 : vector<16x1024xf32>
    %205 = arith.mulf %201, %201 : vector<16x1024xf32>
    %cst_60 = arith.constant dense<0.000000e+00> : vector<1024xf32>
    %206 = vector.multi_reduction <add>, %205, %cst_60 [0] : vector<16x1024xf32> to vector<1024xf32>
    %207 = vector.shape_cast %206 : vector<1024xf32> to vector<1x1024xf32>
    %208 = arith.addf %199, %207 : vector<1x1024xf32>
    %209 = vector.extract_strided_slice %204 {offsets = [0, 0], sizes = [16, 128], strides = [1, 1]} : vector<16x1024xf32> to vector<16x128xf32>
    %cst_61 = arith.constant dense<0.000000e+00> : vector<16x16xf32>
    %210 = tpu.matmul %209, %209, %cst_61 {dimension_numbers = #tpu.dot_dimension_numbers<[1], [1], [0], [0], [0, 0, 1, 0], [], []>} : vector<16x128xf32>, vector<16x128xf32>, vector<16x16xf32> -> vector<16x16xf32>
    %211 = vector.extract_strided_slice %208 {offsets = [0, 0], sizes = [1, 128], strides = [1, 1]} : vector<1x1024xf32> to vector<1x128xf32>
    %212 = vector.shape_cast %211 : vector<1x128xf32> to vector<1x1x128xf32>
    %cst_62 = arith.constant dense<0.000000e+00> : vector<1xf32>
    %213 = vector.multi_reduction <add>, %212, %cst_62 [1, 2] : vector<1x1x128xf32> to vector<1xf32>
    %214 = vector.shape_cast %213 : vector<1xf32> to vector<1x1x1xf32>
    %215 = vector.extract %214[0, 0, 0] : f32 from vector<1x1x1xf32>
    %216 = vector.extract_strided_slice %5 {offsets = [0, 124], sizes = [16, 4], strides = [1, 1]} : vector<16x1024xf32> to vector<16x4xf32>
    %217 = vector.extract_strided_slice %25 {offsets = [0, 0], sizes = [16, 4], strides = [1, 1]} : vector<16x8xf32> to vector<16x4xf32>
    %218 = arith.mulf %217, %216 : vector<16x4xf32>
    %cst_63 = arith.constant dense<0.000000e+00> : vector<16xf32>
    %219 = vector.multi_reduction <add>, %218, %cst_63 [1] : vector<16x4xf32> to vector<16xf32>
    %220 = vector.shape_cast %219 : vector<16xf32> to vector<16x1xf32>
    %221 = arith.addf %220, %27 : vector<16x1xf32>
    %222 = vector.extract_strided_slice %5 {offsets = [0, 126], sizes = [16, 2], strides = [1, 1]} : vector<16x1024xf32> to vector<16x2xf32>
    %223 = vector.extract_strided_slice %26 {offsets = [0, 0], sizes = [16, 2], strides = [1, 1]} : vector<16x4xf32> to vector<16x2xf32>
    %224 = arith.mulf %223, %222 : vector<16x2xf32>
    %cst_64 = arith.constant dense<0.000000e+00> : vector<16xf32>
    %225 = vector.multi_reduction <add>, %224, %cst_64 [1] : vector<16x2xf32> to vector<16xf32>
    %226 = vector.shape_cast %225 : vector<16xf32> to vector<16x1xf32>
    %227 = arith.addf %226, %28 : vector<16x1xf32>
    %228 = tpu.concatenate %221, %227 in 0 : vector<16x1xf32>, vector<16x1xf32> -> vector<32x1xf32>
    %cst_65 = arith.constant dense<0.000000e+00> : vector<16x1xf32>
    %229 = tpu.matmul %29, %228, %cst_65 {dimension_numbers = #tpu.dot_dimension_numbers<[0], [0], [1], [1], [0, 1, 1, 1], [], []>} : vector<32x16xf32>, vector<32x1xf32>, vector<16x1xf32> -> vector<16x1xf32>
    %cst_66 = arith.constant dense<0.000000e+00> : vector<16x16xf32>
    %230 = tpu.matmul %229, %229, %cst_66 {dimension_numbers = #tpu.dot_dimension_numbers<[1], [1], [0], [0], [0, 0, 1, 0], [], []>} : vector<16x1xf32>, vector<16x1xf32>, vector<16x16xf32> -> vector<16x16xf32>
    %231 = arith.addf %210, %230 : vector<16x16xf32>
    %232 = arith.mulf %228, %228 : vector<32x1xf32>
    %233 = vector.shape_cast %232 : vector<32x1xf32> to vector<1x32x1xf32>
    %cst_67 = arith.constant dense<0.000000e+00> : vector<1xf32>
    %234 = vector.multi_reduction <add>, %233, %cst_67 [1, 2] : vector<1x32x1xf32> to vector<1xf32>
    %235 = vector.shape_cast %234 : vector<1xf32> to vector<1x1x1xf32>
    %236 = vector.extract %235[0, 0, 0] : f32 from vector<1x1x1xf32>
    %237 = arith.addf %215, %236 : f32
    %cst_68 = arith.constant 0.00748031493 : f32
    %238 = vector.broadcast %cst_68 : f32 to vector<16x16xf32>
    %239 = arith.mulf %238, %231 : vector<16x16xf32>
    %cst_69 = arith.constant 1.23031496E-5 : f32
    %240 = arith.mulf %cst_69, %237 : f32
    %241 = vector.broadcast %240 : f32 to vector<16x16xf32>
    %242 = arith.mulf %241, %30 : vector<16x16xf32>
    %243 = arith.addf %239, %242 : vector<16x16xf32>
    %244 = vector.extract_strided_slice %204 {offsets = [0, 128], sizes = [16, 128], strides = [1, 1]} : vector<16x1024xf32> to vector<16x128xf32>
    %cst_70 = arith.constant dense<0.000000e+00> : vector<16x16xf32>
    %245 = tpu.matmul %244, %244, %cst_70 {dimension_numbers = #tpu.dot_dimension_numbers<[1], [1], [0], [0], [0, 0, 1, 0], [], []>} : vector<16x128xf32>, vector<16x128xf32>, vector<16x16xf32> -> vector<16x16xf32>
    %246 = vector.extract_strided_slice %208 {offsets = [0, 128], sizes = [1, 128], strides = [1, 1]} : vector<1x1024xf32> to vector<1x128xf32>
    %247 = vector.shape_cast %246 : vector<1x128xf32> to vector<1x1x128xf32>
    %cst_71 = arith.constant dense<0.000000e+00> : vector<1xf32>
    %248 = vector.multi_reduction <add>, %247, %cst_71 [1, 2] : vector<1x1x128xf32> to vector<1xf32>
    %249 = vector.shape_cast %248 : vector<1xf32> to vector<1x1x1xf32>
    %250 = vector.extract %249[0, 0, 0] : f32 from vector<1x1x1xf32>
    %251 = vector.extract_strided_slice %5 {offsets = [0, 252], sizes = [16, 4], strides = [1, 1]} : vector<16x1024xf32> to vector<16x4xf32>
    %252 = vector.extract_strided_slice %25 {offsets = [0, 0], sizes = [16, 4], strides = [1, 1]} : vector<16x8xf32> to vector<16x4xf32>
    %253 = arith.mulf %252, %251 : vector<16x4xf32>
    %cst_72 = arith.constant dense<0.000000e+00> : vector<16xf32>
    %254 = vector.multi_reduction <add>, %253, %cst_72 [1] : vector<16x4xf32> to vector<16xf32>
    %255 = vector.shape_cast %254 : vector<16xf32> to vector<16x1xf32>
    %256 = arith.addf %255, %27 : vector<16x1xf32>
    %257 = vector.extract_strided_slice %5 {offsets = [0, 254], sizes = [16, 2], strides = [1, 1]} : vector<16x1024xf32> to vector<16x2xf32>
    %258 = vector.extract_strided_slice %26 {offsets = [0, 0], sizes = [16, 2], strides = [1, 1]} : vector<16x4xf32> to vector<16x2xf32>
    %259 = arith.mulf %258, %257 : vector<16x2xf32>
    %cst_73 = arith.constant dense<0.000000e+00> : vector<16xf32>
    %260 = vector.multi_reduction <add>, %259, %cst_73 [1] : vector<16x2xf32> to vector<16xf32>
    %261 = vector.shape_cast %260 : vector<16xf32> to vector<16x1xf32>
    %262 = arith.addf %261, %28 : vector<16x1xf32>
    %263 = tpu.concatenate %256, %262 in 0 : vector<16x1xf32>, vector<16x1xf32> -> vector<32x1xf32>
    %cst_74 = arith.constant dense<0.000000e+00> : vector<16x1xf32>
    %264 = tpu.matmul %29, %263, %cst_74 {dimension_numbers = #tpu.dot_dimension_numbers<[0], [0], [1], [1], [0, 1, 1, 1], [], []>} : vector<32x16xf32>, vector<32x1xf32>, vector<16x1xf32> -> vector<16x1xf32>
    %cst_75 = arith.constant dense<0.000000e+00> : vector<16x16xf32>
    %265 = tpu.matmul %264, %264, %cst_75 {dimension_numbers = #tpu.dot_dimension_numbers<[1], [1], [0], [0], [0, 0, 1, 0], [], []>} : vector<16x1xf32>, vector<16x1xf32>, vector<16x16xf32> -> vector<16x16xf32>
    %266 = arith.addf %245, %265 : vector<16x16xf32>
    %267 = arith.mulf %263, %263 : vector<32x1xf32>
    %268 = vector.shape_cast %267 : vector<32x1xf32> to vector<1x32x1xf32>
    %cst_76 = arith.constant dense<0.000000e+00> : vector<1xf32>
    %269 = vector.multi_reduction <add>, %268, %cst_76 [1, 2] : vector<1x32x1xf32> to vector<1xf32>
    %270 = vector.shape_cast %269 : vector<1xf32> to vector<1x1x1xf32>
    %271 = vector.extract %270[0, 0, 0] : f32 from vector<1x1x1xf32>
    %272 = arith.addf %250, %271 : f32
    %cst_77 = arith.constant 0.00748031493 : f32
    %273 = vector.broadcast %cst_77 : f32 to vector<16x16xf32>
    %274 = arith.mulf %273, %266 : vector<16x16xf32>
    %cst_78 = arith.constant 1.23031496E-5 : f32
    %275 = arith.mulf %cst_78, %272 : f32
    %276 = vector.broadcast %275 : f32 to vector<16x16xf32>
    %277 = arith.mulf %276, %30 : vector<16x16xf32>
    %278 = arith.addf %274, %277 : vector<16x16xf32>
    %279 = vector.extract_strided_slice %204 {offsets = [0, 256], sizes = [16, 128], strides = [1, 1]} : vector<16x1024xf32> to vector<16x128xf32>
    %cst_79 = arith.constant dense<0.000000e+00> : vector<16x16xf32>
    %280 = tpu.matmul %279, %279, %cst_79 {dimension_numbers = #tpu.dot_dimension_numbers<[1], [1], [0], [0], [0, 0, 1, 0], [], []>} : vector<16x128xf32>, vector<16x128xf32>, vector<16x16xf32> -> vector<16x16xf32>
    %281 = vector.extract_strided_slice %208 {offsets = [0, 256], sizes = [1, 128], strides = [1, 1]} : vector<1x1024xf32> to vector<1x128xf32>
    %282 = vector.shape_cast %281 : vector<1x128xf32> to vector<1x1x128xf32>
    %cst_80 = arith.constant dense<0.000000e+00> : vector<1xf32>
    %283 = vector.multi_reduction <add>, %282, %cst_80 [1, 2] : vector<1x1x128xf32> to vector<1xf32>
    %284 = vector.shape_cast %283 : vector<1xf32> to vector<1x1x1xf32>
    %285 = vector.extract %284[0, 0, 0] : f32 from vector<1x1x1xf32>
    %286 = vector.extract_strided_slice %5 {offsets = [0, 380], sizes = [16, 4], strides = [1, 1]} : vector<16x1024xf32> to vector<16x4xf32>
    %287 = vector.extract_strided_slice %25 {offsets = [0, 0], sizes = [16, 4], strides = [1, 1]} : vector<16x8xf32> to vector<16x4xf32>
    %288 = arith.mulf %287, %286 : vector<16x4xf32>
    %cst_81 = arith.constant dense<0.000000e+00> : vector<16xf32>
    %289 = vector.multi_reduction <add>, %288, %cst_81 [1] : vector<16x4xf32> to vector<16xf32>
    %290 = vector.shape_cast %289 : vector<16xf32> to vector<16x1xf32>
    %291 = arith.addf %290, %27 : vector<16x1xf32>
    %292 = vector.extract_strided_slice %5 {offsets = [0, 382], sizes = [16, 2], strides = [1, 1]} : vector<16x1024xf32> to vector<16x2xf32>
    %293 = vector.extract_strided_slice %26 {offsets = [0, 0], sizes = [16, 2], strides = [1, 1]} : vector<16x4xf32> to vector<16x2xf32>
    %294 = arith.mulf %293, %292 : vector<16x2xf32>
    %cst_82 = arith.constant dense<0.000000e+00> : vector<16xf32>
    %295 = vector.multi_reduction <add>, %294, %cst_82 [1] : vector<16x2xf32> to vector<16xf32>
    %296 = vector.shape_cast %295 : vector<16xf32> to vector<16x1xf32>
    %297 = arith.addf %296, %28 : vector<16x1xf32>
    %298 = tpu.concatenate %291, %297 in 0 : vector<16x1xf32>, vector<16x1xf32> -> vector<32x1xf32>
    %cst_83 = arith.constant dense<0.000000e+00> : vector<16x1xf32>
    %299 = tpu.matmul %29, %298, %cst_83 {dimension_numbers = #tpu.dot_dimension_numbers<[0], [0], [1], [1], [0, 1, 1, 1], [], []>} : vector<32x16xf32>, vector<32x1xf32>, vector<16x1xf32> -> vector<16x1xf32>
    %cst_84 = arith.constant dense<0.000000e+00> : vector<16x16xf32>
    %300 = tpu.matmul %299, %299, %cst_84 {dimension_numbers = #tpu.dot_dimension_numbers<[1], [1], [0], [0], [0, 0, 1, 0], [], []>} : vector<16x1xf32>, vector<16x1xf32>, vector<16x16xf32> -> vector<16x16xf32>
    %301 = arith.addf %280, %300 : vector<16x16xf32>
    %302 = arith.mulf %298, %298 : vector<32x1xf32>
    %303 = vector.shape_cast %302 : vector<32x1xf32> to vector<1x32x1xf32>
    %cst_85 = arith.constant dense<0.000000e+00> : vector<1xf32>
    %304 = vector.multi_reduction <add>, %303, %cst_85 [1, 2] : vector<1x32x1xf32> to vector<1xf32>
    %305 = vector.shape_cast %304 : vector<1xf32> to vector<1x1x1xf32>
    %306 = vector.extract %305[0, 0, 0] : f32 from vector<1x1x1xf32>
    %307 = arith.addf %285, %306 : f32
    %cst_86 = arith.constant 0.00748031493 : f32
    %308 = vector.broadcast %cst_86 : f32 to vector<16x16xf32>
    %309 = arith.mulf %308, %301 : vector<16x16xf32>
    %cst_87 = arith.constant 1.23031496E-5 : f32
    %310 = arith.mulf %cst_87, %307 : f32
    %311 = vector.broadcast %310 : f32 to vector<16x16xf32>
    %312 = arith.mulf %311, %30 : vector<16x16xf32>
    %313 = arith.addf %309, %312 : vector<16x16xf32>
    %314 = vector.extract_strided_slice %204 {offsets = [0, 384], sizes = [16, 128], strides = [1, 1]} : vector<16x1024xf32> to vector<16x128xf32>
    %cst_88 = arith.constant dense<0.000000e+00> : vector<16x16xf32>
    %315 = tpu.matmul %314, %314, %cst_88 {dimension_numbers = #tpu.dot_dimension_numbers<[1], [1], [0], [0], [0, 0, 1, 0], [], []>} : vector<16x128xf32>, vector<16x128xf32>, vector<16x16xf32> -> vector<16x16xf32>
    %316 = vector.extract_strided_slice %208 {offsets = [0, 384], sizes = [1, 128], strides = [1, 1]} : vector<1x1024xf32> to vector<1x128xf32>
    %317 = vector.shape_cast %316 : vector<1x128xf32> to vector<1x1x128xf32>
    %cst_89 = arith.constant dense<0.000000e+00> : vector<1xf32>
    %318 = vector.multi_reduction <add>, %317, %cst_89 [1, 2] : vector<1x1x128xf32> to vector<1xf32>
    %319 = vector.shape_cast %318 : vector<1xf32> to vector<1x1x1xf32>
    %320 = vector.extract %319[0, 0, 0] : f32 from vector<1x1x1xf32>
    %321 = vector.extract_strided_slice %5 {offsets = [0, 508], sizes = [16, 4], strides = [1, 1]} : vector<16x1024xf32> to vector<16x4xf32>
    %322 = vector.extract_strided_slice %25 {offsets = [0, 0], sizes = [16, 4], strides = [1, 1]} : vector<16x8xf32> to vector<16x4xf32>
    %323 = arith.mulf %322, %321 : vector<16x4xf32>
    %cst_90 = arith.constant dense<0.000000e+00> : vector<16xf32>
    %324 = vector.multi_reduction <add>, %323, %cst_90 [1] : vector<16x4xf32> to vector<16xf32>
    %325 = vector.shape_cast %324 : vector<16xf32> to vector<16x1xf32>
    %326 = arith.addf %325, %27 : vector<16x1xf32>
    %327 = vector.extract_strided_slice %5 {offsets = [0, 510], sizes = [16, 2], strides = [1, 1]} : vector<16x1024xf32> to vector<16x2xf32>
    %328 = vector.extract_strided_slice %26 {offsets = [0, 0], sizes = [16, 2], strides = [1, 1]} : vector<16x4xf32> to vector<16x2xf32>
    %329 = arith.mulf %328, %327 : vector<16x2xf32>
    %cst_91 = arith.constant dense<0.000000e+00> : vector<16xf32>
    %330 = vector.multi_reduction <add>, %329, %cst_91 [1] : vector<16x2xf32> to vector<16xf32>
    %331 = vector.shape_cast %330 : vector<16xf32> to vector<16x1xf32>
    %332 = arith.addf %331, %28 : vector<16x1xf32>
    %333 = tpu.concatenate %326, %332 in 0 : vector<16x1xf32>, vector<16x1xf32> -> vector<32x1xf32>
    %cst_92 = arith.constant dense<0.000000e+00> : vector<16x1xf32>
    %334 = tpu.matmul %29, %333, %cst_92 {dimension_numbers = #tpu.dot_dimension_numbers<[0], [0], [1], [1], [0, 1, 1, 1], [], []>} : vector<32x16xf32>, vector<32x1xf32>, vector<16x1xf32> -> vector<16x1xf32>
    %cst_93 = arith.constant dense<0.000000e+00> : vector<16x16xf32>
    %335 = tpu.matmul %334, %334, %cst_93 {dimension_numbers = #tpu.dot_dimension_numbers<[1], [1], [0], [0], [0, 0, 1, 0], [], []>} : vector<16x1xf32>, vector<16x1xf32>, vector<16x16xf32> -> vector<16x16xf32>
    %336 = arith.addf %315, %335 : vector<16x16xf32>
    %337 = arith.mulf %333, %333 : vector<32x1xf32>
    %338 = vector.shape_cast %337 : vector<32x1xf32> to vector<1x32x1xf32>
    %cst_94 = arith.constant dense<0.000000e+00> : vector<1xf32>
    %339 = vector.multi_reduction <add>, %338, %cst_94 [1, 2] : vector<1x32x1xf32> to vector<1xf32>
    %340 = vector.shape_cast %339 : vector<1xf32> to vector<1x1x1xf32>
    %341 = vector.extract %340[0, 0, 0] : f32 from vector<1x1x1xf32>
    %342 = arith.addf %320, %341 : f32
    %cst_95 = arith.constant 0.00748031493 : f32
    %343 = vector.broadcast %cst_95 : f32 to vector<16x16xf32>
    %344 = arith.mulf %343, %336 : vector<16x16xf32>
    %cst_96 = arith.constant 1.23031496E-5 : f32
    %345 = arith.mulf %cst_96, %342 : f32
    %346 = vector.broadcast %345 : f32 to vector<16x16xf32>
    %347 = arith.mulf %346, %30 : vector<16x16xf32>
    %348 = arith.addf %344, %347 : vector<16x16xf32>
    %349 = vector.extract_strided_slice %204 {offsets = [0, 512], sizes = [16, 128], strides = [1, 1]} : vector<16x1024xf32> to vector<16x128xf32>
    %cst_97 = arith.constant dense<0.000000e+00> : vector<16x16xf32>
    %350 = tpu.matmul %349, %349, %cst_97 {dimension_numbers = #tpu.dot_dimension_numbers<[1], [1], [0], [0], [0, 0, 1, 0], [], []>} : vector<16x128xf32>, vector<16x128xf32>, vector<16x16xf32> -> vector<16x16xf32>
    %351 = vector.extract_strided_slice %208 {offsets = [0, 512], sizes = [1, 128], strides = [1, 1]} : vector<1x1024xf32> to vector<1x128xf32>
    %352 = vector.shape_cast %351 : vector<1x128xf32> to vector<1x1x128xf32>
    %cst_98 = arith.constant dense<0.000000e+00> : vector<1xf32>
    %353 = vector.multi_reduction <add>, %352, %cst_98 [1, 2] : vector<1x1x128xf32> to vector<1xf32>
    %354 = vector.shape_cast %353 : vector<1xf32> to vector<1x1x1xf32>
    %355 = vector.extract %354[0, 0, 0] : f32 from vector<1x1x1xf32>
    %356 = vector.extract_strided_slice %5 {offsets = [0, 636], sizes = [16, 4], strides = [1, 1]} : vector<16x1024xf32> to vector<16x4xf32>
    %357 = vector.extract_strided_slice %25 {offsets = [0, 0], sizes = [16, 4], strides = [1, 1]} : vector<16x8xf32> to vector<16x4xf32>
    %358 = arith.mulf %357, %356 : vector<16x4xf32>
    %cst_99 = arith.constant dense<0.000000e+00> : vector<16xf32>
    %359 = vector.multi_reduction <add>, %358, %cst_99 [1] : vector<16x4xf32> to vector<16xf32>
    %360 = vector.shape_cast %359 : vector<16xf32> to vector<16x1xf32>
    %361 = arith.addf %360, %27 : vector<16x1xf32>
    %362 = vector.extract_strided_slice %5 {offsets = [0, 638], sizes = [16, 2], strides = [1, 1]} : vector<16x1024xf32> to vector<16x2xf32>
    %363 = vector.extract_strided_slice %26 {offsets = [0, 0], sizes = [16, 2], strides = [1, 1]} : vector<16x4xf32> to vector<16x2xf32>
    %364 = arith.mulf %363, %362 : vector<16x2xf32>
    %cst_100 = arith.constant dense<0.000000e+00> : vector<16xf32>
    %365 = vector.multi_reduction <add>, %364, %cst_100 [1] : vector<16x2xf32> to vector<16xf32>
    %366 = vector.shape_cast %365 : vector<16xf32> to vector<16x1xf32>
    %367 = arith.addf %366, %28 : vector<16x1xf32>
    %368 = tpu.concatenate %361, %367 in 0 : vector<16x1xf32>, vector<16x1xf32> -> vector<32x1xf32>
    %cst_101 = arith.constant dense<0.000000e+00> : vector<16x1xf32>
    %369 = tpu.matmul %29, %368, %cst_101 {dimension_numbers = #tpu.dot_dimension_numbers<[0], [0], [1], [1], [0, 1, 1, 1], [], []>} : vector<32x16xf32>, vector<32x1xf32>, vector<16x1xf32> -> vector<16x1xf32>
    %cst_102 = arith.constant dense<0.000000e+00> : vector<16x16xf32>
    %370 = tpu.matmul %369, %369, %cst_102 {dimension_numbers = #tpu.dot_dimension_numbers<[1], [1], [0], [0], [0, 0, 1, 0], [], []>} : vector<16x1xf32>, vector<16x1xf32>, vector<16x16xf32> -> vector<16x16xf32>
    %371 = arith.addf %350, %370 : vector<16x16xf32>
    %372 = arith.mulf %368, %368 : vector<32x1xf32>
    %373 = vector.shape_cast %372 : vector<32x1xf32> to vector<1x32x1xf32>
    %cst_103 = arith.constant dense<0.000000e+00> : vector<1xf32>
    %374 = vector.multi_reduction <add>, %373, %cst_103 [1, 2] : vector<1x32x1xf32> to vector<1xf32>
    %375 = vector.shape_cast %374 : vector<1xf32> to vector<1x1x1xf32>
    %376 = vector.extract %375[0, 0, 0] : f32 from vector<1x1x1xf32>
    %377 = arith.addf %355, %376 : f32
    %cst_104 = arith.constant 0.00748031493 : f32
    %378 = vector.broadcast %cst_104 : f32 to vector<16x16xf32>
    %379 = arith.mulf %378, %371 : vector<16x16xf32>
    %cst_105 = arith.constant 1.23031496E-5 : f32
    %380 = arith.mulf %cst_105, %377 : f32
    %381 = vector.broadcast %380 : f32 to vector<16x16xf32>
    %382 = arith.mulf %381, %30 : vector<16x16xf32>
    %383 = arith.addf %379, %382 : vector<16x16xf32>
    %384 = vector.extract_strided_slice %204 {offsets = [0, 640], sizes = [16, 128], strides = [1, 1]} : vector<16x1024xf32> to vector<16x128xf32>
    %cst_106 = arith.constant dense<0.000000e+00> : vector<16x16xf32>
    %385 = tpu.matmul %384, %384, %cst_106 {dimension_numbers = #tpu.dot_dimension_numbers<[1], [1], [0], [0], [0, 0, 1, 0], [], []>} : vector<16x128xf32>, vector<16x128xf32>, vector<16x16xf32> -> vector<16x16xf32>
    %386 = vector.extract_strided_slice %208 {offsets = [0, 640], sizes = [1, 128], strides = [1, 1]} : vector<1x1024xf32> to vector<1x128xf32>
    %387 = vector.shape_cast %386 : vector<1x128xf32> to vector<1x1x128xf32>
    %cst_107 = arith.constant dense<0.000000e+00> : vector<1xf32>
    %388 = vector.multi_reduction <add>, %387, %cst_107 [1, 2] : vector<1x1x128xf32> to vector<1xf32>
    %389 = vector.shape_cast %388 : vector<1xf32> to vector<1x1x1xf32>
    %390 = vector.extract %389[0, 0, 0] : f32 from vector<1x1x1xf32>
    %391 = vector.extract_strided_slice %5 {offsets = [0, 764], sizes = [16, 4], strides = [1, 1]} : vector<16x1024xf32> to vector<16x4xf32>
    %392 = vector.extract_strided_slice %25 {offsets = [0, 0], sizes = [16, 4], strides = [1, 1]} : vector<16x8xf32> to vector<16x4xf32>
    %393 = arith.mulf %392, %391 : vector<16x4xf32>
    %cst_108 = arith.constant dense<0.000000e+00> : vector<16xf32>
    %394 = vector.multi_reduction <add>, %393, %cst_108 [1] : vector<16x4xf32> to vector<16xf32>
    %395 = vector.shape_cast %394 : vector<16xf32> to vector<16x1xf32>
    %396 = arith.addf %395, %27 : vector<16x1xf32>
    %397 = vector.extract_strided_slice %5 {offsets = [0, 766], sizes = [16, 2], strides = [1, 1]} : vector<16x1024xf32> to vector<16x2xf32>
    %398 = vector.extract_strided_slice %26 {offsets = [0, 0], sizes = [16, 2], strides = [1, 1]} : vector<16x4xf32> to vector<16x2xf32>
    %399 = arith.mulf %398, %397 : vector<16x2xf32>
    %cst_109 = arith.constant dense<0.000000e+00> : vector<16xf32>
    %400 = vector.multi_reduction <add>, %399, %cst_109 [1] : vector<16x2xf32> to vector<16xf32>
    %401 = vector.shape_cast %400 : vector<16xf32> to vector<16x1xf32>
    %402 = arith.addf %401, %28 : vector<16x1xf32>
    %403 = tpu.concatenate %396, %402 in 0 : vector<16x1xf32>, vector<16x1xf32> -> vector<32x1xf32>
    %cst_110 = arith.constant dense<0.000000e+00> : vector<16x1xf32>
    %404 = tpu.matmul %29, %403, %cst_110 {dimension_numbers = #tpu.dot_dimension_numbers<[0], [0], [1], [1], [0, 1, 1, 1], [], []>} : vector<32x16xf32>, vector<32x1xf32>, vector<16x1xf32> -> vector<16x1xf32>
    %cst_111 = arith.constant dense<0.000000e+00> : vector<16x16xf32>
    %405 = tpu.matmul %404, %404, %cst_111 {dimension_numbers = #tpu.dot_dimension_numbers<[1], [1], [0], [0], [0, 0, 1, 0], [], []>} : vector<16x1xf32>, vector<16x1xf32>, vector<16x16xf32> -> vector<16x16xf32>
    %406 = arith.addf %385, %405 : vector<16x16xf32>
    %407 = arith.mulf %403, %403 : vector<32x1xf32>
    %408 = vector.shape_cast %407 : vector<32x1xf32> to vector<1x32x1xf32>
    %cst_112 = arith.constant dense<0.000000e+00> : vector<1xf32>
    %409 = vector.multi_reduction <add>, %408, %cst_112 [1, 2] : vector<1x32x1xf32> to vector<1xf32>
    %410 = vector.shape_cast %409 : vector<1xf32> to vector<1x1x1xf32>
    %411 = vector.extract %410[0, 0, 0] : f32 from vector<1x1x1xf32>
    %412 = arith.addf %390, %411 : f32
    %cst_113 = arith.constant 0.00748031493 : f32
    %413 = vector.broadcast %cst_113 : f32 to vector<16x16xf32>
    %414 = arith.mulf %413, %406 : vector<16x16xf32>
    %cst_114 = arith.constant 1.23031496E-5 : f32
    %415 = arith.mulf %cst_114, %412 : f32
    %416 = vector.broadcast %415 : f32 to vector<16x16xf32>
    %417 = arith.mulf %416, %30 : vector<16x16xf32>
    %418 = arith.addf %414, %417 : vector<16x16xf32>
    %419 = vector.extract_strided_slice %204 {offsets = [0, 768], sizes = [16, 128], strides = [1, 1]} : vector<16x1024xf32> to vector<16x128xf32>
    %cst_115 = arith.constant dense<0.000000e+00> : vector<16x16xf32>
    %420 = tpu.matmul %419, %419, %cst_115 {dimension_numbers = #tpu.dot_dimension_numbers<[1], [1], [0], [0], [0, 0, 1, 0], [], []>} : vector<16x128xf32>, vector<16x128xf32>, vector<16x16xf32> -> vector<16x16xf32>
    %421 = vector.extract_strided_slice %208 {offsets = [0, 768], sizes = [1, 128], strides = [1, 1]} : vector<1x1024xf32> to vector<1x128xf32>
    %422 = vector.shape_cast %421 : vector<1x128xf32> to vector<1x1x128xf32>
    %cst_116 = arith.constant dense<0.000000e+00> : vector<1xf32>
    %423 = vector.multi_reduction <add>, %422, %cst_116 [1, 2] : vector<1x1x128xf32> to vector<1xf32>
    %424 = vector.shape_cast %423 : vector<1xf32> to vector<1x1x1xf32>
    %425 = vector.extract %424[0, 0, 0] : f32 from vector<1x1x1xf32>
    %426 = vector.extract_strided_slice %5 {offsets = [0, 892], sizes = [16, 4], strides = [1, 1]} : vector<16x1024xf32> to vector<16x4xf32>
    %427 = vector.extract_strided_slice %25 {offsets = [0, 0], sizes = [16, 4], strides = [1, 1]} : vector<16x8xf32> to vector<16x4xf32>
    %428 = arith.mulf %427, %426 : vector<16x4xf32>
    %cst_117 = arith.constant dense<0.000000e+00> : vector<16xf32>
    %429 = vector.multi_reduction <add>, %428, %cst_117 [1] : vector<16x4xf32> to vector<16xf32>
    %430 = vector.shape_cast %429 : vector<16xf32> to vector<16x1xf32>
    %431 = arith.addf %430, %27 : vector<16x1xf32>
    %432 = vector.extract_strided_slice %5 {offsets = [0, 894], sizes = [16, 2], strides = [1, 1]} : vector<16x1024xf32> to vector<16x2xf32>
    %433 = vector.extract_strided_slice %26 {offsets = [0, 0], sizes = [16, 2], strides = [1, 1]} : vector<16x4xf32> to vector<16x2xf32>
    %434 = arith.mulf %433, %432 : vector<16x2xf32>
    %cst_118 = arith.constant dense<0.000000e+00> : vector<16xf32>
    %435 = vector.multi_reduction <add>, %434, %cst_118 [1] : vector<16x2xf32> to vector<16xf32>
    %436 = vector.shape_cast %435 : vector<16xf32> to vector<16x1xf32>
    %437 = arith.addf %436, %28 : vector<16x1xf32>
    %438 = tpu.concatenate %431, %437 in 0 : vector<16x1xf32>, vector<16x1xf32> -> vector<32x1xf32>
    %cst_119 = arith.constant dense<0.000000e+00> : vector<16x1xf32>
    %439 = tpu.matmul %29, %438, %cst_119 {dimension_numbers = #tpu.dot_dimension_numbers<[0], [0], [1], [1], [0, 1, 1, 1], [], []>} : vector<32x16xf32>, vector<32x1xf32>, vector<16x1xf32> -> vector<16x1xf32>
    %cst_120 = arith.constant dense<0.000000e+00> : vector<16x16xf32>
    %440 = tpu.matmul %439, %439, %cst_120 {dimension_numbers = #tpu.dot_dimension_numbers<[1], [1], [0], [0], [0, 0, 1, 0], [], []>} : vector<16x1xf32>, vector<16x1xf32>, vector<16x16xf32> -> vector<16x16xf32>
    %441 = arith.addf %420, %440 : vector<16x16xf32>
    %442 = arith.mulf %438, %438 : vector<32x1xf32>
    %443 = vector.shape_cast %442 : vector<32x1xf32> to vector<1x32x1xf32>
    %cst_121 = arith.constant dense<0.000000e+00> : vector<1xf32>
    %444 = vector.multi_reduction <add>, %443, %cst_121 [1, 2] : vector<1x32x1xf32> to vector<1xf32>
    %445 = vector.shape_cast %444 : vector<1xf32> to vector<1x1x1xf32>
    %446 = vector.extract %445[0, 0, 0] : f32 from vector<1x1x1xf32>
    %447 = arith.addf %425, %446 : f32
    %cst_122 = arith.constant 0.00748031493 : f32
    %448 = vector.broadcast %cst_122 : f32 to vector<16x16xf32>
    %449 = arith.mulf %448, %441 : vector<16x16xf32>
    %cst_123 = arith.constant 1.23031496E-5 : f32
    %450 = arith.mulf %cst_123, %447 : f32
    %451 = vector.broadcast %450 : f32 to vector<16x16xf32>
    %452 = arith.mulf %451, %30 : vector<16x16xf32>
    %453 = arith.addf %449, %452 : vector<16x16xf32>
    %454 = vector.extract_strided_slice %204 {offsets = [0, 896], sizes = [16, 128], strides = [1, 1]} : vector<16x1024xf32> to vector<16x128xf32>
    %cst_124 = arith.constant dense<0.000000e+00> : vector<16x16xf32>
    %455 = tpu.matmul %454, %454, %cst_124 {dimension_numbers = #tpu.dot_dimension_numbers<[1], [1], [0], [0], [0, 0, 1, 0], [], []>} : vector<16x128xf32>, vector<16x128xf32>, vector<16x16xf32> -> vector<16x16xf32>
    %456 = vector.extract_strided_slice %208 {offsets = [0, 896], sizes = [1, 128], strides = [1, 1]} : vector<1x1024xf32> to vector<1x128xf32>
    %457 = vector.shape_cast %456 : vector<1x128xf32> to vector<1x1x128xf32>
    %cst_125 = arith.constant dense<0.000000e+00> : vector<1xf32>
    %458 = vector.multi_reduction <add>, %457, %cst_125 [1, 2] : vector<1x1x128xf32> to vector<1xf32>
    %459 = vector.shape_cast %458 : vector<1xf32> to vector<1x1x1xf32>
    %460 = vector.extract %459[0, 0, 0] : f32 from vector<1x1x1xf32>
    %461 = vector.extract_strided_slice %5 {offsets = [0, 1020], sizes = [16, 4], strides = [1, 1]} : vector<16x1024xf32> to vector<16x4xf32>
    %462 = vector.extract_strided_slice %25 {offsets = [0, 0], sizes = [16, 4], strides = [1, 1]} : vector<16x8xf32> to vector<16x4xf32>
    %463 = arith.mulf %462, %461 : vector<16x4xf32>
    %cst_126 = arith.constant dense<0.000000e+00> : vector<16xf32>
    %464 = vector.multi_reduction <add>, %463, %cst_126 [1] : vector<16x4xf32> to vector<16xf32>
    %465 = vector.shape_cast %464 : vector<16xf32> to vector<16x1xf32>
    %466 = arith.addf %465, %27 : vector<16x1xf32>
    %467 = vector.extract_strided_slice %5 {offsets = [0, 1022], sizes = [16, 2], strides = [1, 1]} : vector<16x1024xf32> to vector<16x2xf32>
    %468 = vector.extract_strided_slice %26 {offsets = [0, 0], sizes = [16, 2], strides = [1, 1]} : vector<16x4xf32> to vector<16x2xf32>
    %469 = arith.mulf %468, %467 : vector<16x2xf32>
    %cst_127 = arith.constant dense<0.000000e+00> : vector<16xf32>
    %470 = vector.multi_reduction <add>, %469, %cst_127 [1] : vector<16x2xf32> to vector<16xf32>
    %471 = vector.shape_cast %470 : vector<16xf32> to vector<16x1xf32>
    %472 = arith.addf %471, %28 : vector<16x1xf32>
    %473 = tpu.concatenate %466, %472 in 0 : vector<16x1xf32>, vector<16x1xf32> -> vector<32x1xf32>
    %cst_128 = arith.constant dense<0.000000e+00> : vector<16x1xf32>
    %474 = tpu.matmul %29, %473, %cst_128 {dimension_numbers = #tpu.dot_dimension_numbers<[0], [0], [1], [1], [0, 1, 1, 1], [], []>} : vector<32x16xf32>, vector<32x1xf32>, vector<16x1xf32> -> vector<16x1xf32>
    %cst_129 = arith.constant dense<0.000000e+00> : vector<16x16xf32>
    %475 = tpu.matmul %474, %474, %cst_129 {dimension_numbers = #tpu.dot_dimension_numbers<[1], [1], [0], [0], [0, 0, 1, 0], [], []>} : vector<16x1xf32>, vector<16x1xf32>, vector<16x16xf32> -> vector<16x16xf32>
    %476 = arith.addf %455, %475 : vector<16x16xf32>
    %477 = arith.mulf %473, %473 : vector<32x1xf32>
    %478 = vector.shape_cast %477 : vector<32x1xf32> to vector<1x32x1xf32>
    %cst_130 = arith.constant dense<0.000000e+00> : vector<1xf32>
    %479 = vector.multi_reduction <add>, %478, %cst_130 [1, 2] : vector<1x32x1xf32> to vector<1xf32>
    %480 = vector.shape_cast %479 : vector<1xf32> to vector<1x1x1xf32>
    %481 = vector.extract %480[0, 0, 0] : f32 from vector<1x1x1xf32>
    %482 = arith.addf %460, %481 : f32
    %cst_131 = arith.constant 0.00748031493 : f32
    %483 = vector.broadcast %cst_131 : f32 to vector<16x16xf32>
    %484 = arith.mulf %483, %476 : vector<16x16xf32>
    %cst_132 = arith.constant 1.23031496E-5 : f32
    %485 = arith.mulf %cst_132, %482 : f32
    %486 = vector.broadcast %485 : f32 to vector<16x16xf32>
    %487 = arith.mulf %486, %30 : vector<16x16xf32>
    %488 = arith.addf %484, %487 : vector<16x16xf32>
    %489 = tpu.concatenate %243, %278, %313, %348, %383, %418, %453, %488 in 1 : vector<16x16xf32>, vector<16x16xf32>, vector<16x16xf32>, vector<16x16xf32>, vector<16x16xf32>, vector<16x16xf32>, vector<16x16xf32>, vector<16x16xf32> -> vector<16x128xf32>
    %c0_133 = arith.constant 0 : index
    %c0_134 = arith.constant 0 : index
    %490 = vector.load %arg10[%c0_133, %c0_134] : memref<16x128xf32, #tpu.memory_space<vmem>>, vector<16x128xf32>
    tpu.vector_store %arg10[%c0_133, %c0_134], %489 {strides = array<i32>} : memref<16x128xf32, #tpu.memory_space<vmem>>, vector<16x128xf32>,
    return
  }
  func.func @transform_0(%arg0: i32) -> (i32, i32) {
    %c0_i32 = arith.constant 0 : i32
    %c0_i32_0 = arith.constant 0 : i32
    return %c0_i32, %arg0 : i32, i32
  }
  func.func @transform_1(%arg0: i32) -> (i32, i32) {
    %c0_i32 = arith.constant 0 : i32
    %c0_i32_0 = arith.constant 0 : i32
    %c0_i32_1 = arith.constant 0 : i32
    return %c0_i32, %c0_i32_0 : i32, i32
  }
  func.func @transform_2(%arg0: i32) -> (i32, i32) {
    %c0_i32 = arith.constant 0 : i32
    %c0_i32_0 = arith.constant 0 : i32
    %c0_i32_1 = arith.constant 0 : i32
    return %c0_i32, %c0_i32_0 : i32, i32
  }
  func.func @transform_3(%arg0: i32) -> (i32, i32) {
    %c0_i32 = arith.constant 0 : i32
    %c0_i32_0 = arith.constant 0 : i32
    %c0_i32_1 = arith.constant 0 : i32
    return %c0_i32, %c0_i32_0 : i32, i32
  }
  func.func @transform_4(%arg0: i32) -> (i32, i32) {
    %c0_i32 = arith.constant 0 : i32
    %c0_i32_0 = arith.constant 0 : i32
    %c0_i32_1 = arith.constant 0 : i32
    return %c0_i32, %c0_i32_0 : i32, i32
  }
  func.func @transform_5(%arg0: i32) -> (i32, i32) {
    %c0_i32 = arith.constant 0 : i32
    %c0_i32_0 = arith.constant 0 : i32
    %c0_i32_1 = arith.constant 0 : i32
    return %c0_i32, %c0_i32_0 : i32, i32
  }
  func.func @transform_6(%arg0: i32) -> (i32, i32) {
    %c0_i32 = arith.constant 0 : i32
    %c0_i32_0 = arith.constant 0 : i32
    %c0_i32_1 = arith.constant 0 : i32
    return %c0_i32, %c0_i32_0 : i32, i32
  }
  func.func @transform_7(%arg0: i32) -> (i32, i32) {
    %c0_i32 = arith.constant 0 : i32
    %c0_i32_0 = arith.constant 0 : i32
    %c0_i32_1 = arith.constant 0 : i32
    return %c0_i32, %c0_i32_0 : i32, i32
  }
  func.func @transform_8(%arg0: i32) -> (i32, i32) {
    %c0_i32 = arith.constant 0 : i32
    %c0_i32_0 = arith.constant 0 : i32
    %c0_i32_1 = arith.constant 0 : i32
    return %c0_i32, %c0_i32_0 : i32, i32
  }
  func.func @transform_9(%arg0: i32) -> (i32, i32) {
    %c0_i32 = arith.constant 0 : i32
    %c0_i32_0 = arith.constant 0 : i32
    return %c0_i32, %arg0 : i32, i32
  }
}

module attributes {stable_mosaic.version = 11 : i64} {
  func.func @kernel(%arg0: memref<16x16xf32, #tpu.memory_space<vmem>>, %arg1: memref<16x16x16xf32, #tpu.memory_space<vmem>>, %arg2: memref<4x16x16xf32, #tpu.memory_space<vmem>>, %arg3: memref<1x128xf32, #tpu.memory_space<vmem>>, %arg4: memref<16x128xf32, #tpu.memory_space<vmem>>) attributes {dimension_semantics = [], scalar_prefetch = 0 : i64, scratch_operands = 0 : i64, tpu.core_type = #tpu.core_type<tc>} {
    %c0 = arith.constant 0 : index
    %c0_0 = arith.constant 0 : index
    %0 = vector.load %arg0[%c0, %c0_0] : memref<16x16xf32, #tpu.memory_space<vmem>>, vector<16x16xf32>
    %c0_1 = arith.constant 0 : index
    %c0_2 = arith.constant 0 : index
    %c0_3 = arith.constant 0 : index
    %1 = vector.load %arg1[%c0_1, %c0_2, %c0_3] : memref<16x16x16xf32, #tpu.memory_space<vmem>>, vector<16x16x16xf32>
    %cst = arith.constant 9.99999997E-7 : f32
    %2 = vector.broadcast %cst : f32 to vector<16x16xf32>
    %3 = arith.maximumf %0, %2 : vector<16x16xf32>
    %4 = math.log %3 : vector<16x16xf32>
    %5 = vector.shape_cast %4 : vector<16x16xf32> to vector<16x1x16xf32>
    %6 = vector.broadcast %5 : vector<16x1x16xf32> to vector<16x16x16xf32>
    %7 = arith.mulf %1, %6 : vector<16x16x16xf32>
    %cst_4 = arith.constant dense<0.000000e+00> : vector<16x16x16xf32>
    %8 = tpu.matmul %7, %1, %cst_4 {dimension_numbers = #tpu.dot_dimension_numbers<[2], [2], [1], [1], [0, 0, 0, 1, 1, 1], [0], [0]>} : vector<16x16x16xf32>, vector<16x16x16xf32>, vector<16x16x16xf32> -> vector<16x16x16xf32>
    %c0_5 = arith.constant 0 : index
    %c0_6 = arith.constant 0 : index
    %c0_7 = arith.constant 0 : index
    %9 = vector.load %arg2[%c0_5, %c0_6, %c0_7] : memref<4x16x16xf32, #tpu.memory_space<vmem>>, vector<4x16x16xf32>
    %10 = vector.extract_strided_slice %9 {offsets = [0, 0, 0], sizes = [1, 16, 16], strides = [1, 1, 1]} : vector<4x16x16xf32> to vector<1x16x16xf32>
    %11 = vector.shape_cast %10 : vector<1x16x16xf32> to vector<16x16xf32>
    %12 = vector.shape_cast %11 : vector<16x16xf32> to vector<1x16x16xf32>
    %13 = vector.broadcast %12 : vector<1x16x16xf32> to vector<16x16x16xf32>
    %14 = arith.mulf %8, %13 : vector<16x16x16xf32>
    %cst_8 = arith.constant dense<0.000000e+00> : vector<16x16xf32>
    %15 = vector.multi_reduction <add>, %14, %cst_8 [2] : vector<16x16x16xf32> to vector<16x16xf32>
    %cst_9 = arith.constant dense<0.000000e+00> : vector<16xf32>
    %16 = vector.multi_reduction <add>, %15, %cst_9 [1] : vector<16x16xf32> to vector<16xf32>
    %17 = vector.shape_cast %16 : vector<16xf32> to vector<16x1xf32>
    %18 = vector.extract_strided_slice %9 {offsets = [1, 0, 0], sizes = [1, 16, 16], strides = [1, 1, 1]} : vector<4x16x16xf32> to vector<1x16x16xf32>
    %19 = vector.shape_cast %18 : vector<1x16x16xf32> to vector<16x16xf32>
    %20 = vector.shape_cast %19 : vector<16x16xf32> to vector<1x16x16xf32>
    %21 = vector.broadcast %20 : vector<1x16x16xf32> to vector<16x16x16xf32>
    %22 = arith.mulf %8, %21 : vector<16x16x16xf32>
    %cst_10 = arith.constant dense<0.000000e+00> : vector<16x16xf32>
    %23 = vector.multi_reduction <add>, %22, %cst_10 [2] : vector<16x16x16xf32> to vector<16x16xf32>
    %cst_11 = arith.constant dense<0.000000e+00> : vector<16xf32>
    %24 = vector.multi_reduction <add>, %23, %cst_11 [1] : vector<16x16xf32> to vector<16xf32>
    %25 = vector.shape_cast %24 : vector<16xf32> to vector<16x1xf32>
    %26 = vector.extract_strided_slice %9 {offsets = [2, 0, 0], sizes = [1, 16, 16], strides = [1, 1, 1]} : vector<4x16x16xf32> to vector<1x16x16xf32>
    %27 = vector.shape_cast %26 : vector<1x16x16xf32> to vector<16x16xf32>
    %28 = vector.shape_cast %27 : vector<16x16xf32> to vector<1x16x16xf32>
    %29 = vector.broadcast %28 : vector<1x16x16xf32> to vector<16x16x16xf32>
    %30 = arith.mulf %8, %29 : vector<16x16x16xf32>
    %cst_12 = arith.constant dense<0.000000e+00> : vector<16x16xf32>
    %31 = vector.multi_reduction <add>, %30, %cst_12 [2] : vector<16x16x16xf32> to vector<16x16xf32>
    %cst_13 = arith.constant dense<0.000000e+00> : vector<16xf32>
    %32 = vector.multi_reduction <add>, %31, %cst_13 [1] : vector<16x16xf32> to vector<16xf32>
    %33 = vector.shape_cast %32 : vector<16xf32> to vector<16x1xf32>
    %34 = vector.extract_strided_slice %9 {offsets = [3, 0, 0], sizes = [1, 16, 16], strides = [1, 1, 1]} : vector<4x16x16xf32> to vector<1x16x16xf32>
    %35 = vector.shape_cast %34 : vector<1x16x16xf32> to vector<16x16xf32>
    %36 = vector.shape_cast %35 : vector<16x16xf32> to vector<1x16x16xf32>
    %37 = vector.broadcast %36 : vector<1x16x16xf32> to vector<16x16x16xf32>
    %38 = arith.mulf %8, %37 : vector<16x16x16xf32>
    %cst_14 = arith.constant dense<0.000000e+00> : vector<16x16xf32>
    %39 = vector.multi_reduction <add>, %38, %cst_14 [2] : vector<16x16x16xf32> to vector<16x16xf32>
    %cst_15 = arith.constant dense<0.000000e+00> : vector<16xf32>
    %40 = vector.multi_reduction <add>, %39, %cst_15 [1] : vector<16x16xf32> to vector<16xf32>
    %41 = vector.shape_cast %40 : vector<16xf32> to vector<16x1xf32>
    %cst_16 = arith.constant 0.000000e+00 : f32
    %42 = vector.broadcast %cst_16 : f32 to vector<16x124xf32>
    %43 = tpu.concatenate %17, %25, %33, %41, %42 in 1 : vector<16x1xf32>, vector<16x1xf32>, vector<16x1xf32>, vector<16x1xf32>, vector<16x124xf32> -> vector<16x128xf32>
    %c0_17 = arith.constant 0 : index
    %c0_18 = arith.constant 0 : index
    %44 = vector.load %arg3[%c0_17, %c0_18] : memref<1x128xf32, #tpu.memory_space<vmem>>, vector<1x128xf32>
    %45 = vector.broadcast %44 : vector<1x128xf32> to vector<16x128xf32>
    %46 = arith.addf %43, %45 : vector<16x128xf32>
    %c0_19 = arith.constant 0 : index
    %c0_20 = arith.constant 0 : index
    %47 = vector.load %arg4[%c0_19, %c0_20] : memref<16x128xf32, #tpu.memory_space<vmem>>, vector<16x128xf32>
    tpu.vector_store %arg4[%c0_19, %c0_20], %46 {strides = array<i32>} : memref<16x128xf32, #tpu.memory_space<vmem>>, vector<16x128xf32>,
    return
  }
}

</mosaic_0001>

<bundles_post_ra>
// kernel: custom-call.2
= control target key start
LH: loop header
LB: loop body
LE: loop exit
PB: predicated region body
PF: predicated region fallthrough
CT: control target
= control target key end

     0   :  { %s1662_s30 = smov 0   ;;  %s1664_s10 = smov 0   ;;  %s1971_s0 = inlined_call_operand.vmem [shape: f32[16,8,8], index: 0, kind: input, shape index: {}]   ;;  %s1972_s1 = inlined_call_operand.vmem [shape: f32[16,8,8], index: 1, kind: input, shape index: {}]   ;;  %s1973_s2 = inlined_call_operand.vmem [shape: f32[16,8,8], index: 2, kind: input, shape index: {}]   ;;  %s1974_s3 = inlined_call_operand.vmem [shape: f32[16,8,8], index: 3, kind: input, shape index: {}]   ;;  %s1975_s4 = inlined_call_operand.vmem [shape: f32[16,8], index: 4, kind: output, shape index: {0}]   ;;  %s1976_s5 = inlined_call_operand.vmem [shape: f32[16,8], index: 5, kind: output, shape index: {1}]   ;;  %s1977_s6 = inlined_call_operand.vmem [shape: f32[16,8,8], index: 6, kind: output, shape index: {2}]   ;;  %s1978_s7 = inlined_call_operand.vmem [shape: f32[16,8,8], index: 7, kind: output, shape index: {3}]   ;;  %s1979_s8 = inlined_call_operand.vmem [shape: f32[16,8,8], index: 8, kind: output, shape index: {4}]   ;;  %s1980_s9 = inlined_call_operand.vmem [shape: f32[16,8,8], index: 9, kind: output, shape index: {5}]  }
   0x1   :  { %s1666_s11 = smov 0  }
   0x2 LB: > { %s1678_s12 = sadd.s32 4294967295, %s1599_s11   ;;  %s1681_s13 = sadd.s32 1, %s1599_s11   ;;  %s1599_s11 = sphi %s1666_s11, %s1989_s11   ;;  %s1595_s10 = sphi %s1664_s10, %s1988_s10   ;;  %s1591_s30 = sphi %s1662_s30, %s1987_s30  }
   0x3   : > { %s20_s14 = sshrl.u32 %s1599_s11, 3  ;;  %s21_s15 = sshrl.u32 %s1681_s13, 3 }
   0x4   : > { %s22_s16 = ssub.s32 %s20_s14, %s21_s15  ;;  %s25_s17 = sadd.s32 1, %s1595_s10 }
   0x5   : > { %p23_p0 = scmp.eq.s32.totalorder %s22_s16, 0  ;;  %p35_p1 = scmp.ne.s32.totalorder %s1595_s10, %s1591_s30 }
   0x6   : > { %p36_p2 = scmp.eq.s32.totalorder %s1678_s12, 15  ;;  %p1460_p4 = scmp.ge.s32.totalorder %s1599_s11, 16 }
   0x7   : > { %s1690_s18 = scalar_select %p23_p0, %s1595_s10, %s25_s17  }
   0x8   : > { %p1692_p3 = por %p36_p2, %p35_p1  ;;  %86 = sbr.rel (%p1460_p4) target bundleno = 17 (0x11), region = 16 }
   0x9   : > { %1981 = sst [smem:[#allocation23_spill]] %s1690_s18  ;;  %s88_s20 = sand.u32 (!%p1460_p4), 1, %s1599_s11  }
   0xa   : > { %s1462_s21 = sshll.u32 (!%p1460_p4), %s1599_s11, 3  ;;  %s1461_s22 = sshll.u32 (!%p1460_p4), %s88_s20, 3 }
   0xb   : > { %s92_s25 = scalar_lea.vmem (!%p1460_p4), %s1971_s0, %s1462_s21  ;;  %s90_s26 = scalar_lea.vmem (!%p1460_p4), [#allocation0], %s1461_s22 }
   0xc   : > { %v120_v0 = vld [vmem:[%s92_s25] sm:$0xff] (!%p1460_p4)  ;;  %s130_s29 = scalar_lea.vmem (!%p1460_p4), %s1972_s1, %s1462_s21  ;;  %s168_s16 = scalar_lea.vmem (!%p1460_p4), %s1973_s2, %s1462_s21 }
   0xd   : > { %121 = vst [vmem:[%s90_s26] sm:$0xff] (!%p1460_p4), %v120_v0  ;;  %v158_v1 = vld [vmem:[%s130_s29] sm:$0xff] (!%p1460_p4)  ;;  %s128_s17 = scalar_lea.vmem (!%p1460_p4), [#allocation1], %s1461_s22  ;;  %s206_s23 = scalar_lea.vmem (!%p1460_p4), %s1974_s3, %s1462_s21 }
   0xe   : > { %159 = vst [vmem:[%s128_s17] sm:$0xff] (!%p1460_p4), %v158_v1  ;;  %v196_v2 = vld [vmem:[%s168_s16] sm:$0xff] (!%p1460_p4)  ;;  %s166_s24 = scalar_lea.vmem (!%p1460_p4), [#allocation2], %s1461_s22  ;;  %s204_s25 = scalar_lea.vmem (!%p1460_p4), [#allocation3], %s1461_s22 }
   0xf   : > { %197 = vst [vmem:[%s166_s24] sm:$0xff] %v196_v2  ;;  %v234_v3 = vld [vmem:[%s206_s23] sm:$0xff] }
  0x10   : > { %235 = vst [vmem:[%s204_s25] sm:$0xff] %v234_v3 }
  0x11 PF: > { %p1469_p5 = scmp.ge.s32.totalorder %s1599_s11, 1  ;;  %p240_p6 = scmp.lt.s32.totalorder %s1599_s11, 17 }
  0x13   : > { %p241_p7 = pnand %p1469_p5, %p240_p6 }
  0x15   : > { %244 = sbr.rel (%p241_p7) target bundleno = 984 (0x3d8), region = 156 }
  0x1c   : > { %s247_s26 = sand.u32 1, %s1678_s12   ;;  %s281_s27 = sand.u32 1, %s1591_s30   ;;  %v325_v4 = vlaneseq  ;;  %v1609_v11 = vmov 0.0  }
  0x1d   : > { %s1470_s28 = sshll.u32 %s247_s26, 3  ;;  %s1715_s18 = sshll.u32 %s281_s27, 3 }
  0x1e   : > { %v1717_v5 = vand.u32 127, %v325_v4  ;;  %v1719_v6 = vshrl.u32 %v325_v4, 7  ;;  %s249_s21 = scalar_lea.vmem [#allocation0], %s1470_s28  ;;  %s253_s22 = scalar_lea.vmem [#allocation1], %s1470_s28 }
  0x1f   : > { %v309_v7 = vld [vmem:[%s249_s21] sm:$0xff]  ;;  %v312_v8 = vld [vmem:[%s253_s22] sm:$0xff]  ;;  %s257_s29 = scalar_lea.vmem [#allocation2], %s1470_s28  ;;  %s261_s11 = scalar_lea.vmem [#allocation3], %s1470_s28 }
  0x20   : > { %v315_v9 = vld [vmem:[%s257_s29] sm:$0xff]  ;;  %v318_v10 = vld [vmem:[%s261_s11] sm:$0xff]  ;;  %s1721_s14 = scalar_lea.vmem [#allocation6], %s1470_s28  ;;  %s1724_s30 = scalar_lea.vmem [#allocation7], %s1470_s28  ;;  %v327_v5 = vmov %v1717_v5  ;;  %v330_v6 = vmov %v1719_v6  ;;  %vm1349_vm2 = vcmp.lt.s32.totalorder %v1717_v5, 8 }
  0x21   : > { %320 = vst [vmem:[%s1721_s14] sm:$0xff] %v1609_v11  ;;  %321 = vst [vmem:[%s1724_s30] sm:$0xff] %v1609_v11  ;;  %s308_s15 = smov [#allocation10]  ;;  %s311_s16 = smov [#allocation11]  ;;  %v340_v5 = vmov %v1717_v5  ;;  %v343_v6 = vmov %v1719_v6  ;;  %vm334_vm0 = vcmp.eq.s32.totalorder %v330_v6, %v327_v5 }
  0x22   : > { %s1727_s17 = scalar_lea.vmem [#allocation8], %s1470_s28  ;;  %s1730_s20 = scalar_lea.vmem [#allocation9], %s1470_s28  ;;  %310 = vst [vmem:[%s308_s15] sm:$0xff] %v309_v7  ;;  %313 = vst [vmem:[%s311_s16] sm:$0xff] %v312_v8  ;;  %vm347_vm1 = vcmp.eq.s32.totalorder %v343_v6, %v340_v5  ;;  %v1341_v5 = vmov %v1717_v5  ;;  %v1344_v6 = vmov %v1719_v6 }
  0x23   : > { %322 = vst [vmem:[%s1727_s17] sm:$0xff] %v1609_v11  ;;  %323 = vst [vmem:[%s1730_s20] sm:$0xff] %v1609_v11  ;;  %s314_s23 = smov [#allocation12]  ;;  %s317_s24 = smov [#allocation13]  ;;  %vm1354_vm3 = vcmp.eq.s32.totalorder %v1344_v6, %v1341_v5  ;;  %v1392_v5 = vmov %v1717_v5  ;;  %v1361_v6 = vmov %v1719_v6 }
  0x24   : > { %316 = vst [vmem:[%s314_s23] sm:$0xff] %v315_v9  ;;  %319 = vst [vmem:[%s317_s24] sm:$0xff] %v318_v10  ;;  %s324_s14 = smov %s1721_s14  ;;  %s337_s20 = smov %s1730_s20  ;;  %v1358_v5 = vmov %v1717_v5  ;;  %v1395_v6 = vmov %v1719_v6 }
  0x25   : > { %s283_s25 = scalar_lea.vmem [#allocation4], %s1715_s18  ;;  %s1345_s27 = smov [#allocation10]  ;;  %v1375_v5 = vmov %v1717_v5  ;;  %v1378_v6 = vmov %v1719_v6  ;;  %vm1405_vm4 = vcmp.eq.s32.totalorder %v1395_v6, %v1392_v5 }
  0x26   : > { %s1362_s28 = smov [#allocation11]  ;;  %s1379_s21 = smov [#allocation12] }
  0x27   : > { %s1396_s22 = smov [#allocation13] }
  0x28   : > { %v331_v12 = vld [vmem:[%s324_s14] sm:$0xff] }
  0x29   : > { %v335_v13 = vsel %vm334_vm0, 1.0, %v331_v12  ;;  %v1351_v16 = vld [vmem:[%s1345_s27] sm:$0xff] }
  0x2a   : > { %v344_v14 = vld [vmem:[%s337_s20] sm:$0xff]  ;;  %336 = vst [vmem:[%s324_s14] sm:$0xff] %v335_v13  ;;  %v1352_v18 = vsel %vm1349_vm2, %v1351_v16, 0.0 }
  0x2b   : > { %v348_v15 = vsel %vm347_vm1, 1.0, %v344_v14  ;;  %v1368_v17 = vld [vmem:[%s1362_s28] sm:$0xff]  ;;  %v1353_v22 = vmul.f32 %v1352_v18, %v1352_v18 }
  0x2c   : > { %349 = vst [vmem:[%s337_s20] sm:$0xff] %v348_v15  ;;  %v1369_v19 = vsel %vm1349_vm2, %v1368_v17, 0.0  ;;  %v1385_v20 = vld [vmem:[%s1379_s21] sm:$0xff] }
  0x2d   : > { %v1402_v21 = vld [vmem:[%s1396_s22] sm:$0xff]  ;;  %v1370_v23 = vmul.f32 %v1369_v19, %v1369_v19  ;;  %v1386_v24 = vsel %vm1349_vm2, %v1385_v20, 0.0  ;;  %v1355_v29 = vsel %vm1354_vm3, 0.0, %v1353_v22 }
  0x2e   : > { %v1403_v25 = vsel %vm1349_vm2, %v1402_v21, 0.0  ;;  %v1387_v26 = vmul.f32 %v1386_v24, %v1386_v24 }
  0x2f   : > { %v1372_v27 = vadd.f32 %v1370_v23, %v1353_v22  ;;  %v1404_v28 = vmul.f32 %v1403_v25, %v1403_v25  ;;  %v1371_v30 = vadd.f32 %v1370_v23, %v1355_v29 }
  0x31   : > { %v1389_v31 = vadd.f32 %v1387_v26, %v1372_v27  ;;  %v1388_v32 = vadd.f32 %v1387_v26, %v1371_v30  ;;  %v1406_v33 = vsel %vm1405_vm4, 0.0, %v1404_v28 }
  0x33   : > { %v1408_v34 = vadd.f32 %v1404_v28, %v1389_v31  ;;  %v1407_v35 = vadd.f32 %v1406_v33, %v1388_v32 }
  0x35   : > { %1409 = vadd.xlane.f32.xlu0 %v1408_v34 }
  0x39   : > { %1417 = vadd.xlane.f32.xlu0 %v1407_v35 }
  0xc2   : > { %v1410_v36 = vpop.xlane.xlu0 %1409 }
  0xc3   : > { %v1411_v37 = vrot.slane %v1410_v36, 4 }
  0xc5   : > { %v1412_v38 = vadd.f32 %v1411_v37, %v1410_v36 }
  0xc6   : > { %v1418_v39 = vpop.xlane.xlu0 %1417 }
  0xc7   : > { %v1413_v40 = vrot.slane %v1412_v38, 2  ;;  %v1419_v41 = vrot.slane %v1418_v39, 4 }
  0xc9   : > { %v1420_v42 = vadd.f32 %v1419_v41, %v1418_v39  ;;  %v1414_v43 = vadd.f32 %v1413_v40, %v1412_v38 }
  0xcb   : > { %v1421_v44 = vrot.slane %v1420_v42, 2  ;;  %v1415_v46 = vrot.slane %v1414_v43, 1 }
  0xcd   : > { %v1422_v45 = vadd.f32 %v1421_v44, %v1420_v42  ;;  %v1416_v49 = vadd.f32 %v1415_v46, %v1414_v43 }
  0xcf   : > { %v1423_v47 = vrot.slane %v1422_v45, 1 }
  0xd1   : > { %v1424_v48 = vadd.f32 %v1423_v47, %v1422_v45 }
  0xd3   : > { %1510 = vpush %v1424_v48 }
  0xd4   : > { %1512 = vpush %v1416_v49 }
 0x104   : > { %s1511_s29 = spop %1510 }
 0x105   : > { %s1513_s11 = spop %1512 }
 0x106   : > { %s1427_s15 = smul.f32 1e-10, %s1513_s11 }
 0x108   : > { %p1428_p8 = scmp.le.f32.partialorder %s1511_s29, %s1427_s15 }
 0x109   : > { %s1759_s16 = smov (!%p1428_p8), 0  }
 0x10a   : > { %1431 = sbr.rel (%p1428_p8) target bundleno = 948 (0x3b4), region = 507 }
 0x111 LB: >> { %s1764_s23 = smov 0   ;;  %s1603_s16 = sphi %s1759_s16, %s1983_s16  }
 0x112 LB: >>> { %s454_s24 = smov [#allocation10]  ;;  %v458_v5 = vmov %v1717_v5  ;;  %v461_v6 = vmov %v1719_v6  ;;  %s474_s27 = smov [#allocation11]  ;;  %vm777_vm14 = vcmp.eq.s32.totalorder %v1719_v6, 0  ;;  %vm789_vm15 = vcmp.eq.s32.totalorder %v1719_v6, 7  ;;  %s1607_s23 = sphi %s1764_s23, %s453_s23  }
 0x113   : >>> { %v478_v5 = vmov %v1717_v5  ;;  %v481_v6 = vmov %v1719_v6  ;;  %v462_v50 = vld [vmem:[%s454_s24] sm:$0xff]  ;;  %vm465_vm5 = vcmp.eq.s32.totalorder %v461_v6, %v458_v5  ;;  %s494_s28 = smov [#allocation13]  ;;  %s455_s21 = smov [#allocation14] }
 0x114   : >>> { %vm485_vm6 = vcmp.eq.s32.totalorder %v481_v6, %v478_v5  ;;  %v498_v5 = vmov %v1717_v5  ;;  %v501_v6 = vmov %v1719_v6  ;;  %v466_v51 = vsel %vm465_vm5, %v462_v50, 0.0  ;;  %v482_v52 = vld [vmem:[%s474_s27] sm:$0xff]  ;;  %s475_s22 = smov [#allocation15]  ;;  %s495_s29 = smov [#allocation16] }
 0x115   : >>> { %vm505_vm7 = vcmp.eq.s32.totalorder %v501_v6, %v498_v5  ;;  %v467_v53 = vrot.slane %v466_v51, 4  ;;  %v486_v54 = vsel %vm485_vm6, %v482_v52, 0.0  ;;  %v502_v55 = vld [vmem:[%s494_s28] sm:$0xff]  ;;  %s518_s11 = smov [#allocation15]  ;;  %s516_s15 = smov [#allocation14]  ;;  %v567_v5 = vmov %v1717_v5 }
 0x116   : >>> { %v487_v56 = vrot.slane %v486_v54, 4  ;;  %v506_v57 = vsel %vm505_vm7, %v502_v55, 0.0  ;;  %s520_s24 = smov [#allocation16]  ;;  %s555_s27 = smov [#allocation17]  ;;  %v570_v6 = vmov %v1719_v6  ;;  %v582_v5 = vmov %v1717_v5 }
 0x117   : >>> { %v468_v58 = vadd.f32 %v467_v53, %v466_v51  ;;  %v507_v59 = vrot.slane %v506_v57, 4  ;;  %s557_s28 = smov [#allocation18]  ;;  %v585_v6 = vmov %v1719_v6  ;;  %vm572_vm12 = vcmp.eq.s32.totalorder %v570_v6, %v567_v5  ;;  %s1786_s14 = smov %s1721_s14 }
 0x118   : >>> { %v488_v60 = vadd.f32 %v487_v56, %v486_v54  ;;  %vm587_vm13 = vcmp.eq.s32.totalorder %v585_v6, %v582_v5  ;;  %s1789_s30 = smov %s1724_s30  ;;  %s1792_s17 = smov %s1727_s17  ;;  %v825_v52 = vld [vmem:[%s1786_s14] sm:$0xff]  ;;  %v680_v5 = vmov %v1717_v5  ;;  %v683_v6 = vmov %v1719_v6 }
 0x119   : >>> { %v469_v61 = vrot.slane %v468_v58, 2  ;;  %v508_v62 = vadd.f32 %v507_v59, %v506_v57  ;;  %s1796_s20 = smov %s1730_s20  ;;  %v826_v53 = vld [vmem:[%s1789_s30] sm:$0xff]  ;;  %s819_s26 = smov [#allocation22]  ;;  %v653_v5 = vmov %v1717_v5  ;;  %v656_v6 = vmov %v1719_v6 }
 0x11a   : >>> { %v489_v63 = vrot.slane %v488_v60, 2  ;;  %v827_v56 = vld [vmem:[%s1792_s17] sm:$0xff]  ;;  %v694_v5 = vmov %v1717_v5  ;;  %v697_v6 = vmov %v1719_v6  ;;  %vm687_vm0 = vcmp.eq.s32.totalorder %v683_v6, %v680_v5  ;;  %s453_s23 = sadd.s32 1, %s1607_s23  }
 0x11b   : >>> { %v470_v0 = vadd.f32 %v469_v61, %v468_v58  ;;  %v509_v1 = vrot.slane %v508_v62, 2  ;;  %v828_v57 = vld [vmem:[%s1796_s20] sm:$0xff]  ;;  %v667_v5 = vmov %v1717_v5  ;;  %v670_v6 = vmov %v1719_v6  ;;  %p450_p9 = scmp.ge.s32.totalorder %s453_s23, 15  }
 0x11c   : >>> { %v490_v2 = vadd.f32 %v489_v63, %v488_v60  ;;  %vm661_vm1 = vcmp.eq.s32.totalorder %v656_v6, %v653_v5  ;;  %vm702_vm3 = vcmp.eq.s32.totalorder %v697_v6, %v694_v5  ;;  %vm674_vm4 = vcmp.eq.s32.totalorder %v670_v6, %v667_v5 }
 0x11d   : >>> { %v471_v3 = vrot.slane %v470_v0, 1  ;;  %v510_v4 = vadd.f32 %v509_v1, %v508_v62  ;;  %vm716_vm5 = vcmp.eq.s32.totalorder %v1717_v5, 0  ;;  %vm720_vm6 = vcmp.eq.s32.totalorder %v1717_v5, 1 }
 0x11e   : >>> { %v491_v7 = vrot.slane %v490_v2, 1  ;;  %vm733_vm7 = vcmp.eq.s32.totalorder %v1717_v5, 7  ;;  %v354_v5 = vmov (%p450_p9), %v1717_v5  ;;  %v357_v6 = vmov (%p450_p9), %v1719_v6 }
 0x11f   : >>> { %v472_v8 = vadd.f32 %v471_v3, %v470_v0  ;;  %v511_v9 = vrot.slane %v510_v4, 1  ;;  %v407_v5 = vmov (%p450_p9), %v1717_v5 }
 0x120   : >>> { %v492_v10 = vadd.f32 %v491_v7, %v490_v2 }
 0x121   : >>> { %473 = vst [vmem:[%s455_s21] sm:$0x1] %v472_v8  ;;  %v512_v11 = vadd.f32 %v511_v9, %v510_v4  ;;  %s514_s21 = smov [#allocation19] }
 0x122   : >>> { %493 = vst [vmem:[%s475_s22] sm:$0x1] %v492_v10  ;;  %s515_s22 = smov [#allocation20]  ;;  %s559_s21 = smov %s514_s21 }
 0x123   : >>> { %513 = vst [vmem:[%s495_s29] sm:$0x1] %v512_v11  ;;  %s561_s22 = smov %s515_s22  ;;  %s563_s29 = smov [#allocation19] }
 0x128   : >>> { %v517_v14 = vld [vmem:[%s516_s15] sm:$0xff]  ;;  %s576_s15 = smov [#allocation21] }
 0x129   : >>> { %v519_v12 = vld [vmem:[%s518_s11] sm:$0xff]  ;;  %v540_v27 = vand.u32 2147483647, %v517_v14  ;;  %s578_s11 = smov [#allocation20] }
 0x12a   : >>> { %v523_v13 = vmul.f32 2.0, %v519_v12  ;;  %v521_v15 = vld [vmem:[%s520_s24] sm:$0xff]  ;;  %v541_v32 = vand.u32 2147483647, %v519_v12  ;;  %s593_s24 = smov [#allocation21] }
 0x12b   : >>> { %v522_v16 = vsub.f32 %v521_v15, %v517_v14  ;;  %v542_v28 = vand.u32 2147483647, %v521_v15 }
 0x12c   : >>> { %1561 = vrcp.f32 %v523_v13 }
 0x12d   : >>> { %v543_v31 = vmin.f32 %v540_v27, %v542_v28 }
 0x12f   : >>> { %v544_v33 = vmul.f32 1.1920929e-08, %v543_v31 }
 0x131   : >>> { %vm545_vm11 = vcmp.le.f32.partialorder %v541_v32, %v544_v33 }
 0x136   : >>> { %v1562_v17 = vpop.eup %1561 }
 0x137   : >>> { %v525_v18 = vmul.f32 %v1562_v17, %v522_v16 }
 0x139   : >>> { %v527_v19 = vmul.f32 %v525_v18, %v525_v18  ;;  %vm526_vm10 = vcmp.ge.f32.partialorder %v525_v18, 0.0 }
 0x13b   : >>> { %v528_v20 = vadd.f32 1.0, %v527_v19 }
 0x13d   : >>> { %1563 = vrsqrt.f32 %v528_v20  ;;  %vm531_vm8 = vcmp.eq.f32.partialorder %v528_v20, inf  ;;  %v534_v22 = vand.u32 2147483648, %v528_v20  ;;  %vm533_vm9 = vcmp.eq.f32.partialorder %v528_v20, 0.0 }
 0x147   : >>> { %v1564_v21 = vpop.eup %1563 }
 0x148   : >>> { %v530_v23 = vmul.f32 %v1564_v21, %v528_v20 }
 0x14a   : >>> { %v532_v24 = vsel %vm531_vm8, %v528_v20, %v530_v23  ;;  %vm369_vm8 = vcmp.eq.s32.totalorder (%p450_p9), %v357_v6, %v354_v5  ;;  %v410_v6 = vmov (%p450_p9), %v1719_v6  ;;  %v373_v5 = vmov (%p450_p9), %v1717_v5 }
 0x14b   : >>> { %v535_v25 = vsel %vm533_vm9, %v534_v22, %v532_v24  ;;  %v376_v6 = vmov (%p450_p9), %v1719_v6  ;;  %v390_v5 = vmov (%p450_p9), %v1717_v5  ;;  %vm422_vm9 = vcmp.eq.s32.totalorder (%p450_p9), %v410_v6, %v407_v5 }
 0x14c   : >>> { %v536_v26 = vxor.u32 2147483648, %v535_v25  ;;  %v393_v6 = vmov (%p450_p9), %v1719_v6 }
 0x14e   : >>> { %v537_v29 = vsel %vm526_vm10, %v535_v25, %v536_v26 }
 0x14f   : >>> { %v538_v30 = vadd.f32 %v537_v29, %v525_v18 }
 0x151   : >>> { %1565 = vrcp.f32 %v538_v30 }
 0x15b   : >>> { %v1566_v34 = vpop.eup %1565 }
 0x15c   : >>> { %v546_v35 = vsel %vm545_vm11, 0.0, %v1566_v34 }
 0x15d   : >>> { %v547_v36 = vmul.f32 %v546_v35, %v546_v35  ;;  %v551_v37 = vmul.f32 %v546_v35, %v519_v12 }
 0x15f   : >>> { %v548_v38 = vadd.f32 1.0, %v547_v36  ;;  %v552_v39 = vsub.f32 %v517_v14, %v551_v37  ;;  %v554_v40 = vadd.f32 %v551_v37, %v521_v15 }
 0x161   : >>> { %1567 = vrsqrt.f32 %v548_v38  ;;  %556 = vst [vmem:[%s555_s27] sm:$0xff] %v552_v39  ;;  %558 = vst [vmem:[%s557_s28] sm:$0xff] %v554_v40  ;;  %s1779_s27 = smov [#allocation10]  ;;  %s591_s28 = smov [#allocation22] }
 0x162   : >>> { %v601_v49 = vld [vmem:[%s1779_s27] sm:$0xff] }
 0x16b   : >>> { %v1568_v41 = vpop.eup %1567 }
 0x16c   : >>> { %560 = vst [vmem:[%s559_s21] sm:$0xff] %v1568_v41  ;;  %v550_v42 = vmul.f32 %v1568_v41, %v546_v35  ;;  %s1781_s21 = smov [#allocation11] }
 0x16d   : >>> { %v602_v50 = vld [vmem:[%s1781_s21] sm:$0xff] }
 0x16e   : >>> { %562 = vst [vmem:[%s561_s22] sm:$0xff] %v550_v42  ;;  %s1783_s22 = smov [#allocation13] }
 0x16f   : >>> { %v604_v51 = vld [vmem:[%s1783_s22] sm:$0xff] }
 0x173   : >>> { %v564_v43 = vld [vmem:[%s563_s29] ss:$0 sm:$0xff]  ;;  %s817_s29 = smov [#allocation21] }
 0x174   : >>> { %v573_v44 = vsel %vm572_vm12, %v564_v43, 0.0 }
 0x175   : >>> { %574 = vadd.xlane.f32.xlu0 %v573_v44  ;;  %v579_v45 = vld [vmem:[%s578_s11] ss:$0 sm:$0xff]  ;;  %s1798_s11 = smov [#allocation12] }
 0x176   : >>> { %v588_v46 = vsel %vm587_vm13, %v579_v45, 0.0  ;;  %v603_v58 = vld [vmem:[%s1798_s11] sm:$0xff] }
 0x179   : >>> { %589 = vadd.xlane.f32.xlu0 %v588_v46 }
 0x202   : >>> { %v575_v47 = vpop.xlane.xlu0 %574 }
 0x203   : >>> { %577 = vst [vmem:[%s576_s15] sm:$0xff] %v575_v47  ;;  %s595_s15 = smov [#allocation22] }
 0x206   : >>> { %v590_v48 = vpop.xlane.xlu0 %589 }
 0x207   : >>> { %592 = vst [vmem:[%s591_s28] sm:$0xff] %v590_v48  ;;  %s1825_s28 = smov [#allocation12] }
 0x20a   : >>> { %v594_v54 = vld [vmem:[%s593_s24] sm:$0xff]  ;;  %s623_s24 = smov [#allocation20] }
 0x20b   : >>> { %v818_v55 = vld [vmem:[%s817_s29] sm:$0xff]  ;;  %v605_v59 = vmul.f32 %v601_v49, %v594_v54  ;;  %v608_v60 = vmul.f32 %v602_v50, %v594_v54  ;;  %v615_v61 = vmul.f32 %v604_v51, %v594_v54  ;;  %v612_v4 = vmul.f32 %v603_v58, %v594_v54  ;;  %s650_s29 = smov [#allocation17] }
 0x20c   : >>> { %v829_v62 = vmul.f32 %v825_v52, %v818_v55  ;;  %v832_v63 = vmul.f32 %v826_v53, %v818_v55  ;;  %v836_v0 = vmul.f32 %v827_v56, %v818_v55  ;;  %v839_v1 = vmul.f32 %v828_v57, %v818_v55  ;;  %v624_v24 = vld [vmem:[%s623_s24] ss:$0 sm:$0xff]  ;;  %s690_s24 = smov [#allocation13] }
 0x20d   : >>> { %v657_v55 = vld [vmem:[%s650_s29] ss:$0 sm:$0xff]  ;;  %s706_s29 = smov [#allocation11] }
 0x20e   : >>> { %v596_v2 = vld [vmem:[%s595_s15] sm:$0xff]  ;;  %s677_s15 = smov [#allocation12] }
 0x20f   : >>> { %v820_v3 = vld [vmem:[%s819_s26] sm:$0xff]  ;;  %v609_v7 = vmul.f32 %v604_v51, %v596_v2  ;;  %v611_v8 = vmul.f32 %v601_v49, %v596_v2  ;;  %v614_v9 = vmul.f32 %v602_v50, %v596_v2  ;;  %v606_v14 = vmul.f32 %v603_v58, %v596_v2  ;;  %s621_s26 = smov [#allocation19] }
 0x210   : >>> { %v830_v10 = vmul.f32 %v827_v56, %v820_v3  ;;  %v833_v11 = vmul.f32 %v828_v57, %v820_v3  ;;  %v835_v12 = vmul.f32 %v825_v52, %v820_v3  ;;  %v838_v13 = vmul.f32 %v826_v53, %v820_v3  ;;  %v622_v23 = vld [vmem:[%s621_s26] ss:$0 sm:$0xff]  ;;  %s649_s26 = smov [#allocation10] }
 0x211   : >>> { %v610_v15 = vsub.f32 %v608_v60, %v609_v7  ;;  %v616_v16 = vadd.f32 %v615_v61, %v614_v9  ;;  %v613_v18 = vadd.f32 %v612_v4, %v611_v8  ;;  %v607_v22 = vsub.f32 %v605_v59, %v606_v14 }
 0x212   : >>> { %v831_v17 = vsub.f32 %v829_v62, %v830_v10  ;;  %v834_v19 = vsub.f32 %v832_v63, %v833_v11  ;;  %v837_v20 = vadd.f32 %v836_v0, %v835_v12  ;;  %v840_v21 = vadd.f32 %v839_v1, %v838_v13 }
 0x213   : >>> { %618 = vst [vmem:[%s1781_s21] sm:$0xff] %v610_v15  ;;  %620 = vst [vmem:[%s1783_s22] sm:$0xff] %v616_v16  ;;  %s1827_s21 = smov [#allocation13]  ;;  %s1831_s22 = smov [#allocation11] }
 0x214   : >>> { %841 = vst [vmem:[%s1786_s14] sm:$0xff] %v831_v17  ;;  %619 = vst [vmem:[%s1798_s11] sm:$0xff] %v613_v18  ;;  %s845_s14 = smov %s1721_s14  ;;  %s691_s11 = smov [#allocation18] }
 0x215   : >>> { %842 = vst [vmem:[%s1789_s30] sm:$0xff] %v834_v19  ;;  %843 = vst [vmem:[%s1792_s17] sm:$0xff] %v837_v20  ;;  %s846_s17 = smov %s1727_s17  ;;  %s1818_s30 = smov %s1724_s30  ;;  %v698_v56 = vld [vmem:[%s691_s11] ss:$0 sm:$0xff] }
 0x216   : >>> { %844 = vst [vmem:[%s1796_s20] sm:$0xff] %v840_v21  ;;  %617 = vst [vmem:[%s1779_s27] sm:$0xff] %v607_v22  ;;  %s1821_s20 = smov %s1730_s20  ;;  %s1829_s27 = smov [#allocation10] }
 0x217   : >>> { %s1611_s11 = smov 127  }
 0x21a   : >>> { %v632_v39 = vld [vmem:[%s1827_s21] sm:$0xff] }
 0x21b   : >>> { %v847_v25 = vld [vmem:[%s845_s14] ss:$0 sm:$0xff]  ;;  %v1489_v27 = vld [vmem:[%s845_s14 + $0x7] ss:$0 sm:$0xff]  ;;  %v640_v42 = vmul.f32 %v632_v39, %v624_v24  ;;  %v643_v46 = vmul.f32 %v632_v39, %v622_v23 }
 0x21c   : >>> { %v1488_v26 = vld [vmem:[%s845_s14 - $0x1] sm:$0xfe]  ;;  %v1493_v34 = vld [vmem:[%s1818_s30 + $0x7] ss:$0 sm:$0xff] }
 0x21d   : >>> { %v854_v28 = vsel %vm777_vm14, %v847_v25, %v1488_v26  ;;  %v858_v29 = vld [vmem:[%s846_s17] ss:$0 sm:$0xff]  ;;  %v1491_v30 = vld [vmem:[%s846_s17 + $0x1] sm:$0x7f] }
 0x21e   : >>> { %v871_v31 = vld [vmem:[%s1818_s30] ss:$0 sm:$0xff]  ;;  %857 = vst [vmem:[%s845_s14] sm:$0xff] %v854_v28  ;;  %v866_v32 = vsel %vm789_vm15, %v1489_v27, %v1491_v30  ;;  %v1495_v37 = vld [vmem:[%s1821_s20 + $0x1] sm:$0x7f] }
 0x21f   : >>> { %v1492_v33 = vld [vmem:[%s1818_s30 - $0x1] sm:$0xfe]  ;;  %1490 = vst [vmem:[%s845_s14 + $0x1] sm:$0x1] %v858_v29  ;;  %868 = vst [vmem:[%s846_s17] sm:$0xff] %v866_v32  ;;  %v890_v40 = vsel %vm789_vm15, %v1493_v34, %v1495_v37 }
 0x220   : >>> { %v882_v35 = vld [vmem:[%s1821_s20] ss:$0 sm:$0xff]  ;;  %v878_v36 = vsel %vm777_vm14, %v871_v31, %v1492_v33 }
 0x221   : >>> { %v631_v38 = vld [vmem:[%s1825_s28] sm:$0xff]  ;;  %881 = vst [vmem:[%s1818_s30] sm:$0xff] %v878_v36  ;;  %892 = vst [vmem:[%s1821_s20] sm:$0xff] %v890_v40 }
 0x222   : >>> { %v639_v41 = vmul.f32 %v631_v38, %v622_v23  ;;  %v642_v43 = vmul.f32 %v631_v38, %v624_v24  ;;  %v629_v44 = vld [vmem:[%s1829_s27] sm:$0xff]  ;;  %1494 = vst [vmem:[%s1818_s30 + $0x1] sm:$0x1] %v882_v35 }
 0x223   : >>> { %v630_v45 = vld [vmem:[%s1831_s22] sm:$0xff]  ;;  %v633_v47 = vmul.f32 %v629_v44, %v622_v23  ;;  %v636_v49 = vmul.f32 %v629_v44, %v624_v24 }
 0x224   : >>> { %v634_v48 = vmul.f32 %v630_v45, %v624_v24  ;;  %v641_v50 = vsub.f32 %v639_v41, %v640_v42  ;;  %v637_v51 = vmul.f32 %v630_v45, %v622_v23  ;;  %v644_v52 = vadd.f32 %v643_v46, %v642_v43 }
 0x226   : >>> { %v635_v53 = vsub.f32 %v633_v47, %v634_v48  ;;  %647 = vst [vmem:[%s1825_s28] sm:$0xff] %v641_v50  ;;  %v638_v54 = vadd.f32 %v637_v51, %v636_v49  ;;  %648 = vst [vmem:[%s1827_s21] sm:$0xff] %v644_v52  ;;  %s664_s28 = smov [#allocation11]  ;;  %s1865_s21 = smov [#allocation12] }
 0x228   : >>> { %645 = vst [vmem:[%s1829_s27] sm:$0xff] %v635_v53  ;;  %646 = vst [vmem:[%s1831_s22] sm:$0xff] %v638_v54  ;;  %s705_s27 = smov [#allocation10]  ;;  %s1610_s22 = smov 1  }
 0x22d   : >>> { %v684_v57 = vld [vmem:[%s677_s15] sm:$0xff] }
 0x22e   : >>> { %v688_v58 = vsel %vm687_vm0, 0.0, %v684_v57  ;;  %v699_v60 = vld [vmem:[%s690_s24] sm:$0xff] }
 0x22f   : >>> { %v658_v59 = vld [vmem:[%s649_s26] sm:$0xff]  ;;  %689 = vst [vmem:[%s677_s15] sm:$0xff] %v688_v58  ;;  %v703_v63 = vsel %vm702_vm3, %v698_v56, %v699_v60  ;;  %s1868_s15 = smov [#allocation13] }
 0x230   : >>> { %v662_v61 = vsel %vm661_vm1, %v657_v55, %v658_v59  ;;  %v671_v62 = vld [vmem:[%s664_s28] sm:$0xff]  ;;  %704 = vst [vmem:[%s690_s24] sm:$0xff] %v703_v63  ;;  %s793_s24 = smov [#allocation11] }
 0x231   : >>> { %663 = vst [vmem:[%s649_s26] sm:$0xff] %v662_v61  ;;  %v675_v0 = vsel %vm674_vm4, 0.0, %v671_v62  ;;  %s769_s26 = smov [#allocation10] }
 0x232   : >>> { %676 = vst [vmem:[%s664_s28] sm:$0xff] %v675_v0  ;;  %s770_s28 = smov [#allocation12] }
 0x236   : >>> { %v743_v1 = vld [vmem:[%s1865_s21] sm:$0xff] }
 0x237   : >>> { %744 = vrot.lane.b32.xlu0 %v743_v1, %s1610_s22  ;;  %v739_v4 = vld [vmem:[%s1868_s15] sm:$0xff] }
 0x238   : >>> { %v711_v2 = vld [vmem:[%s705_s27] sm:$0xff] }
 0x239   : >>> { %712 = vrot.lane.b32.xlu1 %v711_v2, %s1610_s22  ;;  %v707_v3 = vld [vmem:[%s706_s29] sm:$0xff] }
 0x23d   : >>> { %708 = vrot.lane.b32.xlu1 %v707_v3, %s1610_s22 }
 0x241   : >>> { %729 = vrot.lane.b32.xlu1 %v707_v3, %s1611_s11 }
 0x245   : >>> { %740 = vrot.lane.b32.xlu1 %v739_v4, %s1610_s22  ;;  %s358_s22 = smov (%p450_p9), [#allocation10] }
 0x249   : >>> { %761 = vrot.lane.b32.xlu1 %v739_v4, %s1611_s11  ;;  %s394_s11 = smov (%p450_p9), [#allocation12] }
 0x2a9   : >>> { %v745_v13 = vpop.permute.xlu0 %744 }
 0x2aa   : >>> { %v749_v15 = vsel %vm716_vm5, %v743_v1, %v745_v13 }
 0x2ab   : >>> { %v713_v7 = vpop.permute.xlu1 %712 }
 0x2ac   : >>> { %v717_v8 = vsel %vm716_vm5, %v711_v2, %v713_v7 }
 0x2af   : >>> { %v709_v9 = vpop.permute.xlu1 %708 }
 0x2b0   : >>> { %v721_v10 = vsel %vm720_vm6, %v709_v9, %v717_v8 }
 0x2b1   : >>> { %v727_v11 = vsel %vm1349_vm2, %v721_v10, 0.0 }
 0x2b2   : >>> { %735 = vst [vmem:[%s705_s27] sm:$0xff] %v727_v11  ;;  %s794_s27 = smov [#allocation13] }
 0x2b3   : >>> { %v730_v12 = vpop.permute.xlu1 %729 }
 0x2b4   : >>> { %v734_v14 = vsel %vm733_vm7, %v711_v2, %v730_v12 }
 0x2b5   : >>> { %736 = vst [vmem:[%s706_s29] sm:$0xff] %v734_v14  ;;  %s377_s29 = smov (%p450_p9), [#allocation11] }
 0x2b7   : >>> { %v741_v16 = vpop.permute.xlu1 %740 }
 0x2b8   : >>> { %v753_v17 = vsel %vm720_vm6, %v741_v16, %v749_v15 }
 0x2b9   : >>> { %v771_v18 = vld [vmem:[%s769_s26] ss:$0 sm:$0xff]  ;;  %v1481_v20 = vld [vmem:[%s769_s26 + $0x7] ss:$0 sm:$0xff]  ;;  %v759_v22 = vsel %vm1349_vm2, %v753_v17, 0.0 }
 0x2ba   : >>> { %v1480_v19 = vld [vmem:[%s769_s26 - $0x1] sm:$0xfe]  ;;  %767 = vst [vmem:[%s1865_s21] sm:$0xff] %v759_v22  ;;  %s893_s21 = sadd.s32 (%p450_p9), 1, %s1603_s16  }
 0x2bb   : >>> { %v778_v21 = vsel %vm777_vm14, %v771_v18, %v1480_v19  ;;  %v762_v23 = vpop.permute.xlu1 %761  ;;  %p446_p10 = scmp.ge.s32.totalorder (%p450_p9), %s893_s21, 15  ;;  %s1983_s16 = smov (%p450_p9), %s893_s21 }
 0x2bc   : >>> { %781 = vst [vmem:[%s769_s26] sm:$0xff] %v778_v21  ;;  %v795_v24 = vld [vmem:[%s793_s24] ss:$0 sm:$0xff]  ;;  %v1485_v26 = vld [vmem:[%s793_s24 + $0x7] ss:$0 sm:$0xff]  ;;  %v766_v27 = vsel %vm733_vm7, %v743_v1, %v762_v23 }
 0x2bd   : >>> { %v1484_v25 = vld [vmem:[%s793_s24 - $0x1] sm:$0xfe]  ;;  %768 = vst [vmem:[%s1868_s15] sm:$0xff] %v766_v27  ;;  %s411_s15 = smov (%p450_p9), [#allocation13] }
 0x2be   : >>> { %v802_v28 = vsel %vm777_vm14, %v795_v24, %v1484_v25 }
 0x2bf   : >>> { %805 = vst [vmem:[%s793_s24] sm:$0xff] %v802_v28 }
 0x2c1   : >>> { %v782_v29 = vld [vmem:[%s770_s28] ss:$0 sm:$0xff]  ;;  %v1483_v30 = vld [vmem:[%s770_s28 + $0x1] sm:$0x7f] }
 0x2c2   : >>> { %1482 = vst [vmem:[%s769_s26 + $0x1] sm:$0x1] %v782_v29  ;;  %v790_v31 = vsel %vm789_vm15, %v1481_v20, %v1483_v30  ;;  %452 = sbr.rel (!%p450_p9) target bundleno = 274 (0x112), region = 502 }
 0x2c3   : >>> { %792 = vst [vmem:[%s770_s28] sm:$0xff] %v790_v31 }
 0x2c4   : >>> { %v806_v32 = vld [vmem:[%s794_s27] ss:$0 sm:$0xff]  ;;  %v1487_v33 = vld [vmem:[%s794_s27 + $0x1] sm:$0x7f] }
 0x2c5   : >>> { %1486 = vst [vmem:[%s793_s24 + $0x1] sm:$0x1] %v806_v32  ;;  %v814_v34 = vsel %vm789_vm15, %v1485_v26, %v1487_v33 }
 0x2c6   : >>> { %816 = vst [vmem:[%s794_s27] sm:$0xff] %v814_v34 }
 0x2c9   : >> { %v364_v35 = vld [vmem:[%s358_s22] sm:$0xff] }
 0x2ca   : >> { %v365_v37 = vsel %vm1349_vm2, %v364_v35, 0.0  ;;  %v400_v39 = vld [vmem:[%s394_s11] sm:$0xff] }
 0x2cb   : >> { %v366_v41 = vmul.f32 %v365_v37, %v365_v37  ;;  %v401_v43 = vsel %vm1349_vm2, %v400_v39, 0.0 }
 0x2cc   : >> { %v383_v36 = vld [vmem:[%s377_s29] sm:$0xff]  ;;  %v402_v45 = vmul.f32 %v401_v43, %v401_v43 }
 0x2cd   : >> { %v384_v38 = vsel %vm1349_vm2, %v383_v36, 0.0  ;;  %v417_v40 = vld [vmem:[%s411_s15] sm:$0xff]  ;;  %v370_v48 = vsel %vm369_vm8, 0.0, %v366_v41 }
 0x2ce   : >> { %v385_v42 = vmul.f32 %v384_v38, %v384_v38  ;;  %v418_v44 = vsel %vm1349_vm2, %v417_v40, 0.0 }
 0x2cf   : >> { %v419_v47 = vmul.f32 %v418_v44, %v418_v44 }
 0x2d0   : >> { %v387_v46 = vadd.f32 %v385_v42, %v366_v41  ;;  %v386_v49 = vadd.f32 %v385_v42, %v370_v48 }
 0x2d1   : >> { %v423_v52 = vsel %vm422_vm9, 0.0, %v419_v47 }
 0x2d2   : >> { %v404_v50 = vadd.f32 %v402_v45, %v387_v46  ;;  %v403_v51 = vadd.f32 %v402_v45, %v386_v49 }
 0x2d4   : >> { %v425_v53 = vadd.f32 %v419_v47, %v404_v50  ;;  %v424_v54 = vadd.f32 %v423_v52, %v403_v51 }
 0x2d6   : >> { %426 = vadd.xlane.f32.xlu0 %v425_v53 }
 0x2da   : >> { %434 = vadd.xlane.f32.xlu0 %v424_v54 }
 0x363   : >> { %v427_v55 = vpop.xlane.xlu0 %426 }
 0x364   : >> { %v428_v56 = vrot.slane %v427_v55, 4 }
 0x366   : >> { %v429_v57 = vadd.f32 %v428_v56, %v427_v55 }
 0x367   : >> { %v435_v58 = vpop.xlane.xlu0 %434 }
 0x368   : >> { %v430_v59 = vrot.slane %v429_v57, 2  ;;  %v436_v60 = vrot.slane %v435_v58, 4 }
 0x36a   : >> { %v437_v61 = vadd.f32 %v436_v60, %v435_v58  ;;  %v431_v62 = vadd.f32 %v430_v59, %v429_v57 }
 0x36c   : >> { %v438_v63 = vrot.slane %v437_v61, 2  ;;  %v432_v1 = vrot.slane %v431_v62, 1 }
 0x36e   : >> { %v439_v0 = vadd.f32 %v438_v63, %v437_v61  ;;  %v433_v4 = vadd.f32 %v432_v1, %v431_v62 }
 0x370   : >> { %v440_v2 = vrot.slane %v439_v0, 1 }
 0x372   : >> { %v441_v3 = vadd.f32 %v440_v2, %v439_v0 }
 0x374   : >> { %1514 = vpush %v441_v3 }
 0x375   : >> { %1516 = vpush %v433_v4 }
 0x3a5   : >> { %s1515_s23 = spop %1514 }
 0x3a6   : >> { %s1517_s26 = spop %1516 }
 0x3a7   : >> { %s444_s24 = smul.f32 1e-10, %s1517_s26 }
 0x3a9   : >> { %p445_p11 = scmp.le.f32.partialorder %s1515_s23, %s444_s24 }
 0x3ab   : >> { %p447_p12 = por %p446_p10, %p445_p11 }
 0x3ad   : > { %895 = sbr.rel (!%p447_p12) target bundleno = 273 (0x111), region = 513 }
 0x3b4 PF: > { %s900_s28 = smov [#allocation10]  ;;  %v904_v5 = vmov %v1717_v5  ;;  %v907_v6 = vmov %v1719_v6  ;;  %s920_s16 = smov [#allocation13] }
 0x3b5   : > { %v924_v5 = vmov %v1717_v5  ;;  %v927_v6 = vmov %v1719_v6  ;;  %v908_v7 = vld [vmem:[%s900_s28] sm:$0xff]  ;;  %vm911_vm10 = vcmp.eq.s32.totalorder %v907_v6, %v904_v5  ;;  %s896_s27 = sand.u32 7, %s1678_s12   ;;  %s1984_s22 = scalar_lea.vmem [#allocation5], %s1715_s18 }
 0x3b6   : > { %vm931_vm11 = vcmp.eq.s32.totalorder %v927_v6, %v924_v5  ;;  %v912_v8 = vsel %vm911_vm10, %v908_v7, 0.0  ;;  %v928_v10 = vld [vmem:[%s920_s16] sm:$0xff]  ;;  %s897_s21 = scalar_lea.vmem %s283_s25, %s896_s27 [#allocation4]  ;;  %s899_s29 = scalar_lea.vmem %s1984_s22, %s896_s27 [#allocation5] }
 0x3b7   : > { %v913_v9 = vrot.slane %v912_v8, 4  ;;  %v932_v11 = vsel %vm931_vm11, %v928_v10, 0.0  ;;  %s901_s21 = smov %s897_s21  ;;  %s921_s29 = smov %s899_s29 }
 0x3b8   : > { %v933_v13 = vrot.slane %v932_v11, 4  ;;  %s967_s11 = sshrl.u32 (%p1692_p3), %s1678_s12, 3 }
 0x3b9   : > { %v914_v12 = vadd.f32 %v913_v9, %v912_v8  ;;  %s1502_s15 = sshll.u32 (%p1692_p3), %s967_s11, 3 }
 0x3ba   : > { %v934_v15 = vadd.f32 %v933_v13, %v932_v11  ;;  %s969_s24 = scalar_lea.vmem (%p1692_p3), %s1975_s4, %s1502_s15 }
 0x3bb   : > { %v915_v14 = vrot.slane %v914_v12, 2 }
 0x3bc   : > { %v935_v17 = vrot.slane %v934_v15, 2 }
 0x3bd   : > { %v916_v16 = vadd.f32 %v915_v14, %v914_v12 }
 0x3be   : > { %v936_v19 = vadd.f32 %v935_v17, %v934_v15  ;;  %966 = sbr.rel (!%p1692_p3) target bundleno = 972 (0x3cc), region = 174 }
 0x3bf   : > { %v917_v18 = vrot.slane %v916_v16, 1 }
 0x3c0   : > { %v937_v6 = vrot.slane %v936_v19, 1 }
 0x3c1   : > { %v918_v5 = vadd.f32 %v917_v18, %v916_v16 }
 0x3c2   : > { %v938_v20 = vadd.f32 %v937_v6, %v936_v19 }
 0x3c3   : > { %919 = vst [vmem:[%s901_s21] sm:$0x1] %v918_v5 }
 0x3c4   : > { %939 = vst [vmem:[%s921_s29] sm:$0x1] %v938_v20 }
 0x3ca   : > { %v997_v21 = vld [vmem:[%s283_s25] sm:$0xff] }
 0x3cb   : > { %998 = vst [vmem:[%s969_s24] sm:$0xff] %v997_v21 }
 0x3cc PF: > { %1004 = sbr.rel (!%p1692_p3) target bundleno = 980 (0x3d4), region = 212  ;;  %s1005_s28 = sshrl.u32 (%p1692_p3), %s1678_s12, 3 }
 0x3cd   : > { %s1985_s16 = scalar_lea.vmem (%p1692_p3), [#allocation5], %s1715_s18  ;;  %s1503_s27 = sshll.u32 (%p1692_p3), %s1005_s28, 3 }
 0x3ce   : > { %s1007_s25 = scalar_lea.vmem (%p1692_p3), %s1976_s5, %s1503_s27 }
 0x3d2   : > { %v1035_v22 = vld [vmem:[%s1985_s16] sm:$0xff] (%p1692_p3) }
 0x3d3   : > { %1036 = vst [vmem:[%s1007_s25] sm:$0xff] %v1035_v22 }
 0x3d4 PF: > { %s1504_s29 = sshll.u32 %s1678_s12, 3  ;;  %v1069_v23 = vld [vmem:[%s1721_s14] sm:$0xff]  ;;  %v1103_v24 = vld [vmem:[%s1724_s30] sm:$0xff] }
 0x3d5   : > { %v1137_v25 = vld [vmem:[%s1727_s17] sm:$0xff]  ;;  %s1041_s18 = scalar_lea.vmem %s1977_s6, %s1504_s29  ;;  %s1075_s26 = scalar_lea.vmem %s1978_s7, %s1504_s29  ;;  %v1171_v26 = vld [vmem:[%s1730_s20] sm:$0xff] }
 0x3d6   : > { %1070 = vst [vmem:[%s1041_s18] sm:$0xff] %v1069_v23  ;;  %1104 = vst [vmem:[%s1075_s26] sm:$0xff] %v1103_v24  ;;  %s1109_s16 = scalar_lea.vmem %s1979_s8, %s1504_s29  ;;  %s1143_s14 = scalar_lea.vmem %s1980_s9, %s1504_s29 }
 0x3d7   : > { %1138 = vst [vmem:[%s1109_s16] sm:$0xff] %v1137_v25  ;;  %1172 = vst [vmem:[%s1143_s14] sm:$0xff] %v1171_v26 }
 0x3d8 PF: > { %s1986_s17 = sld [smem:[#allocation23_spill]]  ;;  %p13_p13 = scmp.ge.s32.totalorder %s1681_s13, 18  }
 0x3d9   : > { %s1987_s30 = smov %s1595_s10  ;;  %s1989_s11 = smov %s1681_s13 }
 0x3da   :  { %15 = sbr.rel (!%p13_p13) target bundleno = 2 (0x2), region = 524 }
 0x3de   : > { %s1988_s10 = smov %s1986_s17 }

// kernel: _lambda_.3
= control target key start
LH: loop header
LB: loop body
LE: loop exit
PB: predicated region body
PF: predicated region fallthrough
CT: control target
= control target key end

     0   :  { %v63_v0 = vlaneseq  ;;  %vm269_vm0 = vcmask 130048   ;;  %v3354_v16 = vmov 1966171168   ;;  %vm1841_vm2 = vcmask 130112   ;;  %s4521_s0 = inlined_call_operand.vmem [shape: f32[16,16], index: 0, kind: input, shape index: {}]   ;;  %s4522_s1 = inlined_call_operand.vmem [shape: f32[16,16,16], index: 1, kind: input, shape index: {}]   ;;  %s4523_s2 = inlined_call_operand.vmem [shape: f32[4,16,16], index: 2, kind: input, shape index: {}]   ;;  %s4524_s3 = inlined_call_operand.vmem [shape: f32[1,128], index: 3, kind: input, shape index: {}]   ;;  %s4525_s4 = inlined_call_operand.vmem [shape: f32[16,128], index: 4, kind: output, shape index: {}]  }
   0x1   :  { %v17_v1 = vld [vmem:[%s4521_s0] sm:$0xff]  ;;  %v20_v3 = vld [vmem:[%s4522_s1 + $0x8] sm:$0xff]  ;;  %vm3391_vm1 = vmpackc.low %vm269_vm0, %vm269_vm0  ;;  %v61_v17 = vunpack.c.l.s4 %v3354_v16  ;;  %vm1978_vm3 = vcmask 1041409   ;;  %vm1980_vm4 = vcmask 1042434   ;;  %vm1982_vm5 = vcmask 1043459  }
   0x2   :  { %v19_v2 = vld [vmem:[%s4522_s1] sm:$0xff]  ;;  %v51_v4 = vmax.f32 %v17_v1, 1e-06  ;;  %v64_v6 = vshrl.u32 %v63_v0, 7  ;;  %v1831_v8 = vand.u32 127, %v63_v0  ;;  %v21_v9 = vld [vmem:[%s4522_s1 + $0x10] sm:$0xff] }
   0x3   :  { %v3253_v7 = vpack.c.bf16 %v20_v3, %v19_v2  ;;  %v22_v10 = vld [vmem:[%s4522_s1 + $0x18] sm:$0xff]  ;;  %v23_v11 = vld [vmem:[%s4522_s1 + $0x20] sm:$0xff]  ;;  %v3407_v13 = vld [vmem:[%s4522_s1 + $0x28] sm:$0xff]  ;;  %v62_v23 = vunpack.c.0.s8 %v61_v17  ;;  %vm1984_vm6 = vcmask 1044484   ;;  %vm1986_vm7 = vcmask 1045509  }
   0x4   :  { %3350 = vlog2.f32 %v51_v4  ;;  %v3259_v12 = vpack.c.bf16 %v22_v10, %v21_v9  ;;  %v25_v14 = vld [vmem:[%s4522_s1 + $0x30] sm:$0xff]  ;;  %v3415_v15 = vld [vmem:[%s4522_s1 + $0x38] sm:$0xff]  ;;  %v3419_v18 = vsub.s32 %v1831_v8, %v64_v6  ;;  %v1836_v19 = vadd.s32 4294967288, %v1831_v8  ;;  %v18_v24 = vld [vmem:[%s4521_s0 + $0x8] sm:$0xff] }
   0x5   :  { %3255 = vmatprep.subr.msk.bf16.mxu0 %vm3391_vm1, %v3253_v7  ;;  %v3265_v20 = vpack.c.bf16 %v3407_v13, %v23_v11  ;;  %v3271_v21 = vpack.c.bf16 %v3415_v15, %v25_v14  ;;  %v3438_v25 = vsub.s32 %v62_v23, %v64_v6  ;;  %v52_v27 = vmax.f32 %v18_v24, 1e-06  ;;  %v27_v38 = vld [vmem:[%s4522_s1 + $0x40] sm:$0xff]  ;;  %v28_v45 = vld [vmem:[%s4522_s1 + $0x48] sm:$0xff]  ;;  %v29_v46 = vld [vmem:[%s4522_s1 + $0x50] sm:$0xff] }
   0x6   :  { %3258 = vmatpush3.bf16.xpose.msk.msra.mxu0 %vm3391_vm1, %v3253_v7  ;;  %3261 = vmatprep.subr.msk.bf16.mxu1 %vm3391_vm1, %v3259_v12  ;;  %v3427_v22 = vsub.s32 %v1836_v19, %v64_v6  ;;  %v3441_v31 = vsub.s32 0, %v64_v6  ;;  %v30_v47 = vld [vmem:[%s4522_s1 + $0x58] sm:$0xff]  ;;  %v3277_v54 = vpack.c.bf16 %v28_v45, %v27_v38  ;;  %v31_v60 = vld [vmem:[%s4522_s1 + $0x60] sm:$0xff]  ;;  %v32_v61 = vld [vmem:[%s4522_s1 + $0x68] sm:$0xff]  ;;  %vm1988_vm8 = vcmask 1046534  }
   0x7   :  { %3264 = vmatpush3.bf16.xpose.msk.msra.mxu1 %vm3391_vm1, %v3259_v12  ;;  %3267 = vmatprep.subr.msk.bf16.mxu0 %vm3391_vm1, %v3265_v20  ;;  %3352 = vlog2.f32 %v52_v27  ;;  %v3283_v55 = vpack.c.bf16 %v30_v47, %v29_v46  ;;  %v33_v1 = vld [vmem:[%s4522_s1 + $0x70] sm:$0xff]  ;;  %v3289_v6 = vpack.c.bf16 %v32_v61, %v31_v60  ;;  %v3641_v5 = vld [vmem:[%s4523_s2 + $0x28] sm:$0xff]  ;;  %vm1990_vm9 = vcmask 1047559  }
   0x8   :  { %3273 = vmatprep.subr.msk.bf16.mxu1 %vm3391_vm1, %v3271_v21  ;;  %vm2985_vm10 = vcmask 7168   ;;  %vm2988_vm11 = vcmask 15360   ;;  %vm2991_vm12 = vcmask 23552   ;;  %vm2994_vm13 = vcmask 31744  }
   0xe   :  { %v3351_v26 = vpop.eup %3350 }
   0xf   :  { %v54_v28 = vmul.f32 0.6931472, %v3351_v26 }
  0x11   :  { %v59_v29 = vcombine.high %v54_v28, %v54_v28  ;;  %v66_v30 = vrot.slane %v54_v28, %v3438_v25  ;;  %v3353_v58 = vpop.eup %3352 }
  0x13   :  { %v82_v32 = vrot.slane %v66_v30, %v3438_v25  ;;  %v74_v33 = vcombine.high %v66_v30, %v66_v30  ;;  %v73_v34 = vrot.slane %v59_v29, %v3438_v25 }
  0x15   :  { %v104_v35 = vcombine.high %v82_v32, %v82_v32  ;;  %v160_v36 = vrot.slane %v82_v32, %v3441_v31  ;;  %v96_v37 = vrot.slane %v74_v33, %v3438_v25  ;;  %v89_v39 = vrot.slane %v73_v34, %v3438_v25  ;;  %v39_v32 = vld [vmem:[%s4522_s1 + $0xa0] sm:$0xff]  ;;  %v40_v33 = vld [vmem:[%s4522_s1 + $0xa8] sm:$0xff] }
  0x16   :  { %v75_v40 = vcombine.high %v73_v34, %v73_v34 }
  0x17   :  { %v238_v41 = vmul.f32 %v160_v36, %v20_v3  ;;  %v237_v42 = vmul.f32 %v160_v36, %v19_v2  ;;  %v106_v43 = vcombine.high %v96_v37, %v96_v37  ;;  %v164_v44 = vrot.slane %v96_v37, %v3441_v31  ;;  %v34_v2 = vld [vmem:[%s4522_s1 + $0x78] sm:$0xff]  ;;  %v41_v37 = vld [vmem:[%s4522_s1 + $0xb0] sm:$0xff] }
  0x18   :  { %v168_v48 = vrot.slane %v104_v35, %v3441_v31  ;;  %v103_v52 = vrot.slane %v75_v40, %v3438_v25  ;;  %v176_v57 = vrot.slane %v89_v39, %v3441_v31  ;;  %v105_v0 = vcombine.high %v89_v39, %v89_v39 }
  0x19   :  { %3145 = vmatprep.mubr.msk.f32.mxu0 %vm269_vm0, %v237_v42  ;;  %v240_v49 = vmul.f32 %v164_v44, %v22_v10  ;;  %v239_v50 = vmul.f32 %v164_v44, %v21_v9  ;;  %v172_v51 = vrot.slane %v106_v43, %v3441_v31  ;;  %v56_v3 = vmul.f32 0.6931472, %v3353_v58 }
  0x1a   :  { %3146 = vmatmul.mubr.msk.f32.vlgmr.msra.gmra.mrb[0].mxu0 %vm269_vm0, %v238_v41  ;;  %v241_v53 = vmul.f32 %v168_v48, %v23_v11  ;;  %v180_v59 = vrot.slane %v103_v52, %v3441_v31  ;;  %v242_v62 = vmul.f32 %v168_v48, %v3407_v13  ;;  %v245_v63 = vmul.f32 %v176_v57, %v27_v38  ;;  %v35_v13 = vld [vmem:[%s4522_s1 + $0x80] sm:$0xff]  ;;  %v42_v38 = vld [vmem:[%s4522_s1 + $0xb8] sm:$0xff] }
  0x1b   :  { %3152 = vmatprep.mubr.msk.f32.mxu1 %vm269_vm0, %v239_v50  ;;  %3270 = vmatpush3.bf16.xpose.msk.msra.mxu0 %vm3391_vm1, %v3265_v20  ;;  %v243_v56 = vmul.f32 %v172_v51, %v25_v14  ;;  %v244_v4 = vmul.f32 %v172_v51, %v3415_v15  ;;  %v107_v8 = vcombine.high %v103_v52, %v103_v52  ;;  %v36_v14 = vld [vmem:[%s4522_s1 + $0x88] sm:$0xff]  ;;  %v37_v20 = vld [vmem:[%s4522_s1 + $0x90] sm:$0xff]  ;;  %v43_v48 = vld [vmem:[%s4522_s1 + $0xc0] sm:$0xff] }
  0x1c   :  { %3153 = vmatmul.mubr.msk.f32.vlgmr.msra.gmra.mrb[0].mxu1 %vm269_vm0, %v240_v49  ;;  %3159 = vmatprep.mubr.msk.f32.mxu0 %vm269_vm0, %v241_v53  ;;  %v247_v7 = vmul.f32 %v180_v59, %v29_v46  ;;  %v3295_v9 = vpack.c.bf16 %v34_v2, %v33_v1  ;;  %v184_v10 = vrot.slane %v105_v0, %v3441_v31  ;;  %v44_v49 = vld [vmem:[%s4522_s1 + $0xc8] sm:$0xff] }
  0x1d   :  { %3276 = vmatpush3.bf16.xpose.msk.msra.mxu1 %vm3391_vm1, %v3271_v21  ;;  %3166 = vmatprep.mubr.msk.f32.mxu1 %vm269_vm0, %v243_v56  ;;  %v115_v11 = vrot.slane %v56_v3, %v3438_v25  ;;  %v188_v12 = vrot.slane %v107_v8, %v3441_v31  ;;  %v246_v16 = vmul.f32 %v176_v57, %v28_v45  ;;  %v38_v21 = vld [vmem:[%s4522_s1 + $0x98] sm:$0xff] }
  0x1e   :  { %3279 = vmatprep.subr.msk.bf16.mxu0 %vm3391_vm1, %v3277_v54  ;;  %3285 = vmatprep.subr.msk.bf16.mxu1 %vm3391_vm1, %v3283_v55  ;;  %v249_v17 = vmul.f32 %v184_v10, %v31_v60  ;;  %v248_v23 = vmul.f32 %v180_v59, %v30_v47  ;;  %v3301_v24 = vpack.c.bf16 %v36_v14, %v35_v13 }
  0x1f   :  { %v123_v15 = vcombine.high %v115_v11, %v115_v11  ;;  %v131_v19 = vrot.slane %v115_v11, %v3438_v25  ;;  %v251_v26 = vmul.f32 %v188_v12, %v33_v1  ;;  %v3307_v28 = vpack.c.bf16 %v38_v21, %v37_v20 }
  0x20   :  { %v250_v34 = vmul.f32 %v184_v10, %v32_v61  ;;  %v108_v39 = vcombine.high %v56_v3, %v56_v3  ;;  %v252_v40 = vmul.f32 %v188_v12, %v34_v2  ;;  %v3313_v41 = vpack.c.bf16 %v40_v33, %v39_v32  ;;  %v49_v12 = vld [vmem:[%s4522_s1 + $0xf0] sm:$0xff] }
  0x21   :  { %v145_v27 = vrot.slane %v123_v15, %v3438_v25  ;;  %v192_v29 = vrot.slane %v131_v19, %v3441_v31  ;;  %v153_v36 = vcombine.high %v131_v19, %v131_v19  ;;  %v3319_v44 = vpack.c.bf16 %v42_v38, %v41_v37 }
  0x22   :  { %3160 = vmatmul.mubr.msk.f32.vlgmr.msra.gmra.mrb[2].mxu0 %vm269_vm0, %v242_v62  ;;  %v122_v46 = vrot.slane %v108_v39, %v3438_v25  ;;  %v3325_v57 = vpack.c.bf16 %v44_v49, %v43_v48 }
  0x23   :  { %3282 = vmatpush3.bf16.xpose.msk.msra.mxu0 %vm3391_vm1, %v3277_v54  ;;  %3173 = vmatprep.mubr.msk.f32.mxu0 %vm269_vm0, %v245_v63  ;;  %v196_v30 = vrot.slane %v145_v27, %v3441_v31  ;;  %v253_v35 = vmul.f32 %v192_v29, %v35_v13  ;;  %v155_v43 = vcombine.high %v145_v27, %v145_v27  ;;  %v45_v54 = vld [vmem:[%s4522_s1 + $0xd0] sm:$0xff]  ;;  %v50_v13 = vld [vmem:[%s4522_s1 + $0xf8] sm:$0xff] }
  0x24   :  { %3167 = vmatmul.mubr.msk.f32.vlgmr.msra.gmra.mrb[2].mxu1 %vm269_vm0, %v244_v4  ;;  %3291 = vmatprep.subr.msk.bf16.mxu0 %vm3391_vm1, %v3289_v6  ;;  %v200_v45 = vrot.slane %v153_v36, %v3441_v31  ;;  %v124_v50 = vcombine.high %v122_v46, %v122_v46  ;;  %v254_v51 = vmul.f32 %v192_v29, %v36_v14  ;;  %v47_v4 = vld [vmem:[%s4522_s1 + $0xe0] sm:$0xff]  ;;  %v3662_v36 = vld [vmem:[%s4523_s2 + $0x10] sm:$0xff] }
  0x25   :  { %3288 = vmatpush3.bf16.xpose.msk.msra.mxu1 %vm3391_vm1, %v3283_v55  ;;  %3180 = vmatprep.mubr.msk.f32.mxu1 %vm269_vm0, %v247_v7  ;;  %v255_v42 = vmul.f32 %v196_v30, %v37_v20  ;;  %v204_v47 = vrot.slane %v155_v43, %v3441_v31  ;;  %v138_v53 = vrot.slane %v122_v46, %v3438_v25  ;;  %v46_v55 = vld [vmem:[%s4522_s1 + $0xd8] sm:$0xff] }
  0x26   :  { %3297 = vmatprep.subr.msk.bf16.mxu1 %vm3391_vm1, %v3295_v9  ;;  %v257_v52 = vmul.f32 %v200_v45, %v39_v32  ;;  %v256_v56 = vmul.f32 %v196_v30, %v38_v21  ;;  %v152_v59 = vrot.slane %v124_v50, %v3438_v25  ;;  %v3331_v60 = vpack.c.bf16 %v46_v55, %v45_v54  ;;  %v3631_v20 = vld [vmem:[%s4523_s2 + $0x18] sm:$0xff]  ;;  %v3688_v50 = vld [vmem:[%s4523_s2 + $0x30] sm:$0xff] }
  0x27   :  { %v259_v58 = vmul.f32 %v204_v47, %v41_v37  ;;  %v208_v61 = vrot.slane %v138_v53, %v3441_v31  ;;  %v258_v62 = vmul.f32 %v200_v45, %v40_v33  ;;  %v260_v0 = vmul.f32 %v204_v47, %v42_v38 }
  0x28   :  { %v212_v25 = vrot.slane %v152_v59, %v3441_v31  ;;  %v154_v7 = vcombine.high %v138_v53, %v138_v53  ;;  %v156_v14 = vcombine.high %v152_v59, %v152_v59  ;;  %v3343_v15 = vpack.c.bf16 %v50_v13, %v49_v12 }
  0x29   :  { %v261_v63 = vmul.f32 %v208_v61, %v43_v48  ;;  %v262_v2 = vmul.f32 %v208_v61, %v44_v49 }
  0x2a   :  { %3174 = vmatmul.mubr.msk.f32.vlgmr.msra.gmra.mrb[4].mxu0 %vm269_vm0, %v246_v16  ;;  %v263_v1 = vmul.f32 %v212_v25, %v45_v54  ;;  %v264_v3 = vmul.f32 %v212_v25, %v46_v55  ;;  %v220_v16 = vrot.slane %v156_v14, %v3441_v31 }
  0x2b   :  { %3294 = vmatpush3.bf16.xpose.msk.msra.mxu0 %vm3391_vm1, %v3289_v6  ;;  %3187 = vmatprep.mubr.msk.f32.mxu0 %vm269_vm0, %v249_v17  ;;  %v48_v6 = vld [vmem:[%s4522_s1 + $0xe8] sm:$0xff] }
  0x2c   :  { %3181 = vmatmul.mubr.msk.f32.vlgmr.msra.gmra.mrb[4].mxu1 %vm269_vm0, %v248_v23  ;;  %3303 = vmatprep.subr.msk.bf16.mxu0 %vm3391_vm1, %v3301_v24  ;;  %v3337_v8 = vpack.c.bf16 %v48_v6, %v47_v4  ;;  %v268_v17 = vmul.f32 %v220_v16, %v50_v13  ;;  %v267_v19 = vmul.f32 %v220_v16, %v49_v12  ;;  %v3646_v23 = vld [vmem:[%s4523_s2] sm:$0xff] }
  0x2d   :  { %3300 = vmatpush3.bf16.xpose.msk.msra.mxu1 %vm3391_vm1, %v3295_v9  ;;  %3194 = vmatprep.mubr.msk.f32.mxu1 %vm269_vm0, %v251_v26  ;;  %v216_v9 = vrot.slane %v154_v7, %v3441_v31  ;;  %v3636_v31 = vld [vmem:[%s4523_s2 + $0x8] sm:$0xff] }
  0x2e   :  { %3309 = vmatprep.subr.msk.bf16.mxu1 %vm3391_vm1, %v3307_v28 }
  0x2f   :  { %v266_v10 = vmul.f32 %v216_v9, %v48_v6  ;;  %v265_v11 = vmul.f32 %v216_v9, %v47_v4 }
  0x32   :  { %3188 = vmatmul.mubr.msk.f32.vlgmr.msra.gmra.mrb[6].mxu0 %vm269_vm0, %v250_v34 }
  0x33   :  { %3306 = vmatpush3.bf16.xpose.msk.msra.mxu0 %vm3391_vm1, %v3301_v24  ;;  %3201 = vmatprep.mubr.msk.f32.mxu0 %vm269_vm0, %v253_v35  ;;  %v3657_v35 = vld [vmem:[%s4523_s2 + $0x38] sm:$0xff] }
  0x34   :  { %3195 = vmatmul.mubr.msk.f32.vlgmr.msra.gmra.mrb[6].mxu1 %vm269_vm0, %v252_v40  ;;  %3315 = vmatprep.subr.msk.bf16.mxu0 %vm3391_vm1, %v3313_v41 }
  0x35   :  { %3312 = vmatpush3.bf16.xpose.msk.msra.mxu1 %vm3391_vm1, %v3307_v28  ;;  %3208 = vmatprep.mubr.msk.f32.mxu1 %vm269_vm0, %v255_v42 }
  0x36   :  { %3321 = vmatprep.subr.msk.bf16.mxu1 %vm3391_vm1, %v3319_v44 }
  0x3a   :  { %3202 = vmatmul.mubr.msk.f32.vlgmr.msra.gmra.mrb[8].mxu0 %vm269_vm0, %v254_v51 }
  0x3b   :  { %3318 = vmatpush3.bf16.xpose.msk.msra.mxu0 %vm3391_vm1, %v3313_v41  ;;  %3215 = vmatprep.mubr.msk.f32.mxu0 %vm269_vm0, %v257_v52  ;;  %v3671_v41 = vld [vmem:[%s4523_s2 + $0x20] sm:$0xff] }
  0x3c   :  { %3209 = vmatmul.mubr.msk.f32.vlgmr.msra.gmra.mrb[8].mxu1 %vm269_vm0, %v256_v56  ;;  %3327 = vmatprep.subr.msk.bf16.mxu0 %vm3391_vm1, %v3325_v57 }
  0x3d   :  { %3324 = vmatpush3.bf16.xpose.msk.msra.mxu1 %vm3391_vm1, %v3319_v44  ;;  %3222 = vmatprep.mubr.msk.f32.mxu1 %vm269_vm0, %v259_v58 }
  0x3e   :  { %3333 = vmatprep.subr.msk.bf16.mxu1 %vm3391_vm1, %v3331_v60 }
  0x42   :  { %3216 = vmatmul.mubr.msk.f32.vlgmr.msra.gmra.mrb[10].mxu0 %vm269_vm0, %v258_v62 }
  0x43   :  { %3330 = vmatpush3.bf16.xpose.msk.msra.mxu0 %vm3391_vm1, %v3325_v57  ;;  %3229 = vmatprep.mubr.msk.f32.mxu0 %vm269_vm0, %v261_v63 }
  0x44   :  { %3223 = vmatmul.mubr.msk.f32.vlgmr.msra.gmra.mrb[10].mxu1 %vm269_vm0, %v260_v0  ;;  %3339 = vmatprep.subr.msk.bf16.mxu0 %vm3391_vm1, %v3337_v8 }
  0x45   :  { %3336 = vmatpush3.bf16.xpose.msk.msra.mxu1 %vm3391_vm1, %v3331_v60  ;;  %3236 = vmatprep.mubr.msk.f32.mxu1 %vm269_vm0, %v263_v1 }
  0x46   :  { %3345 = vmatprep.subr.msk.bf16.mxu1 %vm3391_vm1, %v3343_v15 }
  0x4a   :  { %3230 = vmatmul.mubr.msk.f32.vlgmr.msra.gmra.mrb[12].mxu0 %vm269_vm0, %v262_v2 }
  0x4b   :  { %3342 = vmatpush3.bf16.xpose.msk.msra.mxu0 %vm3391_vm1, %v3337_v8  ;;  %3243 = vmatprep.mubr.msk.f32.mxu0 %vm269_vm0, %v265_v11 }
  0x4c   :  { %3237 = vmatmul.mubr.msk.f32.vlgmr.msra.gmra.mrb[12].mxu1 %vm269_vm0, %v264_v3 }
  0x4d   :  { %3348 = vmatpush3.bf16.xpose.msk.msra.mxu1 %vm3391_vm1, %v3343_v15  ;;  %3250 = vmatprep.mubr.msk.f32.mxu1 %vm269_vm0, %v267_v19 }
  0x52   :  { %3244 = vmatmul.mubr.msk.f32.vlgmr.msra.gmra.mrb[14].mxu0 %vm269_vm0, %v266_v10 }
  0x54   :  { %3251 = vmatmul.mubr.msk.f32.vlgmr.msra.gmra.mrb[14].mxu1 %vm269_vm0, %v268_v17 }
  0xed   :  { %v3147_v21 = vpop.f32.mrb[0].mxu0 }
  0xee   :  { %v348_v24 = vpop.f32.mrb[1].mxu0  ;;  %v2008_v26 = vmul.f32 %v3147_v21, %v3631_v20  ;;  %v1671_v27 = vmul.f32 %v3147_v21, %v3636_v31  ;;  %v2334_v32 = vmul.f32 %v3147_v21, %v3641_v5  ;;  %v2660_v39 = vmul.f32 %v3147_v21, %v3657_v35 }
  0xef   :  { %v3154_v28 = vpop.f32.mrb[0].mxu1  ;;  %v1670_v33 = vmul.f32 %v3646_v23, %v348_v24  ;;  %v2007_v40 = vmul.f32 %v3662_v36, %v348_v24  ;;  %v2333_v48 = vmul.f32 %v3671_v41, %v348_v24  ;;  %v2659_v53 = vmul.f32 %v3688_v50, %v348_v24 }
  0xf0   :  { %v2042_v29 = vsel %vm269_vm0, %v2008_v26, 0.0  ;;  %v1705_v30 = vsel %vm269_vm0, %v1671_v27, 0.0  ;;  %v435_v34 = vpop.f32.mrb[1].mxu1  ;;  %v2368_v37 = vsel %vm269_vm0, %v2334_v32, 0.0  ;;  %v1673_v43 = vmul.f32 %v3154_v28, %v3636_v31 }
  0xf1   :  { %2043 = vadd.xlane.f32.xlu1 %v2042_v29  ;;  %1706 = vadd.xlane.f32.xlu0 %v1705_v30  ;;  %v1702_v38 = vsel %vm269_vm0, %v1670_v33, 0.0  ;;  %v2694_v46 = vsel %vm269_vm0, %v2660_v39, 0.0  ;;  %v2039_v47 = vsel %vm269_vm0, %v2007_v40, 0.0  ;;  %v2365_v52 = vsel %vm269_vm0, %v2333_v48, 0.0 }
  0xf2   :  { %v1711_v51 = vsel %vm269_vm0, %v1673_v43, 0.0  ;;  %v2010_v54 = vmul.f32 %v3154_v28, %v3631_v20  ;;  %v2691_v58 = vsel %vm269_vm0, %v2659_v53, 0.0  ;;  %v2336_v60 = vmul.f32 %v3154_v28, %v3641_v5 }
  0xf3   :  { %v2009_v61 = vmul.f32 %v3662_v36, %v435_v34  ;;  %v2662_v0 = vmul.f32 %v3154_v28, %v3657_v35  ;;  %v2335_v1 = vmul.f32 %v3671_v41, %v435_v34  ;;  %v2661_v8 = vmul.f32 %v3688_v50, %v435_v34 }
  0xf4   :  { %v2048_v59 = vsel %vm269_vm0, %v2010_v54, 0.0  ;;  %v2374_v62 = vsel %vm269_vm0, %v2336_v60, 0.0  ;;  %v1672_v9 = vmul.f32 %v3646_v23, %v435_v34 }
  0xf5   :  { %2369 = vadd.xlane.f32.xlu1 %v2368_v37  ;;  %1703 = vadd.xlane.f32.xlu0 %v1702_v38  ;;  %v3673_v42 = vpop.f32.mrb[2].mxu0  ;;  %v2045_v63 = vsel %vm269_vm0, %v2009_v61, 0.0  ;;  %v2700_v6 = vsel %vm269_vm0, %v2662_v0, 0.0  ;;  %v2371_v7 = vsel %vm269_vm0, %v2335_v1, 0.0  ;;  %v2697_v13 = vsel %vm269_vm0, %v2661_v8, 0.0 }
  0xf6   :  { %v3676_v44 = vpop.f32.mrb[3].mxu0  ;;  %v1675_v12 = vmul.f32 %v3673_v42, %v3636_v31  ;;  %v1708_v14 = vsel %vm269_vm0, %v1672_v9, 0.0  ;;  %v2012_v26 = vmul.f32 %v3673_v42, %v3631_v20  ;;  %v2338_v32 = vmul.f32 %v3673_v42, %v3641_v5 }
  0xf7   :  { %v3678_v45 = vpop.f32.mrb[2].mxu1  ;;  %v1674_v11 = vmul.f32 %v3646_v23, %v3676_v44  ;;  %v2011_v24 = vmul.f32 %v3662_v36, %v3676_v44  ;;  %v2337_v30 = vmul.f32 %v3671_v41, %v3676_v44  ;;  %v2663_v39 = vmul.f32 %v3688_v50, %v3676_v44 }
  0xf8   :  { %v3683_v49 = vpop.f32.mrb[3].mxu1  ;;  %v1717_v17 = vsel %vm269_vm0, %v1675_v12, 0.0  ;;  %v2054_v29 = vsel %vm269_vm0, %v2012_v26, 0.0  ;;  %v2380_v38 = vsel %vm269_vm0, %v2338_v32, 0.0  ;;  %v2664_v40 = vmul.f32 %v3673_v42, %v3657_v35 }
  0xf9   :  { %2695 = vadd.xlane.f32.xlu1 %v2694_v46  ;;  %2040 = vadd.xlane.f32.xlu0 %v2039_v47  ;;  %v1714_v16 = vsel %vm269_vm0, %v1674_v11, 0.0  ;;  %v2051_v28 = vsel %vm269_vm0, %v2011_v24, 0.0  ;;  %v2377_v37 = vsel %vm269_vm0, %v2337_v30, 0.0  ;;  %v1677_v43 = vmul.f32 %v3678_v45, %v3636_v31 }
  0xfa   :  { %v1676_v46 = vmul.f32 %v3646_v23, %v3683_v49  ;;  %v2703_v47 = vsel %vm269_vm0, %v2663_v39, 0.0  ;;  %v2706_v48 = vsel %vm269_vm0, %v2664_v40, 0.0  ;;  %v2014_v53 = vmul.f32 %v3678_v45, %v3631_v20 }
  0xfb   :  { %v1723_v42 = vsel %vm269_vm0, %v1677_v43, 0.0  ;;  %v2013_v54 = vmul.f32 %v3662_v36, %v3683_v49  ;;  %v2340_v60 = vmul.f32 %v3678_v45, %v3641_v5  ;;  %v2339_v61 = vmul.f32 %v3671_v41, %v3683_v49 }
  0xfc   :  { %v2666_v0 = vmul.f32 %v3678_v45, %v3657_v35  ;;  %v2665_v1 = vmul.f32 %v3688_v50, %v3683_v49 }
  0xfd   :  { %2366 = vadd.xlane.f32.xlu0 %v2365_v52  ;;  %1712 = vadd.xlane.f32.xlu1 %v1711_v51  ;;  %v3694_v55 = vpop.f32.mrb[4].mxu0  ;;  %v1720_v52 = vsel %vm269_vm0, %v1676_v46, 0.0 }
  0xfe   :  { %v3696_v56 = vpop.f32.mrb[5].mxu0  ;;  %v2712_v8 = vsel %vm269_vm0, %v2666_v0, 0.0  ;;  %v2709_v9 = vsel %vm269_vm0, %v2665_v1, 0.0  ;;  %v2342_v24 = vmul.f32 %v3694_v55, %v3641_v5  ;;  %v2668_v30 = vmul.f32 %v3694_v55, %v3657_v35 }
  0xff   :  { %v3698_v57 = vpop.f32.mrb[4].mxu1  ;;  %v2341_v26 = vmul.f32 %v3671_v41, %v3696_v56  ;;  %v2667_v32 = vmul.f32 %v3688_v50, %v3696_v56 }
 0x100   :  { %v3704_v25 = vpop.f32.mrb[5].mxu1  ;;  %v2718_v39 = vsel %vm269_vm0, %v2668_v30, 0.0 }
 0x101   :  { %2692 = vadd.xlane.f32.xlu0 %v2691_v58  ;;  %2049 = vadd.xlane.f32.xlu1 %v2048_v59  ;;  %v2060_v58 = vsel %vm269_vm0, %v2014_v53, 0.0  ;;  %v2057_v59 = vsel %vm269_vm0, %v2013_v54, 0.0  ;;  %v2715_v40 = vsel %vm269_vm0, %v2667_v32, 0.0  ;;  %v2344_v53 = vmul.f32 %v3698_v57, %v3641_v5 }
 0x102   :  { %v2343_v54 = vmul.f32 %v3671_v41, %v3704_v25 }
 0x105   :  { %2375 = vadd.xlane.f32.xlu1 %v2374_v62  ;;  %2046 = vadd.xlane.f32.xlu0 %v2045_v63  ;;  %v3710_v2 = vpop.f32.mrb[6].mxu0  ;;  %v2386_v62 = vsel %vm269_vm0, %v2340_v60, 0.0  ;;  %v2383_v63 = vsel %vm269_vm0, %v2339_v61, 0.0  ;;  %v2670_v60 = vmul.f32 %v3698_v57, %v3657_v35  ;;  %v2669_v61 = vmul.f32 %v3688_v50, %v3704_v25 }
 0x106   :  { %v3712_v3 = vpop.f32.mrb[7].mxu0 }
 0x107   :  { %v3714_v4 = vpop.f32.mrb[6].mxu1  ;;  %v2724_v0 = vsel %vm269_vm0, %v2670_v60, 0.0  ;;  %v2721_v1 = vsel %vm269_vm0, %v2669_v61, 0.0 }
 0x108   :  { %v3720_v10 = vpop.f32.mrb[7].mxu1 }
 0x109   :  { %2701 = vadd.xlane.f32.xlu1 %v2700_v6  ;;  %2372 = vadd.xlane.f32.xlu0 %v2371_v7  ;;  %v1679_v6 = vmul.f32 %v3694_v55, %v3636_v31  ;;  %v1678_v7 = vmul.f32 %v3646_v23, %v3696_v56 }
 0x10b   :  { %v1729_v49 = vsel %vm269_vm0, %v1679_v6, 0.0  ;;  %v1726_v12 = vsel %vm269_vm0, %v1678_v7, 0.0 }
 0x10d   :  { %2698 = vadd.xlane.f32.xlu0 %v2697_v13  ;;  %1709 = vadd.xlane.f32.xlu1 %v1708_v14  ;;  %v3728_v15 = vpop.f32.mrb[8].mxu0  ;;  %v2016_v13 = vmul.f32 %v3694_v55, %v3631_v20  ;;  %v2015_v14 = vmul.f32 %v3662_v36, %v3696_v56 }
 0x10e   :  { %v3732_v19 = vpop.f32.mrb[9].mxu0 }
 0x10f   :  { %v3734_v21 = vpop.f32.mrb[8].mxu1 }
 0x110   :  { %v3740_v27 = vpop.f32.mrb[9].mxu1 }
 0x111   :  { %1715 = vadd.xlane.f32.xlu0 %v1714_v16  ;;  %1718 = vadd.xlane.f32.xlu1 %v1717_v17  ;;  %v2066_v16 = vsel %vm269_vm0, %v2016_v13, 0.0  ;;  %v2063_v17 = vsel %vm269_vm0, %v2015_v14, 0.0  ;;  %v2346_v13 = vmul.f32 %v3710_v2, %v3641_v5  ;;  %v2345_v14 = vmul.f32 %v3671_v41, %v3712_v3 }
 0x115   :  { %2052 = vadd.xlane.f32.xlu0 %v2051_v28  ;;  %2055 = vadd.xlane.f32.xlu1 %v2054_v29  ;;  %v3748_v33 = vpop.f32.mrb[10].mxu0  ;;  %v2392_v28 = vsel %vm269_vm0, %v2342_v24, 0.0  ;;  %v2389_v29 = vsel %vm269_vm0, %v2341_v26, 0.0  ;;  %v2672_v24 = vmul.f32 %v3710_v2, %v3657_v35  ;;  %v2671_v26 = vmul.f32 %v3688_v50, %v3712_v3 }
 0x116   :  { %v3750_v34 = vpop.f32.mrb[11].mxu0 }
 0x117   :  { %v3764_v51 = vpop.f32.mrb[10].mxu1  ;;  %v2730_v30 = vsel %vm269_vm0, %v2672_v24, 0.0  ;;  %v2727_v32 = vsel %vm269_vm0, %v2671_v26, 0.0 }
 0x118   :  { %v3766_v44 = vpop.f32.mrb[11].mxu1 }
 0x119   :  { %2378 = vadd.xlane.f32.xlu0 %v2377_v37  ;;  %2381 = vadd.xlane.f32.xlu1 %v2380_v38  ;;  %v1681_v37 = vmul.f32 %v3698_v57, %v3636_v31  ;;  %v1680_v38 = vmul.f32 %v3646_v23, %v3704_v25 }
 0x11b   :  { %v1735_v56 = vsel %vm269_vm0, %v1681_v37, 0.0  ;;  %v1732_v46 = vsel %vm269_vm0, %v1680_v38, 0.0 }
 0x11d   :  { %2704 = vadd.xlane.f32.xlu0 %v2703_v47  ;;  %2707 = vadd.xlane.f32.xlu1 %v2706_v48  ;;  %v3792_v11 = vpop.f32.mrb[12].mxu0  ;;  %v2018_v47 = vmul.f32 %v3698_v57, %v3631_v20  ;;  %v2017_v48 = vmul.f32 %v3662_v36, %v3704_v25 }
 0x11e   :  { %v3794_v45 = vpop.f32.mrb[13].mxu0 }
 0x11f   :  { %v3820_v43 = vpop.f32.mrb[12].mxu1 }
 0x120   :  { %v3822_v55 = vpop.f32.mrb[13].mxu1 }
 0x121   :  { %1724 = vadd.xlane.f32.xlu1 %v1723_v42  ;;  %1721 = vadd.xlane.f32.xlu0 %v1720_v52  ;;  %v2072_v42 = vsel %vm269_vm0, %v2018_v47, 0.0  ;;  %v2069_v52 = vsel %vm269_vm0, %v2017_v48, 0.0  ;;  %v2348_v47 = vmul.f32 %v3714_v4, %v3641_v5  ;;  %v2347_v48 = vmul.f32 %v3671_v41, %v3720_v10 }
 0x125   :  { %2061 = vadd.xlane.f32.xlu1 %v2060_v58  ;;  %2058 = vadd.xlane.f32.xlu0 %v2057_v59  ;;  %v2398_v58 = vsel %vm269_vm0, %v2344_v53, 0.0  ;;  %v2395_v59 = vsel %vm269_vm0, %v2343_v54, 0.0  ;;  %v3848_v6 = vpop.f32.mrb[14].mxu0  ;;  %v2674_v53 = vmul.f32 %v3714_v4, %v3657_v35  ;;  %v2673_v54 = vmul.f32 %v3688_v50, %v3720_v10 }
 0x126   :  { %v3850_v57 = vpop.f32.mrb[15].mxu0 }
 0x127   :  { %v3876_v37 = vpop.f32.mrb[14].mxu1  ;;  %v2736_v60 = vsel %vm269_vm0, %v2674_v53, 0.0  ;;  %v2733_v61 = vsel %vm269_vm0, %v2673_v54, 0.0 }
 0x129   :  { %2387 = vadd.xlane.f32.xlu1 %v2386_v62  ;;  %2384 = vadd.xlane.f32.xlu0 %v2383_v63  ;;  %v1683_v62 = vmul.f32 %v3710_v2, %v3636_v31  ;;  %v1682_v63 = vmul.f32 %v3646_v23, %v3712_v3 }
 0x12b   :  { %v1741_v25 = vsel %vm269_vm0, %v1683_v62, 0.0  ;;  %v1738_v7 = vsel %vm269_vm0, %v1682_v63, 0.0  ;;  %v2023_v63 = vmul.f32 %v3662_v36, %v3732_v19 }
 0x12d   :  { %2713 = vadd.xlane.f32.xlu1 %v2712_v8  ;;  %2710 = vadd.xlane.f32.xlu0 %v2709_v9  ;;  %v2020_v8 = vmul.f32 %v3710_v2, %v3631_v20  ;;  %v2019_v9 = vmul.f32 %v3662_v36, %v3712_v3  ;;  %v3878_v2 = vpop.f32.mrb[15].mxu1 }
 0x131   :  { %1730 = vadd.xlane.f32.xlu1 %v1729_v49  ;;  %1727 = vadd.xlane.f32.xlu0 %v1726_v12  ;;  %v2078_v49 = vsel %vm269_vm0, %v2020_v8, 0.0  ;;  %v2075_v12 = vsel %vm269_vm0, %v2019_v9, 0.0 }
 0x135   :  { %2067 = vadd.xlane.f32.xlu1 %v2066_v16  ;;  %2064 = vadd.xlane.f32.xlu0 %v2063_v17  ;;  %v2404_v16 = vsel %vm269_vm0, %v2346_v13, 0.0  ;;  %v2401_v17 = vsel %vm269_vm0, %v2345_v14, 0.0  ;;  %v1689_v13 = vmul.f32 %v3734_v21, %v3636_v31  ;;  %v1688_v14 = vmul.f32 %v3646_v23, %v3740_v27 }
 0x139   :  { %2393 = vadd.xlane.f32.xlu1 %v2392_v28  ;;  %2390 = vadd.xlane.f32.xlu0 %v2389_v29  ;;  %v1685_v28 = vmul.f32 %v3714_v4, %v3636_v31  ;;  %v1684_v29 = vmul.f32 %v3646_v23, %v3720_v10 }
 0x13b   :  { %v1747_v3 = vsel %vm269_vm0, %v1685_v28, 0.0  ;;  %v1744_v38 = vsel %vm269_vm0, %v1684_v29, 0.0  ;;  %v2026_v28 = vmul.f32 %v3734_v21, %v3631_v20  ;;  %v2025_v29 = vmul.f32 %v3662_v36, %v3740_v27 }
 0x13d   :  { %2719 = vadd.xlane.f32.xlu1 %v2718_v39  ;;  %2716 = vadd.xlane.f32.xlu0 %v2715_v40  ;;  %v2022_v39 = vmul.f32 %v3714_v4, %v3631_v20  ;;  %v2021_v40 = vmul.f32 %v3662_v36, %v3720_v10  ;;  %v2024_v10 = vmul.f32 %v3728_v15, %v3631_v20 }
 0x141   :  { %1736 = vadd.xlane.f32.xlu1 %v1735_v56  ;;  %1733 = vadd.xlane.f32.xlu0 %v1732_v46  ;;  %v2084_v56 = vsel %vm269_vm0, %v2022_v39, 0.0  ;;  %v2081_v46 = vsel %vm269_vm0, %v2021_v40, 0.0  ;;  %v2096_v39 = vsel %vm269_vm0, %v2026_v28, 0.0  ;;  %v2093_v40 = vsel %vm269_vm0, %v2025_v29, 0.0 }
 0x145   :  { %2073 = vadd.xlane.f32.xlu1 %v2072_v42  ;;  %2070 = vadd.xlane.f32.xlu0 %v2069_v52  ;;  %v2410_v42 = vsel %vm269_vm0, %v2348_v47, 0.0  ;;  %v2407_v52 = vsel %vm269_vm0, %v2347_v48, 0.0 }
 0x149   :  { %2399 = vadd.xlane.f32.xlu1 %v2398_v58  ;;  %2396 = vadd.xlane.f32.xlu0 %v2395_v59  ;;  %v1687_v58 = vmul.f32 %v3728_v15, %v3636_v31  ;;  %v1686_v59 = vmul.f32 %v3646_v23, %v3732_v19 }
 0x14b   :  { %v1753_v62 = vsel %vm269_vm0, %v1687_v58, 0.0  ;;  %v1750_v4 = vsel %vm269_vm0, %v1686_v59, 0.0  ;;  %v2678_v59 = vmul.f32 %v3734_v21, %v3657_v35 }
 0x14d   :  { %2725 = vadd.xlane.f32.xlu1 %v2724_v0  ;;  %2722 = vadd.xlane.f32.xlu0 %v2721_v1  ;;  %v2090_v0 = vsel %vm269_vm0, %v2024_v10, 0.0  ;;  %v2087_v1 = vsel %vm269_vm0, %v2023_v63, 0.0  ;;  %v1691_v10 = vmul.f32 %v3748_v33, %v3636_v31  ;;  %v1690_v63 = vmul.f32 %v3646_v23, %v3750_v34 }
 0x151   :  { %1742 = vadd.xlane.f32.xlu1 %v1741_v25  ;;  %1739 = vadd.xlane.f32.xlu0 %v1738_v7  ;;  %v2350_v25 = vmul.f32 %v3728_v15, %v3641_v5  ;;  %v2349_v7 = vmul.f32 %v3671_v41, %v3732_v19 }
 0x153   :  { %v2416_v8 = vsel %vm269_vm0, %v2350_v25, 0.0  ;;  %v2413_v9 = vsel %vm269_vm0, %v2349_v7, 0.0 }
 0x155   :  { %2079 = vadd.xlane.f32.xlu1 %v2078_v49  ;;  %2076 = vadd.xlane.f32.xlu0 %v2075_v12  ;;  %v2676_v49 = vmul.f32 %v3728_v15, %v3657_v35  ;;  %v2675_v12 = vmul.f32 %v3688_v50, %v3732_v19  ;;  %v1759_v15 = vsel %vm269_vm0, %v1689_v13, 0.0  ;;  %v1756_v19 = vsel %vm269_vm0, %v1688_v14, 0.0 }
 0x156   :  { %v2028_v14 = vmul.f32 %v3748_v33, %v3631_v20 }
 0x158   :  { %v2102_v28 = vsel %vm269_vm0, %v2028_v14, 0.0  ;;  %v2030_v14 = vmul.f32 %v3764_v51, %v3631_v20 }
 0x159   :  { %2405 = vadd.xlane.f32.xlu1 %v2404_v16  ;;  %2402 = vadd.xlane.f32.xlu0 %v2401_v17  ;;  %v2742_v16 = vsel %vm269_vm0, %v2676_v49, 0.0  ;;  %v2739_v17 = vsel %vm269_vm0, %v2675_v12, 0.0  ;;  %v1762_v49 = vsel %vm269_vm0, %v1690_v63, 0.0 }
 0x15d   :  { %2731 = vadd.xlane.f32.xlu1 %v2730_v30  ;;  %2728 = vadd.xlane.f32.xlu0 %v2727_v32 }
 0x161   :  { %1748 = vadd.xlane.f32.xlu1 %v1747_v3  ;;  %1745 = vadd.xlane.f32.xlu0 %v1744_v38 }
 0x165   :  { %2085 = vadd.xlane.f32.xlu1 %v2084_v56  ;;  %2082 = vadd.xlane.f32.xlu0 %v2081_v46  ;;  %v2352_v56 = vmul.f32 %v3734_v21, %v3641_v5  ;;  %v2351_v46 = vmul.f32 %v3671_v41, %v3740_v27  ;;  %v2748_v21 = vsel %vm269_vm0, %v2678_v59, 0.0 }
 0x167   :  { %v2422_v54 = vsel %vm269_vm0, %v2352_v56, 0.0  ;;  %v2419_v58 = vsel %vm269_vm0, %v2351_v46, 0.0 }
 0x169   :  { %2411 = vadd.xlane.f32.xlu1 %v2410_v42  ;;  %2408 = vadd.xlane.f32.xlu0 %v2407_v52 }
 0x16d   :  { %2737 = vadd.xlane.f32.xlu1 %v2736_v60  ;;  %2734 = vadd.xlane.f32.xlu0 %v2733_v61  ;;  %v2677_v60 = vmul.f32 %v3688_v50, %v3740_v27 }
 0x16f   :  { %v2745_v27 = vsel %vm269_vm0, %v2677_v60, 0.0 }
 0x171   :  { %1754 = vadd.xlane.f32.xlu1 %v1753_v62  ;;  %1751 = vadd.xlane.f32.xlu0 %v1750_v4 }
 0x175   :  { %2091 = vadd.xlane.f32.xlu1 %v2090_v0  ;;  %2088 = vadd.xlane.f32.xlu0 %v2087_v1 }
 0x179   :  { %2417 = vadd.xlane.f32.xlu1 %v2416_v8  ;;  %2414 = vadd.xlane.f32.xlu0 %v2413_v9  ;;  %v1765_v9 = vsel %vm269_vm0, %v1691_v10, 0.0 }
 0x17d   :  { %2743 = vadd.xlane.f32.xlu1 %v2742_v16  ;;  %2740 = vadd.xlane.f32.xlu0 %v2739_v17  ;;  %v2027_v16 = vmul.f32 %v3662_v36, %v3750_v34 }
 0x17e   :  { %v2044_v24 = vpop.xlane.xlu1 %2043  ;;  %v1707_v26 = vpop.xlane.xlu0 %1706 }
 0x17f   :  { %v1840_v3 = vrot.slane %v1707_v26, %v3427_v22  ;;  %v2174_v52 = vrot.slane %v2044_v24, %v3427_v22  ;;  %v2099_v29 = vsel %vm269_vm0, %v2027_v16, 0.0  ;;  %v2029_v16 = vmul.f32 %v3662_v36, %v3766_v44 }
 0x181   :  { %1760 = vadd.xlane.f32.xlu1 %v1759_v15  ;;  %1757 = vadd.xlane.f32.xlu0 %v1756_v19 }
 0x182   :  { %v2370_v30 = vpop.xlane.xlu1 %2369  ;;  %v1704_v32 = vpop.xlane.xlu0 %1703 }
 0x183   :  { %v1835_v38 = vrot.slane %v1704_v32, %v3419_v18  ;;  %v2500_v0 = vrot.slane %v2370_v30, %v3427_v22  ;;  %v2354_v30 = vmul.f32 %v3748_v33, %v3641_v5  ;;  %v2353_v32 = vmul.f32 %v3671_v41, %v3750_v34 }
 0x185   :  { %v3943_v47 = vsel %vm1841_vm2, %v1840_v3, %v1835_v38  ;;  %2097 = vadd.xlane.f32.xlu1 %v2096_v39  ;;  %2094 = vadd.xlane.f32.xlu0 %v2093_v40 }
 0x186   :  { %v2696_v48 = vpop.xlane.xlu1 %2695  ;;  %v2041_v42 = vpop.xlane.xlu0 %2040 }
 0x187   :  { %v2170_v53 = vrot.slane %v2041_v42, %v3419_v18  ;;  %v2826_v12 = vrot.slane %v2696_v48, %v3427_v22  ;;  %v2428_v48 = vsel %vm269_vm0, %v2354_v30, 0.0  ;;  %v2425_v42 = vsel %vm269_vm0, %v2353_v32, 0.0 }
 0x188   :  { %v2356_v30 = vmul.f32 %v3764_v51, %v3641_v5  ;;  %v2355_v32 = vmul.f32 %v3671_v41, %v3766_v44 }
 0x189   :  { %v2175_v61 = vsel %vm1841_vm2, %v2174_v52, %v2170_v53  ;;  %2423 = vadd.xlane.f32.xlu1 %v2422_v54  ;;  %2420 = vadd.xlane.f32.xlu0 %v2419_v58  ;;  %v2680_v52 = vmul.f32 %v3748_v33, %v3657_v35  ;;  %v2679_v53 = vmul.f32 %v3688_v50, %v3750_v34 }
 0x18a   :  { %v2367_v62 = vpop.xlane.xlu0 %2366  ;;  %v1713_v4 = vpop.xlane.xlu1 %1712 }
 0x18b   :  { %v2496_v1 = vrot.slane %v2367_v62, %v3419_v18  ;;  %v1692_v62 = vmul.f32 %v3646_v23, %v3766_v44  ;;  %v1850_v10 = vrot.slane %v1713_v4, %v3427_v22 }
 0x18d   :  { %v2501_v25 = vsel %vm1841_vm2, %v2500_v0, %v2496_v1  ;;  %2749 = vadd.xlane.f32.xlu1 %v2748_v21  ;;  %2746 = vadd.xlane.f32.xlu0 %v2745_v27  ;;  %v2754_v0 = vsel %vm269_vm0, %v2680_v52, 0.0  ;;  %v2751_v1 = vsel %vm269_vm0, %v2679_v53, 0.0  ;;  %v2431_v52 = vsel %vm269_vm0, %v2355_v32, 0.0 }
 0x18e   :  { %v2693_v7 = vpop.xlane.xlu0 %2692  ;;  %v2050_v8 = vpop.xlane.xlu1 %2049  ;;  %v2682_v53 = vmul.f32 %v3764_v51, %v3657_v35 }
 0x18f   :  { %v2822_v13 = vrot.slane %v2693_v7, %v3419_v18  ;;  %v2183_v15 = vrot.slane %v2050_v8, %v3427_v22 }
 0x191   :  { %v2827_v17 = vsel %vm1841_vm2, %v2826_v12, %v2822_v13  ;;  %1766 = vadd.xlane.f32.xlu1 %v1765_v9  ;;  %1763 = vadd.xlane.f32.xlu0 %v1762_v49  ;;  %v1768_v49 = vsel %vm269_vm0, %v1692_v62, 0.0  ;;  %v1695_v62 = vmul.f32 %v3792_v11, %v3636_v31 }
 0x192   :  { %v2376_v24 = vpop.xlane.xlu1 %2375  ;;  %v2047_v26 = vpop.xlane.xlu0 %2046 }
 0x193   :  { %v2179_v19 = vrot.slane %v2047_v26, %v3419_v18  ;;  %v2509_v56 = vrot.slane %v2376_v24, %v3427_v22 }
 0x195   :  { %v2184_v3 = vsel %vm1841_vm2, %v2183_v15, %v2179_v19  ;;  %2103 = vadd.xlane.f32.xlu1 %v2102_v28  ;;  %2100 = vadd.xlane.f32.xlu0 %v2099_v29  ;;  %v2108_v28 = vsel %vm269_vm0, %v2030_v14, 0.0  ;;  %v2105_v29 = vsel %vm269_vm0, %v2029_v16, 0.0 }
 0x196   :  { %v2311_v38 = vsel %vm1978_vm3, %v2184_v3, %v2175_v61  ;;  %v2702_v39 = vpop.xlane.xlu1 %2701  ;;  %v2373_v40 = vpop.xlane.xlu0 %2372  ;;  %v1693_v61 = vmul.f32 %v3764_v51, %v3636_v31 }
 0x197   :  { %v2505_v46 = vrot.slane %v2373_v40, %v3419_v18  ;;  %v2835_v33 = vrot.slane %v2702_v39, %v3427_v22 }
 0x198   :  { %v1771_v9 = vsel %vm269_vm0, %v1693_v61, 0.0 }
 0x199   :  { %v2510_v54 = vsel %vm1841_vm2, %v2509_v56, %v2505_v46  ;;  %2429 = vadd.xlane.f32.xlu1 %v2428_v48  ;;  %2426 = vadd.xlane.f32.xlu0 %v2425_v42  ;;  %v2434_v42 = vsel %vm269_vm0, %v2356_v30, 0.0  ;;  %v1696_v30 = vmul.f32 %v3646_v23, %v3822_v55 }
 0x19a   :  { %v2637_v58 = vsel %vm1978_vm3, %v2510_v54, %v2501_v25  ;;  %v2699_v59 = vpop.xlane.xlu0 %2698  ;;  %v1710_v60 = vpop.xlane.xlu1 %1709  ;;  %v2681_v54 = vmul.f32 %v3688_v50, %v3766_v44  ;;  %v2760_v44 = vsel %vm269_vm0, %v2682_v53, 0.0 }
 0x19b   :  { %v2831_v34 = vrot.slane %v2699_v59, %v3419_v18  ;;  %v1846_v63 = vrot.slane %v1710_v60, %v3419_v18 }
 0x19d   :  { %v2836_v21 = vsel %vm1841_vm2, %v2835_v33, %v2831_v34  ;;  %v1851_v27 = vsel %vm1841_vm2, %v1850_v10, %v1846_v63  ;;  %2755 = vadd.xlane.f32.xlu1 %v2754_v0  ;;  %2752 = vadd.xlane.f32.xlu0 %v2751_v1  ;;  %v1694_v10 = vmul.f32 %v3646_v23, %v3794_v45  ;;  %v2757_v34 = vsel %vm269_vm0, %v2681_v54, 0.0 }
 0x19e   :  { %v2963_v25 = vsel %vm1978_vm3, %v2836_v21, %v2827_v17  ;;  %v1979_v4 = vsel %vm1978_vm3, %v1851_v27, %v3943_v47  ;;  %v1716_v7 = vpop.xlane.xlu0 %1715  ;;  %v1719_v8 = vpop.xlane.xlu1 %1718  ;;  %v1777_v21 = vsel %vm269_vm0, %v1695_v62, 0.0 }
 0x19f   :  { %v1855_v12 = vrot.slane %v1716_v7, %v3419_v18  ;;  %v1859_v13 = vrot.slane %v1719_v8, %v3427_v22  ;;  %v1774_v27 = vsel %vm269_vm0, %v1694_v10, 0.0  ;;  %v2031_v7 = vmul.f32 %v3662_v36, %v3794_v45 }
 0x1a1   :  { %v1860_v17 = vsel %vm1841_vm2, %v1859_v13, %v1855_v12  ;;  %1772 = vadd.xlane.f32.xlu1 %v1771_v9  ;;  %1769 = vadd.xlane.f32.xlu0 %v1768_v49  ;;  %v2111_v49 = vsel %vm269_vm0, %v2031_v7, 0.0  ;;  %v2358_v12 = vmul.f32 %v3792_v11, %v3641_v5  ;;  %v2357_v13 = vmul.f32 %v3671_v41, %v3794_v45 }
 0x1a2   :  { %v4017_v47 = vsel %vm1980_vm4, %v1860_v17, %v1979_v4  ;;  %v2053_v24 = vpop.xlane.xlu0 %2052  ;;  %v2056_v26 = vpop.xlane.xlu1 %2055  ;;  %v2032_v4 = vmul.f32 %v3792_v11, %v3631_v20 }
 0x1a3   :  { %v2188_v15 = vrot.slane %v2053_v24, %v3419_v18  ;;  %v2192_v19 = vrot.slane %v2056_v26, %v3427_v22  ;;  %v2440_v17 = vsel %vm269_vm0, %v2358_v12, 0.0  ;;  %v2437_v24 = vsel %vm269_vm0, %v2357_v13, 0.0 }
 0x1a4   :  { %v2114_v9 = vsel %vm269_vm0, %v2032_v4, 0.0  ;;  %v2684_v26 = vmul.f32 %v3792_v11, %v3657_v35  ;;  %v2035_v12 = vmul.f32 %v3662_v36, %v3850_v57  ;;  %v2036_v13 = vmul.f32 %v3848_v6, %v3631_v20 }
 0x1a5   :  { %v2193_v3 = vsel %vm1841_vm2, %v2192_v19, %v2188_v15  ;;  %2109 = vadd.xlane.f32.xlu1 %v2108_v28  ;;  %2106 = vadd.xlane.f32.xlu0 %v2105_v29  ;;  %v2683_v15 = vmul.f32 %v3688_v50, %v3794_v45  ;;  %v1697_v29 = vmul.f32 %v3820_v43, %v3636_v31 }
 0x1a6   :  { %v4029_v39 = vsel %vm1980_vm4, %v2193_v3, %v2311_v38  ;;  %v2379_v40 = vpop.xlane.xlu0 %2378  ;;  %v2382_v56 = vpop.xlane.xlu1 %2381  ;;  %v2766_v32 = vsel %vm269_vm0, %v2684_v26, 0.0  ;;  %v2361_v26 = vmul.f32 %v3671_v41, %v3850_v57 }
 0x1a7   :  { %v2514_v46 = vrot.slane %v2379_v40, %v3419_v18  ;;  %v2518_v48 = vrot.slane %v2382_v56, %v3427_v22  ;;  %v2763_v3 = vsel %vm269_vm0, %v2683_v15, 0.0  ;;  %v1783_v40 = vsel %vm269_vm0, %v1697_v29, 0.0 }
 0x1a8   :  { %v1780_v56 = vsel %vm269_vm0, %v1696_v30, 0.0  ;;  %v2126_v15 = vsel %vm269_vm0, %v2036_v13, 0.0  ;;  %v2123_v29 = vsel %vm269_vm0, %v2035_v12, 0.0  ;;  %v2362_v30 = vmul.f32 %v3848_v6, %v3641_v5 }
 0x1a9   :  { %v2519_v59 = vsel %vm1841_vm2, %v2518_v48, %v2514_v46  ;;  %2435 = vadd.xlane.f32.xlu1 %v2434_v42  ;;  %2432 = vadd.xlane.f32.xlu0 %v2431_v52  ;;  %v2034_v46 = vmul.f32 %v3820_v43, %v3631_v20  ;;  %v2033_v48 = vmul.f32 %v3662_v36, %v3822_v55 }
 0x1aa   :  { %v4041_v38 = vsel %vm1980_vm4, %v2519_v59, %v2637_v58  ;;  %v2705_v60 = vpop.xlane.xlu0 %2704  ;;  %v2708_v61 = vpop.xlane.xlu1 %2707  ;;  %v2360_v59 = vmul.f32 %v3820_v43, %v3641_v5 }
 0x1ab   :  { %v2840_v51 = vrot.slane %v2705_v60, %v3419_v18  ;;  %v2844_v33 = vrot.slane %v2708_v61, %v3427_v22  ;;  %v2120_v53 = vsel %vm269_vm0, %v2034_v46, 0.0  ;;  %v2117_v54 = vsel %vm269_vm0, %v2033_v48, 0.0 }
 0x1ac   :  { %v2359_v60 = vmul.f32 %v3671_v41, %v3822_v55  ;;  %v2446_v10 = vsel %vm269_vm0, %v2360_v59, 0.0  ;;  %v2449_v46 = vsel %vm269_vm0, %v2361_v26, 0.0  ;;  %v2688_v48 = vmul.f32 %v3848_v6, %v3657_v35 }
 0x1ad   :  { %v2845_v63 = vsel %vm1841_vm2, %v2844_v33, %v2840_v51  ;;  %2761 = vadd.xlane.f32.xlu1 %v2760_v44  ;;  %2758 = vadd.xlane.f32.xlu0 %v2757_v34  ;;  %v2686_v33 = vmul.f32 %v3820_v43, %v3657_v35  ;;  %v2685_v44 = vmul.f32 %v3688_v50, %v3822_v55 }
 0x1ae   :  { %v4053_v58 = vsel %vm1980_vm4, %v2845_v63, %v2963_v25  ;;  %v4055_v0 = vpop.xlane.xlu1 %1724  ;;  %v4057_v1 = vpop.xlane.xlu0 %1721  ;;  %v2443_v51 = vsel %vm269_vm0, %v2359_v60, 0.0  ;;  %v1700_v59 = vmul.f32 %v3646_v23, %v3878_v2  ;;  %v1701_v60 = vmul.f32 %v3876_v37, %v3636_v31 }
 0x1af   :  { %v2772_v4 = vsel %vm269_vm0, %v2686_v33, 0.0  ;;  %v2769_v7 = vsel %vm269_vm0, %v2685_v44, 0.0  ;;  %v2689_v26 = vmul.f32 %v3688_v50, %v3878_v2 }
 0x1b0   :  { %v1795_v33 = vsel %vm269_vm0, %v1701_v60, 0.0  ;;  %v1792_v44 = vsel %vm269_vm0, %v1700_v59, 0.0 }
 0x1b1   :  { %1778 = vadd.xlane.f32.xlu1 %v1777_v21  ;;  %1775 = vadd.xlane.f32.xlu0 %v1774_v27  ;;  %v1698_v21 = vmul.f32 %v3646_v23, %v3850_v57  ;;  %v1699_v27 = vmul.f32 %v3848_v6, %v3636_v31  ;;  %v2037_v23 = vmul.f32 %v3662_v36, %v3878_v2 }
 0x1b2   :  { %v4065_v8 = vpop.xlane.xlu1 %2061  ;;  %v4067_v25 = vpop.xlane.xlu0 %2058  ;;  %v2038_v31 = vmul.f32 %v3876_v37, %v3631_v20  ;;  %v1864_v36 = vrot.slane %v4057_v1, %v3419_v18 }
 0x1b3   :  { %v2197_v12 = vrot.slane %v4067_v25, %v3419_v18 }
 0x1b4   :  { %v2132_v20 = vsel %vm269_vm0, %v2038_v31, 0.0 }
 0x1b5   :  { %2115 = vadd.xlane.f32.xlu1 %v2114_v9  ;;  %2112 = vadd.xlane.f32.xlu0 %v2111_v49  ;;  %v1789_v9 = vsel %vm269_vm0, %v1699_v27, 0.0  ;;  %v1786_v49 = vsel %vm269_vm0, %v1698_v21, 0.0  ;;  %v2363_v21 = vmul.f32 %v3671_v41, %v3878_v2  ;;  %v2201_v41 = vrot.slane %v4065_v8, %v3427_v22 }
 0x1b6   :  { %v4075_v14 = vpop.xlane.xlu1 %2387  ;;  %v4077_v16 = vpop.xlane.xlu0 %2384 }
 0x1b7   :  { %v2527_v13 = vrot.slane %v4075_v14, %v3427_v22  ;;  %v2455_v14 = vsel %vm269_vm0, %v2363_v21, 0.0 }
 0x1b9   :  { %2441 = vadd.xlane.f32.xlu1 %v2440_v17  ;;  %2438 = vadd.xlane.f32.xlu0 %v2437_v24 }
 0x1ba   :  { %v4085_v19 = vpop.xlane.xlu1 %2713  ;;  %v4087_v28 = vpop.xlane.xlu0 %2710 }
 0x1bb   :  { %v2853_v60 = vrot.slane %v4085_v19, %v3427_v22 }
 0x1bd   :  { %2767 = vadd.xlane.f32.xlu1 %v2766_v32  ;;  %2764 = vadd.xlane.f32.xlu0 %v2763_v3 }
 0x1be   :  { %v4095_v11 = vpop.xlane.xlu1 %1730  ;;  %v4097_v45 = vpop.xlane.xlu0 %1727 }
 0x1bf   :  { %v1873_v1 = vrot.slane %v4097_v45, %v3419_v18  ;;  %v2202_v45 = vsel %vm1841_vm2, %v2201_v41, %v2197_v12 }
 0x1c0   :  { %v2313_v59 = vsel %vm1982_vm5, %v2202_v45, %v4029_v39 }
 0x1c1   :  { %1784 = vadd.xlane.f32.xlu1 %v1783_v40  ;;  %1781 = vadd.xlane.f32.xlu0 %v1780_v56  ;;  %v2687_v40 = vmul.f32 %v3688_v50, %v3850_v57  ;;  %v2452_v56 = vsel %vm269_vm0, %v2362_v30, 0.0  ;;  %v2778_v57 = vsel %vm269_vm0, %v2688_v48, 0.0 }
 0x1c2   :  { %v4105_v42 = vpop.xlane.xlu1 %2067  ;;  %v4107_v52 = vpop.xlane.xlu0 %2064 }
 0x1c5   :  { %2121 = vadd.xlane.f32.xlu1 %v2120_v53  ;;  %2118 = vadd.xlane.f32.xlu0 %v2117_v54 }
 0x1c6   :  { %v4115_v61 = vpop.xlane.xlu1 %2393  ;;  %v4117_v62 = vpop.xlane.xlu0 %2390 }
 0x1c9   :  { %2447 = vadd.xlane.f32.xlu1 %v2446_v10  ;;  %2444 = vadd.xlane.f32.xlu0 %v2443_v51  ;;  %v2775_v10 = vsel %vm269_vm0, %v2687_v40, 0.0  ;;  %v2206_v40 = vrot.slane %v4107_v52, %v3419_v18 }
 0x1ca   :  { %v4125_v34 = vpop.xlane.xlu1 %2719  ;;  %v4127_v63 = vpop.xlane.xlu0 %2716 }
 0x1cd   :  { %2773 = vadd.xlane.f32.xlu1 %v2772_v4  ;;  %2770 = vadd.xlane.f32.xlu0 %v2769_v7  ;;  %v2364_v7 = vmul.f32 %v3876_v37, %v3641_v5  ;;  %v2523_v5 = vrot.slane %v4077_v16, %v3419_v18  ;;  %v2690_v16 = vmul.f32 %v3876_v37, %v3657_v35  ;;  %v2781_v35 = vsel %vm269_vm0, %v2689_v26, 0.0 }
 0x1ce   :  { %v4135_v43 = vpop.xlane.xlu1 %1736  ;;  %v4137_v55 = vpop.xlane.xlu0 %1733  ;;  %v2210_v37 = vrot.slane %v4105_v42, %v3427_v22  ;;  %v2862_v26 = vrot.slane %v4125_v34, %v3427_v22 }
 0x1cf   :  { %v2528_v50 = vsel %vm1841_vm2, %v2527_v13, %v2523_v5  ;;  %v2458_v2 = vsel %vm269_vm0, %v2364_v7, 0.0  ;;  %v1882_v30 = vrot.slane %v4137_v55, %v3419_v18  ;;  %v2784_v42 = vsel %vm269_vm0, %v2690_v16, 0.0 }
 0x1d0   :  { %v2639_v52 = vsel %vm1982_vm5, %v2528_v50, %v4041_v38  ;;  %v2211_v38 = vsel %vm1841_vm2, %v2210_v37, %v2206_v40 }
 0x1d1   :  { %1790 = vadd.xlane.f32.xlu1 %v1789_v9  ;;  %1787 = vadd.xlane.f32.xlu0 %v1786_v49  ;;  %v1868_v9 = vrot.slane %v4055_v0, %v3427_v22  ;;  %v2129_v49 = vsel %vm269_vm0, %v2037_v23, 0.0  ;;  %v1877_v0 = vrot.slane %v4095_v11, %v3427_v22 }
 0x1d2   :  { %v4145_v17 = vpop.xlane.xlu1 %2073  ;;  %v4147_v24 = vpop.xlane.xlu0 %2070 }
 0x1d3   :  { %v1869_v11 = vsel %vm1841_vm2, %v1868_v9, %v1864_v36  ;;  %v2215_v39 = vrot.slane %v4147_v24, %v3419_v18  ;;  %v2532_v24 = vrot.slane %v4117_v62, %v3419_v18  ;;  %v2314_v9 = vsel %vm1984_vm6, %v2211_v38, %v2313_v59 }
 0x1d4   :  { %v1983_v55 = vsel %vm1982_vm5, %v1869_v11, %v4017_v47  ;;  %v2219_v47 = vrot.slane %v4145_v17, %v3427_v22  ;;  %v2536_v17 = vrot.slane %v4115_v61, %v3427_v22 }
 0x1d5   :  { %2127 = vadd.xlane.f32.xlu1 %v2126_v15  ;;  %2124 = vadd.xlane.f32.xlu0 %v2123_v29  ;;  %v1878_v15 = vsel %vm1841_vm2, %v1877_v0, %v1873_v1  ;;  %v1886_v29 = vrot.slane %v4135_v43, %v3427_v22 }
 0x1d6   :  { %v4155_v32 = vpop.xlane.xlu1 %2399  ;;  %v4157_v3 = vpop.xlane.xlu0 %2396  ;;  %v2220_v61 = vsel %vm1841_vm2, %v2219_v47, %v2215_v39  ;;  %v2537_v13 = vsel %vm1841_vm2, %v2536_v17, %v2532_v24 }
 0x1d9   :  { %2453 = vadd.xlane.f32.xlu1 %v2452_v56  ;;  %2450 = vadd.xlane.f32.xlu0 %v2449_v46 }
 0x1da   :  { %v4165_v53 = vpop.xlane.xlu1 %2725  ;;  %v4167_v54 = vpop.xlane.xlu0 %2722 }
 0x1db   :  { %v2871_v16 = vrot.slane %v4165_v53, %v3427_v22  ;;  %v2867_v11 = vrot.slane %v4167_v54, %v3419_v18  ;;  %v2640_v53 = vsel %vm1984_vm6, %v2537_v13, %v2639_v52 }
 0x1dd   :  { %2779 = vadd.xlane.f32.xlu1 %v2778_v57  ;;  %2776 = vadd.xlane.f32.xlu0 %v2775_v10  ;;  %v2849_v57 = vrot.slane %v4087_v28, %v3419_v18  ;;  %v1985_v10 = vsel %vm1984_vm6, %v1878_v15, %v1983_v55 }
 0x1de   :  { %v4175_v51 = vpop.xlane.xlu1 %1742  ;;  %v4177_v6 = vpop.xlane.xlu0 %1739 }
 0x1df   :  { %v1895_v56 = vrot.slane %v4175_v51, %v3427_v22  ;;  %v1891_v46 = vrot.slane %v4177_v6, %v3419_v18  ;;  %v1887_v51 = vsel %vm1841_vm2, %v1886_v29, %v1882_v30  ;;  %v2854_v21 = vsel %vm1841_vm2, %v2853_v60, %v2849_v57 }
 0x1e0   :  { %v1987_v7 = vsel %vm1986_vm7, %v1887_v51, %v1985_v10  ;;  %v2965_v55 = vsel %vm1982_vm5, %v2854_v21, %v4053_v58 }
 0x1e1   :  { %1796 = vadd.xlane.f32.xlu1 %v1795_v33  ;;  %1793 = vadd.xlane.f32.xlu0 %v1792_v44  ;;  %v1896_v19 = vsel %vm1841_vm2, %v1895_v56, %v1891_v46  ;;  %v2872_v46 = vsel %vm1841_vm2, %v2871_v16, %v2867_v11 }
 0x1e2   :  { %v4187_v27 = vpop.xlane.xlu1 %2079  ;;  %v4189_v4 = vpop.xlane.xlu0 %2076  ;;  %v1989_v36 = vsel %vm1988_vm8, %v1896_v19, %v1987_v7 }
 0x1e3   :  { %v2228_v28 = vrot.slane %v4187_v27, %v3427_v22  ;;  %v2224_v6 = vrot.slane %v4189_v4, %v3419_v18  ;;  %v2545_v27 = vrot.slane %v4155_v32, %v3427_v22  ;;  %v2541_v4 = vrot.slane %v4157_v3, %v3419_v18 }
 0x1e5   :  { %2133 = vadd.xlane.f32.xlu1 %v2132_v20  ;;  %2130 = vadd.xlane.f32.xlu0 %v2129_v49  ;;  %v2229_v20 = vsel %vm1841_vm2, %v2228_v28, %v2224_v6 }
 0x1e6   :  { %v4213_v8 = vpop.xlane.xlu1 %2405  ;;  %v4215_v25 = vpop.xlane.xlu0 %2402 }
 0x1e7   :  { %v2554_v49 = vrot.slane %v4213_v8, %v3427_v22  ;;  %v2550_v32 = vrot.slane %v4215_v25, %v3419_v18  ;;  %v2858_v8 = vrot.slane %v4127_v63, %v3419_v18  ;;  %v2546_v25 = vsel %vm1841_vm2, %v2545_v27, %v2541_v4 }
 0x1e8   :  { %v2641_v56 = vsel %vm1986_vm7, %v2546_v25, %v2640_v53 }
 0x1e9   :  { %2459 = vadd.xlane.f32.xlu1 %v2458_v2  ;;  %2456 = vadd.xlane.f32.xlu0 %v2455_v14  ;;  %v2315_v14 = vsel %vm1986_vm7, %v2220_v61, %v2314_v9  ;;  %v2555_v34 = vsel %vm1841_vm2, %v2554_v49, %v2550_v32  ;;  %v2863_v40 = vsel %vm1841_vm2, %v2862_v26, %v2858_v8 }
 0x1ea   :  { %v4238_v43 = vpop.xlane.xlu1 %2731  ;;  %v4240_v48 = vpop.xlane.xlu0 %2728  ;;  %v2316_v50 = vsel %vm1988_vm8, %v2229_v20, %v2315_v14  ;;  %v2966_v57 = vsel %vm1984_vm6, %v2863_v40, %v2965_v55 }
 0x1eb   :  { %v2880_v63 = vrot.slane %v4238_v43, %v3427_v22  ;;  %v2876_v2 = vrot.slane %v4240_v48, %v3419_v18  ;;  %v2642_v48 = vsel %vm1988_vm8, %v2555_v34, %v2641_v56  ;;  %v2967_v39 = vsel %vm1986_vm7, %v2872_v46, %v2966_v57 }
 0x1ed   :  { %2785 = vadd.xlane.f32.xlu1 %v2784_v42  ;;  %2782 = vadd.xlane.f32.xlu0 %v2781_v35  ;;  %v2881_v59 = vsel %vm1841_vm2, %v2880_v63, %v2876_v2 }
 0x1ee   :  { %v1749_v33 = vpop.xlane.xlu1 %1748  ;;  %v1746_v44 = vpop.xlane.xlu0 %1745  ;;  %v2968_v58 = vsel %vm1988_vm8, %v2881_v59, %v2967_v39 }
 0x1ef   :  { %v1904_v23 = vrot.slane %v1749_v33, %v3427_v22  ;;  %v1900_v31 = vrot.slane %v1746_v44, %v3419_v18 }
 0x1f1   :  { %v1905_v62 = vsel %vm1841_vm2, %v1904_v23, %v1900_v31 }
 0x1f2   :  { %v2086_v41 = vpop.xlane.xlu1 %2085  ;;  %v2083_v3 = vpop.xlane.xlu0 %2082  ;;  %v1991_v12 = vsel %vm1990_vm9, %v1905_v62, %v1989_v36 }
 0x1f3   :  { %v2237_v5 = vrot.slane %v2086_v41, %v3427_v22  ;;  %v2233_v0 = vrot.slane %v2083_v3, %v3419_v18  ;;  %v2001_v1 = vsel %vm269_vm0, %v1991_v12, 0.0 }
 0x1f4   :  { %2002 = vadd.xlane.f32.xlu0 %v2001_v1 }
 0x1f5   :  { %v2238_v45 = vsel %vm1841_vm2, %v2237_v5, %v2233_v0 }
 0x1f6   :  { %v2412_v15 = vpop.xlane.xlu1 %2411  ;;  %v2409_v29 = vpop.xlane.xlu0 %2408  ;;  %v2317_v30 = vsel %vm1990_vm9, %v2238_v45, %v2316_v50 }
 0x1f7   :  { %v2563_v54 = vrot.slane %v2412_v15, %v3427_v22  ;;  %v2559_v35 = vrot.slane %v2409_v29, %v3419_v18  ;;  %v2327_v37 = vsel %vm269_vm0, %v2317_v30, 0.0 }
 0x1f8   :  { %2328 = vadd.xlane.f32.xlu0 %v2327_v37 }
 0x1f9   :  { %v2564_v43 = vsel %vm1841_vm2, %v2563_v54, %v2559_v35 }
 0x1fa   :  { %v2738_v42 = vpop.xlane.xlu1 %2737  ;;  %v2735_v52 = vpop.xlane.xlu0 %2734  ;;  %v2643_v60 = vsel %vm1990_vm9, %v2564_v43, %v2642_v48 }
 0x1fb   :  { %v2889_v10 = vrot.slane %v2738_v42, %v3427_v22  ;;  %v2885_v51 = vrot.slane %v2735_v52, %v3419_v18  ;;  %v2653_v47 = vsel %vm269_vm0, %v2643_v60, 0.0 }
 0x1fc   :  { %2654 = vadd.xlane.f32.xlu0 %v2653_v47 }
 0x1fd   :  { %v2890_v38 = vsel %vm1841_vm2, %v2889_v10, %v2885_v51 }
 0x1fe   :  { %v1755_v19 = vpop.xlane.xlu1 %1754  ;;  %v1752_v28 = vpop.xlane.xlu0 %1751  ;;  %v2969_v6 = vsel %vm1990_vm9, %v2890_v38, %v2968_v58 }
 0x1ff   :  { %v1913_v33 = vrot.slane %v1755_v19, %v3427_v22  ;;  %v1909_v44 = vrot.slane %v1752_v28, %v3419_v18  ;;  %v2979_v17 = vsel %vm269_vm0, %v2969_v6, 0.0 }
 0x200   :  { %2980 = vadd.xlane.f32.xlu0 %v2979_v17 }
 0x201   :  { %v1914_v24 = vsel %vm1841_vm2, %v1913_v33, %v1909_v44 }
 0x202   :  { %v2092_v23 = vpop.xlane.xlu1 %2091  ;;  %v2089_v31 = vpop.xlane.xlu0 %2088 }
 0x203   :  { %v2246_v21 = vrot.slane %v2092_v23, %v3427_v22  ;;  %v2242_v27 = vrot.slane %v2089_v31, %v3419_v18 }
 0x205   :  { %v2247_v4 = vsel %vm1841_vm2, %v2246_v21, %v2242_v27 }
 0x206   :  { %v2418_v7 = vpop.xlane.xlu1 %2417  ;;  %v2415_v9 = vpop.xlane.xlu0 %2414 }
 0x207   :  { %v2572_v61 = vrot.slane %v2418_v7, %v3427_v22  ;;  %v2568_v62 = vrot.slane %v2415_v9, %v3419_v18 }
 0x209   :  { %v2573_v36 = vsel %vm1841_vm2, %v2572_v61, %v2568_v62 }
 0x20a   :  { %v2744_v20 = vpop.xlane.xlu1 %2743  ;;  %v2741_v49 = vpop.xlane.xlu0 %2740 }
 0x20b   :  { %v2898_v32 = vrot.slane %v2744_v20, %v3427_v22  ;;  %v2894_v41 = vrot.slane %v2741_v49, %v3419_v18 }
 0x20d   :  { %v2899_v3 = vsel %vm1841_vm2, %v2898_v32, %v2894_v41 }
 0x20e   :  { %v1761_v12 = vpop.xlane.xlu1 %1760  ;;  %v1758_v13 = vpop.xlane.xlu0 %1757 }
 0x20f   :  { %v1922_v5 = vrot.slane %v1761_v12, %v3427_v22  ;;  %v1918_v0 = vrot.slane %v1758_v13, %v3419_v18 }
 0x211   :  { %v1923_v1 = vsel %vm1841_vm2, %v1922_v5, %v1918_v0 }
 0x212   :  { %v1992_v26 = vsel %vm1978_vm3, %v1923_v1, %v1914_v24  ;;  %v2098_v8 = vpop.xlane.xlu1 %2097  ;;  %v2095_v25 = vpop.xlane.xlu0 %2094 }
 0x213   :  { %v2255_v14 = vrot.slane %v2098_v8, %v3427_v22  ;;  %v2251_v16 = vrot.slane %v2095_v25, %v3419_v18 }
 0x215   :  { %v2256_v11 = vsel %vm1841_vm2, %v2255_v14, %v2251_v16 }
 0x216   :  { %v2318_v45 = vsel %vm1978_vm3, %v2256_v11, %v2247_v4  ;;  %v2424_v50 = vpop.xlane.xlu1 %2423  ;;  %v2421_v34 = vpop.xlane.xlu0 %2420 }
 0x217   :  { %v2581_v63 = vrot.slane %v2424_v50, %v3427_v22  ;;  %v2577_v2 = vrot.slane %v2421_v34, %v3419_v18 }
 0x219   :  { %v2582_v15 = vsel %vm1841_vm2, %v2581_v63, %v2577_v2 }
 0x21a   :  { %v2644_v29 = vsel %vm1978_vm3, %v2582_v15, %v2573_v36  ;;  %v2750_v30 = vpop.xlane.xlu1 %2749  ;;  %v2747_v53 = vpop.xlane.xlu0 %2746 }
 0x21b   :  { %v2907_v54 = vrot.slane %v2750_v30, %v3427_v22  ;;  %v2903_v35 = vrot.slane %v2747_v53, %v3419_v18 }
 0x21d   :  { %v2908_v37 = vsel %vm1841_vm2, %v2907_v54, %v2903_v35 }
 0x21e   :  { %v2970_v40 = vsel %vm1978_vm3, %v2908_v37, %v2899_v3  ;;  %v1767_v56 = vpop.xlane.xlu1 %1766  ;;  %v1764_v46 = vpop.xlane.xlu0 %1763 }
 0x21f   :  { %v1931_v43 = vrot.slane %v1767_v56, %v3427_v22  ;;  %v1927_v48 = vrot.slane %v1764_v46, %v3419_v18 }
 0x221   :  { %v1932_v55 = vsel %vm1841_vm2, %v1931_v43, %v1927_v48 }
 0x222   :  { %v4363_v59 = vsel %vm1980_vm4, %v1932_v55, %v1992_v26  ;;  %v2104_v42 = vpop.xlane.xlu1 %2103  ;;  %v2101_v52 = vpop.xlane.xlu0 %2100 }
 0x223   :  { %v2264_v60 = vrot.slane %v2104_v42, %v3427_v22  ;;  %v2260_v57 = vrot.slane %v2101_v52, %v3419_v18 }
 0x225   :  { %v2265_v10 = vsel %vm1841_vm2, %v2264_v60, %v2260_v57 }
 0x226   :  { %v4369_v51 = vsel %vm1980_vm4, %v2265_v10, %v2318_v45  ;;  %v2430_v47 = vpop.xlane.xlu1 %2429  ;;  %v2427_v39 = vpop.xlane.xlu0 %2426 }
 0x227   :  { %v2590_v38 = vrot.slane %v2430_v47, %v3427_v22  ;;  %v2586_v58 = vrot.slane %v2427_v39, %v3419_v18 }
 0x229   :  { %v2591_v19 = vsel %vm1841_vm2, %v2590_v38, %v2586_v58 }
 0x22a   :  { %v2645_v28 = vsel %vm1980_vm4, %v2591_v19, %v2644_v29  ;;  %v2756_v6 = vpop.xlane.xlu1 %2755  ;;  %v2753_v33 = vpop.xlane.xlu0 %2752 }
 0x22b   :  { %v2916_v44 = vrot.slane %v2756_v6, %v3427_v22  ;;  %v2912_v17 = vrot.slane %v2753_v33, %v3419_v18 }
 0x22d   :  { %v2917_v24 = vsel %vm1841_vm2, %v2916_v44, %v2912_v17 }
 0x22e   :  { %v4379_v23 = vsel %vm1980_vm4, %v2917_v24, %v2970_v40  ;;  %v1773_v31 = vpop.xlane.xlu1 %1772  ;;  %v1770_v21 = vpop.xlane.xlu0 %1769 }
 0x22f   :  { %v1940_v63 = vrot.slane %v1773_v31, %v3427_v22  ;;  %v1936_v2 = vrot.slane %v1770_v21, %v3419_v18 }
 0x231   :  { %v1941_v56 = vsel %vm1841_vm2, %v1940_v63, %v1936_v2 }
 0x232   :  { %v2110_v27 = vpop.xlane.xlu1 %2109  ;;  %v2107_v4 = vpop.xlane.xlu0 %2106  ;;  %v1994_v38 = vsel %vm1982_vm5, %v1941_v56, %v4363_v59 }
 0x233   :  { %v2273_v15 = vrot.slane %v2110_v27, %v3427_v22  ;;  %v2269_v29 = vrot.slane %v2107_v4, %v3419_v18 }
 0x235   :  { %v2274_v46 = vsel %vm1841_vm2, %v2273_v15, %v2269_v29 }
 0x236   :  { %v2436_v7 = vpop.xlane.xlu1 %2435  ;;  %v2433_v9 = vpop.xlane.xlu0 %2432  ;;  %v2320_v58 = vsel %vm1982_vm5, %v2274_v46, %v4369_v51 }
 0x237   :  { %v2599_v30 = vrot.slane %v2436_v7, %v3427_v22  ;;  %v2595_v53 = vrot.slane %v2433_v9, %v3419_v18 }
 0x239   :  { %v2600_v43 = vsel %vm1841_vm2, %v2599_v30, %v2595_v53 }
 0x23a   :  { %v4381_v61 = vpop.xlane.xlu1 %2761  ;;  %v4383_v62 = vpop.xlane.xlu0 %2758  ;;  %v2646_v19 = vsel %vm1982_vm5, %v2600_v43, %v2645_v28 }
 0x23b   :  { %v2925_v6 = vrot.slane %v4381_v61, %v3427_v22  ;;  %v2921_v33 = vrot.slane %v4383_v62, %v3419_v18 }
 0x23e   :  { %v1779_v36 = vpop.xlane.xlu1 %1778  ;;  %v1776_v20 = vpop.xlane.xlu0 %1775 }
 0x23f   :  { %v1949_v54 = vrot.slane %v1779_v36, %v3427_v22  ;;  %v1945_v35 = vrot.slane %v1776_v20, %v3419_v18  ;;  %v2926_v36 = vsel %vm1841_vm2, %v2925_v6, %v2921_v33 }
 0x241   :  { %v1950_v48 = vsel %vm1841_vm2, %v1949_v54, %v1945_v35 }
 0x242   :  { %v2116_v49 = vpop.xlane.xlu1 %2115  ;;  %v2113_v32 = vpop.xlane.xlu0 %2112  ;;  %v1995_v44 = vsel %vm1984_vm6, %v1950_v48, %v1994_v38 }
 0x243   :  { %v2282_v52 = vrot.slane %v2116_v49, %v3427_v22  ;;  %v2278_v60 = vrot.slane %v2113_v32, %v3419_v18 }
 0x245   :  { %v2283_v59 = vsel %vm1841_vm2, %v2282_v52, %v2278_v60 }
 0x246   :  { %v4385_v41 = vpop.xlane.xlu1 %2441  ;;  %v4387_v3 = vpop.xlane.xlu0 %2438 }
 0x247   :  { %v2608_v7 = vrot.slane %v4385_v41, %v3427_v22  ;;  %v2604_v9 = vrot.slane %v4387_v3, %v3419_v18 }
 0x24a   :  { %v4389_v12 = vpop.xlane.xlu1 %2767  ;;  %v4391_v13 = vpop.xlane.xlu0 %2764 }
 0x24b   :  { %v2934_v15 = vrot.slane %v4389_v12, %v3427_v22  ;;  %v2930_v29 = vrot.slane %v4391_v13, %v3419_v18 }
 0x24d   :  { %v2935_v52 = vsel %vm1841_vm2, %v2934_v15, %v2930_v29 }
 0x24e   :  { %v1785_v5 = vpop.xlane.xlu1 %1784  ;;  %v1782_v0 = vpop.xlane.xlu0 %1781 }
 0x24f   :  { %v1958_v55 = vrot.slane %v1785_v5, %v3427_v22  ;;  %v1954_v42 = vrot.slane %v1782_v0, %v3419_v18  ;;  %v2321_v5 = vsel %vm1984_vm6, %v2283_v59, %v2320_v58 }
 0x251   :  { %v1959_v17 = vsel %vm1841_vm2, %v1958_v55, %v1954_v42 }
 0x252   :  { %v2122_v1 = vpop.xlane.xlu1 %2121  ;;  %v2119_v26 = vpop.xlane.xlu0 %2118  ;;  %v1996_v32 = vsel %vm1986_vm7, %v1959_v17, %v1995_v44 }
 0x253   :  { %v2291_v24 = vrot.slane %v2122_v1, %v3427_v22  ;;  %v2287_v31 = vrot.slane %v2119_v26, %v3419_v18 }
 0x255   :  { %v2292_v41 = vsel %vm1841_vm2, %v2291_v24, %v2287_v31 }
 0x256   :  { %v4393_v8 = vpop.xlane.xlu1 %2447  ;;  %v4395_v25 = vpop.xlane.xlu0 %2444  ;;  %v2322_v53 = vsel %vm1986_vm7, %v2292_v41, %v2321_v5 }
 0x257   :  { %v2617_v20 = vrot.slane %v4393_v8, %v3427_v22  ;;  %v2613_v49 = vrot.slane %v4395_v25, %v3419_v18 }
 0x259   :  { %v2618_v30 = vsel %vm1841_vm2, %v2617_v20, %v2613_v49 }
 0x25a   :  { %v4397_v14 = vpop.xlane.xlu1 %2773  ;;  %v4399_v16 = vpop.xlane.xlu0 %2770 }
 0x25b   :  { %v2943_v54 = vrot.slane %v4397_v14, %v3427_v22  ;;  %v2939_v35 = vrot.slane %v4399_v16, %v3419_v18 }
 0x25e   :  { %v1791_v11 = vpop.xlane.xlu1 %1790  ;;  %v1788_v45 = vpop.xlane.xlu0 %1787 }
 0x25f   :  { %v1967_v57 = vrot.slane %v1791_v11, %v3427_v22  ;;  %v1963_v10 = vrot.slane %v1788_v45, %v3419_v18 }
 0x261   :  { %v1968_v51 = vsel %vm1841_vm2, %v1967_v57, %v1963_v10  ;;  %v2944_v57 = vsel %vm1841_vm2, %v2943_v54, %v2939_v35 }
 0x262   :  { %v2128_v50 = vpop.xlane.xlu1 %2127  ;;  %v2125_v34 = vpop.xlane.xlu0 %2124  ;;  %v1997_v0 = vsel %vm1988_vm8, %v1968_v51, %v1996_v32 }
 0x263   :  { %v2300_v28 = vrot.slane %v2128_v50, %v3427_v22  ;;  %v2296_v21 = vrot.slane %v2125_v34, %v3419_v18  ;;  %v2609_v50 = vsel %vm1841_vm2, %v2608_v7, %v2604_v9  ;;  %v3076_v7 = vld [vmem:[%s4524_s3] ss:$0 sm:$0xff] }
 0x264   :  { %v2647_v14 = vsel %vm1984_vm6, %v2609_v50, %v2646_v19 }
 0x265   :  { %v2301_v1 = vsel %vm1841_vm2, %v2300_v28, %v2296_v21  ;;  %v2648_v60 = vsel %vm1986_vm7, %v2618_v30, %v2647_v14 }
 0x266   :  { %v2454_v37 = vpop.xlane.xlu1 %2453  ;;  %v2451_v40 = vpop.xlane.xlu0 %2450 }
 0x267   :  { %v2626_v26 = vrot.slane %v2454_v37, %v3427_v22  ;;  %v2622_v11 = vrot.slane %v2451_v40, %v3419_v18  ;;  %v2323_v40 = vsel %vm1988_vm8, %v2301_v1, %v2322_v53 }
 0x269   :  { %v2627_v12 = vsel %vm1841_vm2, %v2626_v26, %v2622_v11 }
 0x26a   :  { %v4419_v47 = vpop.xlane.xlu1 %2779  ;;  %v4421_v39 = vpop.xlane.xlu0 %2776 }
 0x26b   :  { %v2952_v13 = vrot.slane %v4419_v47, %v3427_v22  ;;  %v2948_v56 = vrot.slane %v4421_v39, %v3419_v18  ;;  %v2649_v47 = vsel %vm1988_vm8, %v2627_v12, %v2648_v60  ;;  %v2972_v39 = vsel %vm1982_vm5, %v2926_v36, %v4379_v23 }
 0x26c   :  { %v2973_v33 = vsel %vm1984_vm6, %v2935_v52, %v2972_v39 }
 0x26d   :  { %v2953_v38 = vsel %vm1841_vm2, %v2952_v13, %v2948_v56  ;;  %v2974_v31 = vsel %vm1986_vm7, %v2944_v57, %v2973_v33 }
 0x26e   :  { %v1797_v27 = vpop.xlane.xlu1 %1796  ;;  %v1794_v4 = vpop.xlane.xlu0 %1793  ;;  %v2975_v23 = vsel %vm1988_vm8, %v2953_v38, %v2974_v31 }
 0x26f   :  { %v1976_v61 = vrot.slane %v1797_v27, %v3427_v22  ;;  %v1972_v62 = vrot.slane %v1794_v4, %v3419_v18 }
 0x271   :  { %v1977_v3 = vsel %vm1841_vm2, %v1976_v61, %v1972_v62 }
 0x272   :  { %v2134_v8 = vpop.xlane.xlu1 %2133  ;;  %v2131_v45 = vpop.xlane.xlu0 %2130  ;;  %v1998_v25 = vsel %vm1990_vm9, %v1977_v3, %v1997_v0 }
 0x273   :  { %v2309_v34 = vrot.slane %v2134_v8, %v3427_v22  ;;  %v2305_v63 = vrot.slane %v2131_v45, %v3419_v18  ;;  %v2004_v2 = vsel %vm269_vm0, %v1998_v25, 0.0 }
 0x274   :  { %2005 = vadd.xlane.f32.xlu1 %v2004_v2 }
 0x275   :  { %v2310_v37 = vsel %vm1841_vm2, %v2309_v34, %v2305_v63 }
 0x276   :  { %v2460_v46 = vpop.xlane.xlu1 %2459  ;;  %v2457_v43 = vpop.xlane.xlu0 %2456  ;;  %v2324_v48 = vsel %vm1990_vm9, %v2310_v37, %v2323_v40 }
 0x277   :  { %v2635_v16 = vrot.slane %v2460_v46, %v3427_v22  ;;  %v2631_v55 = vrot.slane %v2457_v43, %v3419_v18  ;;  %v2330_v42 = vsel %vm269_vm0, %v2324_v48, 0.0 }
 0x278   :  { %2331 = vadd.xlane.f32.xlu1 %v2330_v42 }
 0x279   :  { %v2636_v10 = vsel %vm1841_vm2, %v2635_v16, %v2631_v55 }
 0x27a   :  { %v2786_v58 = vpop.xlane.xlu1 %2785  ;;  %v2783_v19 = vpop.xlane.xlu0 %2782  ;;  %v2650_v6 = vsel %vm1990_vm9, %v2636_v10, %v2649_v47 }
 0x27b   :  { %v2961_v44 = vrot.slane %v2786_v58, %v3427_v22  ;;  %v2957_v17 = vrot.slane %v2783_v19, %v3419_v18  ;;  %v2656_v24 = vsel %vm269_vm0, %v2650_v6, 0.0 }
 0x27c   :  { %2657 = vadd.xlane.f32.xlu1 %v2656_v24 }
 0x27d   :  { %v2962_v59 = vsel %vm1841_vm2, %v2961_v44, %v2957_v17 }
 0x27e   :  { %v2976_v51 = vsel %vm1990_vm9, %v2962_v59, %v2975_v23 }
 0x27f   :  { %v2982_v28 = vsel %vm269_vm0, %v2976_v51, 0.0 }
 0x280   :  { %2983 = vadd.xlane.f32.xlu1 %v2982_v28 }
 0x281   :  { %v2003_v21 = vpop.xlane.xlu0 %2002 }
 0x285   :  { %v2329_v27 = vpop.xlane.xlu0 %2328 }
 0x286   :  { %v2986_v18 = vsel %vm2985_vm10, %v2003_v21, %v2329_v27 }
 0x289   :  { %v2655_v22 = vpop.xlane.xlu0 %2654 }
 0x28a   :  { %v2989_v4 = vsel %vm2988_vm11, %v2986_v18, %v2655_v22 }
 0x28d   :  { %v2981_v9 = vpop.xlane.xlu0 %2980 }
 0x28e   :  { %v2992_v61 = vsel %vm2991_vm12, %v2989_v4, %v2981_v9 }
 0x28f   :  { %v2995_v62 = vsel %vm2994_vm13, %v2992_v61, 0.0 }
 0x290   :  { %v3004_v36 = vadd.f32 %v3076_v7, %v2995_v62 }
 0x292   :  { %3006 = vst [vmem:[%s4525_s4] sm:$0xff] %v3004_v36 }
 0x301   :  { %v2006_v20 = vpop.xlane.xlu1 %2005 }
 0x305   :  { %v2332_v49 = vpop.xlane.xlu1 %2331 }
 0x306   :  { %v2987_v5 = vsel %vm2985_vm10, %v2006_v20, %v2332_v49 }
 0x309   :  { %v2658_v32 = vpop.xlane.xlu1 %2657 }
 0x30a   :  { %v2990_v41 = vsel %vm2988_vm11, %v2987_v5, %v2658_v32 }
 0x30d   :  { %v2984_v3 = vpop.xlane.xlu1 %2983 }
 0x30e   :  { %v2993_v0 = vsel %vm2991_vm12, %v2990_v41, %v2984_v3 }
 0x30f   :  { %v2996_v1 = vsel %vm2994_vm13, %v2993_v0, 0.0 }
 0x310   :  { %v3005_v26 = vadd.f32 %v3076_v7, %v2996_v1 }
 0x312   :  { %3007 = vst [vmem:[%s4525_s4 + $0x8] sm:$0xff] %v3005_v26 }

// kernel: _lambda_.2
= control target key start
LH: loop header
LB: loop body
LE: loop exit
PB: predicated region body
PF: predicated region fallthrough
CT: control target
= control target key end

     0   :  { %s6510_s30 = smov 0   ;;  %s6512_s10 = smov 0   ;;  %s9216_s0 = inlined_call_operand.vmem [shape: f32[8,2048], index: 0, kind: input, shape index: {}]   ;;  %s9217_s1 = inlined_call_operand.vmem [shape: f32[16,8], index: 1, kind: input, shape index: {}]   ;;  %s9218_s2 = inlined_call_operand.vmem [shape: f32[16,1], index: 2, kind: input, shape index: {}]   ;;  %s9219_s3 = inlined_call_operand.vmem [shape: f32[16,8], index: 3, kind: input, shape index: {}]   ;;  %s9220_s4 = inlined_call_operand.vmem [shape: f32[16,1], index: 4, kind: input, shape index: {}]   ;;  %s9221_s5 = inlined_call_operand.vmem [shape: f32[16,4], index: 5, kind: input, shape index: {}]   ;;  %s9222_s6 = inlined_call_operand.vmem [shape: f32[16,1], index: 6, kind: input, shape index: {}]   ;;  %s9223_s7 = inlined_call_operand.vmem [shape: f32[32,16], index: 7, kind: input, shape index: {}]   ;;  %s9224_s8 = inlined_call_operand.vmem [shape: f32[16,16], index: 8, kind: input, shape index: {}]   ;;  %s9225_s9 = inlined_call_operand.vmem [shape: f32[16,256], index: 9, kind: output, shape index: {}]  }
   0x1   :  { %s6514_s11 = smov 0  }
   0x2 LB: > { %s5696_s12 = sadd.s32 4294967295, %s6435_s11   ;;  %s6523_s13 = sadd.s32 1, %s6435_s11   ;;  %s6435_s11 = sphi %s6514_s11, %s9820_s11   ;;  %s6431_s10 = sphi %s6512_s10, %s9819_s10   ;;  %s6427_s30 = sphi %s6510_s30, %s9818_s30  }
   0x3   : > { %s217_s14 = ssub.s32 %s6435_s11, %s6523_s13  ;;  %s220_s15 = sadd.s32 1, %s6431_s10 }
   0x4   : > { %p218_p0 = scmp.eq.s32.totalorder %s217_s14, 0  ;;  %p230_p1 = scmp.ne.s32.totalorder %s6431_s10, %s6427_s30 }
   0x5   : > { %p231_p2 = scmp.eq.s32.totalorder %s5696_s12, 1  ;;  %p5700_p3 = scmp.ge.s32.totalorder %s6435_s11, 1 }
   0x6   : > { %s6530_s16 = scalar_select %p218_p0, %s6431_s10, %s220_s15  }
   0x7   : > { %p6532_p4 = por %p231_p2, %p230_p1  ;;  %p288_p5 = scmp.lt.s32.totalorder %s6435_s11, 3 }
   0x9   : > { %p289_p6 = pnand %p5700_p3, %p288_p5 }
   0xb   : > { %292 = sbr.rel (%p289_p6) target bundleno = 1948 (0x79c), region = 56 }
  0x12   : > { %s6536_s18 = sshll.u32 %s5696_s12, 3  ;;  %v9226_v0 = vmov 0.0   ;;  %v6544_v1 = vld [vmem:[%s9221_s5] sm:$0xff]  ;;  %v6438_v2 = vmov 1   ;;  %v6439_v3 = vmov 0   ;;  %v6551_v4 = vld [vmem:[%s9221_s5 + $0x8] sm:$0xff] }
  0x13   : > { %p324_p7 = scmp.lt.s32.totalorder %s6536_s18, 15  ;;  %422 = vmatprep.mubr.f32.mxu1 %v9226_v0  ;;  %576 = vmatprep.mubr.f32.mxu0 %v9226_v0  ;;  %v329_v5 = vld [vmem:[%s9217_s1] sm:$0xff]  ;;  %vm351_vm0 = vcmask 64512   ;;  %s6440_s11 = smov 2   ;;  %v6575_v11 = vld [vmem:[%s9219_s3 + $0x8] sm:$0xff]  ;;  %v6441_v16 = vmov 2  }
  0x14   : > { %6380 = vset.pattern.permute.xlu0 %v6438_v2  ;;  %6379 = vset.pattern.permute.xlu1 %v6439_v3  ;;  %v330_v13 = vld [vmem:[%s9217_s1 + $0x8] sm:$0xff]  ;;  %v6598_v17 = vld [vmem:[%s9219_s3] sm:$0xff]  ;;  %v6442_v18 = vmov 3   ;;  %s6443_s22 = smov 4   ;;  %v6444_v19 = vmov 4   ;;  %v6446_v20 = vmov 5  }
  0x15   : > { %s325_s23 = scalar_select %p324_p7, %s6536_s18, 15  ;;  %1499 = vperm.xlu0 %6380, %v6544_v1   ;;  %1308 = vperm.xlu1 %6379, %v6551_v4   ;;  %9432 = vst [vmem:[#allocation3_spill] sm:$0xff] %v6598_v17  ;;  %v777_v21 = vld [vmem:[%s9222_s6] sm:$0xff]  ;;  %v6447_v22 = vmov 6   ;;  %v778_v23 = vld [vmem:[%s9222_s6 + $0x8] sm:$0xff]  ;;  %v6448_v24 = vmov 7  }
  0x16   : > { %v339_v25 = vld [vmem:[%s9218_s2] sm:$0xff]  ;;  %v340_v26 = vld [vmem:[%s9218_s2 + $0x8] sm:$0xff]  ;;  %s6449_s15 = smov 3   ;;  %s6450_s25 = smov 127   ;;  %vm884_vm1 = vcmask 31744   ;;  %vm1212_vm2 = vcmask 15360  }
  0x17   : > { %s5703_s24 = sshll.u32 %s325_s23, 3  ;;  %s6445_s23 = smov 1   ;;  %v775_v27 = vld [vmem:[%s9220_s4] sm:$0xff]  ;;  %v776_v28 = vld [vmem:[%s9220_s4 + $0x8] sm:$0xff]  ;;  %vm1409_vm4 = vcmask 7168   ;;  %vm1041_vm5 = vcmask 23552  }
  0x18   : > { %s6559_s27 = scalar_lea.vmem %s9216_s0, %s5703_s24  ;;  %s6451_s26 = smov 126   ;;  %vm1756_vm13 = vcmask 1039360  }
  0x19   : > { %v332_v6 = vld [vmem:[%s6559_s27 + $0x8] sm:$0xff]  ;;  %v331_v8 = vld [vmem:[%s6559_s27] sm:$0xff]  ;;  %1178 = vrot.lane.b32.xlu0 %v9226_v0, %s6440_s11  ;;  %6381 = vset.pattern.permute.xlu1 %v6438_v2  ;;  %v334_v10 = vld [vmem:[%s6559_s27 + $0x18] sm:$0xff]  ;;  %s6453_s19 = smov 16   ;;  %s6454_s28 = smov 32  }
  0x1a   : > { %v336_v7 = vld [vmem:[%s6559_s27 + $0x28] sm:$0xff]  ;;  %358 = vmatprep.subr.mxu1 %v332_v6  ;;  %v335_v9 = vld [vmem:[%s6559_s27 + $0x20] sm:$0xff]  ;;  %v333_v12 = vld [vmem:[%s6559_s27 + $0x10] sm:$0xff]  ;;  %1503 = vperm.xlu1 %6381, %v6551_v4   ;;  %s6455_s29 = smov 48  }
  0x1b   : > { %512 = vmatprep.subr.mxu0 %v336_v7  ;;  %359 = vmatpush1.msra.mxu1 %v331_v8  ;;  %v338_v14 = vld [vmem:[%s6559_s27 + $0x38] sm:$0xff]  ;;  %v337_v15 = vld [vmem:[%s6559_s27 + $0x30] sm:$0xff]  ;;  %s6452_s27 = smov 125  }
  0x1c   : > { %513 = vmatpush1.msra.mxu0 %v335_v9  ;;  %5704 = vmatmul.mubr.msk.f32.vlgmr.msra.gmra.mrb[0].mxu1 %vm351_vm0, %v329_v5 }
  0x1d   : > { %5708 = vmatmul.mubr.msk.f32.vlgmr.msra.gmra.mrb[0].mxu0 %vm351_vm0, %v329_v5  ;;  %428 = vmatprep.mubr.f32.mxu1 %v9226_v0 }
  0x1e   : > { %582 = vmatprep.mubr.f32.mxu0 %v9226_v0  ;;  %435 = vmatprep.subr.mxu1 %v334_v10 }
  0x1f   : > { %1095 = vperm.xlu0 %6380, %v6575_v11   ;;  %436 = vmatpush1.msra.mxu1 %v333_v12 }
  0x20   : > { %5705 = vmatmul.mubr.msk.f32.gmra.mrb[2].mxu1 %vm351_vm0, %v330_v13  ;;  %589 = vmatprep.subr.mxu1 %v338_v14 }
  0x21   : > { %5709 = vmatmul.mubr.msk.f32.gmra.mrb[2].mxu0 %vm351_vm0, %v330_v13  ;;  %499 = vmatprep.mubr.f32.mxu1 %v9226_v0 }
  0x22   : > { %2462 = vmatprep.mubr.f32.mxu0 %v9226_v0  ;;  %6382 = vset.pattern.permute.xlu1 %v6441_v16 }
  0x23   : > { %6386 = vset.pattern.permute.xlu0 %v6441_v16  ;;  %1635 = vperm.xlu1 %6382, %v6544_v1  }
  0x24   : > { %1639 = vperm.xlu0 %6386, %v6551_v4   ;;  %5706 = vmatmul.mubr.msk.f32.vlgmr.msra.gmra.mrb[4].mxu1 %vm351_vm0, %v329_v5 }
  0x25   : > { %505 = vmatprep.mubr.f32.mxu1 %v9226_v0  ;;  %590 = vmatpush1.msra.mxu1 %v337_v15 }
  0x27   : > { %6383 = vset.pattern.permute.xlu1 %v6442_v18 }
  0x28   : > { %1262 = vperm.xlu0 %6386, %v6598_v17   ;;  %5707 = vmatmul.mubr.msk.f32.gmra.mrb[6].mxu1 %vm351_vm0, %v330_v13 }
  0x29   : > { %653 = vmatprep.mubr.f32.mxu1 %v9226_v0  ;;  %1846 = vperm.xlu1 %6383, %v6544_v1  }
  0x2c   : > { %6390 = vset.pattern.permute.xlu0 %v6442_v18  ;;  %5710 = vmatmul.mubr.msk.f32.vlgmr.msra.gmra.mrb[8].mxu1 %vm351_vm0, %v329_v5 }
  0x2d   : > { %1463 = vperm.xlu0 %6390, %v6575_v11   ;;  %659 = vmatprep.mubr.f32.mxu1 %v9226_v0 }
  0x2e   : > { %1850 = vperm.xlu1 %6383, %v6551_v4  }
  0x30   : > { %5711 = vmatmul.mubr.msk.f32.gmra.mrb[10].mxu1 %vm351_vm0, %v330_v13 }
  0x31   : > { %850 = vrot.lane.b32.xlu0 %v9226_v0, %s6443_s22  ;;  %2539 = vmatprep.mubr.f32.mxu1 %v9226_v0 }
  0x32   : > { %6391 = vset.pattern.permute.xlu0 %v6444_v19  ;;  %1375 = vrot.lane.b32.xlu1 %v9226_v0, %s6445_s23 }
  0x33   : > { %6384 = vset.pattern.permute.xlu1 %v6439_v3 }
  0x35   : > { %1595 = vperm.xlu0 %6391, %v6598_v17  }
  0x36   : > { %940 = vperm.xlu1 %6384, %v6575_v11  }
  0x39   : > { %6394 = vset.pattern.permute.xlu0 %v6446_v20 }
  0x3a   : > { %1810 = vperm.xlu0 %6394, %v6575_v11   ;;  %6385 = vset.pattern.permute.xlu1 %v6438_v2 }
  0x3b   : > { %1091 = vperm.xlu1 %6385, %v6598_v17  }
  0x3e   : > { %6395 = vset.pattern.permute.xlu0 %v6447_v22 }
  0x3f   : > { %2017 = vperm.xlu0 %6395, %v6598_v17   ;;  %6387 = vset.pattern.permute.xlu1 %v6439_v3 }
  0x40   : > { %2335 = vperm.xlu1 %6387, %v777_v21  }
  0x43   : > { %6398 = vset.pattern.permute.xlu0 %v6448_v24 }
  0x44   : > { %2192 = vperm.xlu0 %6398, %v6575_v11   ;;  %2340 = vperm.xlu1 %6387, %v778_v23  }
  0x48   : > { %6399 = vset.pattern.permute.xlu0 %v6439_v3  ;;  %6388 = vset.pattern.permute.xlu1 %v6441_v16 }
  0x49   : > { %343 = vperm.xlu0 %6399, %v339_v25   ;;  %1266 = vperm.xlu1 %6388, %v6575_v11  }
  0x4d   : > { %348 = vperm.xlu0 %6399, %v340_v26   ;;  %6389 = vset.pattern.permute.xlu1 %v6442_v18 }
  0x4e   : > { %1459 = vperm.xlu1 %6389, %v6598_v17  }
  0x51   : > { %1303 = vperm.xlu0 %6399, %v6544_v1  }
  0x52   : > { %1007 = vrot.lane.b32.xlu1 %v9226_v0, %s6449_s15 }
  0x53   : > { %6392 = vset.pattern.permute.xlu1 %v6444_v19 }
  0x55   : > { %935 = vperm.xlu0 %6399, %v6598_v17  }
  0x56   : > { %1599 = vperm.xlu1 %6392, %v6575_v11  }
  0x59   : > { %2229 = vperm.xlu0 %6399, %v775_v27  }
  0x5a   : > { %6393 = vset.pattern.permute.xlu1 %v6446_v20 }
  0x5b   : > { %1806 = vperm.xlu1 %6393, %v6598_v17  }
  0x5f   : > { %6396 = vset.pattern.permute.xlu1 %v6447_v22 }
  0x60   : > { %2021 = vperm.xlu1 %6396, %v6575_v11  }
  0x64   : > { %6397 = vset.pattern.permute.xlu1 %v6448_v24 }
  0x65   : > { %2188 = vperm.xlu1 %6397, %v6598_v17  }
  0x69   : > { %6400 = vset.pattern.permute.xlu1 %v6439_v3 }
  0x6a   : > { %2234 = vperm.xlu1 %6400, %v776_v28  }
  0x94   : > { %v6655_v29 = vpop.permute.xlu0 %1499  ;;  %v6701_v53 = vpop.permute.xlu1 %1308 }
  0x95   : > { %9433 = vst [vmem:[#allocation4_spill] sm:$0xff] %v6655_v29 }
  0x98   : > { %v6657_v30 = vpop.permute.xlu0 %1178 }
  0x99   : > { %v6717_v57 = vpop.permute.xlu1 %1503 }
  0x9a   : > { %9444 = vst [vmem:[#allocation15_spill] sm:$0xff] %v6717_v57 }
  0x9e   : > { %v6659_v31 = vpop.permute.xlu0 %1095 }
  0x9f   : > { %9434 = vst [vmem:[#allocation5_spill] sm:$0xff] %v6659_v31 }
  0xa2   : > { %v6729_v61 = vpop.permute.xlu1 %1635 }
  0xa3   : > { %v6661_v32 = vpop.permute.xlu0 %1639  ;;  %9447 = vst [vmem:[#allocation18_spill] sm:$0xff] %v6729_v61 }
  0xa4   : > { %9435 = vst [vmem:[#allocation6_spill] sm:$0xff] %v6661_v32 }
  0xa7   : > { %v6663_v33 = vpop.permute.xlu0 %1262 }
  0xa8   : > { %9436 = vst [vmem:[#allocation7_spill] sm:$0xff] %v6663_v33  ;;  %v6742_v63 = vpop.permute.xlu1 %1846 }
  0xac   : > { %v6665_v34 = vpop.permute.xlu0 %1463 }
  0xad   : > { %9437 = vst [vmem:[#allocation8_spill] sm:$0xff] %v6665_v34  ;;  %v6751_v3 = vpop.permute.xlu1 %1850 }
  0xae   : > { %9449 = vst [vmem:[#allocation20_spill] sm:$0xff] %v6751_v3 }
  0xb0   : > { %v6667_v35 = vpop.permute.xlu0 %850 }
  0xb1   : > { %v6761_v5 = vpop.permute.xlu1 %1375 }
  0xb4   : > { %v6669_v36 = vpop.permute.xlu0 %1595 }
  0xb5   : > { %9438 = vst [vmem:[#allocation9_spill] sm:$0xff] %v6669_v36  ;;  %v6767_v6 = vpop.permute.xlu1 %940 }
  0xb6   : > { %9450 = vst [vmem:[#allocation21_spill] sm:$0xff] %v6767_v6 }
  0xb9   : > { %v6671_v37 = vpop.permute.xlu0 %1810 }
  0xba   : > { %9439 = vst [vmem:[#allocation10_spill] sm:$0xff] %v6671_v37  ;;  %v6782_v9 = vpop.permute.xlu1 %1091 }
  0xbb   : > { %9452 = vst [vmem:[#allocation23_spill] sm:$0xff] %v6782_v9 }
  0xbe   : > { %v6673_v38 = vpop.permute.xlu0 %2017 }
  0xbf   : > { %9440 = vst [vmem:[#allocation11_spill] sm:$0xff] %v6673_v38  ;;  %v6791_v12 = vpop.permute.xlu1 %2335 }
  0xc0   : > { %9454 = vst [vmem:[#allocation25_spill] sm:$0xff] %v6791_v12 }
  0xc3   : > { %v6675_v39 = vpop.permute.xlu0 %2192  ;;  %v6801_v13 = vpop.permute.xlu1 %2340 }
  0xc4   : > { %9441 = vst [vmem:[#allocation12_spill] sm:$0xff] %v6675_v39  ;;  %9455 = vst [vmem:[#allocation26_spill] sm:$0xff] %v6801_v13 }
  0xc8   : > { %v6677_v40 = vpop.permute.xlu0 %343  ;;  %v6807_v14 = vpop.permute.xlu1 %1266 }
  0xc9   : > { %9442 = vst [vmem:[#allocation13_spill] sm:$0xff] %v6677_v40  ;;  %9456 = vst [vmem:[#allocation27_spill] sm:$0xff] %v6807_v14 }
  0xcc   : > { %v6773_v7 = vpop.permute.xlu0 %348 }
  0xcd   : > { %9451 = vst [vmem:[#allocation22_spill] sm:$0xff] %v6773_v7  ;;  %v6821_v16 = vpop.permute.xlu1 %1459 }
  0xce   : > { %9458 = vst [vmem:[#allocation29_spill] sm:$0xff] %v6821_v16 }
  0xd0   : > { %v6867_v25 = vpop.permute.xlu0 %1303 }
  0xd1   : > { %v6831_v19 = vpop.permute.xlu1 %1007  ;;  %9464 = vst [vmem:[#allocation35_spill] sm:$0xff] %v6867_v25 }
  0xd4   : > { %v6875_v27 = vpop.permute.xlu0 %935 }
  0xd5   : > { %v6841_v20 = vpop.permute.xlu1 %1599  ;;  %9466 = vst [vmem:[#allocation37_spill] sm:$0xff] %v6875_v27 }
  0xda   : > { %v6851_v22 = vpop.permute.xlu1 %1806 }
  0xdb   : > { %9461 = vst [vmem:[#allocation32_spill] sm:$0xff] %v6851_v22 }
  0xdf   : > { %v6865_v24 = vpop.permute.xlu1 %2021 }
  0xe0   : > { %9463 = vst [vmem:[#allocation34_spill] sm:$0xff] %v6865_v24 }
  0xe4   : > { %v6873_v26 = vpop.permute.xlu1 %2188 }
  0xe5   : > { %9465 = vst [vmem:[#allocation36_spill] sm:$0xff] %v6873_v26 }
  0xef   : > { %v424_v41 = vpop.f32.mrb[0].mxu1 }
  0xf0   : > { %v578_v42 = vpop.f32.mrb[0].mxu0  ;;  %v6680_v43 = vadd.f32 %v424_v41, %v6677_v40  ;;  %v426_v44 = vpop.f32.mrb[1].mxu1  ;;  %v666_v41 = vlaneseq }
  0xf1   : > { %v580_v45 = vpop.f32.mrb[1].mxu0  ;;  %v6697_v51 = vadd.f32 %v578_v42, %v6677_v40  ;;  %v6736_v62 = vadd.f32 %v426_v44, %v6677_v40  ;;  %v6889_v42 = vpop.permute.xlu1 %2234 }
  0xf2   : > { %1180 = vrot.lane.b32.xlu0 %v6680_v43, %s6440_s11  ;;  %852 = vrot.lane.b32.xlu1 %v6680_v43, %s6443_s22  ;;  %v6749_v2 = vadd.f32 %v580_v45, %v6677_v40  ;;  %9468 = vst [vmem:[#allocation39_spill] sm:$0xff] %v6889_v42  ;;  %v6891_v44 = vpop.permute.xlu0 %2229  ;;  %v6893_v45 = vand.u32 127, %v666_v41 }
  0xf3   : > { %v430_v46 = vpop.f32.mrb[2].mxu1  ;;  %9443 = vst [vmem:[#allocation14_spill] sm:$0xff] %v6697_v51  ;;  %9469 = vst [vmem:[#allocation40_spill] sm:$0xff] %v6891_v44 }
  0xf4   : > { %v584_v47 = vpop.f32.mrb[2].mxu0  ;;  %v6686_v48 = vpop.f32.mrb[3].mxu1  ;;  %9448 = vst [vmem:[#allocation19_spill] sm:$0xff] %v6749_v2  ;;  %v6776_v8 = vadd.f32 %v430_v46, %v6773_v7  ;;  %9470 = vst [vmem:[#allocation41_spill] sm:$0xff] %v6893_v45  ;;  %v6929_v0 = vadd.s32 4294967295, %v6893_v45 }
  0xf5   : > { %v6688_v49 = vpop.f32.mrb[3].mxu0  ;;  %v6789_v10 = vadd.f32 %v584_v47, %v6773_v7  ;;  %v6815_v15 = vadd.f32 %v6686_v48, %v6773_v7 }
  0xf6   : > { %1377 = vrot.lane.b32.xlu0 %v6680_v43, %s6445_s23  ;;  %1722 = vrot.lane.b32.xlu1 %v6680_v43, %s6450_s25  ;;  %v6825_v18 = vadd.f32 %v6688_v49, %v6773_v7  ;;  %v6908_v49 = vadd.s32 4294967292, %v6893_v45  ;;  %vm1335_vm8 = vcmp.ge.s32.totalorder %v6929_v0, 0  ;;  %v1610_v0 = vmul.f32 %v6841_v20, %v6776_v8 }
  0xf7   : > { %v6694_v50 = vpop.f32.mrb[4].mxu1  ;;  %9453 = vst [vmem:[#allocation24_spill] sm:$0xff] %v6789_v10  ;;  %9457 = vst [vmem:[#allocation28_spill] sm:$0xff] %v6815_v15 }
  0xf8   : > { %v6699_v52 = vpop.f32.mrb[5].mxu1  ;;  %9459 = vst [vmem:[#allocation30_spill] sm:$0xff] %v6825_v18  ;;  %v6849_v21 = vadd.f32 %v6694_v50, %v6677_v40  ;;  %v6915_v50 = vadd.s32 4294967294, %v6893_v45  ;;  %vm793_vm3 = vcmp.ge.s32.totalorder %v6908_v49, 0 }
  0xf9   : > { %v6859_v23 = vadd.f32 %v6699_v52, %v6677_v40  ;;  %v6918_v52 = vadd.s32 4294967293, %v6893_v45 }
  0xfa   : > { %1188 = vrot.lane.b32.xlu0 %v6697_v51, %s6440_s11  ;;  %1009 = vrot.lane.b32.xlu1 %v6680_v43, %s6449_s15  ;;  %9460 = vst [vmem:[#allocation31_spill] sm:$0xff] %v6849_v21  ;;  %vm1138_vm6 = vcmp.ge.s32.totalorder %v6915_v50, 0 }
  0xfb   : > { %v6707_v54 = vpop.f32.mrb[6].mxu1  ;;  %9462 = vst [vmem:[#allocation33_spill] sm:$0xff] %v6859_v23  ;;  %vm967_vm7 = vcmp.ge.s32.totalorder %v6918_v52, 0 }
  0xfc   : > { %v6709_v55 = vpop.f32.mrb[7].mxu1  ;;  %v6883_v28 = vadd.f32 %v6707_v54, %v6773_v7 }
  0xfd   : > { %v6968_v39 = vadd.f32 %v6709_v55, %v6773_v7 }
  0xfe   : > { %1385 = vrot.lane.b32.xlu0 %v6697_v51, %s6445_s23  ;;  %860 = vrot.lane.b32.xlu1 %v6697_v51, %s6443_s22  ;;  %9467 = vst [vmem:[#allocation38_spill] sm:$0xff] %v6883_v28 }
  0xff   : > { %v6715_v56 = vpop.f32.mrb[8].mxu1  ;;  %9476 = vst [vmem:[#allocation47_spill] sm:$0xff] %v6968_v39 }
 0x100   : > { %v6719_v58 = vpop.f32.mrb[9].mxu1 }
 0x101   : > { %9445 = vst [vmem:[#allocation16_spill] sm:$0xff] %v6719_v58 }
 0x102   : > { %1730 = vrot.lane.b32.xlu0 %v6697_v51, %s6450_s25  ;;  %1017 = vrot.lane.b32.xlu1 %v6697_v51, %s6449_s15 }
 0x103   : > { %v6725_v59 = vpop.f32.mrb[10].mxu1 }
 0x104   : > { %v6727_v60 = vpop.f32.mrb[11].mxu1  ;;  %v6901_v46 = vadd.f32 %v6725_v59, %v6773_v7 }
 0x105   : > { %9446 = vst [vmem:[#allocation17_spill] sm:$0xff] %v6727_v60  ;;  %v6942_v60 = vadd.f32 %v6715_v56, %v6677_v40 }
 0x106   : > { %1933 = vrot.lane.b32.xlu0 %v6680_v43, %s6451_s26  ;;  %2104 = vrot.lane.b32.xlu1 %v6680_v43, %s6452_s27  ;;  %9471 = vst [vmem:[#allocation42_spill] sm:$0xff] %v6901_v46 }
 0x107   : > { %9474 = vst [vmem:[#allocation45_spill] sm:$0xff] %v6942_v60 }
 0x10a   : > { %854 = vrot.lane.b32.xlu0 %v6736_v62, %s6443_s22  ;;  %1379 = vrot.lane.b32.xlu1 %v6736_v62, %s6445_s23 }
 0x10e   : > { %1182 = vrot.lane.b32.xlu0 %v6736_v62, %s6440_s11  ;;  %1011 = vrot.lane.b32.xlu1 %v6736_v62, %s6449_s15 }
 0x112   : > { %1724 = vrot.lane.b32.xlu0 %v6736_v62, %s6450_s25  ;;  %1190 = vrot.lane.b32.xlu1 %v6749_v2, %s6440_s11 }
 0x116   : > { %862 = vrot.lane.b32.xlu0 %v6749_v2, %s6443_s22  ;;  %1387 = vrot.lane.b32.xlu1 %v6749_v2, %s6445_s23 }
 0x11a   : > { %1019 = vrot.lane.b32.xlu0 %v6749_v2, %s6449_s15  ;;  %1732 = vrot.lane.b32.xlu1 %v6749_v2, %s6450_s25 }
 0x11e   : > { %1935 = vrot.lane.b32.xlu0 %v6736_v62, %s6451_s26  ;;  %2106 = vrot.lane.b32.xlu1 %v6736_v62, %s6452_s27 }
 0x122   : > { %1393 = vrot.lane.b32.xlu0 %v6776_v8, %s6445_s23  ;;  %868 = vrot.lane.b32.xlu1 %v6776_v8, %s6443_s22 }
 0x126   : > { %1740 = vrot.lane.b32.xlu0 %v6776_v8, %s6450_s25  ;;  %1196 = vrot.lane.b32.xlu1 %v6776_v8, %s6440_s11 }
 0x12a   : > { %1025 = vrot.lane.b32.xlu0 %v6776_v8, %s6449_s15  ;;  %1748 = vrot.lane.b32.xlu1 %v6789_v10, %s6450_s25 }
 0x12e   : > { %1204 = vrot.lane.b32.xlu0 %v6789_v10, %s6440_s11  ;;  %876 = vrot.lane.b32.xlu1 %v6789_v10, %s6443_s22 }
 0x132   : > { %1401 = vrot.lane.b32.xlu0 %v6789_v10, %s6445_s23  ;;  %1033 = vrot.lane.b32.xlu1 %v6789_v10, %s6449_s15 }
 0x136   : > { %2122 = vrot.lane.b32.xlu0 %v6776_v8, %s6452_s27  ;;  %1951 = vrot.lane.b32.xlu1 %v6776_v8, %s6451_s26 }
 0x13a   : > { %1742 = vrot.lane.b32.xlu0 %v6815_v15, %s6450_s25  ;;  %870 = vrot.lane.b32.xlu1 %v6815_v15, %s6443_s22 }
 0x13e   : > { %1750 = vrot.lane.b32.xlu0 %v6825_v18, %s6450_s25  ;;  %1198 = vrot.lane.b32.xlu1 %v6815_v15, %s6440_s11 }
 0x142   : > { %878 = vrot.lane.b32.xlu0 %v6825_v18, %s6443_s22  ;;  %1395 = vrot.lane.b32.xlu1 %v6815_v15, %s6445_s23 }
 0x146   : > { %1035 = vrot.lane.b32.xlu0 %v6825_v18, %s6449_s15  ;;  %1027 = vrot.lane.b32.xlu1 %v6815_v15, %s6449_s15 }
 0x14a   : > { %1953 = vrot.lane.b32.xlu0 %v6815_v15, %s6451_s26  ;;  %1206 = vrot.lane.b32.xlu1 %v6825_v18, %s6440_s11 }
 0x14e   : > { %2108 = vrot.lane.b32.xlu0 %v6849_v21, %s6452_s27  ;;  %1403 = vrot.lane.b32.xlu1 %v6825_v18, %s6445_s23 }
 0x152   : > { %1186 = vrot.lane.b32.xlu0 %v6859_v23, %s6440_s11  ;;  %2124 = vrot.lane.b32.xlu1 %v6815_v15, %s6452_s27 }
 0x156   : > { %1383 = vrot.lane.b32.xlu0 %v6859_v23, %s6445_s23  ;;  %1726 = vrot.lane.b32.xlu1 %v6849_v21, %s6450_s25 }
 0x15a   : > { %1015 = vrot.lane.b32.xlu0 %v6859_v23, %s6449_s15  ;;  %1937 = vrot.lane.b32.xlu1 %v6849_v21, %s6451_s26 }
 0x15e   : > { %2126 = vrot.lane.b32.xlu0 %v6883_v28, %s6452_s27  ;;  %858 = vrot.lane.b32.xlu1 %v6859_v23, %s6443_s22 }
 0x162   : > { %1943 = vrot.lane.b32.xlu0 %v6749_v2, %s6451_s26  ;;  %1744 = vrot.lane.b32.xlu1 %v6883_v28, %s6450_s25 }
 0x164   : > { %v6903_v47 = vpop.permute.xlu0 %1180  ;;  %v6905_v48 = vpop.permute.xlu1 %852 }
 0x165   : > { %9472 = vst [vmem:[#allocation43_spill] sm:$0xff] %v6903_v47  ;;  %9473 = vst [vmem:[#allocation44_spill] sm:$0xff] %v6905_v48  ;;  %v885_v41 = vsel %vm884_vm1, %v6667_v35, %v6905_v48  ;;  %v1213_v23 = vsel %vm1212_vm2, %v6657_v30, %v6903_v47 }
 0x166   : > { %1963 = vrot.lane.b32.xlu0 %v6901_v46, %s6451_s26  ;;  %1955 = vrot.lane.b32.xlu1 %v6883_v28, %s6451_s26  ;;  %v917_v58 = vsel %vm793_vm3, %v885_v41, 0.0  ;;  %v6956_v44 = vsel %vm1138_vm6, %v1213_v23, 0.0 }
 0x167   : > { %v943_v41 = vmul.f32 %v6875_v27, %v917_v58  ;;  %v1269_v24 = vmul.f32 %v6663_v33, %v6956_v44  ;;  %v668_v58 = vadd.s32 128, %v6893_v45 }
 0x168   : > { %v6920_v54 = vpop.permute.xlu0 %1377  ;;  %v6922_v59 = vpop.permute.xlu1 %1722 }
 0x169   : > { %v1410_v15 = vsel %vm1409_vm4, %v6761_v5, %v6920_v54  ;;  %v6991_v13 = vand.u32 127, %v668_v58 }
 0x16a   : > { %1959 = vrot.lane.b32.xlu0 %v6789_v10, %s6451_s26  ;;  %1961 = vrot.lane.b32.xlu1 %v6825_v18, %s6451_s26  ;;  %v6972_v23 = vsel %vm1335_vm8, %v1410_v15, 0.0 }
 0x16b   : > { %v1466_v55 = vmul.f32 %v6821_v16, %v6972_v23  ;;  %9480 = vst [vmem:[#allocation51_spill] sm:$0xff] %v6991_v13  ;;  %v7009_v58 = vadd.s32 4294967294, %v6991_v13  ;;  %v1506_v52 = vmul.f32 %v6655_v29, %v6972_v23 }
 0x16c   : > { %v6946_v28 = vpop.permute.xlu0 %1188  ;;  %v1010_v21 = vpop.permute.xlu1 %1009 }
 0x16d   : > { %9475 = vst [vmem:[#allocation46_spill] sm:$0xff] %v6946_v28  ;;  %v1042_v42 = vsel %vm1041_vm5, %v6831_v19, %v1010_v21  ;;  %vm1139_vm10 = vcmp.ge.s32.totalorder %v7009_v58, 0 }
 0x16e   : > { %v1074_v56 = vsel %vm967_vm7, %v1042_v42, 0.0  ;;  %2116 = vrot.lane.b32.xlu0 %v6942_v60, %s6452_s27  ;;  %1941 = vrot.lane.b32.xlu1 %v6697_v51, %s6451_s26 }
 0x16f   : > { %v1098_v40 = vmul.f32 %v6782_v9, %v1074_v56 }
 0x170   : > { %v6974_v26 = vpop.permute.xlu0 %1385  ;;  %v6976_v42 = vpop.permute.xlu1 %860 }
 0x171   : > { %9477 = vst [vmem:[#allocation48_spill] sm:$0xff] %v6976_v42  ;;  %v1114_v38 = vadd.f32 %v1098_v40, %v943_v41  ;;  %v1602_v40 = vmul.f32 %v6669_v36, %v6680_v43 }
 0x172   : > { %2134 = vrot.lane.b32.xlu0 %v6901_v46, %s6452_s27  ;;  %1202 = vrot.lane.b32.xlu1 %v6968_v39, %s6440_s11 }
 0x173   : > { %v1285_v15 = vadd.f32 %v1269_v24, %v1114_v38  ;;  %v7004_v24 = vadd.s32 4294967292, %v6991_v13 }
 0x174   : > { %v6987_v56 = vpop.permute.xlu0 %1730  ;;  %v6989_v7 = vpop.permute.xlu1 %1017 }
 0x175   : > { %9478 = vst [vmem:[#allocation49_spill] sm:$0xff] %v6987_v56  ;;  %9479 = vst [vmem:[#allocation50_spill] sm:$0xff] %v6989_v7  ;;  %v1482_v17 = vadd.f32 %v1466_v55, %v1285_v15  ;;  %v7012_v55 = vadd.s32 4294967293, %v6991_v13  ;;  %vm794_vm9 = vcmp.ge.s32.totalorder %v7004_v24, 0  ;;  %v672_v56 = vadd.s32 640, %v6893_v45 }
 0x176   : > { %2112 = vrot.lane.b32.xlu0 %v6697_v51, %s6452_s27  ;;  %1399 = vrot.lane.b32.xlu1 %v6968_v39, %s6445_s23  ;;  %9483 = vst [vmem:[#allocation54_spill] sm:$0xff] %v7004_v24 }
 0x177   : > { %v1618_v41 = vadd.f32 %v1602_v40, %v1482_v17  ;;  %9484 = vst [vmem:[#allocation55_spill] sm:$0xff] %v7012_v55  ;;  %v7023_v40 = vadd.s32 4294967295, %v6991_v13  ;;  %vm9278_vm11 = vcmp.ge.s32.totalorder %v7012_v55, 0 }
 0x178   : > { %v6999_v12 = vpop.permute.xlu0 %1933  ;;  %v7001_v38 = vpop.permute.xlu1 %2104 }
 0x179   : > { %9481 = vst [vmem:[#allocation52_spill] sm:$0xff] %v6999_v12  ;;  %9482 = vst [vmem:[#allocation53_spill] sm:$0xff] %v7001_v38  ;;  %v7031_v38 = vadd.s32 1, %v6893_v45  ;;  %vm9271_vm12 = vcmp.ge.s32.totalorder %v7023_v40, 0 }
 0x17a   : > { %874 = vrot.lane.b32.xlu1 %v6968_v39, %s6443_s22  ;;  %9487 = vst [vmem:[#allocation58_spill] sm:$0xff] %v7023_v40 }
 0x17b   : > { %vm1690_vm14 = vcmp.lt.s32.totalorder %v7031_v38, 128  ;;  %v9508_v38 = vld [vmem:[#allocation25_spill] sm:$0xff] }
 0x17c   : > { %v7014_v15 = vpop.permute.xlu0 %854  ;;  %v7016_v51 = vpop.permute.xlu1 %1379 }
 0x17d   : > { %9485 = vst [vmem:[#allocation56_spill] sm:$0xff] %v7014_v15  ;;  %9486 = vst [vmem:[#allocation57_spill] sm:$0xff] %v7016_v51  ;;  %v886_v17 = vsel %vm884_vm1, %v6905_v48, %v7014_v15  ;;  %v7045_v48 = vand.u32 127, %v672_v56  ;;  %v1411_v24 = vsel %vm1409_vm4, %v6920_v54, %v7016_v51 }
 0x17e   : > { %1031 = vrot.lane.b32.xlu1 %v6968_v39, %s6449_s15  ;;  %v918_v12 = vsel %vm794_vm9, %v886_v17, 0.0 }
 0x17f   : > { %9490 = vst [vmem:[#allocation61_spill] sm:$0xff] %v7045_v48  ;;  %v7086_v40 = vadd.s32 4294967294, %v7045_v48 }
 0x180   : > { %v7035_v3 = vpop.permute.xlu0 %1182  ;;  %v7037_v15 = vpop.permute.xlu1 %1011 }
 0x181   : > { %9488 = vst [vmem:[#allocation59_spill] sm:$0xff] %v7035_v3  ;;  %9489 = vst [vmem:[#allocation60_spill] sm:$0xff] %v7037_v15  ;;  %v1214_v39 = vsel %vm1212_vm2, %v6903_v47, %v7035_v3  ;;  %v1043_v13 = vsel %vm1041_vm5, %v1010_v21, %v7037_v15  ;;  %v944_v47 = vmul.f32 %v6875_v27, %v918_v12  ;;  %vm1143_vm0 = vcmp.ge.s32.totalorder %v7086_v40, 0 }
 0x182   : > { %v7052_v17 = vsel %vm1139_vm10, %v1214_v39, 0.0  ;;  %v1075_v45 = vsel %vm9278_vm11, %v1043_v13, 0.0  ;;  %1734 = vrot.lane.b32.xlu1 %v6942_v60, %s6450_s25  ;;  %v7066_v39 = vadd.s32 4294967292, %v7045_v48  ;;  %v7070_v13 = vsel %vm9271_vm12, %v1411_v24, 0.0 }
 0x183   : > { %9491 = vst [vmem:[#allocation62_spill] sm:$0xff] %v7052_v17  ;;  %v1099_v21 = vmul.f32 %v6782_v9, %v1075_v45  ;;  %9493 = vst [vmem:[#allocation64_spill] sm:$0xff] %v7070_v13  ;;  %v1270_v15 = vmul.f32 %v6663_v33, %v7052_v17 }
 0x184   : > { %v7061_v56 = vpop.permute.xlu0 %1724  ;;  %v7063_v54 = vpop.permute.xlu1 %1190  ;;  %vm798_vm15 = vcmp.ge.s32.totalorder %v7066_v39, 0 }
 0x185   : > { %9492 = vst [vmem:[#allocation63_spill] sm:$0xff] %v7063_v54  ;;  %v1115_v51 = vadd.f32 %v1099_v21, %v944_v47  ;;  %v1757_v12 = vsel %vm1756_vm13, %v6922_v59, %v7061_v56  ;;  %v7089_v47 = vadd.s32 4294967293, %v7045_v48  ;;  %v1467_v59 = vmul.f32 %v6821_v16, %v7070_v13 }
 0x186   : > { %v7079_v45 = vsel %vm1690_vm14, %v1757_v12, 0.0  ;;  %1945 = vrot.lane.b32.xlu1 %v6942_v60, %s6451_s26  ;;  %v1603_v13 = vmul.f32 %v6669_v36, %v6736_v62 }
 0x187   : > { %v1286_v55 = vadd.f32 %v1270_v15, %v1115_v51  ;;  %v1813_v24 = vmul.f32 %v6851_v22, %v7079_v45  ;;  %v7104_v15 = vadd.s32 4294967295, %v7045_v48  ;;  %vm972_vm12 = vcmp.ge.s32.totalorder %v7089_v47, 0  ;;  %v9524_v47 = vld [vmem:[#allocation58_spill] sm:$0xff] }
 0x188   : > { %v7093_v21 = vpop.permute.xlu0 %862  ;;  %v7095_v12 = vpop.permute.xlu1 %1387 }
 0x189   : > { %9494 = vst [vmem:[#allocation65_spill] sm:$0xff] %v7093_v21  ;;  %9495 = vst [vmem:[#allocation66_spill] sm:$0xff] %v7095_v12  ;;  %v7097_v17 = vadd.f32 %v1813_v24, %v1618_v41  ;;  %v890_v51 = vsel %vm884_vm1, %v6976_v42, %v7093_v21  ;;  %v1483_v60 = vadd.f32 %v1467_v59, %v1286_v55  ;;  %vm1340_vm11 = vcmp.ge.s32.totalorder %v7104_v15, 0 }
 0x18a   : > { %1752 = vrot.lane.b32.xlu1 %v6901_v46, %s6450_s25  ;;  %v1218_v41 = vsel %vm1212_vm2, %v6946_v28, %v7063_v54  ;;  %v922_v24 = vsel %vm798_vm15, %v890_v51, 0.0  ;;  %v1415_v51 = vsel %vm1409_vm4, %v6974_v26, %v7095_v12 }
 0x18b   : > { %v7121_v46 = vadd.f32 %v1603_v13, %v1483_v60  ;;  %v7128_v59 = vsel %vm1143_vm0, %v1218_v41, 0.0  ;;  %v948_v60 = vmul.f32 %v6875_v27, %v922_v24  ;;  %v7148_v12 = vsel %vm1340_vm11, %v1415_v51, 0.0 }
 0x18c   : > { %v7117_v21 = vpop.permute.xlu0 %1019  ;;  %v7119_v48 = vpop.permute.xlu1 %1732  ;;  %9498 = vst [vmem:[#allocation69_spill] sm:$0xff] %v7128_v59  ;;  %9499 = vst [vmem:[#allocation70_spill] sm:$0xff] %v7148_v12  ;;  %v1471_v24 = vmul.f32 %v6821_v16, %v7148_v12 }
 0x18d   : > { %9496 = vst [vmem:[#allocation67_spill] sm:$0xff] %v7117_v21  ;;  %9497 = vst [vmem:[#allocation68_spill] sm:$0xff] %v7119_v48  ;;  %v1047_v55 = vsel %vm1041_vm5, %v6989_v7, %v7117_v21  ;;  %v1274_v7 = vmul.f32 %v6663_v33, %v7128_v59 }
 0x18e   : > { %v1079_v54 = vsel %vm972_vm12, %v1047_v55, 0.0  ;;  %2114 = vrot.lane.b32.xlu1 %v6749_v2, %s6452_s27 }
 0x18f   : > { %v1103_v13 = vmul.f32 %v6782_v9, %v1079_v54 }
 0x190   : > { %v7140_v21 = vpop.permute.xlu0 %1935  ;;  %v7142_v41 = vpop.permute.xlu1 %2106 }
 0x191   : > { %v1119_v42 = vadd.f32 %v1103_v13, %v948_v60 }
 0x192   : > { %2132 = vrot.lane.b32.xlu1 %v6825_v18, %s6452_s27 }
 0x193   : > { %v1290_v55 = vadd.f32 %v1274_v7, %v1119_v42 }
 0x194   : > { %v7154_v54 = vpop.permute.xlu0 %1393  ;;  %v7156_v9 = vpop.permute.xlu1 %868 }
 0x195   : > { %v3146_v27 = vmul.f32 %v7156_v9, %v6575_v11  ;;  %v7162_v51 = vadd.f32 %v1471_v24, %v1290_v55  ;;  %v893_v7 = vsel %vm884_vm1, %v6667_v35, %v7156_v9  ;;  %v1418_v35 = vsel %vm1409_vm4, %v6761_v5, %v7154_v54 }
 0x196   : > { %2130 = vrot.lane.b32.xlu1 %v6789_v10, %s6452_s27  ;;  %v925_v24 = vsel %vm793_vm3, %v893_v7, 0.0  ;;  %v1450_v59 = vsel %vm1335_vm8, %v1418_v35, 0.0  ;;  %v1853_v10 = vmul.f32 %v6742_v63, %v7079_v45  ;;  %vm9402_vm3 = vcmask 1031168  }
 0x197   : > { %9500 = vst [vmem:[#allocation71_spill] sm:$0xff] %v7162_v51  ;;  %v3150_v13 = vsel %vm884_vm1, %v3146_v27, 0.0  ;;  %v951_v7 = vmul.f32 %v6767_v6, %v925_v24  ;;  %v1474_v50 = vmul.f32 %v6665_v34, %v1450_v59  ;;  %v1514_v23 = vmul.f32 %v6717_v57, %v1450_v59 }
 0x198   : > { %v1741_v60 = vpop.permute.xlu0 %1740  ;;  %v7165_v33 = vpop.permute.xlu1 %1196  ;;  %3151 = vadd.xlane.f32.xlu0 %v3150_v13 }
 0x199   : > { %v3158_v42 = vmul.f32 %v7165_v33, %v6551_v4  ;;  %v1221_v16 = vsel %vm1212_vm2, %v6657_v30, %v7165_v33 }
 0x19a   : > { %v1253_v30 = vsel %vm1138_vm6, %v1221_v16, 0.0 }
 0x19b   : > { %v3162_v55 = vsel %vm1212_vm2, %v3158_v42, 0.0  ;;  %v1319_v18 = vmul.f32 %v6701_v53, %v1253_v30 }
 0x19c   : > { %v7178_v27 = vpop.permute.xlu0 %1025  ;;  %v7180_v51 = vpop.permute.xlu1 %1748  ;;  %3163 = vadd.xlane.f32.xlu0 %v3162_v55 }
 0x19d   : > { %9501 = vst [vmem:[#allocation72_spill] sm:$0xff] %v7180_v51  ;;  %v1050_v13 = vsel %vm1041_vm5, %v6831_v19, %v7178_v27  ;;  %v1277_v19 = vmul.f32 %v6807_v14, %v1253_v30  ;;  %v1650_v30 = vmul.f32 %v6661_v32, %v6776_v8 }
 0x19e   : > { %v1082_v49 = vsel %vm967_vm7, %v1050_v13, 0.0  ;;  %vm9401_vm7 = vcmask 1022976  }
 0x19f   : > { %v1106_v42 = vmul.f32 %v6659_v31, %v1082_v49  ;;  %v1311_v49 = vmul.f32 %v6867_v25, %v6956_v44 }
 0x1a0   : > { %v7196_v12 = vpop.permute.xlu0 %1204  ;;  %v7198_v5 = vpop.permute.xlu1 %876 }
 0x1a1   : > { %9502 = vst [vmem:[#allocation73_spill] sm:$0xff] %v7196_v12  ;;  %9503 = vst [vmem:[#allocation74_spill] sm:$0xff] %v7198_v5  ;;  %v1122_v55 = vadd.f32 %v1106_v42, %v951_v7  ;;  %v1522_v42 = vadd.f32 %v1506_v52, %v1311_v49  ;;  %v9505_v49 = vld [vmem:[#allocation20_spill] sm:$0xff] }
 0x1a3   : > { %v1293_v16 = vadd.f32 %v1277_v19, %v1122_v55  ;;  %v1642_v55 = vmul.f32 %v6729_v61, %v6680_v43 }
 0x1a4   : > { %v7204_v13 = vpop.permute.xlu0 %1401  ;;  %v7206_v24 = vpop.permute.xlu1 %1033 }
 0x1a5   : > { %v1490_v35 = vadd.f32 %v1474_v50, %v1293_v16  ;;  %v1530_v50 = vadd.f32 %v1514_v23, %v1319_v18  ;;  %v1658_v16 = vadd.f32 %v1642_v55, %v1522_v42  ;;  %v3490_v18 = vmul.f32 %v7035_v3, %v6544_v1  ;;  %v9512_v3 = vld [vmem:[#allocation44_spill] sm:$0xff] }
 0x1a7   : > { %v1626_v7 = vadd.f32 %v1610_v0, %v1490_v35  ;;  %v1869_v0 = vadd.f32 %v1853_v10, %v1658_v16  ;;  %v1666_v45 = vadd.f32 %v1650_v30, %v1530_v50  ;;  %v9510_v16 = vld [vmem:[#allocation41_spill] sm:$0xff]  ;;  %v3492_v50 = vsel %vm1212_vm2, %v3490_v18, 0.0  ;;  %v9511_v30 = vld [vmem:[#allocation3_spill] sm:$0xff] }
 0x1a8   : > { %v7213_v2 = vpop.permute.xlu0 %2122  ;;  %v7215_v19 = vpop.permute.xlu1 %1951 }
 0x1a9   : > { %v7246_v55 = vadd.f32 %v9508_v38, %v1869_v0 }
 0x1ab   : > { %9509 = vst [vmem:[#allocation25_spill] sm:$0xff] %v7246_v55  ;;  %v3052_v18 = vmul.f32 %v7246_v55, %v7246_v55 }
 0x1ac   : > { %v7222_v36 = vpop.permute.xlu0 %1742  ;;  %v7224_v44 = vpop.permute.xlu1 %870 }
 0x1ad   : > { %9504 = vst [vmem:[#allocation75_spill] sm:$0xff] %v7224_v44  ;;  %v1765_v52 = vsel %vm1756_vm13, %v1741_v60, %v7222_v36  ;;  %v3479_v59 = vmul.f32 %v7224_v44, %v6575_v11 }
 0x1ae   : > { %v1797_v43 = vsel %vm1690_vm14, %v1765_v52, 0.0  ;;  %v1885_v52 = vadd.s32 2, %v9510_v16 }
 0x1af   : > { %v1821_v35 = vmul.f32 %v6671_v37, %v1797_v43  ;;  %v1861_v42 = vmul.f32 %v9505_v49, %v1797_v43  ;;  %v3483_v8 = vsel %vm884_vm1, %v3479_v59, 0.0  ;;  %v3145_v43 = vmul.f32 %v9512_v3, %v9511_v30 }
 0x1b0   : > { %v7239_v23 = vpop.permute.xlu0 %1750  ;;  %3484 = vadd.xlane.f32.xlu0 %v3483_v8  ;;  %v7241_v60 = vpop.permute.xlu1 %1198  ;;  %v9515_v8 = vld [vmem:[#allocation26_spill] sm:$0xff]  ;;  %vm1901_vm6 = vcmp.lt.s32.totalorder %v1885_v52, 128 }
 0x1b1   : > { %9506 = vst [vmem:[#allocation76_spill] sm:$0xff] %v7239_v23  ;;  %9507 = vst [vmem:[#allocation77_spill] sm:$0xff] %v7241_v60  ;;  %v7243_v11 = vadd.f32 %v1821_v35, %v1626_v7  ;;  %v1877_v10 = vadd.f32 %v1861_v42, %v1666_v45  ;;  %v894_v7 = vsel %vm884_vm1, %v7156_v9, %v7224_v44  ;;  %v3147_v35 = vsel %vm884_vm1, %v3145_v43, 0.0  ;;  %v9517_v42 = vld [vmem:[#allocation43_spill] sm:$0xff]  ;;  %v9518_v9 = vld [vmem:[#allocation52_spill] sm:$0xff] }
 0x1b2   : > { %v1222_v0 = vsel %vm1212_vm2, %v7165_v33, %v7241_v60  ;;  %v926_v44 = vsel %vm794_vm9, %v894_v7, 0.0  ;;  %vm9525_vm9 = vcmp.ge.s32.totalorder %v9524_v47, 0  ;;  %v9529_v47 = vld [vmem:[#allocation53_spill] sm:$0xff] }
 0x1b3   : > { %v7257_v23 = vadd.f32 %v9515_v8, %v1877_v10  ;;  %v3157_v10 = vmul.f32 %v9517_v42, %v6544_v1  ;;  %v7281_v3 = vsel %vm1139_vm10, %v1222_v0, 0.0  ;;  %v2056_v0 = vadd.s32 3, %v9510_v16 }
 0x1b4   : > { %v7252_v51 = vpop.permute.xlu0 %878  ;;  %3493 = vadd.xlane.f32.xlu0 %v3492_v50  ;;  %v7254_v59 = vpop.permute.xlu1 %1395  ;;  %v1968_v50 = vsel %vm9402_vm3, %v9518_v9, %v7140_v21  ;;  %v952_v9 = vmul.f32 %v6767_v6, %v926_v44 }
 0x1b5   : > { %9513 = vst [vmem:[#allocation3_spill] sm:$0xff] %v7252_v51  ;;  %9514 = vst [vmem:[#allocation44_spill] sm:$0xff] %v7254_v59  ;;  %v3060_v45 = vmul.f32 %v7257_v23, %v7257_v23  ;;  %v898_v1 = vsel %vm884_vm1, %v7198_v5, %v7252_v51  ;;  %v1419_v43 = vsel %vm1409_vm4, %v7154_v54, %v7254_v59  ;;  %v2000_v54 = vsel %vm1901_vm6, %v1968_v50, 0.0  ;;  %v9527_v50 = vld [vmem:[#allocation56_spill] sm:$0xff] }
 0x1b6   : > { %9516 = vst [vmem:[#allocation26_spill] sm:$0xff] %v7257_v23  ;;  %v930_v59 = vsel %vm798_vm15, %v898_v1, 0.0  ;;  %v3478_v44 = vmul.f32 %v9527_v50, %v9511_v30  ;;  %v9528_v1 = vld [vmem:[#allocation11_spill] sm:$0xff]  ;;  %vm2072_vm10 = vcmp.lt.s32.totalorder %v2056_v0, 128  ;;  %v9535_v51 = vld [vmem:[#allocation36_spill] sm:$0xff] }
 0x1b7   : > { %v7287_v23 = vadd.f32 %v3060_v45, %v3052_v18  ;;  %v9522_v45 = vld [vmem:[#allocation55_spill] sm:$0xff] }
 0x1b8   : > { %v7283_v48 = vpop.permute.xlu0 %1035  ;;  %v7285_v55 = vpop.permute.xlu1 %1027  ;;  %vm9523_vm8 = vcmp.ge.s32.totalorder %v9522_v45, 0 }
 0x1b9   : > { %9520 = vst [vmem:[#allocation43_spill] sm:$0xff] %v7283_v48  ;;  %9521 = vst [vmem:[#allocation52_spill] sm:$0xff] %v7285_v55  ;;  %v1055_v58 = vsel %vm1041_vm5, %v7206_v24, %v7283_v48  ;;  %v1051_v7 = vsel %vm1041_vm5, %v7178_v27, %v7285_v55  ;;  %v3159_v48 = vsel %vm1212_vm2, %v3157_v10, 0.0  ;;  %v1278_v27 = vmul.f32 %v6807_v14, %v7281_v3 }
 0x1ba   : > { %v1087_v18 = vsel %vm972_vm12, %v1055_v58, 0.0  ;;  %v1083_v42 = vsel %vm9523_vm8, %v1051_v7, 0.0  ;;  %3148 = vadd.xlane.f32.xlu1 %v3147_v35  ;;  %v1451_v58 = vsel %vm9525_vm9, %v1419_v43, 0.0  ;;  %v2024_v43 = vmul.f32 %v9528_v1, %v2000_v54 }
 0x1bb   : > { %v1107_v33 = vmul.f32 %v6659_v31, %v1083_v42  ;;  %v1111_v7 = vmul.f32 %v6659_v31, %v1087_v18  ;;  %v2139_v55 = vsel %vm9401_vm7, %v9529_v47, %v7142_v41  ;;  %v956_v18 = vmul.f32 %v6767_v6, %v930_v59 }
 0x1bc   : > { %v7316_v45 = vpop.permute.xlu0 %1953  ;;  %v7318_v35 = vpop.permute.xlu1 %1206  ;;  %v3480_v47 = vsel %vm884_vm1, %v3478_v44, 0.0  ;;  %v2171_v40 = vsel %vm2072_vm10, %v2139_v55, 0.0  ;;  %v3491_v59 = vmul.f32 %v7241_v60, %v6551_v4  ;;  %v9533_v44 = vld [vmem:[#allocation34_spill] sm:$0xff] }
 0x1bd   : > { %9526 = vst [vmem:[#allocation54_spill] sm:$0xff] %v7318_v35  ;;  %v1123_v42 = vadd.f32 %v1107_v33, %v952_v9  ;;  %v1976_v10 = vsel %vm9402_vm3, %v7215_v19, %v7316_v45  ;;  %v1226_v39 = vsel %vm1212_vm2, %v7196_v12, %v7318_v35  ;;  %v1475_v33 = vmul.f32 %v6665_v34, %v1451_v58 }
 0x1be   : > { %v7335_v30 = vsel %vm1143_vm0, %v1226_v39, 0.0  ;;  %3160 = vadd.xlane.f32.xlu1 %v3159_v48  ;;  %v2008_v54 = vsel %vm1901_vm6, %v1976_v10, 0.0  ;;  %v1127_v39 = vadd.f32 %v1111_v7, %v956_v18  ;;  %v9534_v18 = vld [vmem:[#allocation51_spill] sm:$0xff]  ;;  %v2195_v4 = vmul.f32 %v9535_v51, %v2171_v40 }
 0x1bf   : > { %9530 = vst [vmem:[#allocation55_spill] sm:$0xff] %v7335_v30  ;;  %v1294_v9 = vadd.f32 %v1278_v27, %v1123_v42  ;;  %v1282_v19 = vmul.f32 %v6807_v14, %v7335_v30  ;;  %v2040_v27 = vadd.f32 %v2024_v43, %v7097_v17  ;;  %v2032_v10 = vmul.f32 %v9533_v44, %v2008_v54 }
 0x1c0   : > { %v7342_v50 = vpop.permute.xlu0 %2108  ;;  %v7344_v35 = vpop.permute.xlu1 %1403  ;;  %v7387_v0 = vadd.s32 2, %v9534_v18  ;;  %v1643_v14 = vmul.f32 %v6729_v61, %v6736_v62 }
 0x1c1   : > { %9531 = vst [vmem:[#allocation58_spill] sm:$0xff] %v7342_v50  ;;  %9532 = vst [vmem:[#allocation53_spill] sm:$0xff] %v7344_v35  ;;  %v1423_v48 = vsel %vm1409_vm4, %v7204_v13, %v7344_v35  ;;  %v7358_v42 = vadd.f32 %v1475_v33, %v1294_v9  ;;  %v1298_v55 = vadd.f32 %v1282_v19, %v1127_v39  ;;  %v7364_v35 = vadd.s32 1, %v9534_v18 }
 0x1c2   : > { %v7356_v52 = vsel %vm1340_vm11, %v1423_v48, 0.0  ;;  %3481 = vadd.xlane.f32.xlu1 %v3480_v47  ;;  %v3495_v9 = vsel %vm1212_vm2, %v3491_v59, 0.0  ;;  %v2211_v33 = vadd.f32 %v2195_v4, %v2040_v27  ;;  %v2048_v54 = vadd.f32 %v2032_v10, %v7243_v11  ;;  %v9538_v47 = vld [vmem:[#allocation12_spill] sm:$0xff] }
 0x1c3   : > { %v1479_v7 = vmul.f32 %v6665_v34, %v7356_v52  ;;  %vm1691_vm11 = vcmp.lt.s32.totalorder %v7364_v35, 128  ;;  %v9541_v59 = vld [vmem:[#allocation40_spill] sm:$0xff]  ;;  %v671_v10 = vadd.s32 512, %v9510_v16  ;;  %vm1902_vm12 = vcmp.lt.s32.totalorder %v7387_v0, 128 }
 0x1c4   : > { %v7367_v60 = vpop.permute.xlu0 %1186  ;;  %v2125_v17 = vpop.permute.xlu1 %2124  ;;  %v7392_v27 = vadd.f32 %v9541_v59, %v2211_v33 }
 0x1c5   : > { %9536 = vst [vmem:[#allocation51_spill] sm:$0xff] %v7367_v60  ;;  %v7369_v15 = vadd.f32 %v1479_v7, %v1298_v55  ;;  %v2147_v43 = vsel %vm9401_vm7, %v7213_v2, %v2125_v17  ;;  %v3069_v55 = vrot.slane %v7287_v23, 4  ;;  %v7429_v30 = vand.u32 127, %v671_v10 }
 0x1c6   : > { %v2179_v19 = vsel %vm2072_vm10, %v2147_v43, 0.0  ;;  %3496 = vadd.xlane.f32.xlu1 %v3495_v9  ;;  %9542 = vst [vmem:[#allocation81_spill] sm:$0xff] %v7392_v27  ;;  %v9543_v43 = vld [vmem:[#allocation62_spill] sm:$0xff] }
 0x1c7   : > { %9537 = vst [vmem:[#allocation78_spill] sm:$0xff] %v7369_v15  ;;  %v2203_v39 = vmul.f32 %v9538_v47, %v2179_v19  ;;  %v1312_v9 = vmul.f32 %v6867_v25, %v9543_v43  ;;  %v2057_v19 = vadd.s32 3, %v9534_v18  ;;  %v1515_v15 = vmul.f32 %v6717_v57, %v1451_v58 }
 0x1c8   : > { %v7378_v40 = vpop.permute.xlu0 %1383  ;;  %v7380_v48 = vpop.permute.xlu1 %1726 }
 0x1c9   : > { %9539 = vst [vmem:[#allocation79_spill] sm:$0xff] %v7378_v40  ;;  %9540 = vst [vmem:[#allocation80_spill] sm:$0xff] %v7380_v48  ;;  %v2219_v7 = vadd.f32 %v2203_v39, %v2048_v54  ;;  %v1758_v2 = vsel %vm1756_vm13, %v7061_v56, %v7380_v48  ;;  %v9545_v56 = vld [vmem:[#allocation39_spill] sm:$0xff]  ;;  %v3070_v48 = vadd.f32 %v3069_v55, %v7287_v23  ;;  %vm2073_vm14 = vcmp.lt.s32.totalorder %v2057_v19, 128 }
 0x1ca   : > { %v1790_v11 = vsel %vm1691_vm11, %v1758_v2, 0.0  ;;  %v9547_v2 = vld [vmem:[#allocation64_spill] sm:$0xff]  ;;  %v2140_v55 = vsel %vm9401_vm7, %v7142_v41, %v7342_v50  ;;  %v1414_v35 = vsel %vm1409_vm4, %v7378_v40, %v6974_v26  ;;  %v1217_v26 = vsel %vm1212_vm2, %v7367_v60, %v6946_v28 }
 0x1cb   : > { %v1814_v4 = vmul.f32 %v6851_v22, %v1790_v11  ;;  %v7402_v39 = vadd.f32 %v9545_v56, %v2219_v7  ;;  %v1507_v33 = vmul.f32 %v6655_v29, %v9547_v2  ;;  %v2253_v7 = vmul.f32 %v7392_v27, %v7392_v27 }
 0x1cc   : > { %v7399_v54 = vpop.permute.xlu1 %1937  ;;  %v7409_v34 = vpop.permute.xlu0 %1015 }
 0x1cd   : > { %9544 = vst [vmem:[#allocation62_spill] sm:$0xff] %v7399_v54  ;;  %9546 = vst [vmem:[#allocation82_spill] sm:$0xff] %v7402_v39  ;;  %v1830_v16 = vadd.f32 %v1814_v4, %v7121_v46  ;;  %v1969_v18 = vsel %vm9402_vm3, %v7140_v21, %v7399_v54  ;;  %v2261_v23 = vmul.f32 %v7402_v39, %v7402_v39  ;;  %v3071_v21 = vrot.slane %v3070_v48, 2 }
 0x1ce   : > { %9548 = vst [vmem:[#allocation64_spill] sm:$0xff] %v7409_v34  ;;  %v1320_v46 = vmul.f32 %v6701_v53, %v7281_v3  ;;  %v1523_v58 = vadd.f32 %v1507_v33, %v1312_v9  ;;  %v2001_v4 = vsel %vm1902_vm12, %v1969_v18, 0.0  ;;  %v1854_v3 = vmul.f32 %v6742_v63, %v1790_v11  ;;  %v9551_v18 = vld [vmem:[#allocation28_spill] sm:$0xff] }
 0x1cf   : > { %v2269_v2 = vadd.f32 %v2261_v23, %v2253_v7  ;;  %v2025_v9 = vmul.f32 %v9528_v1, %v2001_v4  ;;  %v1651_v7 = vmul.f32 %v6661_v32, %v9551_v18  ;;  %v7441_v23 = vadd.s32 4294967295, %v7429_v30 }
 0x1d0   : > { %v7425_v43 = vpop.permute.xlu1 %858  ;;  %v1531_v54 = vadd.f32 %v1515_v15, %v1320_v46  ;;  %v7436_v33 = vpop.permute.xlu0 %2126  ;;  %v1659_v62 = vadd.f32 %v1643_v14, %v1523_v58  ;;  %v1611_v10 = vmul.f32 %v6841_v20, %v9551_v18  ;;  %v3072_v41 = vadd.f32 %v3071_v21, %v3070_v48 }
 0x1d1   : > { %9549 = vst [vmem:[#allocation83_spill] sm:$0xff] %v7425_v43  ;;  %9550 = vst [vmem:[#allocation84_spill] sm:$0xff] %v7436_v33  ;;  %v2270_v15 = vrot.slane %v2269_v2, 4  ;;  %v2172_v11 = vsel %vm2073_vm14, %v2140_v55, 0.0  ;;  %v2148_v1 = vsel %vm9401_vm7, %v2125_v17, %v7436_v33  ;;  %v2041_v18 = vadd.f32 %v2025_v9, %v1830_v16  ;;  %v7544_v33 = vld [vmem:[%s9223_s7] sm:$0xff] }
 0x1d2   : > { %v1667_v50 = vadd.f32 %v1651_v7, %v1531_v54  ;;  %v1870_v39 = vadd.f32 %v1854_v3, %v1659_v62  ;;  %v1627_v14 = vadd.f32 %v1611_v10, %v7358_v42  ;;  %v2196_v21 = vmul.f32 %v9535_v51, %v2172_v11 }
 0x1d3   : > { %v2271_v27 = vadd.f32 %v2270_v15, %v2269_v2  ;;  %vm1339_vm15 = vcmp.ge.s32.totalorder %v7441_v23, 0  ;;  %v3073_v17 = vrot.slane %v3072_v41, 1  ;;  %v2180_v9 = vsel %vm2073_vm14, %v2148_v1, 0.0  ;;  %v9573_v23 = vld [vmem:[#allocation24_spill] sm:$0xff] }
 0x1d4   : > { %v7445_v46 = vpop.permute.xlu1 %1744  ;;  %v2344_v15 = vadd.f32 %v9508_v38, %v1870_v39  ;;  %v7485_v1 = vsel %vm1339_vm15, %v1414_v35, 0.0  ;;  %v2204_v0 = vmul.f32 %v9538_v47, %v2180_v9  ;;  %v1678_v35 = vadd.s32 1, %v7429_v30  ;;  %v9556_v9 = vld [vmem:[#allocation26_spill] sm:$0xff] }
 0x1d5   : > { %9552 = vst [vmem:[#allocation28_spill] sm:$0xff] %v7445_v46  ;;  %v1766_v4 = vsel %vm1756_vm13, %v7222_v36, %v7445_v46  ;;  %v2272_v54 = vrot.slane %v2271_v27, 2  ;;  %v7460_v36 = vadd.s32 4294967294, %v7429_v30 }
 0x1d6   : > { %v1798_v58 = vsel %vm1691_vm11, %v1766_v4, 0.0  ;;  %v2212_v4 = vadd.f32 %v2196_v21, %v2041_v18  ;;  %v3053_v39 = vmul.f32 %v2344_v15, %v2344_v15  ;;  %v3074_v18 = vadd.f32 %v3073_v17, %v3072_v41  ;;  %v9557_v41 = vld [vmem:[#allocation25_spill] sm:$0xff] }
 0x1d7   : > { %v1822_v48 = vmul.f32 %v6671_v37, %v1798_v58  ;;  %v1862_v55 = vmul.f32 %v9505_v49, %v1798_v58  ;;  %v2273_v62 = vadd.f32 %v2272_v54, %v2271_v27  ;;  %vm1142_vm0 = vcmp.ge.s32.totalorder %v7460_v36, 0  ;;  %v7491_v58 = vld [vmem:[%s9223_s7 + $0x10] sm:$0xff]  ;;  %v9570_v36 = vld [vmem:[#allocation48_spill] sm:$0xff] }
 0x1d8   : > { %v7463_v2 = vpop.permute.xlu1 %1955  ;;  %v7498_v54 = vadd.f32 %v9541_v59, %v2212_v4  ;;  %v9558_v17 = vpack.c.bf16 %v9556_v9, %v9557_v41  ;;  %vm1694_vm6 = vcmp.lt.s32.totalorder %v1678_v35, 128  ;;  %v9564_v41 = vld [vmem:[#allocation14_spill] sm:$0xff]  ;;  %v9576_v59 = vld [vmem:[#allocation19_spill] sm:$0xff] }
 0x1d9   : > { %9553 = vst [vmem:[#allocation85_spill] sm:$0xff] %v7463_v2  ;;  %v1838_v16 = vadd.f32 %v1822_v48, %v1627_v14  ;;  %v1878_v42 = vadd.f32 %v1862_v55, %v1667_v50  ;;  %v1977_v3 = vsel %vm9402_vm3, %v7316_v45, %v7463_v2  ;;  %v2274_v50 = vrot.slane %v2273_v62, 1  ;;  %v9566_v2 = vld [vmem:[#allocation72_spill] sm:$0xff] }
 0x1da   : > { %v2009_v7 = vsel %vm1902_vm12, %v1977_v3, 0.0  ;;  %v7495_v48 = vsel %vm1142_vm0, %v1217_v26, 0.0  ;;  %9554 = vst [vmem:[#allocation86_spill] sm:$0xff] %v7498_v54  ;;  %v2254_v26 = vmul.f32 %v7498_v54, %v7498_v54 }
 0x1db   : > { %v2033_v10 = vmul.f32 %v9533_v44, %v2009_v7  ;;  %v2352_v11 = vadd.f32 %v9515_v8, %v1878_v42  ;;  %v2275_v21 = vadd.f32 %v2274_v50, %v2273_v62  ;;  %v1315_v62 = vmul.f32 %v6867_v25, %v7495_v48 }
 0x1dc   : > { %v7481_v45 = vpop.permute.xlu1 %1961 }
 0x1dd   : > { %v2049_v27 = vadd.f32 %v2033_v10, %v1838_v16  ;;  %v6092_v19 = vpack.c.bf16 %v2352_v11, %v2344_v15  ;;  %v3061_v14 = vmul.f32 %v2352_v11, %v2352_v11  ;;  %v1510_v16 = vmul.f32 %v6655_v29, %v7485_v1  ;;  %v7516_v10 = vpop.permute.xlu0 %1943  ;;  %v7521_v11 = vld [vmem:[%s9223_s7 + $0x18] sm:$0xff] }
 0x1de   : > { %v7512_v15 = vadd.f32 %v3074_v18, %v2275_v21 }
 0x1df   : > { %6093 = vmatprep.subr.bf16.mxu0 %v6092_v19  ;;  %v2220_v55 = vadd.f32 %v2204_v0, %v2049_v27  ;;  %v3075_v42 = vadd.f32 %v3061_v14, %v3053_v39  ;;  %v9561_v27 = vld [vmem:[#allocation68_spill] sm:$0xff]  ;;  %v9562_v19 = vld [vmem:[#allocation49_spill] sm:$0xff]  ;;  %v1526_v14 = vadd.f32 %v1510_v16, %v1315_v62  ;;  %v789_v0 = vadd.s32 4294967292, %v7429_v30 }
 0x1e0   : > { %v7503_v3 = vpop.permute.xlu1 %1941  ;;  %6095 = vmatpush1.bf16.msra.mxu0 %v9558_v17  ;;  %9560 = vst [vmem:[#allocation25_spill] sm:$0xff] %v7512_v15  ;;  %v1761_v39 = vsel %vm1756_vm13, %v9562_v19, %v9561_v27  ;;  %v1646_v17 = vmul.f32 %v6729_v61, %v9564_v41 }
 0x1e1   : > { %9555 = vst [vmem:[#allocation87_spill] sm:$0xff] %v7503_v3  ;;  %2359 = vxpose.xlu0.b32.start [1/2] (short) (narrow) %v7491_v58, 16  ;;  %v7510_v7 = vadd.f32 %v9545_v56, %v2220_v55  ;;  %v3076_v4 = vrot.slane %v3075_v42, 4  ;;  %v7553_v40 = vpop.permute.xlu0 %1963  ;;  %vm797_vm8 = vcmp.ge.s32.totalorder %v789_v0, 0 }
 0x1e2   : > { %9567 = vst [vmem:[#allocation14_spill] sm:$0xff] %v7553_v40 }
 0x1e3   : > { %9559 = vst [vmem:[#allocation26_spill] sm:$0xff] %v7510_v7  ;;  %v2262_v50 = vmul.f32 %v7510_v7, %v7510_v7  ;;  %v3077_v55 = vadd.f32 %v3076_v4, %v3075_v42  ;;  %v7547_v42 = vsel %vm1694_vm6, %v1761_v39, 0.0  ;;  %v9565_v4 = vld [vmem:[#allocation76_spill] sm:$0xff] }
 0x1e4   : > { %v7532_v18 = vpop.permute.xlu1 %1202  ;;  %v1769_v19 = vsel %vm1756_vm13, %v9566_v2, %v9565_v4  ;;  %v1857_v2 = vmul.f32 %v6742_v63, %v7547_v42 }
 0x1e5   : > { %9563 = vst [vmem:[#allocation68_spill] sm:$0xff] %v7532_v18  ;;  %v1225_v21 = vsel %vm1212_vm2, %v7532_v18, %v7196_v12  ;;  %2360 = vxpose.xlu0.b32.end [2/2] (short) (narrow) %v7521_v11, 16  ;;  %v2276_v9 = vadd.f32 %v2262_v50, %v2254_v26  ;;  %v3078_v16 = vrot.slane %v3077_v55, 2  ;;  %v1662_v26 = vadd.f32 %v1646_v17, %v1526_v14  ;;  %v9569_v18 = vld [vmem:[#allocation9_spill] sm:$0xff]  ;;  %v7601_v56 = vpop.permute.xlu0 %1959 }
 0x1e6   : > { %v963_v50 = vadd.s32 4294967293, %v7429_v30  ;;  %v7557_v46 = vsel %vm1142_vm0, %v1225_v21, 0.0  ;;  %v7563_v39 = vmul.f32 %v9569_v18, %v9564_v41  ;;  %v889_v21 = vsel %vm884_vm1, %v7425_v43, %v9570_v36  ;;  %9575 = vst [vmem:[#allocation24_spill] sm:$0xff] %v7601_v56 }
 0x1e7   : > { %v2277_v62 = vrot.slane %v2276_v9, 4  ;;  %v3079_v17 = vadd.f32 %v3078_v16, %v3077_v55  ;;  %v1323_v55 = vmul.f32 %v6701_v53, %v7557_v46  ;;  %v1654_v43 = vmul.f32 %v6661_v32, %v9573_v23 }
 0x1e8   : > { %v7559_v15 = vpop.permute.xlu1 %1399  ;;  %vm971_vm9 = vcmp.ge.s32.totalorder %v963_v50, 0  ;;  %v1873_v35 = vadd.f32 %v1857_v2, %v1662_v26  ;;  %v9577_v2 = vld [vmem:[#allocation61_spill] sm:$0xff]  ;;  %v7653_v50 = vadd.s32 3, %v7429_v30  ;;  %vm9403_vm0 = vcmask 130048  }
 0x1e9   : > { %9568 = vst [vmem:[#allocation76_spill] sm:$0xff] %v7559_v15  ;;  %v1422_v60 = vsel %vm1409_vm4, %v7559_v15, %v7204_v13  ;;  %3167 = vxpose.xlu0.b32.start [1/4] (short) (narrow) %v7544_v33, 16  ;;  %v2278_v14 = vadd.f32 %v2277_v62, %v2276_v9  ;;  %v7581_v13 = vld [vmem:[%s9223_s7 + $0x8] sm:$0xff]  ;;  %v7584_v9 = vsel %vm1694_vm6, %v1769_v19, 0.0  ;;  %v9572_v15 = vld [vmem:[#allocation50_spill] sm:$0xff]  ;;  %v921_v19 = vsel %vm797_vm8, %v889_v21, 0.0 }
 0x1ea   : > { %v7576_v41 = vsel %vm1339_vm15, %v1422_v60, 0.0  ;;  %9571 = vst [vmem:[#allocation88_spill] sm:$0xff] %v7584_v9  ;;  %v1046_v60 = vsel %vm1041_vm5, %v7409_v34, %v9572_v15  ;;  %v3080_v54 = vrot.slane %v3079_v17, 1  ;;  %v1865_v7 = vmul.f32 %v9505_v49, %v7584_v9 }
 0x1eb   : > { %v1518_v16 = vmul.f32 %v6717_v57, %v7576_v41  ;;  %v2279_v62 = vrot.slane %v2278_v14, 2  ;;  %v1607_v15 = vmul.f32 %v9569_v18, %v9576_v59  ;;  %v7607_v34 = vmul.f32 %v6729_v61, %v9576_v59  ;;  %v9579_v18 = vld [vmem:[#allocation30_spill] sm:$0xff] }
 0x1ec   : > { %v7595_v12 = vpop.permute.xlu1 %874  ;;  %v7610_v26 = vadd.s32 1, %v9577_v2  ;;  %v1078_v21 = vsel %vm971_vm9, %v1046_v60, 0.0  ;;  %v1615_v9 = vmul.f32 %v6841_v20, %v9579_v18  ;;  %v7623_v59 = vmul.f32 %v6661_v32, %v9579_v18 }
 0x1ed   : > { %9574 = vst [vmem:[#allocation50_spill] sm:$0xff] %v7595_v12  ;;  %v1534_v28 = vadd.f32 %v1518_v16, %v1323_v55  ;;  %3168 = vxpose.xlu0.b32.cont [2/4] (short) (narrow) %v7581_v13, 16  ;;  %v2280_v36 = vadd.f32 %v2279_v62, %v2278_v14  ;;  %v897_v14 = vsel %vm884_vm1, %v7595_v12, %v7198_v5  ;;  %v9578_v62 = vld [vmem:[#allocation37_spill] sm:$0xff]  ;;  %v7634_v5 = vadd.s32 2, %v7429_v30 }
 0x1ee   : > { %v947_v47 = vmul.f32 %v9578_v62, %v921_v19  ;;  %v7626_v61 = vadd.f32 %v9508_v38, %v1873_v35  ;;  %v3081_v19 = vadd.f32 %v3080_v54, %v3079_v17  ;;  %v9580_v62 = vld [vmem:[#allocation23_spill] sm:$0xff]  ;;  %v929_v18 = vsel %vm797_vm8, %v897_v14, 0.0  ;;  %v9584_v14 = vld [vmem:[#allocation69_spill] sm:$0xff] }
 0x1ef   : > { %v1670_v55 = vadd.f32 %v1654_v43, %v1534_v28  ;;  %v2281_v16 = vrot.slane %v2280_v36, 1  ;;  %v1102_v12 = vmul.f32 %v9580_v62, %v1078_v21  ;;  %vm1695_vm10 = vcmp.lt.s32.totalorder %v7610_v26, 128  ;;  %v7648_v21 = vpop.permute.xlu0 %2116  ;;  %v9587_v62 = vld [vmem:[#allocation55_spill] sm:$0xff] }
 0x1f0   : > { %v7617_v44 = vpop.permute.xlu1 %1031  ;;  %9582 = vst [vmem:[#allocation19_spill] sm:$0xff] %v7648_v21  ;;  %v1519_v30 = vmul.f32 %v6717_v57, %v7356_v52  ;;  %v2061_v52 = vadd.s32 3, %v9577_v2  ;;  %vm1905_vm11 = vcmp.lt.s32.totalorder %v7634_v5, 128  ;;  %vm2076_vm14 = vcmp.lt.s32.totalorder %v7653_v50, 128 }
 0x1f1   : > { %v1054_v28 = vsel %vm1041_vm5, %v7617_v44, %v7206_v24  ;;  %3169 = vxpose.xlu0.b32.cont [3/4] (short) (narrow) %v7491_v58, 16  ;;  %v1881_v43 = vadd.f32 %v1865_v7, %v1670_v55  ;;  %v2282_v60 = vadd.f32 %v2281_v16, %v2280_v36  ;;  %v9581_v7 = vld [vmem:[#allocation70_spill] sm:$0xff]  ;;  %v1118_v17 = vadd.f32 %v1102_v12, %v947_v47 }
 0x1f2   : > { %v1086_v32 = vsel %vm971_vm9, %v1054_v28, 0.0  ;;  %v1511_v54 = vmul.f32 %v6655_v29, %v9581_v7  ;;  %v1890_v36 = vadd.s32 2, %v9577_v2  ;;  %v3056_v12 = vmul.f32 %v7626_v61, %v7626_v61  ;;  %v9585_v28 = vld [vmem:[#allocation7_spill] sm:$0xff] }
 0x1f3   : > { %v1110_v35 = vmul.f32 %v6659_v31, %v1086_v32  ;;  %v7641_v24 = vadd.f32 %v9515_v8, %v1881_v43  ;;  %v7643_v58 = vadd.f32 %v3081_v19, %v2282_v60  ;;  %v955_v32 = vmul.f32 %v6767_v6, %v929_v18  ;;  %v7692_v2 = vpop.permute.xlu0 %2134 }
 0x1f4   : > { %v7650_v0 = vpop.permute.xlu1 %1734  ;;  %v1316_v16 = vmul.f32 %v6867_v25, %v9584_v14  ;;  %v1273_v43 = vmul.f32 %v9585_v28, %v7495_v48  ;;  %v1324_v14 = vmul.f32 %v6701_v53, %v9587_v62  ;;  %v9589_v48 = vld [vmem:[#allocation27_spill] sm:$0xff]  ;;  %v9590_v62 = vld [vmem:[#allocation29_spill] sm:$0xff]  ;;  %9591 = vst [vmem:[#allocation70_spill] sm:$0xff] %v7692_v2  ;;  %vm1906_vm12 = vcmp.lt.s32.totalorder %v1890_v36, 128 }
 0x1f5   : > { %9583 = vst [vmem:[#allocation61_spill] sm:$0xff] %v7650_v0  ;;  %v1762_v55 = vsel %vm1756_vm13, %v9561_v27, %v7650_v0  ;;  %3170 = vxpose.xlu0.b32.end [4/4] (short) (narrow) %v7521_v11, 16  ;;  %v3064_v47 = vmul.f32 %v7641_v24, %v7641_v24  ;;  %v1126_v60 = vadd.f32 %v1110_v35, %v955_v32  ;;  %v9586_v11 = vld [vmem:[#allocation71_spill] sm:$0xff]  ;;  %vm2077_vm15 = vcmp.lt.s32.totalorder %v2061_v52, 128 }
 0x1f6   : > { %v1794_v27 = vsel %vm1695_vm10, %v1762_v55, 0.0  ;;  %v1623_v19 = vadd.f32 %v1607_v15, %v9586_v11  ;;  %v1527_v0 = vadd.f32 %v1511_v54, %v1316_v16  ;;  %v1289_v29 = vadd.f32 %v1273_v43, %v1118_v17 }
 0x1f7   : > { %v1818_v18 = vmul.f32 %v6851_v22, %v1794_v27  ;;  %v7674_v7 = vadd.f32 %v3064_v47, %v3056_v12  ;;  %v1281_v57 = vmul.f32 %v9589_v48, %v7557_v46  ;;  %v1614_v35 = vmul.f32 %v6841_v20, %v9573_v23  ;;  %v7728_v26 = vpop.permute.xlu0 %2112 }
 0x1f8   : > { %v7678_v31 = vpop.permute.xlu1 %1945  ;;  %v1535_v54 = vadd.f32 %v1519_v30, %v1324_v14  ;;  %v1470_v17 = vmul.f32 %v9590_v62, %v7485_v1  ;;  %v1858_v46 = vmul.f32 %v6742_v63, %v1794_v27  ;;  %v1972_v32 = vsel %vm9402_vm3, %v7503_v3, %v7516_v10  ;;  %v9593_v30 = vld [vmem:[#allocation8_spill] sm:$0xff]  ;;  %v9594_v27 = vld [vmem:[#allocation78_spill] sm:$0xff]  ;;  %9596 = vst [vmem:[#allocation71_spill] sm:$0xff] %v7728_v26 }
 0x1f9   : > { %9588 = vst [vmem:[#allocation30_spill] sm:$0xff] %v7678_v31  ;;  %v1834_v55 = vadd.f32 %v1818_v18, %v1623_v19  ;;  %v1973_v15 = vsel %vm9402_vm3, %v7516_v10, %v7678_v31  ;;  %2706 = vxpose.xlu1.b32.start [1/2] (short) (narrow) %v7544_v33, 16  ;;  %v1297_v12 = vadd.f32 %v1281_v57, %v1126_v60  ;;  %v9595_v19 = vld [vmem:[#allocation11_spill] sm:$0xff]  ;;  %v9646_v31 = vld [vmem:[#allocation73_spill] sm:$0xff]  ;;  %vm9400_vm6 = vcmask 1040384  }
 0x1fa   : > { %v1486_v33 = vadd.f32 %v1470_v17, %v1289_v29  ;;  %v1663_v23 = vadd.f32 %v7607_v34, %v1527_v0  ;;  %v2005_v47 = vsel %vm1906_vm12, %v1973_v15, 0.0  ;;  %v1981_v16 = vsel %vm9402_vm3, %v7481_v45, %v7553_v40 }
 0x1fb   : > { %v1478_v43 = vmul.f32 %v9593_v30, %v7576_v41  ;;  %v1631_v10 = vadd.f32 %v1615_v9, %v9594_v27  ;;  %v2004_v34 = vsel %vm1905_vm11, %v1972_v32, 0.0  ;;  %v1671_v0 = vadd.f32 %v7623_v59, %v1535_v54 }
 0x1fc   : > { %v7701_v1 = vpop.permute.xlu1 %1752  ;;  %v1874_v57 = vadd.f32 %v1858_v46, %v1663_v23  ;;  %v2029_v41 = vmul.f32 %v9595_v19, %v2005_v47  ;;  %v2013_v14 = vsel %vm1906_vm12, %v1981_v16, 0.0  ;;  %v1622_v59 = vadd.f32 %v7563_v39, %v1486_v33  ;;  %v9597_v16 = vld [vmem:[#allocation88_spill] sm:$0xff] }
 0x1fd   : > { %9592 = vst [vmem:[#allocation69_spill] sm:$0xff] %v7701_v1  ;;  %v1770_v29 = vsel %vm1756_vm13, %v9565_v4, %v7701_v1  ;;  %2707 = vxpose.xlu1.b32.end [2/2] (short) (narrow) %v7581_v13, 16  ;;  %v1494_v11 = vadd.f32 %v1478_v43, %v1297_v12  ;;  %v1817_v4 = vmul.f32 %v6851_v22, %v7547_v42  ;;  %v9642_v1 = vld [vmem:[#allocation63_spill] sm:$0xff]  ;;  %vm3199_vm8 = vcmask 261120  }
 0x1fe   : > { %v1802_v60 = vsel %vm1695_vm10, %v1770_v29, 0.0  ;;  %v1980_v13 = vsel %vm9402_vm3, %v7601_v56, %v7481_v45  ;;  %v2028_v42 = vmul.f32 %v9595_v19, %v2004_v34  ;;  %v2348_v39 = vadd.f32 %v9508_v38, %v1874_v57 }
 0x1ff   : > { %v1826_v9 = vmul.f32 %v6671_v37, %v1802_v60  ;;  %v1866_v18 = vmul.f32 %v9505_v49, %v1802_v60  ;;  %v2045_v12 = vadd.f32 %v2029_v41, %v1834_v55  ;;  %v1630_v47 = vadd.f32 %v1614_v35, %v1494_v11 }
 0x200   : > { %v2115_v15 = vpop.permute.xlu1 %2114  ;;  %v1825_v43 = vmul.f32 %v6671_v37, %v9597_v16  ;;  %v2012_v27 = vsel %vm1905_vm11, %v1980_v13, 0.0  ;;  %v3057_v11 = vmul.f32 %v2348_v39, %v2348_v39 }
 0x201   : > { %v1842_v54 = vadd.f32 %v1826_v9, %v1631_v10  ;;  %v1882_v17 = vadd.f32 %v1866_v18, %v1671_v0  ;;  %v2143_v46 = vsel %vm9401_vm7, %v7728_v26, %v2115_v15  ;;  %v2144_v32 = vsel %vm9401_vm7, %v2115_v15, %v7648_v21  ;;  %v9598_v0 = vld [vmem:[#allocation34_spill] sm:$0xff] }
 0x202   : > { %v2175_v45 = vsel %vm2076_vm14, %v2143_v46, 0.0  ;;  %v2176_v36 = vsel %vm2077_vm15, %v2144_v32, 0.0  ;;  %v1833_v10 = vadd.f32 %v1817_v4, %v1622_v59  ;;  %v2037_v60 = vmul.f32 %v9598_v0, %v2013_v14 }
 0x203   : > { %v2200_v33 = vmul.f32 %v9535_v51, %v2176_v36  ;;  %v2356_v23 = vadd.f32 %v9515_v8, %v1882_v17  ;;  %v2199_v29 = vmul.f32 %v9535_v51, %v2175_v45  ;;  %v9599_v17 = vld [vmem:[#allocation12_spill] sm:$0xff]  ;;  %v1841_v4 = vadd.f32 %v1825_v43, %v1630_v47 }
 0x204   : > { %v2133_v34 = vpop.permute.xlu1 %2132  ;;  %v2044_v41 = vadd.f32 %v2028_v42, %v1833_v10  ;;  %v2053_v15 = vadd.f32 %v2037_v60, %v1842_v54  ;;  %v2036_v14 = vmul.f32 %v9598_v0, %v2012_v27  ;;  %v9601_v42 = vld [vmem:[#allocation40_spill] sm:$0xff]  ;;  %v3097_v47 = vrot.slane %v7674_v7, 4 }
 0x205   : > { %v2216_v9 = vadd.f32 %v2200_v33, %v2045_v12  ;;  %v2152_v55 = vsel %vm9401_vm7, %v2133_v34, %v7692_v2  ;;  %v6100_v57 = vpack.c.bf16 %v2356_v23, %v2348_v39  ;;  %v3065_v18 = vmul.f32 %v2356_v23, %v2356_v23  ;;  %v9602_v33 = vld [vmem:[#allocation39_spill] sm:$0xff] }
 0x206   : > { %v2184_v35 = vsel %vm2077_vm15, %v2152_v55, 0.0  ;;  %v2215_v13 = vadd.f32 %v2199_v29, %v2044_v41  ;;  %v2052_v39 = vadd.f32 %v2036_v14, %v1841_v4 }
 0x207   : > { %v2208_v5 = vmul.f32 %v9599_v17, %v2184_v35  ;;  %6101 = vmatprep.subr.bf16.mxu0 %v6100_v57  ;;  %v3103_v59 = vadd.f32 %v3065_v18, %v3057_v11  ;;  %v7757_v52 = vadd.f32 %v9601_v42, %v2216_v9  ;;  %v3098_v9 = vadd.f32 %v3097_v47, %v7674_v7 }
 0x208   : > { %v7751_v46 = vpop.permute.xlu1 %2130  ;;  %v7767_v16 = vadd.f32 %v9601_v42, %v2215_v13  ;;  %v8044_v42 = vld [vmem:[%s9221_s5 + $0x8] sm:$0xff] }
 0x209   : > { %9600 = vst [vmem:[#allocation55_spill] sm:$0xff] %v7751_v46  ;;  %v2224_v32 = vadd.f32 %v2208_v5, %v2053_v15  ;;  %v2151_v45 = vsel %vm9401_vm7, %v7751_v46, %v2133_v34  ;;  %v3104_v36 = vrot.slane %v3103_v59, 4  ;;  %v2258_v10 = vmul.f32 %v7757_v52, %v7757_v52 }
 0x20a   : > { %v2183_v54 = vsel %vm2076_vm14, %v2151_v45, 0.0  ;;  %v2257_v57 = vmul.f32 %v7767_v16, %v7767_v16  ;;  %v3099_v18 = vrot.slane %v3098_v9, 2  ;;  %v4373_v51 = vmul.f32 %v8044_v42, %v9646_v31 }
 0x20b   : > { %v2207_v12 = vmul.f32 %v9599_v17, %v2183_v54  ;;  %v7763_v23 = vadd.f32 %v9602_v33, %v2224_v32  ;;  %v3105_v43 = vadd.f32 %v3104_v36, %v3103_v59  ;;  %v9603_v36 = vld [vmem:[#allocation31_spill] sm:$0xff] }
 0x20c   : > { %v3100_v14 = vadd.f32 %v3099_v18, %v3098_v9  ;;  %v9610_v18 = vld [vmem:[#allocation22_spill] sm:$0xff] }
 0x20d   : > { %v2223_v27 = vadd.f32 %v2207_v12, %v2052_v39  ;;  %v2266_v50 = vmul.f32 %v7763_v23, %v7763_v23  ;;  %v3106_v55 = vrot.slane %v3105_v43, 2 }
 0x20e   : > { %v3101_v12 = vrot.slane %v3100_v14, 1 }
 0x20f   : > { %v2304_v34 = vadd.f32 %v2266_v50, %v2258_v10  ;;  %v7776_v60 = vadd.f32 %v9602_v33, %v2223_v27  ;;  %v3107_v5 = vadd.f32 %v3106_v55, %v3105_v43  ;;  %v9605_v43 = vld [vmem:[#allocation38_spill] sm:$0xff] }
 0x210   : > { %v3102_v9 = vadd.f32 %v3101_v12, %v3100_v14  ;;  %v9614_v14 = vld [vmem:[#allocation42_spill] sm:$0xff] }
 0x211   : > { %v2265_v41 = vmul.f32 %v7776_v60, %v7776_v60  ;;  %v2305_v35 = vrot.slane %v2304_v34, 4  ;;  %v3108_v45 = vrot.slane %v3107_v5, 1 }
 0x213   : > { %v2297_v11 = vadd.f32 %v2265_v41, %v2257_v57  ;;  %v2306_v15 = vadd.f32 %v2305_v35, %v2304_v34  ;;  %v3109_v27 = vadd.f32 %v3108_v45, %v3107_v5  ;;  %v9607_v57 = vld [vmem:[#allocation47_spill] sm:$0xff]  ;;  %v9608_v41 = vld [vmem:[#allocation13_spill] sm:$0xff]  ;;  %v9609_v35 = vld [vmem:[#allocation16_spill] sm:$0xff] }
 0x214   : > { %v6401_v45 = vld [vmem:[%s9220_s4 + $0x8] sm:$0xff] }
 0x215   : > { %v2298_v4 = vrot.slane %v2297_v11, 4  ;;  %v2307_v13 = vrot.slane %v2306_v15, 2 }
 0x217   : > { %v2299_v59 = vadd.f32 %v2298_v4, %v2297_v11  ;;  %v2308_v32 = vadd.f32 %v2307_v13, %v2306_v15  ;;  %v7803_v11 = vadd.f32 %v9609_v35, %v9608_v41  ;;  %v9611_v15 = vld [vmem:[#allocation17_spill] sm:$0xff]  ;;  %v9615_v41 = vmov 0.0  }
 0x218   : > { %v7811_v5 = vadd.f32 %v9611_v15, %v9610_v18  ;;  %v9612_v4 = vld [vmem:[#allocation33_spill] sm:$0xff] }
 0x219   : > { %v2300_v54 = vrot.slane %v2299_v59, 2  ;;  %v2309_v7 = vrot.slane %v2308_v32, 1  ;;  %v9613_v13 = vld [vmem:[#allocation45_spill] sm:$0xff] }
 0x21a   : > { %v8058_v26 = vmul.f32 %v6841_v20, %v7811_v5 }
 0x21b   : > { %856 = vrot.lane.b32.xlu1 %v9603_v36, %s6443_s22  ;;  %v2301_v39 = vadd.f32 %v2300_v54, %v2299_v59  ;;  %v2310_v47 = vadd.f32 %v2309_v7, %v2308_v32 }
 0x21d   : > { %v2302_v10 = vrot.slane %v2301_v39, 1  ;;  %v7785_v50 = vadd.f32 %v3109_v27, %v2310_v47  ;;  %v6402_v47 = vld [vmem:[%s9220_s4] sm:$0xff] }
 0x21e   : > { %872 = vrot.lane.b32.xlu0 %v9605_v43, %s6443_s22 }
 0x21f   : > { %9604 = vst [vmem:[#allocation29_spill] sm:$0xff] %v7785_v50  ;;  %1184 = vrot.lane.b32.xlu1 %v9603_v36, %s6440_s11  ;;  %v2303_v34 = vadd.f32 %v2302_v10, %v2301_v39  ;;  %v6403_v10 = vld [vmem:[%s9222_s6 + $0x8] sm:$0xff] }
 0x221   : > { %v7791_v55 = vadd.f32 %v3102_v9, %v2303_v34 }
 0x222   : > { %1746 = vrot.lane.b32.xlu0 %v9607_v57, %s6450_s25 }
 0x223   : > { %9606 = vst [vmem:[#allocation8_spill] sm:$0xff] %v7791_v55  ;;  %1200 = vrot.lane.b32.xlu1 %v9605_v43, %s6440_s11 }
 0x225   : > { %v3152_v59 = vpop.xlane.xlu0 %3151 }
 0x226   : > { %1029 = vrot.lane.b32.xlu0 %v9605_v43, %s6449_s15  ;;  %v7840_v54 = vadd.f32 %v6401_v45, %v3152_v59 }
 0x227   : > { %1381 = vrot.lane.b32.xlu1 %v9603_v36, %s6445_s23 }
 0x228   : > { %v3438_v12 = vmul.f32 %v7840_v54, %v7840_v54 }
 0x229   : > { %v3164_v32 = vpop.xlane.xlu0 %3163 }
 0x22a   : > { %1194 = vrot.lane.b32.xlu0 %v7803_v11, %s6440_s11  ;;  %v7856_v34 = vadd.f32 %v6403_v10, %v3164_v32  ;;  %v3442_v15 = vsel %vm1409_vm4, %v3438_v12, 0.0  ;;  %v6404_v32 = vld [vmem:[%s9222_s6] sm:$0xff] }
 0x22b   : > { %1397 = vrot.lane.b32.xlu1 %v9605_v43, %s6445_s23 }
 0x22c   : > { %v3440_v55 = vmul.f32 %v7856_v34, %v7856_v34 }
 0x22e   : > { %1210 = vrot.lane.b32.xlu0 %v7811_v5, %s6440_s11 }
 0x22f   : > { %1728 = vrot.lane.b32.xlu1 %v9612_v4, %s6450_s25 }
 0x232   : > { %1391 = vrot.lane.b32.xlu0 %v7803_v11, %s6445_s23 }
 0x233   : > { %1013 = vrot.lane.b32.xlu1 %v9603_v36, %s6449_s15 }
 0x236   : > { %1407 = vrot.lane.b32.xlu0 %v7811_v5, %s6445_s23 }
 0x237   : > { %1192 = vrot.lane.b32.xlu1 %v9613_v13, %s6440_s11 }
 0x23a   : > { %866 = vrot.lane.b32.xlu0 %v7803_v11, %s6443_s22 }
 0x23b   : > { %1208 = vrot.lane.b32.xlu1 %v9614_v14, %s6440_s11 }
 0x23d   : > { %v3485_v7 = vpop.xlane.xlu0 %3484 }
 0x23e   : > { %882 = vrot.lane.b32.xlu0 %v7811_v5, %s6443_s22  ;;  %v7865_v59 = vadd.f32 %v6401_v45, %v3485_v7 }
 0x23f   : > { %1389 = vrot.lane.b32.xlu1 %v9613_v13, %s6445_s23 }
 0x240   : > { %v3732_v7 = vmul.f32 %v7865_v59, %v7865_v59 }
 0x241   : > { %v3494_v35 = vpop.xlane.xlu0 %3493 }
 0x242   : > { %1023 = vrot.lane.b32.xlu0 %v7803_v11, %s6449_s15  ;;  %v7875_v2 = vadd.f32 %v6404_v32, %v3494_v35 }
 0x243   : > { %1405 = vrot.lane.b32.xlu1 %v9614_v14, %s6445_s23 }
 0x244   : > { %v3733_v35 = vmul.f32 %v7875_v2, %v7875_v2 }
 0x246   : > { %1039 = vrot.lane.b32.xlu0 %v7811_v5, %s6449_s15 }
 0x247   : > { %864 = vrot.lane.b32.xlu1 %v9613_v13, %s6443_s22  ;;  %v3149_v39 = vpop.xlane.xlu1 %3148 }
 0x248   : > { %v7851_v27 = vadd.f32 %v6402_v47, %v3149_v39 }
 0x24a   : > { %v3437_v9 = vmul.f32 %v7851_v27, %v7851_v27  ;;  %1738 = vrot.lane.b32.xlu0 %v9615_v41, %s6450_s25 }
 0x24b   : > { %880 = vrot.lane.b32.xlu1 %v9614_v14, %s6443_s22  ;;  %v3161_v18 = vpop.xlane.xlu1 %3160 }
 0x24c   : > { %v3441_v39 = vsel %vm1409_vm4, %v3437_v9, 0.0  ;;  %v7871_v29 = vadd.f32 %v6404_v32, %v3161_v18 }
 0x24d   : > { %v3443_v50 = vadd.f32 %v3442_v15, %v3441_v39  ;;  %v3446_v39 = vsel %vm1409_vm4, %v3440_v55, 0.0 }
 0x24e   : > { %v3439_v21 = vmul.f32 %v7871_v29, %v7871_v29  ;;  %1939 = vrot.lane.b32.xlu0 %v9612_v4, %s6451_s26 }
 0x24f   : > { %1021 = vrot.lane.b32.xlu1 %v9613_v13, %s6449_s15  ;;  %v3482_v45 = vpop.xlane.xlu1 %3481 }
 0x250   : > { %v3444_v12 = vsel %vm1409_vm4, %v3439_v21, 0.0  ;;  %v7886_v9 = vadd.f32 %v6402_v47, %v3482_v45  ;;  %v3736_v21 = vsel %vm1409_vm4, %v3732_v7, 0.0 }
 0x251   : > { %v3445_v18 = vadd.f32 %v3444_v12, %v3443_v50  ;;  %v3738_v12 = vsel %vm1409_vm4, %v3733_v35, 0.0  ;;  %v9619_v35 = vld [vmem:[#allocation26_spill] sm:$0xff] }
 0x252   : > { %v3731_v15 = vmul.f32 %v7886_v9, %v7886_v9  ;;  %2110 = vrot.lane.b32.xlu0 %v9612_v4, %s6452_s27 }
 0x253   : > { %1037 = vrot.lane.b32.xlu1 %v9614_v14, %s6449_s15  ;;  %v3497_v32 = vpop.xlane.xlu1 %3496  ;;  %v7897_v33 = vadd.f32 %v3446_v39, %v3445_v18 }
 0x254   : > { %v3735_v50 = vsel %vm1409_vm4, %v3731_v15, 0.0  ;;  %v7901_v47 = vadd.f32 %v6403_v10, %v3497_v32  ;;  %v9620_v15 = vld [vmem:[#allocation86_spill] sm:$0xff] }
 0x255   : > { %9616 = vst [vmem:[#allocation78_spill] sm:$0xff] %v7897_v33  ;;  %v3737_v45 = vadd.f32 %v3736_v21, %v3735_v50  ;;  %v9621_v39 = vpack.c.bf16 %v9619_v35, %v9620_v15  ;;  %v9626_v50 = vpack.c.bf16 %v7763_v23, %v7757_v52  ;;  %v9628_v52 = vld [vmem:[#allocation18_spill] sm:$0xff]  ;;  %v9641_v33 = vld [vmem:[#allocation65_spill] sm:$0xff] }
 0x256   : > { %v3734_v17 = vmul.f32 %v7901_v47, %v7901_v47  ;;  %1947 = vrot.lane.b32.xlu0 %v7803_v11, %s6451_s26  ;;  %v7966_v23 = vmul.f32 %v9628_v52, %v9603_v36  ;;  %9649 = vst [vmem:[#allocation18_spill] sm:$0xff] %v8058_v26 }
 0x257   : > { %1736 = vrot.lane.b32.xlu1 %v7803_v11, %s6450_s25  ;;  %v3739_v55 = vadd.f32 %v3738_v12, %v3737_v45  ;;  %v6118_v12 = vpack.c.bf16 %v7776_v60, %v7767_v16  ;;  %v7975_v16 = vmul.f32 %v6841_v20, %v9605_v43  ;;  %v7979_v60 = vmul.f32 %v9628_v52, %v9612_v4 }
 0x258   : > { %v3740_v18 = vsel %vm1409_vm4, %v3734_v17, 0.0  ;;  %v6102_v17 = vpack.c.bf16 %v7641_v24, %v7626_v61  ;;  %v9623_v61 = vld [vmem:[#allocation82_spill] sm:$0xff]  ;;  %v9624_v24 = vld [vmem:[#allocation81_spill] sm:$0xff] }
 0x259   : > { %v7911_v7 = vadd.f32 %v3740_v18, %v3739_v55  ;;  %v9625_v21 = vpack.c.bf16 %v9623_v61, %v9624_v24  ;;  %v6124_v55 = vpack.c.bf16 %v7840_v54, %v7851_v27  ;;  %v9629_v18 = vld [vmem:[#allocation9_spill] sm:$0xff]  ;;  %v9633_v27 = vld [vmem:[#allocation6_spill] sm:$0xff] }
 0x25a   : > { %1965 = vrot.lane.b32.xlu0 %v7811_v5, %s6451_s26  ;;  %v7983_v54 = vmul.f32 %v9629_v18, %v9612_v4  ;;  %v7991_v35 = vmul.f32 %v9633_v27, %v9605_v43  ;;  %v7995_v15 = vmul.f32 %v9633_v27, %v9607_v57  ;;  %v9636_v4 = vld [vmem:[#allocation41_spill] sm:$0xff]  ;;  %v8031_v40 = vmul.f32 %v9629_v18, %v7803_v11 }
 0x25b   : > { %9617 = vst [vmem:[#allocation88_spill] sm:$0xff] %v7911_v7  ;;  %1754 = vrot.lane.b32.xlu1 %v7811_v5, %s6450_s25  ;;  %v669_v24 = vadd.s32 256, %v9636_v4  ;;  %v8020_v7 = vmul.f32 %v9628_v52, %v9613_v13  ;;  %v670_v56 = vadd.s32 384, %v9636_v4  ;;  %v8066_v19 = vmul.f32 %v9633_v27, %v7811_v5 }
 0x25c   : > { %9631 = vst [vmem:[#allocation16_spill] sm:$0xff] %v7983_v54  ;;  %9643 = vst [vmem:[#allocation26_spill] sm:$0xff] %v8031_v40  ;;  %v8054_v40 = vmul.f32 %v6841_v20, %v9614_v14 }
 0x25d   : > { %9640 = vst [vmem:[#allocation42_spill] sm:$0xff] %v8020_v7  ;;  %9651 = vst [vmem:[#allocation6_spill] sm:$0xff] %v8066_v19  ;;  %v6142_v7 = vpack.c.bf16 %v7865_v59, %v7886_v9 }
 0x25e   : > { %2120 = vrot.lane.b32.xlu0 %v9615_v41, %s6452_s27  ;;  %9648 = vst [vmem:[#allocation81_spill] sm:$0xff] %v8054_v40 }
 0x25f   : > { %1957 = vrot.lane.b32.xlu1 %v9607_v57, %s6451_s26 }
 0x261   : > { %v7921_v10 = vpop.trf.xlu0 }
 0x262   : > { %9618 = vst [vmem:[#allocation31_spill] sm:$0xff] %v7921_v10  ;;  %5712 = vmatmul.mubr.msk.f32.vlgmr.msra.gmra.mrb[4].mxu0 %vm9403_vm0, %v7921_v10 }
 0x263   : > { %6103 = vmatpush1.bf16.msra.mxu0 %v6102_v17  ;;  %2128 = vrot.lane.b32.xlu1 %v9607_v57, %s6452_s27  ;;  %v7970_v17 = vmul.f32 %v9629_v18, %v9603_v36  ;;  %v7987_v36 = vmul.f32 %v6841_v20, %v9607_v57  ;;  %v8014_v57 = vld [vmem:[%s9221_s5] sm:$0xff] }
 0x264   : > { %6109 = vmatprep.subr.bf16.mxu0 %v9621_v39  ;;  %2468 = vmatprep.mubr.f32.mxu0 %v9615_v41  ;;  %v7999_v39 = vmul.f32 %v9629_v18, %v9613_v13  ;;  %v4666_v0 = vmul.f32 %v8014_v57, %v9642_v1  ;;  %v8037_v13 = vld [vmem:[%s9219_s3 + $0x8] sm:$0xff]  ;;  %v8050_v18 = vmul.f32 %v9628_v52, %v7803_v11  ;;  %v9653_v20 = vld [vmem:[#allocation3_spill] sm:$0xff] }
 0x265   : > { %v7933_v32 = vpop.trf.xlu0  ;;  %9630 = vst [vmem:[#allocation13_spill] sm:$0xff] %v7970_v17  ;;  %9632 = vst [vmem:[#allocation22_spill] sm:$0xff] %v7987_v36  ;;  %v4655_v26 = vmul.f32 %v8037_v13, %v9653_v20  ;;  %v9664_v17 = vld [vmem:[#allocation25_spill] sm:$0xff] }
 0x266   : > { %9622 = vst [vmem:[#allocation38_spill] sm:$0xff] %v7933_v32  ;;  %5713 = vmatmul.mubr.msk.f32.gmra.mrb[6].mxu0 %vm9403_vm0, %v7933_v32  ;;  %9634 = vst [vmem:[#allocation17_spill] sm:$0xff] %v7999_v39 }
 0x267   : > { %1949 = vrot.lane.b32.xlu1 %v9615_v41, %s6451_s26  ;;  %2616 = vmatprep.mubr.f32.mxu0 %v9615_v41  ;;  %9644 = vst [vmem:[#allocation86_spill] sm:$0xff] %v8037_v13  ;;  %9647 = vst [vmem:[#allocation82_spill] sm:$0xff] %v8050_v18  ;;  %v8115_v18 = vsel %vm884_vm1, %v4655_v26, 0.0 }
 0x268   : > { %9661 = vst [vmem:[#allocation63_spill] sm:$0xff] %v8115_v18 }
 0x269   : > { %v8068_v31 = vpop.trf.xlu0 }
 0x26a   : > { %5716 = vmatmul.mubr.msk.f32.vlgmr.msra.gmra.mrb[8].mxu0 %vm9403_vm0, %v7921_v10  ;;  %9652 = vst [vmem:[#allocation41_spill] sm:$0xff] %v8068_v31 }
 0x26b   : > { %6111 = vmatpush1.bf16.msra.mxu0 %v9625_v21  ;;  %2118 = vrot.lane.b32.xlu1 %v7803_v11, %s6452_s27  ;;  %v8007_v21 = vld [vmem:[%s9219_s3] sm:$0xff]  ;;  %v8070_v11 = vand.u32 127, %v669_v24  ;;  %v8090_v24 = vsel %vm1212_vm2, %v4666_v0, 0.0 }
 0x26c   : > { %6117 = vmatprep.subr.bf16.mxu0 %v9626_v50  ;;  %2622 = vmatprep.mubr.f32.mxu0 %v9615_v41  ;;  %9637 = vst [vmem:[#allocation45_spill] sm:$0xff] %v8007_v21  ;;  %v9638_v50 = vld [vmem:[#allocation48_spill] sm:$0xff] }
 0x26d   : > { %v4360_v43 = vmul.f32 %v8007_v21, %v9638_v50  ;;  %v4654_v50 = vmul.f32 %v8007_v21, %v9641_v33  ;;  %9654 = vst [vmem:[#allocation48_spill] sm:$0xff] %v8090_v24  ;;  %v8108_v19 = vadd.s32 4294967292, %v8070_v11  ;;  %v8125_v33 = vadd.s32 4294967294, %v8070_v11  ;;  %v8132_v26 = vpop.trf.xlu0 }
 0x26e   : > { %5717 = vmatmul.mubr.msk.f32.gmra.mrb[10].mxu0 %vm9403_vm0, %v7933_v32  ;;  %v8135_v59 = vadd.s32 1, %v8070_v11 }
 0x26f   : > { %2136 = vrot.lane.b32.xlu1 %v7811_v5, %s6452_s27  ;;  %2808 = vmatprep.mubr.f32.mxu0 %v9615_v41  ;;  %v8073_v52 = vsel %vm884_vm1, %v4360_v43, 0.0  ;;  %v8084_v5 = vand.u32 127, %v670_v56  ;;  %v9657_v56 = vld [vmem:[#allocation54_spill] sm:$0xff]  ;;  %vm795_vm9 = vcmp.ge.s32.totalorder %v8108_v19, 0  ;;  %vm1140_vm11 = vcmp.ge.s32.totalorder %v8125_v33, 0 }
 0x270   : > { %vm1692_vm14 = vcmp.lt.s32.totalorder %v8135_v59, 128 }
 0x271   : > { %v8128_v32 = vadd.s32 4294967294, %v8084_v5  ;;  %v8138_v9 = vadd.s32 1, %v8084_v5  ;;  %v8218_v18 = vadd.s32 2, %v8084_v5 }
 0x273   : > { %vm1141_vm12 = vcmp.ge.s32.totalorder %v8128_v32, 0  ;;  %vm1693_vm15 = vcmp.lt.s32.totalorder %v8138_v9, 128  ;;  %v9699_v9 = vld [vmem:[#allocation64_spill] sm:$0xff] }
 0x279   : > { %v7956_v45 = vpop.trf.xlu1 }
 0x27a   : > { %9627 = vst [vmem:[#allocation47_spill] sm:$0xff] %v7956_v45  ;;  %5720 = vmatmul.mubr.msk.f32.vlgmr.msra.gmra.mrb[4].mxu0 %vm9403_vm0, %v7956_v45 }
 0x27b   : > { %6119 = vmatpush1.bf16.msra.mxu0 %v6118_v12  ;;  %2814 = vmatprep.mubr.f32.mxu0 %v9615_v41  ;;  %v9639_v12 = vld [vmem:[#allocation46_spill] sm:$0xff] }
 0x27c   : > { %6125 = vmatprep.subr.bf16.mxu0 %v6124_v55  ;;  %v4372_v46 = vmul.f32 %v8014_v57, %v9639_v12  ;;  %v9645_v12 = vld [vmem:[#allocation74_spill] sm:$0xff] }
 0x27d   : > { %v8001_v61 = vpop.trf.xlu1  ;;  %v4361_v39 = vmul.f32 %v8037_v13, %v9645_v12  ;;  %v8062_v12 = vmul.f32 %v9633_v27, %v9614_v14  ;;  %v6128_v14 = vpack.c.bf16 %v7856_v34, %v7871_v29  ;;  %v8087_v27 = vsel %vm884_vm1, %v4654_v50, 0.0  ;;  %v9658_v50 = vld [vmem:[#allocation83_spill] sm:$0xff]  ;;  %9662 = vst [vmem:[#allocation74_spill] sm:$0xff] %v8132_v26 }
 0x27e   : > { %9635 = vst [vmem:[#allocation33_spill] sm:$0xff] %v8001_v61  ;;  %5721 = vmatmul.mubr.msk.f32.gmra.mrb[6].mxu0 %vm9403_vm0, %v8001_v61  ;;  %v8076_v40 = vsel %vm1212_vm2, %v4372_v46, 0.0  ;;  %v9655_v46 = vld [vmem:[#allocation51_spill] sm:$0xff]  ;;  %v8099_v29 = vsel %vm1212_vm2, %v4373_v51, 0.0  ;;  %v4667_v34 = vmul.f32 %v8044_v42, %v9657_v56  ;;  %v4066_v0 = vmul.f32 %v8007_v21, %v9658_v50  ;;  %v9660_v51 = vld [vmem:[#allocation68_spill] sm:$0xff] }
 0x27f   : > { %2962 = vmatprep.mubr.f32.mxu0 %v9615_v41  ;;  %9650 = vst [vmem:[#allocation9_spill] sm:$0xff] %v8062_v12  ;;  %v4078_v43 = vmul.f32 %v8014_v57, %v9655_v46  ;;  %v8096_v3 = vsel %vm884_vm1, %v4361_v39, 0.0  ;;  %9656 = vst [vmem:[#allocation46_spill] sm:$0xff] %v8099_v29  ;;  %v9659_v39 = vld [vmem:[#allocation50_spill] sm:$0xff]  ;;  %v4079_v20 = vmul.f32 %v8044_v42, %v9660_v51  ;;  %v8155_v56 = vsel %vm9400_vm6, %v9664_v17, 0.0  ;;  %v9670_v29 = vld [vmem:[#allocation56_spill] sm:$0xff] }
 0x280   : > { %v4067_v12 = vmul.f32 %v8037_v13, %v9659_v39  ;;  %9665 = vst [vmem:[#allocation51_spill] sm:$0xff] %v8155_v56  ;;  %v8189_v17 = vadd.s32 4294967295, %v8084_v5  ;;  %9671 = vst [vmem:[#allocation56_spill] sm:$0xff] %v8218_v18 }
 0x282   : > { %5724 = vmatmul.mubr.msk.f32.vlgmr.msra.gmra.mrb[8].mxu0 %vm9403_vm0, %v7956_v45  ;;  %v674_v45 = vadd.s32 896, %v9636_v4 }
 0x283   : > { %6127 = vmatpush3.bf16.msra.mxu0 %v6124_v55  ;;  %2968 = vmatprep.mubr.f32.mxu0 %v9615_v41  ;;  %v673_v55 = vadd.s32 768, %v9636_v4  ;;  %v8122_v4 = vadd.s32 4294967292, %v8084_v5  ;;  %v8144_v41 = vsel %vm1212_vm2, %v4667_v34, 0.0  ;;  %v8162_v34 = vsel %vm1212_vm2, %v4079_v20, 0.0 }
 0x284   : > { %6129 = vmatprep.subr.bf16.mxu0 %v6128_v14  ;;  %9663 = vst [vmem:[#allocation73_spill] sm:$0xff] %v8144_v41  ;;  %v8151_v54 = vand.u32 127, %v674_v45  ;;  %v6146_v45 = vpack.c.bf16 %v7901_v47, %v7875_v2  ;;  %v8183_v2 = vadd.s32 4294967293, %v8084_v5  ;;  %v8186_v47 = vadd.s32 4294967295, %v8070_v11 }
 0x285   : > { %v8149_v10 = vand.u32 127, %v673_v55  ;;  %vm796_vm10 = vcmp.ge.s32.totalorder %v8122_v4, 0  ;;  %v8210_v41 = vadd.s32 2, %v8070_v11 }
 0x286   : > { %5725 = vmatmul.mubr.msk.f32.gmra.mrb[10].mxu0 %vm9403_vm0, %v8001_v61  ;;  %v8141_v61 = vsel %vm1212_vm2, %v4078_v43, 0.0  ;;  %v8159_v43 = vsel %vm884_vm1, %v4067_v12, 0.0  ;;  %v8195_v12 = vadd.s32 4294967294, %v8151_v54  ;;  %v8207_v56 = vadd.s32 4294967292, %v8151_v54 }
 0x287   : > { %6131 = vmatpush3.bf16.msra.mxu0 %v6128_v14  ;;  %5900 = vmatprep.mubr.msk.f32.mxu0 %vm3199_vm8, %v8068_v31  ;;  %v8147_v14 = vsel %vm884_vm1, %v4066_v0, 0.0  ;;  %v8166_v0 = vsel %vm9400_vm6, %v7643_v58, 0.0  ;;  %v8180_v58 = vadd.s32 4294967293, %v8070_v11  ;;  %v8198_v20 = vadd.s32 4294967295, %v8149_v10  ;;  %9669 = vst [vmem:[#allocation25_spill] sm:$0xff] %v8210_v41 }
 0x288   : > { %6143 = vmatprep.subr.bf16.mxu0 %v6142_v7  ;;  %9666 = vst [vmem:[#allocation83_spill] sm:$0xff] %v8166_v0  ;;  %v8204_v0 = vadd.s32 4294967292, %v8149_v10  ;;  %9668 = vst [vmem:[#allocation68_spill] sm:$0xff] %v8207_v56  ;;  %v8224_v56 = vadd.s32 4294967293, %v8151_v54  ;;  %v8227_v41 = vadd.s32 3, %v8070_v11  ;;  %vm970_vm7 = vcmp.ge.s32.totalorder %v8183_v2, 0 }
 0x289   : > { %vm969_vm6 = vcmp.ge.s32.totalorder %v8180_v58, 0  ;;  %vm1337_vm3 = vcmp.ge.s32.totalorder %v8186_v47, 0  ;;  %vm1338_vm0 = vcmp.ge.s32.totalorder %v8189_v17, 0  ;;  %v8242_v11 = vadd.s32 2, %v8149_v10 }
 0x28a   : > { %5901 = vmatmul.mubr.msk.f32.vlgmr.msra.gmra.mrb[12].mxu0 %vm3199_vm8, %v8132_v26  ;;  %9667 = vst [vmem:[#allocation50_spill] sm:$0xff] %v8204_v0  ;;  %v8221_v0 = vadd.s32 4294967293, %v8149_v10  ;;  %9673 = vst [vmem:[#allocation90_spill] sm:$0xff] %v8224_v56  ;;  %v8269_v19 = vadd.s32 1, %v8151_v54  ;;  %v8272_v4 = vadd.s32 2, %v8151_v54 }
 0x28b   : > { %6145 = vmatpush3.bf16.msra.mxu0 %v6142_v7  ;;  %5925 = vmatprep.mubr.msk.f32.mxu0 %vm3199_vm8, %v8068_v31  ;;  %v8192_v7 = vadd.s32 4294967294, %v8149_v10  ;;  %v8201_v31 = vadd.s32 4294967295, %v8151_v54  ;;  %9674 = vst [vmem:[#allocation91_spill] sm:$0xff] %v8227_v41  ;;  %9676 = vst [vmem:[#allocation93_spill] sm:$0xff] %v8242_v11  ;;  %v8250_v41 = vadd.s32 1, %v8149_v10  ;;  %v9679_v11 = vld [vmem:[#allocation59_spill] sm:$0xff] }
 0x28c   : > { %6147 = vmatprep.subr.bf16.mxu0 %v6146_v45  ;;  %9672 = vst [vmem:[#allocation89_spill] sm:$0xff] %v8221_v0  ;;  %9681 = vst [vmem:[#allocation59_spill] sm:$0xff] %v8269_v19  ;;  %v9684_v19 = vld [vmem:[#allocation72_spill] sm:$0xff] }
 0x28d   : > { %v857_v55 = vpop.permute.xlu1 %856  ;;  %9682 = vst [vmem:[#allocation94_spill] sm:$0xff] %v8272_v4 }
 0x28e   : > { %v887_v24 = vsel %vm884_vm1, %v9670_v29, %v857_v55  ;;  %v888_v22 = vsel %vm884_vm1, %v857_v55, %v9658_v50  ;;  %v3772_v36 = vmul.f32 %v8007_v21, %v857_v55  ;;  %v8230_v29 = vadd.s32 3, %v8084_v5  ;;  %v9677_v5 = vld [vmem:[#allocation75_spill] sm:$0xff] }
 0x28f   : > { %6149 = vmatpush3.bf16.msra.mxu0 %v6146_v45  ;;  %v919_v50 = vsel %vm795_vm9, %v887_v24, 0.0  ;;  %v920_v55 = vsel %vm796_vm10, %v888_v22, 0.0  ;;  %9678 = vst [vmem:[#allocation75_spill] sm:$0xff] %v8250_v41 }
 0x290   : > { %9675 = vst [vmem:[#allocation92_spill] sm:$0xff] %v8230_v29  ;;  %v873_v18 = vpop.permute.xlu0 %872  ;;  %v3774_v45 = vsel %vm884_vm1, %v3772_v36, 0.0 }
 0x291   : > { %v895_v24 = vsel %vm884_vm1, %v9677_v5, %v873_v18  ;;  %v896_v22 = vsel %vm884_vm1, %v873_v18, %v9659_v39  ;;  %v3773_v29 = vmul.f32 %v8037_v13, %v873_v18  ;;  %3775 = vadd.xlane.f32.xlu0 %v3774_v45  ;;  %v1185_v36 = vpop.permute.xlu1 %1184  ;;  %v9680_v18 = vld [vmem:[#allocation37_spill] sm:$0xff] }
 0x292   : > { %v927_v56 = vsel %vm795_vm9, %v895_v24, 0.0  ;;  %v928_v0 = vsel %vm796_vm10, %v896_v22, 0.0  ;;  %v1215_v21 = vsel %vm1212_vm2, %v9679_v11, %v1185_v36  ;;  %v1216_v5 = vsel %vm1212_vm2, %v1185_v36, %v9655_v46  ;;  %5926 = vmatmul.mubr.msk.f32.vlgmr.msra.gmra.mrb[14].mxu0 %vm3199_vm8, %v8132_v26  ;;  %v9683_v26 = vld [vmem:[#allocation28_spill] sm:$0xff] }
 0x293   : > { %v8263_v39 = vmul.f32 %v9680_v18, %v919_v50  ;;  %v8266_v45 = vmul.f32 %v9680_v18, %v920_v55  ;;  %v953_v11 = vmul.f32 %v6767_v6, %v927_v56  ;;  %v954_v24 = vmul.f32 %v6767_v6, %v928_v0 }
 0x294   : > { %v1247_v46 = vsel %vm1140_vm11, %v1215_v21, 0.0  ;;  %v1248_v50 = vsel %vm1141_vm12, %v1216_v5, 0.0  ;;  %v1747_v22 = vpop.permute.xlu0 %1746  ;;  %v3784_v55 = vmul.f32 %v8014_v57, %v1185_v36  ;;  %v3777_v4 = vsel %vm884_vm1, %v3773_v29, 0.0  ;;  %v9685_v5 = vld [vmem:[#allocation77_spill] sm:$0xff] }
 0x295   : > { %v1767_v41 = vsel %vm1756_vm13, %v9683_v26, %v1747_v22  ;;  %v1768_v18 = vsel %vm1756_vm13, %v1747_v22, %v9684_v19  ;;  %4069 = vadd.xlane.f32.xlu0 %v8147_v14  ;;  %v1201_v56 = vpop.permute.xlu1 %1200  ;;  %3778 = vadd.xlane.f32.xlu1 %v3777_v4  ;;  %v8296_v19 = vmul.f32 %v9585_v28, %v1247_v46  ;;  %vm1144_vm9 = vcmp.ge.s32.totalorder %v8192_v7, 0 }
 0x296   : > { %v1799_v21 = vsel %vm1692_vm14, %v1767_v41, 0.0  ;;  %v1800_v0 = vsel %vm1693_vm15, %v1768_v18, 0.0  ;;  %v1223_v36 = vsel %vm1212_vm2, %v9685_v5, %v1201_v56  ;;  %v1224_v26 = vsel %vm1212_vm2, %v1201_v56, %v9660_v51 }
 0x297   : > { %v8299_v29 = vmul.f32 %v9585_v28, %v1248_v50  ;;  %v1313_v14 = vmul.f32 %v6867_v25, %v1247_v46  ;;  %v1314_v41 = vmul.f32 %v6867_v25, %v1248_v50  ;;  %v8304_v22 = vmul.f32 %v6671_v37, %v1799_v21 }
 0x298   : > { %v8307_v18 = vmul.f32 %v6671_v37, %v1800_v0  ;;  %v8310_v4 = vmul.f32 %v9505_v49, %v1799_v21  ;;  %v8313_v51 = vmul.f32 %v9505_v49, %v1800_v0  ;;  %v1030_v5 = vpop.permute.xlu0 %1029  ;;  %v1255_v6 = vsel %vm1140_vm11, %v1223_v36, 0.0  ;;  %v9689_v49 = vld [vmem:[#allocation57_spill] sm:$0xff]  ;;  %v9690_v36 = vld [vmem:[#allocation79_spill] sm:$0xff] }
 0x299   : > { %9686 = vst [vmem:[#allocation28_spill] sm:$0xff] %v8304_v22  ;;  %v1256_v46 = vsel %vm1141_vm12, %v1224_v26, 0.0  ;;  %v3785_v50 = vmul.f32 %v8044_v42, %v1201_v56  ;;  %v3786_v22 = vsel %vm1212_vm2, %v3784_v55, 0.0  ;;  %4072 = vadd.xlane.f32.xlu0 %v8159_v43  ;;  %v1382_v37 = vpop.permute.xlu1 %1381  ;;  %v1053_v0 = vsel %vm1041_vm5, %v1030_v5, %v7617_v44 }
 0x29a   : > { %9687 = vst [vmem:[#allocation72_spill] sm:$0xff] %v8307_v18  ;;  %v9688_v18 = vld [vmem:[#allocation52_spill] sm:$0xff]  ;;  %3787 = vadd.xlane.f32.xlu1 %v3786_v22  ;;  %v1412_v33 = vsel %vm1409_vm4, %v9689_v49, %v1382_v37  ;;  %v1413_v32 = vsel %vm1409_vm4, %v1382_v37, %v9690_v36  ;;  %v1085_v43 = vsel %vm970_vm7, %v1053_v0, 0.0  ;;  %v1279_v44 = vmul.f32 %v9589_v48, %v1255_v6  ;;  %v9691_v49 = vld [vmem:[#allocation5_spill] sm:$0xff] }
 0x29b   : > { %v1052_v21 = vsel %vm1041_vm5, %v9688_v18, %v1030_v5  ;;  %v1444_v55 = vsel %vm1337_vm3, %v1412_v33, 0.0  ;;  %v1445_v26 = vsel %vm1338_vm0, %v1413_v32, 0.0  ;;  %v1280_v22 = vmul.f32 %v9589_v48, %v1256_v46  ;;  %v9692_v36 = vld [vmem:[#allocation4_spill] sm:$0xff] }
 0x29c   : > { %v1084_v56 = vsel %vm969_vm6, %v1052_v21, 0.0  ;;  %v1109_v37 = vmul.f32 %v9691_v49, %v1085_v43  ;;  %v8342_v5 = vpop.permute.xlu0 %1194  ;;  %v1321_v21 = vmul.f32 %v6701_v53, %v1255_v6  ;;  %v1508_v0 = vmul.f32 %v9692_v36, %v1444_v55  ;;  %v9693_v48 = vld [vmem:[#allocation44_spill] sm:$0xff] }
 0x29d   : > { %v1108_v18 = vmul.f32 %v9691_v49, %v1084_v56  ;;  %v1509_v13 = vmul.f32 %v9692_v36, %v1445_v26  ;;  %v3789_v33 = vsel %vm1212_vm2, %v3785_v50, 0.0  ;;  %v1398_v25 = vpop.permute.xlu1 %1397  ;;  %v8352_v43 = vadd.s32 3, %v8149_v10  ;;  %v9694_v36 = vld [vmem:[#allocation76_spill] sm:$0xff] }
 0x29e   : > { %v1125_v28 = vadd.f32 %v1109_v37, %v954_v24  ;;  %4081 = vadd.xlane.f32.xlu1 %v8141_v61  ;;  %3790 = vadd.xlane.f32.xlu0 %v3789_v33  ;;  %v1420_v56 = vsel %vm1409_vm4, %v9693_v48, %v1398_v25  ;;  %v1322_v6 = vmul.f32 %v6701_v53, %v1256_v46  ;;  %vm1145_vm10 = vcmp.ge.s32.totalorder %v8195_v12, 0  ;;  %v9696_v33 = vld [vmem:[#allocation80_spill] sm:$0xff]  ;;  %v9712_v12 = vld [vmem:[#allocation27_spill] sm:$0xff] }
 0x29f   : > { %v1124_v32 = vadd.f32 %v1108_v18, %v953_v11  ;;  %v8356_v49 = vmul.f32 %v9590_v62, %v1444_v55  ;;  %v1421_v50 = vsel %vm1409_vm4, %v1398_v25, %v9694_v36  ;;  %v1452_v11 = vsel %vm1337_vm3, %v1420_v56, 0.0  ;;  %v9695_v55 = vld [vmem:[#allocation15_spill] sm:$0xff] }
 0x2a0   : > { %v1524_v24 = vadd.f32 %v1508_v0, %v1313_v14  ;;  %v1453_v18 = vsel %vm1338_vm0, %v1421_v50, 0.0  ;;  %v1476_v48 = vmul.f32 %v9593_v30, %v1452_v11  ;;  %v8365_v10 = vpop.permute.xlu0 %1210  ;;  %v8370_v46 = vmul.f32 %v9590_v62, %v1445_v26 }
 0x2a1   : > { %v1295_v61 = vadd.f32 %v1279_v44, %v1124_v32  ;;  %v1525_v25 = vadd.f32 %v1509_v13, %v1314_v41  ;;  %v1516_v47 = vmul.f32 %v9695_v55, %v1452_v11  ;;  %v1517_v14 = vmul.f32 %v9695_v55, %v1453_v18  ;;  %v1729_v44 = vpop.permute.xlu1 %1728 }
 0x2a2   : > { %v5254_v17 = vmul.f32 %v8014_v57, %v8342_v5  ;;  %v1296_v37 = vadd.f32 %v1280_v22, %v1125_v28  ;;  %v1477_v36 = vmul.f32 %v9593_v30, %v1453_v18  ;;  %4363 = vadd.xlane.f32.xlu1 %v8073_v52  ;;  %4084 = vadd.xlane.f32.xlu0 %v8162_v34  ;;  %v8380_v0 = vadd.s32 3, %v8151_v54  ;;  %v9697_v22 = vld [vmem:[#allocation49_spill] sm:$0xff] }
 0x2a3   : > { %v1532_v26 = vadd.f32 %v1516_v47, %v1321_v21  ;;  %v1533_v13 = vadd.f32 %v1517_v14, %v1322_v6  ;;  %v5255_v41 = vmul.f32 %v8044_v42, %v8365_v10  ;;  %v1759_v32 = vsel %vm1756_vm13, %v9696_v33, %v1729_v44 }
 0x2a4   : > { %v1492_v56 = vadd.f32 %v1476_v48, %v1295_v61  ;;  %v1660_v28 = vadd.f32 %v7966_v23, %v1524_v24  ;;  %v1760_v50 = vsel %vm1756_vm13, %v1729_v44, %v9697_v22  ;;  %v1791_v52 = vsel %vm1692_vm14, %v1759_v32, 0.0  ;;  %v8391_v34 = vpop.permute.xlu0 %1391  ;;  %v9702_v22 = vld [vmem:[#allocation22_spill] sm:$0xff] }
 0x2a5   : > { %v1668_v54 = vadd.f32 %v7991_v35, %v1532_v26  ;;  %v1669_v21 = vadd.f32 %v7995_v15, %v1533_v13  ;;  %v1661_v6 = vadd.f32 %v7979_v60, %v1525_v25  ;;  %v1792_v11 = vsel %vm1693_vm15, %v1760_v50, 0.0  ;;  %v1014_v61 = vpop.permute.xlu1 %1013  ;;  %v9698_v15 = vld [vmem:[#allocation60_spill] sm:$0xff] }
 0x2a6   : > { %v1493_v18 = vadd.f32 %v1477_v36, %v1296_v37  ;;  %v1855_v23 = vmul.f32 %v6742_v63, %v1791_v52  ;;  %v1856_v24 = vmul.f32 %v6742_v63, %v1792_v11  ;;  %4657 = vadd.xlane.f32.xlu1 %v8087_v27  ;;  %v8402_v59 = vsel %vm1212_vm2, %v5254_v17, 0.0  ;;  %4366 = vadd.xlane.f32.xlu0 %v8096_v3  ;;  %v9700_v17 = vld [vmem:[#allocation23_spill] sm:$0xff] }
 0x2a7   : > { %v1879_v35 = vadd.f32 %v8310_v4, %v1668_v54  ;;  %v1044_v60 = vsel %vm1041_vm5, %v9698_v15, %v1014_v61  ;;  %v1045_v48 = vsel %vm1041_vm5, %v1014_v61, %v9699_v9  ;;  %v1880_v25 = vadd.f32 %v8313_v51, %v1669_v21  ;;  %v9707_v9 = vld [vmem:[#allocation54_spill] sm:$0xff] }
 0x2a8   : > { %v8412_v47 = vadd.f32 %v7975_v16, %v1492_v56  ;;  %v1871_v14 = vadd.f32 %v1855_v23, %v1660_v28  ;;  %v1076_v27 = vsel %vm969_vm6, %v1044_v60, 0.0  ;;  %v1077_v4 = vsel %vm970_vm7, %v1045_v48, 0.0  ;;  %v8418_v44 = vpop.permute.xlu0 %1407  ;;  %v9701_v56 = vld [vmem:[#allocation63_spill] sm:$0xff] }
 0x2a9   : > { %vm1341_vm3 = vcmp.ge.s32.totalorder %v8198_v20, 0  ;;  %v1872_v3 = vadd.f32 %v1856_v24, %v1661_v6  ;;  %v1100_v37 = vmul.f32 %v9700_v17, %v1076_v27  ;;  %v1101_v36 = vmul.f32 %v9700_v17, %v1077_v4  ;;  %v1193_v51 = vpop.permute.xlu1 %1192  ;;  %v9726_v20 = vld [vmem:[#allocation90_spill] sm:$0xff] }
 0x2aa   : > { %v2354_v16 = vadd.f32 %v9515_v8, %v1880_v25  ;;  %vm1342_vm0 = vcmp.ge.s32.totalorder %v8201_v31, 0  ;;  %v2345_v58 = vadd.f32 %v9508_v38, %v1871_v14  ;;  %4375 = vadd.xlane.f32.xlu1 %v8076_v40  ;;  %v1219_v2 = vsel %vm1212_vm2, %v9642_v1, %v1193_v51  ;;  %4660 = vadd.xlane.f32.xlu0 %v9701_v56  ;;  %v9703_v1 = vld [vmem:[#allocation32_spill] sm:$0xff] }
 0x2ab   : > { %v1220_v26 = vsel %vm1212_vm2, %v1193_v51, %v8342_v5  ;;  %v2353_v13 = vadd.f32 %v9515_v8, %v1879_v35  ;;  %v1116_v33 = vadd.f32 %v1100_v37, %v8263_v39  ;;  %v1117_v32 = vadd.f32 %v1101_v36, %v8266_v45  ;;  %v9705_v35 = vld [vmem:[#allocation48_spill] sm:$0xff]  ;;  %v9709_v36 = vld [vmem:[#allocation35_spill] sm:$0xff] }
 0x2ac   : > { %v1251_v28 = vsel %vm1144_vm9, %v1219_v2, 0.0  ;;  %v1252_v40 = vsel %vm1145_vm10, %v1220_v26, 0.0  ;;  %v8440_v50 = vadd.f32 %v9702_v22, %v1493_v18  ;;  %v8443_v54 = vmul.f32 %v9703_v1, %v1791_v52  ;;  %v8448_v39 = vpop.permute.xlu0 %866  ;;  %v9704_v52 = vld [vmem:[#allocation7_spill] sm:$0xff]  ;;  %v9711_v26 = vld [vmem:[#allocation68_spill] sm:$0xff]  ;;  %v9714_v22 = vld [vmem:[#allocation73_spill] sm:$0xff] }
 0x2ad   : > { %v8446_v5 = vmul.f32 %v9703_v1, %v1792_v11  ;;  %v8451_v45 = vsel %vm1212_vm2, %v5255_v41, 0.0  ;;  %v8453_v21 = vmul.f32 %v2345_v58, %v2345_v58  ;;  %v1287_v6 = vadd.f32 %v8296_v19, %v1116_v33  ;;  %v1209_v23 = vpop.permute.xlu1 %1208  ;;  %v9706_v19 = vld [vmem:[#allocation46_spill] sm:$0xff] }
 0x2ae   : > { %v1288_v61 = vadd.f32 %v8299_v29, %v1117_v32  ;;  %v8458_v18 = vmul.f32 %v8014_v57, %v1193_v51  ;;  %v8461_v24 = vmul.f32 %v9704_v52, %v1251_v28  ;;  %v8464_v11 = vmul.f32 %v9704_v52, %v1252_v40  ;;  %4669 = vadd.xlane.f32.xlu1 %v9705_v35  ;;  %v9715_v35 = vld [vmem:[#allocation4_spill] sm:$0xff] }
 0x2af   : > { %v2346_v41 = vadd.f32 %v9508_v38, %v1872_v3  ;;  %v3063_v15 = vmul.f32 %v2354_v16, %v2354_v16  ;;  %v1484_v60 = vadd.f32 %v8356_v49, %v1287_v6  ;;  %4378 = vadd.xlane.f32.xlu0 %v9706_v19  ;;  %v6098_v29 = vpack.c.bf16 %v2353_v13, %v2345_v58  ;;  %v9708_v49 = vld [vmem:[#allocation50_spill] sm:$0xff] }
 0x2b0   : > { %v1227_v57 = vsel %vm1212_vm2, %v9707_v9, %v1209_v23  ;;  %v1228_v48 = vsel %vm1212_vm2, %v1209_v23, %v8365_v10  ;;  %v8478_v3 = vpop.permute.xlu0 %882  ;;  %vm799_vm7 = vcmp.ge.s32.totalorder %v9708_v49, 0  ;;  %v1485_v37 = vadd.f32 %v8370_v46, %v1288_v61  ;;  %v9710_v10 = vld [vmem:[#allocation45_spill] sm:$0xff]  ;;  %v9713_v46 = vld [vmem:[#allocation66_spill] sm:$0xff] }
 0x2b1   : > { %v6096_v25 = vpack.c.bf16 %v2354_v16, %v2346_v41  ;;  %v3055_v14 = vmul.f32 %v2346_v41, %v2346_v41  ;;  %v1259_v27 = vsel %vm1144_vm9, %v1227_v57, 0.0  ;;  %v1260_v4 = vsel %vm1145_vm10, %v1228_v48, 0.0  ;;  %v1390_v2 = vpop.permute.xlu1 %1389  ;;  %v9717_v57 = vld [vmem:[#allocation86_spill] sm:$0xff] }
 0x2b2   : > { %v1317_v51 = vmul.f32 %v9709_v36, %v1251_v28  ;;  %v1318_v58 = vmul.f32 %v9709_v36, %v1252_v40  ;;  %v5242_v16 = vmul.f32 %v9710_v10, %v8448_v39  ;;  %vm800_vm6 = vcmp.ge.s32.totalorder %v9711_v26, 0  ;;  %v9721_v36 = vld [vmem:[#allocation53_spill] sm:$0xff] }
 0x2b3   : > { %6097 = vmatprep.subr.bf16.mxu1 %v6096_v25  ;;  %v8487_v7 = vmul.f32 %v2353_v13, %v2353_v13  ;;  %v8490_v33 = vmul.f32 %v9712_v12, %v1259_v27  ;;  %v8493_v32 = vmul.f32 %v9712_v12, %v1260_v4  ;;  %v1416_v56 = vsel %vm1409_vm4, %v9713_v46, %v1390_v2  ;;  %v9745_v26 = vld [vmem:[#allocation93_spill] sm:$0xff] }
 0x2b4   : > { %6099 = vmatpush1.bf16.msra.mxu1 %v6098_v29  ;;  %v1325_v28 = vmul.f32 %v6701_v53, %v1259_v27  ;;  %v1326_v40 = vmul.f32 %v6701_v53, %v1260_v4  ;;  %4672 = vadd.xlane.f32.xlu0 %v9714_v22  ;;  %v1417_v13 = vsel %vm1409_vm4, %v1390_v2, %v8391_v34  ;;  %v1448_v6 = vsel %vm1341_vm3, %v1416_v56, 0.0  ;;  %v8509_v19 = vpop.permute.xlu0 %1023  ;;  %v9716_v29 = vld [vmem:[#allocation13_spill] sm:$0xff]  ;;  %v9718_v27 = vld [vmem:[#allocation16_spill] sm:$0xff] }
 0x2b5   : > { %v8504_v61 = vadd.f32 %v3063_v15, %v3055_v14  ;;  %v1449_v52 = vsel %vm1342_vm0, %v1417_v13, 0.0  ;;  %v1512_v41 = vmul.f32 %v9715_v35, %v1448_v6  ;;  %v1620_v9 = vadd.f32 %v9716_v29, %v1484_v60  ;;  %v1406_v25 = vpop.permute.xlu1 %1405  ;;  %v9719_v14 = vld [vmem:[#allocation31_spill] sm:$0xff]  ;;  %v9723_v22 = vld [vmem:[#allocation25_spill] sm:$0xff]  ;;  %v9724_v13 = vld [vmem:[#allocation56_spill] sm:$0xff] }
 0x2b6   : > { %v4961_v53 = vmul.f32 %v8044_v42, %v1209_v23  ;;  %v5243_v48 = vmul.f32 %v9717_v57, %v8478_v3  ;;  %v1513_v34 = vmul.f32 %v9715_v35, %v1449_v52  ;;  %v1621_v15 = vadd.f32 %v9718_v27, %v1485_v37 }
 0x2b7   : > { %vm9720_vm11 = vcmask 130048   ;;  %v8520_v4 = vmul.f32 %v9590_v62, %v1448_v6  ;;  %v1424_v2 = vsel %vm1409_vm4, %v9721_v36, %v1406_v25  ;;  %v1425_v42 = vsel %vm1409_vm4, %v1406_v25, %v8418_v44  ;;  %v9731_v36 = vld [vmem:[#allocation92_spill] sm:$0xff] }
 0x2b8   : > { %5714 = vmatmul.mubr.msk.f32.vlgmr.msra.gmra.mrb[12].mxu1 %vm9720_vm11, %v9719_v14  ;;  %v8527_v23 = vsel %vm884_vm1, %v5242_v16, 0.0  ;;  %v8530_v60 = vmul.f32 %v9590_v62, %v1449_v52  ;;  %v1528_v12 = vadd.f32 %v1512_v41, %v1317_v51  ;;  %v9722_v37 = vmov 0.0   ;;  %v8541_v62 = vpop.permute.xlu0 %1039  ;;  %v9725_v52 = vld [vmem:[#allocation89_spill] sm:$0xff]  ;;  %vm9728_vm10 = vmmov %vm9720_vm11 }
 0x2b9   : > { %2545 = vmatprep.mubr.f32.mxu1 %v9722_v37  ;;  %v1456_v46 = vsel %vm1341_vm3, %v1424_v2, 0.0  ;;  %v1457_v56 = vsel %vm1342_vm0, %v1425_v42, 0.0  ;;  %vm1903_vm12 = vcmp.lt.s32.totalorder %v9723_v22, 128  ;;  %vm1904_vm14 = vcmp.lt.s32.totalorder %v9724_v13, 128  ;;  %v865_v35 = vpop.permute.xlu1 %864 }
 0x2ba   : > { %v1529_v44 = vadd.f32 %v1513_v34, %v1318_v58  ;;  %v1520_v16 = vmul.f32 %v9695_v55, %v1456_v46  ;;  %v1521_v6 = vmul.f32 %v9695_v55, %v1457_v56  ;;  %v8544_v51 = vadd.f32 %v8443_v54, %v1620_v9  ;;  %v9727_v54 = vld [vmem:[#allocation38_spill] sm:$0xff]  ;;  %v9729_v9 = vld [vmem:[#allocation65_spill] sm:$0xff] }
 0x2bb   : > { %vm973_vm15 = vcmp.ge.s32.totalorder %v9725_v52, 0  ;;  %vm974_vm9 = vcmp.ge.s32.totalorder %v9726_v20, 0  ;;  %v8549_v31 = vmul.f32 %v9593_v30, %v1456_v46  ;;  %v8552_v41 = vadd.f32 %v8446_v5, %v1621_v15  ;;  %v9730_v15 = vld [vmem:[#allocation91_spill] sm:$0xff]  ;;  %v9759_v20 = vld [vmem:[#allocation61_spill] sm:$0xff] }
 0x2bc   : > { %v8556_v58 = vsel %vm1212_vm2, %v8458_v18, 0.0  ;;  %v8559_v55 = vsel %vm884_vm1, %v5243_v48, 0.0  ;;  %5715 = vmatmul.mubr.msk.f32.gmra.mrb[14].mxu1 %vm9728_vm10, %v9727_v54  ;;  %v8564_v29 = vmul.f32 %v9593_v30, %v1457_v56  ;;  %v891_v34 = vsel %vm884_vm1, %v9729_v9, %v865_v35  ;;  %v9732_v30 = vld [vmem:[#allocation42_spill] sm:$0xff] }
 0x2bd   : > { %v892_v5 = vsel %vm884_vm1, %v865_v35, %v8448_v39  ;;  %v8571_v25 = vsel %vm1212_vm2, %v4961_v53, 0.0  ;;  %v1536_v18 = vadd.f32 %v1520_v16, %v1325_v28  ;;  %v923_v48 = vsel %vm799_vm7, %v891_v34, 0.0  ;;  %2693 = vmatprep.mubr.f32.mxu1 %v9722_v37  ;;  %v8584_v53 = vpop.permute.xlu0 %1738  ;;  %v9733_v28 = vld [vmem:[#allocation82_spill] sm:$0xff]  ;;  %v9736_v34 = vld [vmem:[#allocation37_spill] sm:$0xff] }
 0x2be   : > { %v4948_v27 = vmul.f32 %v9710_v10, %v865_v35  ;;  %vm2074_vm3 = vcmp.lt.s32.totalorder %v9730_v15, 128  ;;  %vm2075_vm0 = vcmp.lt.s32.totalorder %v9731_v36, 128  ;;  %v8579_v2 = vadd.f32 %v9732_v30, %v1528_v12  ;;  %v9734_v10 = vld [vmem:[#allocation28_spill] sm:$0xff]  ;;  %v881_v35 = vpop.permute.xlu1 %880 }
 0x2bf   : > { %v1537_v42 = vadd.f32 %v1521_v6, %v1326_v40  ;;  %v924_v39 = vsel %vm800_vm6, %v892_v5, 0.0  ;;  %v8587_v46 = vadd.f32 %v9733_v28, %v1529_v44  ;;  %v8591_v56 = vadd.f32 %v9734_v10, %v8412_v47  ;;  %v9735_v12 = vld [vmem:[#allocation72_spill] sm:$0xff]  ;;  %v9737_v44 = vld [vmem:[#allocation3_spill] sm:$0xff]  ;;  %v9738_v10 = vld [vmem:[#allocation9_spill] sm:$0xff] }
 0x2c0   : > { %v4950_v16 = vsel %vm884_vm1, %v4948_v27, 0.0  ;;  %v8596_v9 = vadd.f32 %v9735_v12, %v8440_v50  ;;  %v3082_v40 = vadd.f32 %v8487_v7, %v8453_v21  ;;  %v3090_v6 = vrot.slane %v8504_v61, 4 }
 0x2c1   : > { %v949_v5 = vmul.f32 %v9736_v34, %v923_v48  ;;  %4951 = vadd.xlane.f32.xlu1 %v4950_v16  ;;  %v899_v30 = vsel %vm884_vm1, %v9737_v44, %v881_v35  ;;  %v900_v47 = vsel %vm884_vm1, %v881_v35, %v8478_v3  ;;  %v4949_v27 = vmul.f32 %v9717_v57, %v881_v35  ;;  %v1940_v16 = vpop.permute.xlu0 %1939  ;;  %v9739_v44 = vld [vmem:[#allocation6_spill] sm:$0xff]  ;;  %v9740_v57 = vld [vmem:[#allocation21_spill] sm:$0xff] }
 0x2c2   : > { %v950_v28 = vmul.f32 %v9736_v34, %v924_v39  ;;  %v931_v50 = vsel %vm799_vm7, %v899_v30, 0.0  ;;  %v8611_v21 = vadd.f32 %v9738_v10, %v1536_v18  ;;  %v3083_v7 = vrot.slane %v3082_v40, 4  ;;  %v9741_v35 = vld [vmem:[#allocation62_spill] sm:$0xff]  ;;  %v9743_v34 = vld [vmem:[#allocation87_spill] sm:$0xff]  ;;  %v1022_v30 = vpop.permute.xlu1 %1021 }
 0x2c3   : > { %v932_v48 = vsel %vm800_vm6, %v900_v47, 0.0  ;;  %v4953_v12 = vsel %vm884_vm1, %v4949_v27, 0.0  ;;  %v8617_v54 = vadd.f32 %v9739_v44, %v1537_v42  ;;  %v3091_v3 = vadd.f32 %v3090_v6, %v8504_v61  ;;  %v9746_v6 = vld [vmem:[#allocation67_spill] sm:$0xff] }
 0x2c4   : > { %v957_v39 = vmul.f32 %v9740_v57, %v931_v50  ;;  %vm9742_vm2 = vcmask 1031168   ;;  %4954 = vadd.xlane.f32.xlu0 %v4953_v12  ;;  %vm1907_vm6 = vcmp.lt.s32.totalorder %v9745_v26, 128  ;;  %v8626_v47 = vadd.f32 %v3083_v7, %v3082_v40  ;;  %v9747_v10 = vld [vmem:[#allocation75_spill] sm:$0xff] }
 0x2c5   : > { %v1970_v49 = vsel %vm9742_vm2, %v9741_v35, %v1940_v16  ;;  %vm9744_vm7 = vmmov %vm9742_vm2  ;;  %5245 = vadd.xlane.f32.xlu1 %v8527_v23  ;;  %v1048_v27 = vsel %vm1041_vm5, %v9746_v6, %v1022_v30  ;;  %v1049_v50 = vsel %vm1041_vm5, %v1022_v30, %v8509_v19  ;;  %vm1696_vm1 = vcmp.lt.s32.totalorder %v9747_v10, 128  ;;  %v9748_v40 = vld [vmem:[#allocation11_spill] sm:$0xff]  ;;  %v9777_v10 = vld [vmem:[#allocation24_spill] sm:$0xff] }
 0x2c6   : > { %v1971_v18 = vsel %vm9744_vm7, %v1940_v16, %v9743_v34  ;;  %v2002_v42 = vsel %vm1903_vm12, %v1970_v49, 0.0  ;;  %v958_v16 = vmul.f32 %v9740_v57, %v932_v48  ;;  %v1080_v12 = vsel %vm973_vm15, %v1048_v27, 0.0  ;;  %v9749_v35 = vld [vmem:[#allocation59_spill] sm:$0xff]  ;;  %v2111_v34 = vpop.permute.xlu0 %2110  ;;  %v9750_v57 = vld [vmem:[#allocation58_spill] sm:$0xff]  ;;  %v1038_v27 = vpop.permute.xlu1 %1037 }
 0x2c7   : > { %v2003_v61 = vsel %vm1904_vm14, %v1971_v18, 0.0  ;;  %v2026_v7 = vmul.f32 %v9748_v40, %v2002_v42  ;;  %v1081_v44 = vsel %vm974_vm9, %v1049_v50, 0.0  ;;  %vm1697_vm11 = vcmp.lt.s32.totalorder %v9749_v35, 128  ;;  %v9752_v42 = vld [vmem:[#allocation71_spill] sm:$0xff] }
 0x2c8   : > { %v2027_v23 = vmul.f32 %v9748_v40, %v2003_v61  ;;  %v1104_v49 = vmul.f32 %v9700_v17, %v1080_v12  ;;  %v1105_v19 = vmul.f32 %v9700_v17, %v1081_v44  ;;  %v3092_v18 = vrot.slane %v3091_v3, 2  ;;  %5248 = vadd.xlane.f32.xlu0 %v8559_v55 }
 0x2c9   : > { %v2042_v48 = vadd.f32 %v2026_v7, %v8544_v51  ;;  %vm9751_vm10 = vcmask 1022976   ;;  %v3085_v50 = vrot.slane %v8626_v47, 2  ;;  %4963 = vadd.xlane.f32.xlu1 %v8556_v58  ;;  %v9754_v51 = vld [vmem:[#allocation36_spill] sm:$0xff] }
 0x2ca   : > { %v2141_v30 = vsel %vm9751_vm10, %v9750_v57, %v2111_v34  ;;  %vm9753_vm2 = vmmov %vm9751_vm10  ;;  %v1120_v61 = vadd.f32 %v1104_v49, %v949_v5  ;;  %v1121_v37 = vadd.f32 %v1105_v19, %v950_v28  ;;  %v1057_v57 = vsel %vm1041_vm5, %v1038_v27, %v8541_v62  ;;  %v8672_v19 = vpop.permute.xlu0 %1947 }
 0x2cb   : > { %v2142_v6 = vsel %vm9753_vm2, %v2111_v34, %v9752_v42  ;;  %v2173_v17 = vsel %vm2074_vm3, %v2141_v30, 0.0  ;;  %v9755_v34 = vld [vmem:[#allocation43_spill] sm:$0xff]  ;;  %v1089_v58 = vsel %vm974_vm9, %v1057_v57, 0.0  ;;  %v2043_v30 = vadd.f32 %v2027_v23, %v8552_v41 }
 0x2cc   : > { %v2174_v12 = vsel %vm2075_vm0, %v2142_v6, 0.0  ;;  %v2197_v7 = vmul.f32 %v9754_v51, %v2173_v17  ;;  %v1056_v55 = vsel %vm1041_vm5, %v9755_v34, %v1038_v27  ;;  %v1291_v5 = vadd.f32 %v8461_v24, %v1120_v61  ;;  %v9756_v6 = vld [vmem:[#allocation5_spill] sm:$0xff]  ;;  %4966 = vadd.xlane.f32.xlu0 %v8571_v25  ;;  %v1737_v24 = vpop.permute.xlu1 %1736  ;;  %vm9758_vm5 = vmmov %vm9744_vm7  ;;  %v9760_v25 = vld [vmem:[#allocation40_spill] sm:$0xff] }
 0x2cd   : > { %v2198_v44 = vmul.f32 %v9754_v51, %v2174_v12  ;;  %v1292_v28 = vadd.f32 %v8464_v11, %v1121_v37  ;;  %v1088_v49 = vsel %vm973_vm15, %v1056_v55, 0.0  ;;  %v1113_v12 = vmul.f32 %v9756_v6, %v1089_v58  ;;  %v9757_v11 = vld [vmem:[#allocation30_spill] sm:$0xff]  ;;  %5257 = vadd.xlane.f32.xlu1 %v8402_v59  ;;  %v9761_v59 = vld [vmem:[#allocation17_spill] sm:$0xff]  ;;  %vm9764_vm15 = vmmov %vm9758_vm5 }
 0x2ce   : > { %v2213_v42 = vadd.f32 %v2197_v7, %v2042_v48  ;;  %v1112_v17 = vmul.f32 %v9756_v6, %v1088_v49  ;;  %v1974_v37 = vsel %vm9758_vm5, %v9757_v11, %v8672_v19  ;;  %v1488_v62 = vadd.f32 %v8520_v4, %v1291_v5  ;;  %v9763_v58 = vld [vmem:[#allocation14_spill] sm:$0xff]  ;;  %vm9775_vm7 = vmmov %vm9758_vm5 }
 0x2cf   : > { %v1489_v52 = vadd.f32 %v8530_v60, %v1292_v28  ;;  %v1763_v41 = vsel %vm1756_vm13, %v9759_v20, %v1737_v24  ;;  %v8686_v23 = vadd.f32 %v2198_v44, %v2043_v30  ;;  %v1129_v27 = vadd.f32 %v1113_v12, %v958_v16  ;;  %v8698_v60 = vpop.permute.xlu0 %1965  ;;  %v9762_v16 = vld [vmem:[#allocation26_spill] sm:$0xff] }
 0x2d0   : > { %v1128_v48 = vadd.f32 %v1112_v17, %v957_v39  ;;  %v8688_v61 = vadd.f32 %v3092_v18, %v3091_v3  ;;  %v8691_v7 = vadd.f32 %v9760_v25, %v2213_v42  ;;  %v2006_v34 = vsel %vm1907_vm6, %v1974_v37, 0.0  ;;  %5260 = vadd.xlane.f32.xlu0 %v8451_v45  ;;  %v1755_v57 = vpop.permute.xlu1 %1754 }
 0x2d1   : > { %v1624_v55 = vadd.f32 %v9761_v59, %v1488_v62  ;;  %v1764_v4 = vsel %vm1756_vm13, %v1737_v24, %v8584_v53  ;;  %v1300_v39 = vadd.f32 %v8493_v32, %v1129_v27  ;;  %v1625_v3 = vadd.f32 %v9762_v16, %v1489_v52  ;;  %v9765_v32 = vld [vmem:[#allocation51_spill] sm:$0xff]  ;;  %v9767_v62 = vld [vmem:[#allocation69_spill] sm:$0xff]  ;;  %v9768_v52 = vld [vmem:[#allocation78_spill] sm:$0xff] }
 0x2d2   : > { %v1299_v44 = vadd.f32 %v8490_v33, %v1128_v48  ;;  %v1795_v18 = vsel %vm1696_vm1, %v1763_v41, 0.0  ;;  %v1796_v5 = vsel %vm1697_vm11, %v1764_v4, 0.0  ;;  %v1982_v33 = vsel %vm9764_vm15, %v9763_v58, %v8698_v60  ;;  %3134 = vadd.xlane.f32.xlu1 %v9765_v32  ;;  %v9769_v41 = vld [vmem:[#allocation94_spill] sm:$0xff]  ;;  %v9770_v27 = vld [vmem:[#allocation81_spill] sm:$0xff]  ;;  %v9771_v59 = vld [vmem:[#allocation83_spill] sm:$0xff] }
 0x2d3   : > { %v1819_v28 = vmul.f32 %v9703_v1, %v1795_v18  ;;  %v1859_v49 = vmul.f32 %v6742_v63, %v1795_v18  ;;  %v1820_v30 = vmul.f32 %v9703_v1, %v1796_v5  ;;  %v1860_v42 = vmul.f32 %v6742_v63, %v1796_v5  ;;  %v9766_v1 = vld [vmem:[#allocation34_spill] sm:$0xff]  ;;  %v9779_v32 = vld [vmem:[#allocation88_spill] sm:$0xff] }
 0x2d4   : > { %v2014_v45 = vsel %vm1907_vm6, %v1982_v33, 0.0  ;;  %v1496_v6 = vadd.f32 %v8549_v31, %v1299_v44  ;;  %v8721_v17 = vmul.f32 %v8691_v7, %v8691_v7  ;;  %v8724_v12 = vmul.f32 %v9748_v40, %v2006_v34  ;;  %3448 = vadd.xlane.f32.xlu0 %v9768_v52  ;;  %v1958_v20 = vpop.permute.xlu1 %1957  ;;  %v9772_v4 = vld [vmem:[#allocation10_spill] sm:$0xff] }
 0x2d5   : > { %v8726_v24 = vadd.f32 %v1819_v28, %v1624_v55  ;;  %v1497_v11 = vadd.f32 %v8564_v29, %v1300_v39  ;;  %v8729_v37 = vadd.f32 %v1820_v30, %v1625_v3  ;;  %v1875_v63 = vadd.f32 %v1859_v49, %v8579_v2  ;;  %v9773_v39 = vld [vmem:[#allocation20_spill] sm:$0xff]  ;;  %v9774_v3 = vld [vmem:[#allocation85_spill] sm:$0xff]  ;;  %v9776_v18 = vld [vmem:[#allocation18_spill] sm:$0xff] }
 0x2d6   : > { %v8733_v26 = vmul.f32 %v9766_v1, %v2014_v45  ;;  %v1771_v31 = vsel %vm1756_vm13, %v9767_v62, %v1755_v57  ;;  %vm1908_vm9 = vcmp.lt.s32.totalorder %v9769_v41, 128  ;;  %v1876_v48 = vadd.f32 %v1860_v42, %v8587_v46  ;;  %3467 = vadd.xlane.f32.xlu1 %v9771_v59  ;;  %v9782_v62 = vld [vmem:[#allocation55_spill] sm:$0xff] }
 0x2d7   : > { %v1632_v34 = vadd.f32 %v9770_v27, %v1496_v6  ;;  %v1772_v29 = vsel %vm1756_vm13, %v1755_v57, %v8584_v53  ;;  %v1803_v2 = vsel %vm1696_vm1, %v1771_v31, 0.0  ;;  %v1978_v46 = vsel %vm9775_vm7, %v9774_v3, %v1958_v20  ;;  %vm9778_vm13 = vmmov %vm9758_vm5 }
 0x2d8   : > { %v1804_v55 = vsel %vm1697_vm11, %v1772_v29, 0.0  ;;  %v1827_v44 = vmul.f32 %v9772_v4, %v1803_v2  ;;  %v1867_v16 = vmul.f32 %v9773_v39, %v1803_v2  ;;  %v1633_v5 = vadd.f32 %v9776_v18, %v1497_v11  ;;  %3742 = vadd.xlane.f32.xlu0 %v9779_v32  ;;  %v2129_v30 = vpop.permute.xlu1 %2128  ;;  %vm9781_vm11 = vmmov %vm9753_vm2  ;;  %v9784_v29 = vld [vmem:[#allocation12_spill] sm:$0xff] }
 0x2d9   : > { %v1828_v28 = vmul.f32 %v9772_v4, %v1804_v55  ;;  %v1868_v53 = vmul.f32 %v9773_v39, %v1804_v55  ;;  %v1979_v57 = vsel %vm9778_vm13, %v1958_v20, %v9777_v10  ;;  %vm2078_vm6 = vcmp.lt.s32.totalorder %v8352_v43, 128 }
 0x2da   : > { %v8759_v35 = vadd.f32 %v9508_v38, %v1875_v63  ;;  %v1883_v49 = vadd.f32 %v1867_v16, %v8611_v21  ;;  %v2010_v58 = vsel %vm1903_vm12, %v1978_v46, 0.0  ;;  %v2011_v33 = vsel %vm1904_vm14, %v1979_v57, 0.0  ;;  %v9780_v63 = vld [vmem:[#allocation84_spill] sm:$0xff]  ;;  %vm9783_vm12 = vmmov %vm9753_vm2  ;;  %v2121_v16 = vpop.permute.xlu0 %2120  ;;  %v9788_v57 = vld [vmem:[#allocation19_spill] sm:$0xff] }
 0x2db   : > { %vm2079_vm1 = vcmp.lt.s32.totalorder %v8380_v0, 128  ;;  %v1843_v42 = vadd.f32 %v1827_v44, %v1632_v34  ;;  %v1884_v45 = vadd.f32 %v1868_v53, %v8617_v54  ;;  %v2034_v6 = vmul.f32 %v9766_v1, %v2010_v58  ;;  %vm9785_vm14 = vmmov %vm9758_vm5 }
 0x2dc   : > { %v2035_v11 = vmul.f32 %v9766_v1, %v2011_v33  ;;  %v2357_v21 = vadd.f32 %v9515_v8, %v1883_v49  ;;  %v2149_v22 = vsel %vm9781_vm11, %v9780_v63, %v2129_v30  ;;  %v2150_v13 = vsel %vm9783_vm12, %v2129_v30, %v9782_v62  ;;  %v1950_v4 = vpop.permute.xlu1 %1949 }
 0x2dd   : > { %v2350_v31 = vadd.f32 %v9508_v38, %v1876_v48  ;;  %v1844_v52 = vadd.f32 %v1828_v28, %v1633_v5  ;;  %v2050_v20 = vadd.f32 %v2034_v6, %v8591_v56  ;;  %v2181_v54 = vsel %vm2074_vm3, %v2149_v22, 0.0  ;;  %vm9786_vm3 = vmmov %vm9758_vm5  ;;  %v9787_v5 = vld [vmem:[#allocation39_spill] sm:$0xff] }
 0x2de   : > { %v2182_v27 = vsel %vm2075_vm0, %v2150_v13, 0.0  ;;  %v2051_v34 = vadd.f32 %v2035_v11, %v8596_v9  ;;  %v2205_v2 = vmul.f32 %v9784_v29, %v2181_v54  ;;  %v2358_v55 = vadd.f32 %v9515_v8, %v1884_v45  ;;  %vm9789_vm0 = vmmov %vm9753_vm2 }
 0x2df   : > { %v2206_v59 = vmul.f32 %v9784_v29, %v2182_v27  ;;  %v8786_v44 = vmul.f32 %v2357_v21, %v2357_v21  ;;  %v6106_v38 = vpack.c.bf16 %v2357_v21, %v8759_v35  ;;  %v1975_v15 = vsel %vm9785_vm14, %v8672_v19, %v1950_v4  ;;  %vm9790_vm10 = vmmov %vm9789_vm0  ;;  %v9796_v27 = vld [vmem:[#allocation38_spill] sm:$0xff] }
 0x2e0   : > { %v1983_v36 = vsel %vm9786_vm3, %v8698_v60, %v1950_v4  ;;  %v2221_v56 = vadd.f32 %v2205_v2, %v2050_v20  ;;  %v6104_v9 = vpack.c.bf16 %v2358_v55, %v2350_v31  ;;  %v3059_v39 = vmul.f32 %v2350_v31, %v2350_v31  ;;  %v2119_v10 = vpop.permute.xlu1 %2118  ;;  %v9793_v31 = vld [vmem:[#allocation70_spill] sm:$0xff]  ;;  %vm9794_vm5 = vmmov %vm9789_vm0 }
 0x2e1   : > { %v2222_v48 = vadd.f32 %v2206_v59, %v2051_v34  ;;  %v3067_v3 = vmul.f32 %v2358_v55, %v2358_v55  ;;  %v2007_v8 = vsel %vm1908_vm9, %v1975_v15, 0.0  ;;  %v2015_v46 = vsel %vm1908_vm9, %v1983_v36, 0.0  ;;  %vm9795_vm15 = vmmov %vm9789_vm0 }
 0x2e2   : > { %v2240_v18 = vadd.f32 %v9760_v25, %v8686_v23  ;;  %v2247_v19 = vadd.f32 %v9787_v5, %v2221_v56  ;;  %6105 = vmatprep.subr.bf16.mxu1 %v6104_v9  ;;  %v2031_v60 = vmul.f32 %v9748_v40, %v2007_v8  ;;  %v2039_v28 = vmul.f32 %v9766_v1, %v2015_v46 }
 0x2e3   : > { %v2046_v53 = vadd.f32 %v8724_v12, %v8726_v24  ;;  %6107 = vmatpush1.bf16.msra.mxu1 %v6106_v38  ;;  %v2145_v49 = vsel %vm9789_vm0, %v9788_v57, %v2119_v10  ;;  %v2146_v41 = vsel %vm9790_vm10, %v2119_v10, %v2121_v16  ;;  %v2248_v58 = vadd.f32 %v9787_v5, %v2222_v48  ;;  %v9798_v48 = vld [vmem:[#allocation47_spill] sm:$0xff]  ;;  %v9800_v57 = vld [vmem:[#allocation33_spill] sm:$0xff] }
 0x2e4   : > { %v2256_v23 = vmul.f32 %v2240_v18, %v2240_v18  ;;  %v2263_v33 = vmul.f32 %v2247_v19, %v2247_v19  ;;  %v2047_v32 = vadd.f32 %v2031_v60, %v8729_v37  ;;  %v2055_v30 = vadd.f32 %v2039_v28, %v1844_v52  ;;  %v2137_v21 = vpop.permute.xlu1 %2136 }
 0x2e5   : > { %v2177_v40 = vsel %vm2078_vm6, %v2145_v49, 0.0  ;;  %v2178_v12 = vsel %vm2079_vm1, %v2146_v41, 0.0  ;;  %v2264_v1 = vmul.f32 %v2248_v58, %v2248_v58  ;;  %v6112_v45 = vpack.c.bf16 %v2248_v58, %v2240_v18 }
 0x2e6   : > { %v2201_v24 = vmul.f32 %v9754_v51, %v2177_v40  ;;  %vm9791_vm2 = vcmask 130048   ;;  %v2202_v6 = vmul.f32 %v9754_v51, %v2178_v12  ;;  %v6114_v11 = vpack.c.bf16 %v2247_v19, %v8691_v7 }
 0x2e7   : > { %5718 = vmatmul.mubr.msk.f32.vlgmr.msra.gmra.mrb[16].mxu1 %vm9791_vm2, %v9719_v14  ;;  %v2054_v37 = vadd.f32 %v8733_v26, %v1843_v42  ;;  %v2283_v63 = vadd.f32 %v2263_v33, %v8721_v17  ;;  %v9792_v62 = vmov 0.0   ;;  %v2290_v13 = vadd.f32 %v2264_v1, %v2256_v23  ;;  %6113 = vmatprep.subr.bf16.mxu1 %v6112_v45  ;;  %vm9797_vm9 = vmmov %vm9791_vm2 }
 0x2e8   : > { %v2217_v22 = vadd.f32 %v2201_v24, %v2046_v53  ;;  %2699 = vmatprep.mubr.f32.mxu1 %v9792_v62  ;;  %v2153_v52 = vsel %vm9794_vm5, %v9793_v31, %v2137_v21  ;;  %v2218_v20 = vadd.f32 %v2202_v6, %v2047_v32  ;;  %6115 = vmatpush1.bf16.msra.mxu1 %v6114_v11  ;;  %vm9799_vm7 = vmmov %vm9791_vm2 }
 0x2e9   : > { %v2154_v14 = vsel %vm9795_vm15, %v2137_v21, %v2121_v16  ;;  %v2185_v51 = vsel %vm2078_vm6, %v2153_v52, 0.0  ;;  %v2284_v7 = vrot.slane %v2283_v63, 4  ;;  %v3086_v54 = vadd.f32 %v3085_v50, %v8626_v47  ;;  %vm9801_vm13 = vmmov %vm9791_vm2 }
 0x2ea   : > { %v2243_v26 = vadd.f32 %v9760_v25, %v2217_v22  ;;  %v2186_v17 = vsel %vm2079_vm1, %v2154_v14, 0.0  ;;  %v2209_v42 = vmul.f32 %v9784_v29, %v2185_v51  ;;  %v2244_v43 = vadd.f32 %v9760_v25, %v2218_v20  ;;  %vm9802_vm6 = vmmov %vm9791_vm2  ;;  %v9806_v51 = vld [vmem:[#allocation8_spill] sm:$0xff] }
 0x2eb   : > { %5719 = vmatmul.mubr.msk.f32.gmra.mrb[18].mxu1 %vm9797_vm9, %v9796_v27  ;;  %v2210_v34 = vmul.f32 %v9784_v29, %v2186_v17  ;;  %v2285_v2 = vadd.f32 %v2284_v7, %v2283_v63  ;;  %v2291_v59 = vrot.slane %v2290_v13, 4  ;;  %v3058_v55 = vmul.f32 %v8759_v35, %v8759_v35  ;;  %vm9804_vm11 = vmmov %vm9791_vm2 }
 0x2ec   : > { %v3117_v0 = vadd.f32 %v3067_v3, %v3059_v39  ;;  %v2225_v4 = vadd.f32 %v2209_v42, %v2054_v37  ;;  %2885 = vmatprep.mubr.f32.mxu1 %v9792_v62  ;;  %v3094_v47 = vrot.slane %v8688_v61, 1  ;;  %v2259_v50 = vmul.f32 %v2243_v26, %v2243_v26  ;;  %vm8989_vm2 = vmpackc.low %vm1409_vm4, %vm1409_vm4 }
 0x2ed   : > { %v2226_v38 = vadd.f32 %v2210_v34, %v2055_v30  ;;  %v2286_v15 = vrot.slane %v2285_v2, 2  ;;  %v2292_v36 = vadd.f32 %v2291_v59, %v2290_v13  ;;  %v3087_v29 = vrot.slane %v3086_v54, 1  ;;  %vm9816_vm5 = vmmov %vm9802_vm6 }
 0x2ee   : > { %v2251_v56 = vadd.f32 %v9787_v5, %v2225_v4  ;;  %v3110_v25 = vadd.f32 %v8786_v44, %v3058_v55  ;;  %v2260_v9 = vmul.f32 %v2244_v43, %v2244_v43  ;;  %v3118_v18 = vrot.slane %v3117_v0, 4  ;;  %vm9817_vm9 = vmmov %vm9816_vm5 }
 0x2ef   : > { %5722 = vmatmul.mubr.msk.f32.vlgmr.msra.gmra.mrb[12].mxu1 %vm9799_vm7, %v9798_v48  ;;  %v2252_v35 = vadd.f32 %v9787_v5, %v2226_v38  ;;  %v2287_v39 = vadd.f32 %v2286_v15, %v2285_v2  ;;  %v2293_v16 = vrot.slane %v2292_v36, 2  ;;  %v3088_v41 = vadd.f32 %v3087_v29, %v3086_v54  ;;  %v9808_v54 = vld [vmem:[#allocation29_spill] sm:$0xff]  ;;  %v8867_v15 = vld [vmem:[%s9220_s4] sm:$0xff] }
 0x2f0   : > { %v2267_v3 = vmul.f32 %v2251_v56, %v2251_v56  ;;  %2891 = vmatprep.mubr.f32.mxu1 %v9792_v62  ;;  %v6122_v8 = vpack.c.bf16 %v2251_v56, %v2243_v26  ;;  %v3111_v46 = vrot.slane %v3110_v25, 4  ;;  %v3095_v23 = vadd.f32 %v3094_v47, %v8688_v61 }
 0x2f1   : > { %v2268_v19 = vmul.f32 %v2252_v35, %v2252_v35  ;;  %v6120_v60 = vpack.c.bf16 %v2252_v35, %v2244_v43  ;;  %v2288_v28 = vrot.slane %v2287_v39, 1  ;;  %v2294_v53 = vadd.f32 %v2293_v16, %v2292_v36 }
 0x2f2   : > { %v2311_v10 = vadd.f32 %v2267_v3, %v2259_v50  ;;  %v3112_v44 = vadd.f32 %v3111_v46, %v3110_v25  ;;  %v3119_v32 = vadd.f32 %v3118_v18, %v3117_v0  ;;  %vm9803_vm1 = vcmask 1040384   ;;  %v8873_v50 = vld [vmem:[%s9220_s4 + $0x8] sm:$0xff]  ;;  %v8883_v3 = vld [vmem:[%s9222_s6] sm:$0xff] }
 0x2f3   : > { %5723 = vmatmul.mubr.msk.f32.gmra.mrb[14].mxu1 %vm9801_vm13, %v9800_v57  ;;  %v2318_v49 = vadd.f32 %v2268_v19, %v2260_v9  ;;  %6121 = vmatprep.subr.bf16.mxu1 %v6120_v60  ;;  %v2289_v5 = vadd.f32 %v2288_v28, %v2287_v39  ;;  %v2295_v58 = vrot.slane %v2294_v53, 1  ;;  %vm9805_vm12 = vmmov %vm9803_vm1  ;;  %vm5587_vm15 = vcmask 523264  }
 0x2f4   : > { %6123 = vmatpush1.bf16.msra.mxu1 %v6122_v8  ;;  %3039 = vmatprep.mubr.f32.mxu1 %v9792_v62  ;;  %v2312_v33 = vrot.slane %v2311_v10, 4  ;;  %v3113_v12 = vrot.slane %v3112_v44, 2  ;;  %v3120_v63 = vrot.slane %v3119_v32, 2  ;;  %vm9807_vm14 = vmmov %vm9803_vm1  ;;  %vm5590_vm7 = vcmask 654336  }
 0x2f5   : > { %v3126_v30 = vadd.f32 %v3088_v41, %v2289_v5  ;;  %v2296_v40 = vadd.f32 %v2295_v58, %v2294_v53  ;;  %v2319_v24 = vrot.slane %v2318_v49, 4  ;;  %v4348_v7 = vsel %vm9807_vm14, %v9806_v51, 0.0  ;;  %vm9809_vm3 = vmmov %vm9803_vm1  ;;  %v8896_v41 = vld [vmem:[%s9222_s6 + $0x8] sm:$0xff] }
 0x2f6   : > { %v2313_v1 = vadd.f32 %v2312_v33, %v2311_v10  ;;  %v3114_v21 = vadd.f32 %v3113_v12, %v3112_v44  ;;  %v3121_v14 = vadd.f32 %v3120_v63, %v3119_v32  ;;  %v4642_v27 = vsel %vm9809_vm3, %v9808_v54, 0.0  ;;  %vm9810_vm0 = vmmov %vm9803_vm1 }
 0x2f7   : > { %5726 = vmatmul.mubr.msk.f32.vlgmr.msra.gmra.mrb[16].mxu1 %vm9802_vm6, %v9798_v48  ;;  %v3760_v45 = vsel %vm9803_vm1, %v3126_v30, 0.0  ;;  %v3127_v6 = vadd.f32 %v3095_v23, %v2296_v40  ;;  %v2320_v11 = vadd.f32 %v2319_v24, %v2318_v49  ;;  %vm9811_vm10 = vmmov %vm9810_vm0  ;;  %vm5593_vm13 = vcmask 785408  }
 0x2f8   : > { %3761 = vadd.xlane.f32.xlu1 %v3760_v45  ;;  %3045 = vmatprep.mubr.f32.mxu1 %v9792_v62  ;;  %v2314_v37 = vrot.slane %v2313_v1, 2  ;;  %v3115_v20 = vrot.slane %v3114_v21, 1  ;;  %v3122_v42 = vrot.slane %v3121_v14, 1  ;;  %vm5596_vm6 = vcmask 916480  }
 0x2f9   : > { %v2321_v61 = vrot.slane %v2320_v11, 2  ;;  %v4054_v13 = vsel %vm9805_vm12, %v3127_v6, 0.0 }
 0x2fa   : > { %v2315_v22 = vadd.f32 %v2314_v37, %v2313_v1  ;;  %v3116_v17 = vadd.f32 %v3115_v20, %v3114_v21  ;;  %v3123_v2 = vadd.f32 %v3122_v42, %v3121_v14 }
 0x2fb   : > { %5727 = vmatmul.mubr.msk.f32.gmra.mrb[18].mxu1 %vm9804_vm11, %v9800_v57  ;;  %v2322_v31 = vadd.f32 %v2321_v61, %v2320_v11 }
 0x2fc   : > { %4055 = vadd.xlane.f32.xlu1 %v4054_v13  ;;  %v2316_v52 = vrot.slane %v2315_v22, 1 }
 0x2fd   : > { %v2323_v62 = vrot.slane %v2322_v31, 1 }
 0x2fe   : > { %v2317_v26 = vadd.f32 %v2316_v52, %v2315_v22 }
 0x2ff   : > { %v2324_v43 = vadd.f32 %v2323_v62, %v2322_v31 }
 0x300   : > { %4349 = vadd.xlane.f32.xlu1 %v4348_v7  ;;  %v3130_v34 = vadd.f32 %v3116_v17, %v2317_v26 }
 0x301   : > { %v3131_v55 = vadd.f32 %v3123_v2, %v2324_v43 }
 0x302   : > { %v4936_v59 = vsel %vm9810_vm0, %v3130_v34, 0.0 }
 0x303   : > { %v5230_v0 = vsel %vm9811_vm10, %v3131_v55, 0.0 }
 0x304   : > { %4643 = vadd.xlane.f32.xlu1 %v4642_v27 }
 0x308   : > { %4937 = vadd.xlane.f32.xlu1 %v4936_v59 }
 0x30c   : > { %5231 = vadd.xlane.f32.xlu1 %v5230_v0 }
 0x31e   : > { %v3776_v4 = vpop.xlane.xlu0 %3775 }
 0x31f   : > { %v3780_v36 = vadd.f32 %v8867_v15, %v3776_v4 }
 0x321   : > { %v4025_v9 = vmul.f32 %v3780_v36, %v3780_v36 }
 0x322   : > { %v4070_v38 = vpop.xlane.xlu0 %4069  ;;  %v3779_v47 = vpop.xlane.xlu1 %3778 }
 0x323   : > { %v3781_v56 = vadd.f32 %v8873_v50, %v3779_v47  ;;  %v4074_v48 = vadd.f32 %v8867_v15, %v4070_v38  ;;  %v4029_v53 = vsel %vm1409_vm4, %v4025_v9, 0.0 }
 0x325   : > { %v8876_v29 = vpack.c.bf16 %v3781_v56, %v3780_v36  ;;  %v4026_v25 = vmul.f32 %v3781_v56, %v3781_v56  ;;  %v4319_v60 = vmul.f32 %v4074_v48, %v4074_v48 }
 0x326   : > { %v4073_v35 = vpop.xlane.xlu0 %4072 }
 0x327   : > { %v3788_v39 = vpop.xlane.xlu1 %3787  ;;  %v4075_v16 = vadd.f32 %v8873_v50, %v4073_v35  ;;  %v4030_v19 = vsel %vm1409_vm4, %v4026_v25, 0.0  ;;  %v4323_v33 = vsel %vm1409_vm4, %v4319_v60, 0.0 }
 0x328   : > { %v3792_v8 = vadd.f32 %v8883_v3, %v3788_v39  ;;  %v4031_v23 = vadd.f32 %v4030_v19, %v4029_v53 }
 0x329   : > { %v8886_v46 = vpack.c.bf16 %v4075_v16, %v4074_v48  ;;  %v4320_v18 = vmul.f32 %v4075_v16, %v4075_v16 }
 0x32a   : > { %v4027_v28 = vmul.f32 %v3792_v8, %v3792_v8 }
 0x32b   : > { %v4082_v10 = vpop.xlane.xlu1 %4081  ;;  %v3791_v44 = vpop.xlane.xlu0 %3790  ;;  %v4324_v49 = vsel %vm1409_vm4, %v4320_v18, 0.0 }
 0x32c   : > { %v4032_v57 = vsel %vm1409_vm4, %v4027_v28, 0.0  ;;  %v4086_v5 = vadd.f32 %v8883_v3, %v4082_v10  ;;  %v3793_v58 = vadd.f32 %v8896_v41, %v3791_v44  ;;  %v4325_v24 = vadd.f32 %v4324_v49, %v4323_v33 }
 0x32d   : > { %v4033_v12 = vadd.f32 %v4032_v57, %v4031_v23 }
 0x32e   : > { %v4321_v32 = vmul.f32 %v4086_v5, %v4086_v5  ;;  %v8900_v30 = vpack.c.bf16 %v3793_v58, %v3792_v8  ;;  %v4028_v40 = vmul.f32 %v3793_v58, %v3793_v58 }
 0x32f   : > { %v4364_v1 = vpop.xlane.xlu1 %4363  ;;  %v4085_v45 = vpop.xlane.xlu0 %4084 }
 0x330   : > { %v4326_v6 = vsel %vm1409_vm4, %v4321_v32, 0.0  ;;  %v4034_v11 = vsel %vm1409_vm4, %v4028_v40, 0.0  ;;  %v4087_v37 = vadd.f32 %v8896_v41, %v4085_v45  ;;  %v4368_v13 = vadd.f32 %v8867_v15, %v4364_v1 }
 0x331   : > { %v4035_v21 = vadd.f32 %v4034_v11, %v4033_v12  ;;  %v4327_v22 = vadd.f32 %v4326_v6, %v4325_v24 }
 0x332   : > { %v8905_v61 = vpack.c.bf16 %v4087_v37, %v4086_v5  ;;  %v4322_v63 = vmul.f32 %v4087_v37, %v4087_v37  ;;  %v4613_v7 = vmul.f32 %v4368_v13, %v4368_v13 }
 0x333   : > { %v4658_v31 = vpop.xlane.xlu1 %4657  ;;  %4036 = vadd.xlane.f32.xlu0 %v4035_v21  ;;  %v4367_v20 = vpop.xlane.xlu0 %4366 }
 0x334   : > { %v4328_v52 = vsel %vm1409_vm4, %v4322_v63, 0.0  ;;  %v4369_v14 = vadd.f32 %v8873_v50, %v4367_v20  ;;  %v4662_v26 = vadd.f32 %v8867_v15, %v4658_v31  ;;  %v4617_v59 = vsel %vm1409_vm4, %v4613_v7, 0.0 }
 0x335   : > { %v4329_v51 = vadd.f32 %v4328_v52, %v4327_v22 }
 0x336   : > { %v8911_v62 = vpack.c.bf16 %v4369_v14, %v4368_v13  ;;  %v4614_v17 = vmul.f32 %v4369_v14, %v4369_v14  ;;  %v4907_v55 = vmul.f32 %v4662_v26, %v4662_v26 }
 0x337   : > { %v4376_v42 = vpop.xlane.xlu1 %4375  ;;  %4330 = vadd.xlane.f32.xlu0 %v4329_v51  ;;  %v4661_v27 = vpop.xlane.xlu0 %4660 }
 0x338   : > { %v4380_v54 = vadd.f32 %v8883_v3, %v4376_v42  ;;  %v4618_v34 = vsel %vm1409_vm4, %v4614_v17, 0.0  ;;  %v4663_v43 = vadd.f32 %v8873_v50, %v4661_v27  ;;  %v4911_v39 = vsel %vm1409_vm4, %v4907_v55, 0.0 }
 0x339   : > { %v4619_v36 = vadd.f32 %v4618_v34, %v4617_v59 }
 0x33a   : > { %v4615_v2 = vmul.f32 %v4380_v54, %v4380_v54  ;;  %v8917_v0 = vpack.c.bf16 %v4663_v43, %v4662_v26  ;;  %v4908_v4 = vmul.f32 %v4663_v43, %v4663_v43 }
 0x33b   : > { %v4670_v38 = vpop.xlane.xlu1 %4669 }
 0x33c   : > { %v4674_v47 = vadd.f32 %v8883_v3, %v4670_v38  ;;  %v4379_v56 = vpop.xlane.xlu0 %4378  ;;  %v4620_v25 = vsel %vm1409_vm4, %v4615_v2, 0.0  ;;  %v4912_v48 = vsel %vm1409_vm4, %v4908_v4, 0.0 }
 0x33d   : > { %v4381_v35 = vadd.f32 %v8896_v41, %v4379_v56  ;;  %v4621_v18 = vadd.f32 %v4620_v25, %v4619_v36  ;;  %v4913_v19 = vadd.f32 %v4912_v48, %v4911_v39 }
 0x33e   : > { %v4909_v9 = vmul.f32 %v4674_v47, %v4674_v47 }
 0x33f   : > { %v8924_v16 = vpack.c.bf16 %v4381_v35, %v4380_v54  ;;  %v4616_v8 = vmul.f32 %v4381_v35, %v4381_v35 }
 0x340   : > { %v4914_v28 = vsel %vm1409_vm4, %v4909_v9, 0.0 }
 0x341   : > { %v4673_v60 = vpop.xlane.xlu0 %4672  ;;  %v4622_v53 = vsel %vm1409_vm4, %v4616_v8, 0.0  ;;  %v4915_v5 = vadd.f32 %v4914_v28, %v4913_v19 }
 0x342   : > { %v4675_v10 = vadd.f32 %v8896_v41, %v4673_v60  ;;  %v4623_v44 = vadd.f32 %v4622_v53, %v4621_v18 }
 0x344   : > { %v8929_v57 = vpack.c.bf16 %v4675_v10, %v4674_v47  ;;  %v4910_v49 = vmul.f32 %v4675_v10, %v4675_v10  ;;  %4624 = vadd.xlane.f32.xlu0 %v4623_v44 }
 0x346   : > { %v4916_v58 = vsel %vm1409_vm4, %v4910_v49, 0.0 }
 0x347   : > { %v4917_v23 = vadd.f32 %v4916_v58, %v4915_v5 }
 0x349   : > { %4918 = vadd.xlane.f32.xlu0 %v4917_v23 }
 0x34d   : > { %v8932_v32 = vpop.f32.mrb[4].mxu0 }
 0x34e   : > { %v4952_v33 = vpop.xlane.xlu1 %4951  ;;  %v8934_v12 = vpop.f32.mrb[5].mxu0 }
 0x34f   : > { %v4956_v24 = vadd.f32 %v8867_v15, %v4952_v33 }
 0x351   : > { %v4955_v40 = vpop.xlane.xlu0 %4954  ;;  %v8940_v37 = vpop.f32.mrb[6].mxu0  ;;  %v5201_v13 = vmul.f32 %v4956_v24, %v4956_v24 }
 0x352   : > { %v4957_v1 = vadd.f32 %v8873_v50, %v4955_v40  ;;  %v5246_v45 = vpop.xlane.xlu1 %5245  ;;  %v8944_v21 = vpack.c.bf16 %v8940_v37, %v8932_v32  ;;  %v8946_v22 = vpop.f32.mrb[7].mxu0 }
 0x353   : > { %v5250_v31 = vadd.f32 %v8867_v15, %v5246_v45  ;;  %v8952_v14 = vpack.c.bf16 %v8946_v22, %v8934_v12  ;;  %v5205_v15 = vsel %vm1409_vm4, %v5201_v13, 0.0 }
 0x354   : > { %v8938_v6 = vpack.c.bf16 %v4957_v1, %v4956_v24  ;;  %v5202_v11 = vmul.f32 %v4957_v1, %v4957_v1 }
 0x355   : > { %v5249_v63 = vpop.xlane.xlu0 %5248  ;;  %v8958_v42 = vpop.f32.mrb[8].mxu0 }
 0x356   : > { %v5251_v52 = vadd.f32 %v8873_v50, %v5249_v63  ;;  %v4964_v20 = vpop.xlane.xlu1 %4963  ;;  %v5206_v7 = vsel %vm1409_vm4, %v5202_v11, 0.0  ;;  %v8960_v34 = vpop.f32.mrb[9].mxu0  ;;  %v5495_v50 = vmul.f32 %v5250_v31, %v5250_v31 }
 0x357   : > { %v4968_v51 = vadd.f32 %v8883_v3, %v4964_v20  ;;  %v5207_v59 = vadd.f32 %v5206_v7, %v5205_v15 }
 0x358   : > { %v8956_v26 = vpack.c.bf16 %v5251_v52, %v5250_v31  ;;  %v5496_v17 = vmul.f32 %v5251_v52, %v5251_v52  ;;  %v5499_v8 = vsel %vm1409_vm4, %v5495_v50, 0.0 }
 0x359   : > { %v5203_v54 = vmul.f32 %v4968_v51, %v4968_v51  ;;  %v4967_v27 = vpop.xlane.xlu0 %4966  ;;  %v8969_v56 = vpop.f32.mrb[10].mxu0 }
 0x35a   : > { %v4969_v43 = vadd.f32 %v8896_v41, %v4967_v27  ;;  %v5258_v2 = vpop.xlane.xlu1 %5257  ;;  %v5500_v38 = vsel %vm1409_vm4, %v5496_v17, 0.0  ;;  %v8973_v35 = vpack.c.bf16 %v8969_v56, %v8958_v42  ;;  %v8975_v39 = vpop.f32.mrb[11].mxu0 }
 0x35b   : > { %v5208_v55 = vsel %vm1409_vm4, %v5203_v54, 0.0  ;;  %v5262_v4 = vadd.f32 %v8883_v3, %v5258_v2  ;;  %v8982_v19 = vpack.c.bf16 %v8975_v39, %v8960_v34  ;;  %v5501_v28 = vadd.f32 %v5500_v38, %v5499_v8 }
 0x35c   : > { %v8967_v36 = vpack.c.bf16 %v4969_v43, %v4968_v51  ;;  %v5204_v47 = vmul.f32 %v4969_v43, %v4969_v43  ;;  %v5209_v25 = vadd.f32 %v5208_v55, %v5207_v59 }
 0x35d   : > { %v5497_v48 = vmul.f32 %v5262_v4, %v5262_v4  ;;  %v5261_v9 = vpop.xlane.xlu0 %5260  ;;  %v5902_v58 = vpop.f32.mrb[12].mxu0 }
 0x35e   : > { %v5210_v3 = vsel %vm1409_vm4, %v5204_v47, 0.0  ;;  %v5263_v18 = vadd.f32 %v8896_v41, %v5261_v9  ;;  %v3272_v24 = vpop.f32.mrb[13].mxu0 }
 0x35f   : > { %v3135_v60 = vpop.xlane.xlu1 %3134  ;;  %v5502_v53 = vsel %vm1409_vm4, %v5497_v48, 0.0  ;;  %v5211_v44 = vadd.f32 %v5210_v3, %v5209_v25  ;;  %v6132_v11 = vpack.c.bf16 %v5902_v58, %v3272_v24  ;;  %5907 = vmatprep.mubr.msk.f32.mxu1 %vm1409_vm4, %v3272_v24 }
 0x360   : > { %v3136_v10 = vrot.slane %v3135_v60, 4  ;;  %v8985_v49 = vpack.c.bf16 %v5263_v18, %v5262_v4  ;;  %v5498_v5 = vmul.f32 %v5263_v18, %v5263_v18  ;;  %v5503_v23 = vadd.f32 %v5502_v53, %v5501_v28 }
 0x361   : > { %v3449_v40 = vpop.xlane.xlu0 %3448  ;;  %5212 = vadd.xlane.f32.xlu0 %v5211_v44  ;;  %6134 = vmatprep.subr.msk.bf16.mxu1 %vm8989_vm2, %v6132_v11 }
 0x362   : > { %v3137_v33 = vadd.f32 %v3136_v10, %v3135_v60  ;;  %v5504_v1 = vsel %vm1409_vm4, %v5498_v5, 0.0  ;;  %v3450_v45 = vrot.slane %v3449_v40, 4  ;;  %6137 = vmatpush3.bf16.xpose.msk.msra.mxu1 %vm8989_vm2, %v6132_v11 }
 0x363   : > { %v3468_v63 = vpop.xlane.xlu1 %3467  ;;  %v5505_v52 = vadd.f32 %v5504_v1, %v5503_v23  ;;  %6139 = vmatprep.subr.bf16.mxu1 %v8944_v21 }
 0x364   : > { %v3138_v13 = vrot.slane %v3137_v33, 2  ;;  %v3469_v31 = vrot.slane %v3468_v63, 4  ;;  %v3451_v20 = vadd.f32 %v3450_v45, %v3449_v40 }
 0x365   : > { %v3743_v7 = vpop.xlane.xlu0 %3742  ;;  %5506 = vadd.xlane.f32.xlu0 %v5505_v52  ;;  %v5927_v2 = vpop.f32.mrb[14].mxu0 }
 0x366   : > { %v3470_v51 = vadd.f32 %v3469_v31, %v3468_v63  ;;  %v3139_v17 = vadd.f32 %v3138_v13, %v3137_v33  ;;  %v3452_v54 = vrot.slane %v3451_v20, 2  ;;  %v3744_v27 = vrot.slane %v3743_v7, 4  ;;  %v3566_v55 = vpop.f32.mrb[15].mxu0 }
 0x367   : > { %v6150_v25 = vpack.c.bf16 %v5927_v2, %v3566_v55  ;;  %5932 = vmatprep.mubr.msk.f32.mxu0 %vm1409_vm4, %v3566_v55 }
 0x368   : > { %v3471_v15 = vrot.slane %v3470_v51, 2  ;;  %v3140_v50 = vrot.slane %v3139_v17, 1  ;;  %v3745_v43 = vadd.f32 %v3744_v27, %v3743_v7  ;;  %v3453_v59 = vadd.f32 %v3452_v54, %v3451_v20 }
 0x369   : > { %6152 = vmatprep.subr.msk.bf16.mxu0 %vm8989_vm2, %v6150_v25  ;;  %5908 = vmatmul.mubr.msk.f32.vlgmr.msra.gmra.mrb[20].mxu1 %vm1409_vm4, %v5902_v58 }
 0x36a   : > { %v3141_v4 = vadd.f32 %v3140_v50, %v3139_v17  ;;  %v3472_v38 = vadd.f32 %v3471_v15, %v3470_v51  ;;  %v3746_v47 = vrot.slane %v3745_v43, 2  ;;  %v3454_v48 = vrot.slane %v3453_v59, 1  ;;  %6155 = vmatpush3.bf16.xpose.msk.msra.mxu0 %vm8989_vm2, %v6150_v25  ;;  %6141 = vmatpush3.bf16.xpose.msra.mxu1 %v8944_v21  ;;  %v9815_v21 = vld [vmem:[#allocation74_spill] sm:$0xff] }
 0x36b   : > { %5914 = vmatprep.mubr.f32.mxu1 %v8932_v32  ;;  %6157 = vmatprep.subr.bf16.mxu0 %v8952_v14  ;;  %v9814_v32 = vld [vmem:[#allocation41_spill] sm:$0xff] }
 0x36c   : > { %6300 = vpush %v3141_v4  ;;  %v3473_v9 = vrot.slane %v3472_v38, 1  ;;  %v3455_v8 = vadd.f32 %v3454_v48, %v3453_v59  ;;  %v3747_v3 = vadd.f32 %v3746_v47, %v3745_v43  ;;  %6161 = vmatprep.subr.bf16.mxu1 %v8876_v29 }
 0x36e   : > { %v3474_v18 = vadd.f32 %v3473_v9, %v3472_v38  ;;  %6302 = vpush %v3455_v8  ;;  %v3748_v60 = vrot.slane %v3747_v3, 1 }
 0x370   : > { %6304 = vpush %v3474_v18  ;;  %v3749_v28 = vadd.f32 %v3748_v60, %v3747_v3 }
 0x371   : > { %5933 = vmatmul.mubr.msk.f32.vlgmr.msra.gmra.mrb[16].mxu0 %vm1409_vm4, %v5927_v2  ;;  %5915 = vmatmul.mubr.f32.vlgmr.msra.gmra.mrb[20].mxu1 %v8940_v37 }
 0x372   : > { %6306 = vpush %v3749_v28  ;;  %6159 = vmatpush3.bf16.xpose.msra.mxu0 %v8952_v14  ;;  %5939 = vmatprep.mubr.f32.mxu0 %v8934_v12 }
 0x373   : > { %6163 = vmatpush3.bf16.msra.mxu1 %v8876_v29  ;;  %5950 = vmatprep.mubr.msk.f32.mxu1 %vm3199_vm8, %v9814_v32 }
 0x374   : > { %6179 = vmatprep.subr.bf16.mxu0 %v8886_v46  ;;  %6165 = vmatprep.subr.bf16.mxu1 %v8900_v30 }
 0x377   : > { %6167 = vmatpush3.bf16.msra.mxu1 %v8900_v30 }
 0x379   : > { %5940 = vmatmul.mubr.f32.vlgmr.msra.gmra.mrb[16].mxu0 %v8946_v22 }
 0x37a   : > { %5951 = vmatmul.mubr.msk.f32.vlgmr.msra.gmra.mrb[22].mxu1 %vm3199_vm8, %v9815_v21  ;;  %6181 = vmatpush3.bf16.msra.mxu0 %v8886_v46 }
 0x37b   : > { %5975 = vmatprep.mubr.msk.f32.mxu0 %vm3199_vm8, %v9814_v32  ;;  %6183 = vmatprep.subr.bf16.mxu0 %v8905_v61 }
 0x37e   : > { %6185 = vmatpush3.bf16.msra.mxu0 %v8905_v61 }
 0x381   : > { %5976 = vmatmul.mubr.msk.f32.vlgmr.msra.gmra.mrb[18].mxu0 %vm3199_vm8, %v9815_v21 }
 0x385   : > { %v3762_v29 = vpop.xlane.xlu1 %3761 }
 0x386   : > { %v3763_v12 = vrot.slane %v3762_v29, 4 }
 0x388   : > { %v3764_v30 = vadd.f32 %v3763_v12, %v3762_v29 }
 0x389   : > { %v4056_v46 = vpop.xlane.xlu1 %4055 }
 0x38a   : > { %v3765_v37 = vrot.slane %v3764_v30, 2  ;;  %v4057_v61 = vrot.slane %v4056_v46, 4 }
 0x38c   : > { %v3766_v22 = vadd.f32 %v3765_v37, %v3764_v30  ;;  %v4058_v44 = vadd.f32 %v4057_v61, %v4056_v46 }
 0x38d   : > { %v4350_v10 = vpop.xlane.xlu1 %4349 }
 0x38e   : > { %v3767_v14 = vrot.slane %v3766_v22, 1  ;;  %v4351_v5 = vrot.slane %v4350_v10, 4  ;;  %v4059_v33 = vrot.slane %v4058_v44, 2 }
 0x390   : > { %v3768_v53 = vadd.f32 %v3767_v14, %v3766_v22  ;;  %v4352_v40 = vadd.f32 %v4351_v5, %v4350_v10  ;;  %v4060_v17 = vadd.f32 %v4059_v33, %v4058_v44 }
 0x391   : > { %v4644_v31 = vpop.xlane.xlu1 %4643 }
 0x392   : > { %6308 = vpush %v3768_v53  ;;  %v4353_v20 = vrot.slane %v4352_v40, 2  ;;  %v4061_v59 = vrot.slane %v4060_v17, 1  ;;  %v4645_v4 = vrot.slane %v4644_v31, 4 }
 0x394   : > { %v4354_v55 = vadd.f32 %v4353_v20, %v4352_v40  ;;  %v4062_v60 = vadd.f32 %v4061_v59, %v4060_v17  ;;  %v4646_v29 = vadd.f32 %v4645_v4, %v4644_v31 }
 0x395   : > { %v4938_v9 = vpop.xlane.xlu1 %4937 }
 0x396   : > { %v4355_v28 = vrot.slane %v4354_v55, 1  ;;  %v4939_v12 = vrot.slane %v4938_v9, 4  ;;  %v4647_v14 = vrot.slane %v4646_v29, 2 }
 0x398   : > { %v4356_v22 = vadd.f32 %v4355_v28, %v4354_v55  ;;  %v4940_v53 = vadd.f32 %v4939_v12, %v4938_v9  ;;  %v4648_v33 = vadd.f32 %v4647_v14, %v4646_v29 }
 0x399   : > { %v5232_v55 = vpop.xlane.xlu1 %5231 }
 0x39a   : > { %v4941_v44 = vrot.slane %v4940_v53, 2 }
 0x39c   : > { %v4942_v20 = vadd.f32 %v4941_v44, %v4940_v53 }
 0x39d   : > { %s9030_s15 = spop %6300 }
 0x39f   : > { %s9032_s25 = spop %6302 }
 0x3a0   : > { %s3457_s26 = sadd.f32 %s9032_s25, %s9030_s15 }
 0x3a1   : > { %s6305_s21 = spop %6304 }
 0x3a2   : > { %s3460_s27 = smul.f32 1.230315e-05, %s3457_s26 }
 0x3a3   : > { %s6307_s24 = spop %6306 }
 0x3a4   : > { %s3751_s11 = sadd.f32 %s6307_s24, %s6305_s21 }
 0x3a6   : > { %s3754_s14 = smul.f32 1.230315e-05, %s3751_s11 }
 0x3c0   : > { %v4037_v1 = vpop.xlane.xlu0 %4036 }
 0x3c1   : > { %v4038_v63 = vrot.slane %v4037_v1, 4 }
 0x3c2   : > { %v9036_v58 = vpop.f32.mrb[12].mxu1 }
 0x3c3   : > { %v9038_v23 = vpop.f32.mrb[13].mxu1  ;;  %v4039_v52 = vadd.f32 %v4038_v63, %v4037_v1  ;;  %s6309_s20 = spop %6308 }
 0x3c4   : > { %v4331_v7 = vpop.xlane.xlu0 %4330 }
 0x3c5   : > { %v4040_v54 = vrot.slane %v4039_v52, 2  ;;  %v4332_v27 = vrot.slane %v4331_v7, 4 }
 0x3c6   : > { %v9040_v24 = vpop.f32.mrb[14].mxu1 }
 0x3c7   : > { %v9044_v45 = vpack.c.bf16 %v9040_v24, %v9036_v58  ;;  %v9046_v11 = vpop.f32.mrb[15].mxu1  ;;  %v4333_v50 = vadd.f32 %v4332_v27, %v4331_v7  ;;  %v4041_v43 = vadd.f32 %v4040_v54, %v4039_v52  ;;  %v4649_v52 = vrot.slane %v4648_v33, 1 }
 0x3c8   : > { %v9050_v13 = vpack.c.bf16 %v9046_v11, %v9038_v23 }
 0x3c9   : > { %v4334_v38 = vrot.slane %v4333_v50, 2  ;;  %v4042_v48 = vrot.slane %v4041_v43, 1 }
 0x3ca   : > { %v9052_v51 = vpop.f32.mrb[16].mxu1 }
 0x3cb   : > { %v9054_v15 = vpop.f32.mrb[17].mxu1  ;;  %v4043_v3 = vadd.f32 %v4042_v48, %v4041_v43  ;;  %v4335_v18 = vadd.f32 %v4334_v38, %v4333_v50  ;;  %v4650_v50 = vadd.f32 %v4649_v52, %v4648_v33  ;;  %v4943_v43 = vrot.slane %v4942_v20, 1 }
 0x3cc   : > { %v5233_v48 = vrot.slane %v5232_v55, 4 }
 0x3cd   : > { %6310 = vpush %v4043_v3  ;;  %v4336_v30 = vrot.slane %v4335_v18, 1  ;;  %v4944_v38 = vadd.f32 %v4943_v43, %v4942_v20 }
 0x3ce   : > { %v9056_v2 = vpop.f32.mrb[18].mxu1  ;;  %6312 = vpush %v4062_v60  ;;  %v5234_v9 = vadd.f32 %v5233_v48, %v5232_v55 }
 0x3cf   : > { %v9060_v47 = vpack.c.bf16 %v9056_v2, %v9052_v51  ;;  %v9062_v25 = vpop.f32.mrb[19].mxu1  ;;  %v4337_v37 = vadd.f32 %v4336_v30, %v4335_v18 }
 0x3d0   : > { %v9066_v8 = vpack.c.bf16 %v9062_v25, %v9054_v15  ;;  %v5235_v3 = vrot.slane %v5234_v9, 2 }
 0x3d1   : > { %v4625_v46 = vpop.xlane.xlu0 %4624  ;;  %6314 = vpush %v4337_v37 }
 0x3d2   : > { %v4626_v61 = vrot.slane %v4625_v46, 4  ;;  %6316 = vpush %v4356_v22  ;;  %v5236_v12 = vadd.f32 %v5235_v3, %v5234_v9 }
 0x3d4   : > { %v4627_v10 = vadd.f32 %v4626_v61, %v4625_v46  ;;  %v5237_v53 = vrot.slane %v5236_v12, 1 }
 0x3d6   : > { %v4919_v5 = vpop.xlane.xlu0 %4918  ;;  %v4628_v40 = vrot.slane %v4627_v10, 2 }
 0x3d7   : > { %v4920_v1 = vrot.slane %v4919_v5, 4 }
 0x3d8   : > { %v4629_v31 = vadd.f32 %v4628_v40, %v4627_v10 }
 0x3d9   : > { %v4921_v63 = vadd.f32 %v4920_v1, %v4919_v5  ;;  %v5238_v5 = vadd.f32 %v5237_v53, %v5236_v12  ;;  %v9074_v1 = vld [vmem:[%s9224_s8 + $0x8] sm:$0xff] }
 0x3da   : > { %v4630_v17 = vrot.slane %v4629_v31, 1 }
 0x3db   : > { %v4922_v7 = vrot.slane %v4921_v63, 2 }
 0x3dc   : > { %v4631_v54 = vadd.f32 %v4630_v17, %v4629_v31  ;;  %v9079_v31 = vld [vmem:[%s9224_s8] sm:$0xff] }
 0x3dd   : > { %v4923_v27 = vadd.f32 %v4922_v7, %v4921_v63  ;;  %v3461_v63 = vstv %s3460_s27 }
 0x3de   : > { %6318 = vpush %v4631_v54  ;;  %v3463_v20 = vmul.f32 %v3461_v63, %v9074_v1  ;;  %v3462_v54 = vmul.f32 %v3461_v63, %v9079_v31 }
 0x3df   : > { %v4924_v59 = vrot.slane %v4923_v27, 1  ;;  %6320 = vpush %v4650_v50 }
 0x3e1   : > { %v4925_v4 = vadd.f32 %v4924_v59, %v4923_v27  ;;  %v3755_v59 = vstv %s3754_s14 }
 0x3e2   : > { %v3756_v3 = vmul.f32 %v3755_v59, %v9079_v31 }
 0x3e3   : > { %6322 = vpush %v4925_v4  ;;  %v3757_v4 = vmul.f32 %v3755_v59, %v9074_v1 }
 0x3e4   : > { %6324 = vpush %v4944_v38 }
 0x3ee   : > { %v5213_v18 = vpop.xlane.xlu0 %5212 }
 0x3ef   : > { %v5214_v60 = vrot.slane %v5213_v18, 4 }
 0x3f1   : > { %v5215_v28 = vadd.f32 %v5214_v60, %v5213_v18 }
 0x3f2   : > { %v5507_v29 = vpop.xlane.xlu0 %5506 }
 0x3f3   : > { %v5216_v30 = vrot.slane %v5215_v28, 2  ;;  %v5508_v37 = vrot.slane %v5507_v29, 4 }
 0x3f5   : > { %v5509_v22 = vadd.f32 %v5508_v37, %v5507_v29  ;;  %v5217_v14 = vadd.f32 %v5216_v30, %v5215_v28 }
 0x3f7   : > { %v5510_v46 = vrot.slane %v5509_v22, 2  ;;  %v5218_v61 = vrot.slane %v5217_v14, 1 }
 0x3f9   : > { %v5219_v10 = vadd.f32 %v5218_v61, %v5217_v14  ;;  %v5511_v44 = vadd.f32 %v5510_v46, %v5509_v22 }
 0x3fb   : > { %6326 = vpush %v5219_v10  ;;  %v5512_v33 = vrot.slane %v5511_v44, 1 }
 0x3fc   : > { %6328 = vpush %v5238_v5 }
 0x3fd   : > { %v5513_v40 = vadd.f32 %v5512_v33, %v5511_v44 }
 0x3fe   : > { %s6311_s22 = spop %6310 }
 0x3ff   : > { %6330 = vpush %v5513_v40  ;;  %s4045_s15 = sadd.f32 %s6311_s22, %s6309_s20  ;;  %s6313_s25 = spop %6312 }
 0x401   : > { %s4048_s26 = smul.f32 1.230315e-05, %s4045_s15 }
 0x402   : > { %s6315_s27 = spop %6314 }
 0x403   : > { %s4339_s21 = sadd.f32 %s6315_s27, %s6313_s25  ;;  %s6317_s11 = spop %6316 }
 0x404   : > { %s6456_s25 = smov 64  }
 0x405   : > { %s4342_s24 = smul.f32 1.230315e-05, %s4339_s21 }
 0x40f   : > { %s6319_s12 = spop %6318 }
 0x410   : > { %s4633_s23 = sadd.f32 %s6319_s12, %s6317_s11  ;;  %s6321_s14 = spop %6320 }
 0x414   : > { %s6323_s20 = spop %6322 }
 0x415   : > { %s4927_s22 = sadd.f32 %s6323_s20, %s6321_s14  ;;  %s6325_s27 = spop %6324 }
 0x416   : > { %s6458_s14 = smov 96   ;;  %s320_s20 = sand.u32 1, %s6427_s30  }
 0x417   : > { %s4930_s15 = smul.f32 1.230315e-05, %s4927_s22  ;;  %s5701_s22 = sshll.u32 %s320_s20, 4 }
 0x418   : > { %s322_s30 = scalar_lea.vmem [#allocation2], %s5701_s22 }
 0x42c   : > { %s6327_s21 = spop %6326 }
 0x444   : > { %v5916_v52 = vpop.f32.mrb[20].mxu1 }
 0x445   : > { %v3459_v7 = vmul.f32 0.007480315, %v5916_v52  ;;  %v3428_v17 = vpop.f32.mrb[21].mxu1 }
 0x446   : > { %v3458_v27 = vmul.f32 0.007480315, %v3428_v17 }
 0x447   : > { %v9083_v50 = vadd.f32 %v3463_v20, %v3459_v7 }
 0x448   : > { %v9085_v43 = vadd.f32 %v3462_v54, %v3458_v27 }
 0x44c   : > { %v5941_v55 = vpop.f32.mrb[16].mxu0 }
 0x44d   : > { %v3753_v38 = vmul.f32 0.007480315, %v5941_v55  ;;  %v3722_v48 = vpop.f32.mrb[17].mxu0  ;;  %v5952_v9 = vpop.f32.mrb[22].mxu1 }
 0x44e   : > { %v3752_v18 = vmul.f32 0.007480315, %v3722_v48  ;;  %v3860_v60 = vpop.f32.mrb[23].mxu1 }
 0x44f   : > { %v3759_v28 = vadd.f32 %v3757_v4, %v3753_v38  ;;  %v6168_v29 = vpack.c.bf16 %v5952_v9, %v3860_v60  ;;  %5957 = vmatprep.mubr.msk.f32.mxu1 %vm1409_vm4, %v3860_v60 }
 0x450   : > { %v3758_v12 = vadd.f32 %v3756_v3, %v3752_v18 }
 0x451   : > { %6170 = vmatprep.subr.msk.bf16.mxu1 %vm8989_vm2, %v6168_v29  ;;  %5528 = vrot.lane.b32.xlu0 %v3759_v28, %s6453_s19 }
 0x452   : > { %6173 = vmatpush3.bf16.xpose.msk.msra.mxu1 %vm8989_vm2, %v6168_v29  ;;  %5526 = vrot.lane.b32.xlu1 %v3758_v12, %s6453_s19  ;;  %s4636_s19 = smul.f32 1.230315e-05, %s4633_s23 }
 0x453   : > { %6175 = vmatprep.subr.bf16.mxu1 %v9044_v45 }
 0x454   : > { %v5977_v30 = vpop.f32.mrb[18].mxu0 }
 0x455   : > { %v4154_v37 = vpop.f32.mrb[19].mxu0 }
 0x456   : > { %v6186_v22 = vpack.c.bf16 %v5977_v30, %v4154_v37  ;;  %5982 = vmatprep.mubr.msk.f32.mxu0 %vm1409_vm4, %v4154_v37 }
 0x458   : > { %6188 = vmatprep.subr.msk.bf16.mxu0 %vm8989_vm2, %v6186_v22 }
 0x459   : > { %5958 = vmatmul.mubr.msk.f32.vlgmr.msra.gmra.mrb[24].mxu1 %vm1409_vm4, %v5952_v9  ;;  %6191 = vmatpush3.bf16.xpose.msk.msra.mxu0 %vm8989_vm2, %v6186_v22 }
 0x45a   : > { %6177 = vmatpush3.bf16.xpose.msra.mxu1 %v9044_v45  ;;  %5964 = vmatprep.mubr.f32.mxu1 %v9036_v58 }
 0x45b   : > { %6193 = vmatprep.subr.bf16.mxu0 %v9050_v13  ;;  %6197 = vmatprep.subr.bf16.mxu1 %v8911_v62 }
 0x460   : > { %5983 = vmatmul.mubr.msk.f32.vlgmr.msra.gmra.mrb[20].mxu0 %vm1409_vm4, %v5977_v30 }
 0x461   : > { %5965 = vmatmul.mubr.f32.vlgmr.msra.gmra.mrb[24].mxu1 %v9040_v24  ;;  %6195 = vmatpush3.bf16.xpose.msra.mxu0 %v9050_v13 }
 0x462   : > { %5989 = vmatprep.mubr.f32.mxu0 %v9038_v23  ;;  %6199 = vmatpush3.bf16.msra.mxu1 %v8911_v62  ;;  %v4049_v62 = vstv %s4048_s26  ;;  %s6457_s26 = smov 80  }
 0x463   : > { %6000 = vmatprep.mubr.msk.f32.mxu1 %vm3199_vm8, %v9814_v32  ;;  %6215 = vmatprep.subr.bf16.mxu0 %v8917_v0 }
 0x464   : > { %6201 = vmatprep.subr.bf16.mxu1 %v8924_v16 }
 0x466   : > { %6203 = vmatpush3.bf16.msra.mxu1 %v8924_v16 }
 0x468   : > { %5990 = vmatmul.mubr.f32.vlgmr.msra.gmra.mrb[20].mxu0 %v9046_v11  ;;  %v4343_v11 = vstv %s4342_s24  ;;  %s5221_s24 = sadd.f32 %s6327_s21, %s6325_s27 }
 0x469   : > { %6001 = vmatmul.mubr.msk.f32.vlgmr.msra.gmra.mrb[26].mxu1 %vm3199_vm8, %v9815_v21  ;;  %6217 = vmatpush3.bf16.msra.mxu0 %v8917_v0  ;;  %v4051_v0 = vmul.f32 %v4049_v62, %v9074_v1  ;;  %v4345_v53 = vmul.f32 %v4343_v11, %v9074_v1  ;;  %v4344_v44 = vmul.f32 %v4343_v11, %v9079_v31 }
 0x46a   : > { %6025 = vmatprep.mubr.msk.f32.mxu0 %vm3199_vm8, %v9814_v32  ;;  %6219 = vmatprep.subr.bf16.mxu0 %v8929_v57 }
 0x46d   : > { %6221 = vmatpush3.bf16.msra.mxu0 %v8929_v57  ;;  %v4050_v57 = vmul.f32 %v4049_v62, %v9079_v31 }
 0x470   : > { %6026 = vmatmul.mubr.msk.f32.vlgmr.msra.gmra.mrb[22].mxu0 %vm3199_vm8, %v9815_v21 }
 0x534   : > { %v5966_v16 = vpop.f32.mrb[24].mxu1 }
 0x535   : > { %v4047_v58 = vmul.f32 0.007480315, %v5966_v16  ;;  %v4016_v23 = vpop.f32.mrb[25].mxu1 }
 0x536   : > { %v4046_v45 = vmul.f32 0.007480315, %v4016_v23 }
 0x537   : > { %v4053_v24 = vadd.f32 %v4051_v0, %v4047_v58 }
 0x538   : > { %v4052_v13 = vadd.f32 %v4050_v57, %v4046_v45  ;;  %v5527_v45 = vpop.permute.xlu1 %5526 }
 0x539   : > { %5536 = vrot.lane.b32.xlu1 %v4053_v24, %s6454_s28 }
 0x53b   : > { %v5991_v14 = vpop.f32.mrb[20].mxu0 }
 0x53c   : > { %v4341_v46 = vmul.f32 0.007480315, %v5991_v14  ;;  %v4310_v61 = vpop.f32.mrb[21].mxu0  ;;  %v6002_v10 = vpop.f32.mrb[26].mxu1 }
 0x53d   : > { %v4340_v5 = vmul.f32 0.007480315, %v4310_v61  ;;  %v4448_v33 = vpop.f32.mrb[27].mxu1  ;;  %5534 = vrot.lane.b32.xlu1 %v4052_v13, %s6454_s28  ;;  %s6329_s28 = spop %6328  ;;  %v5529_v13 = vpop.permute.xlu0 %5528 }
 0x53e   : > { %v4347_v40 = vadd.f32 %v4345_v53, %v4341_v46  ;;  %v6204_v63 = vpack.c.bf16 %v6002_v10, %v4448_v33  ;;  %6007 = vmatprep.mubr.msk.f32.mxu1 %vm1409_vm4, %v4448_v33  ;;  %s6331_s11 = spop %6330 }
 0x53f   : > { %v4346_v52 = vadd.f32 %v4344_v44, %v4340_v5  ;;  %s5515_s12 = sadd.f32 %s6331_s11, %s6329_s28  ;;  %v5580_v44 = vsel %vm9817_vm9, %v9085_v43, %v5527_v45 }
 0x540   : > { %6206 = vmatprep.subr.msk.bf16.mxu1 %vm8989_vm2, %v6204_v63 }
 0x541   : > { %6209 = vmatpush3.bf16.xpose.msk.msra.mxu1 %vm8989_vm2, %v6204_v63  ;;  %5544 = vrot.lane.b32.xlu1 %v4347_v40, %s6455_s29  ;;  %s5518_s23 = smul.f32 1.230315e-05, %s5515_s12 }
 0x542   : > { %5542 = vrot.lane.b32.xlu0 %v4346_v52, %s6455_s29  ;;  %6211 = vmatprep.subr.bf16.mxu1 %v8973_v35  ;;  %s5224_s29 = smul.f32 1.230315e-05, %s5221_s24 }
 0x543   : > { %v6027_v20 = vpop.f32.mrb[22].mxu0 }
 0x544   : > { %v4742_v7 = vpop.f32.mrb[23].mxu0  ;;  %v5225_v41 = vstv %s5224_s29 }
 0x545   : > { %v6222_v17 = vpack.c.bf16 %v6027_v20, %v4742_v7  ;;  %6032 = vmatprep.mubr.msk.f32.mxu0 %vm1409_vm4, %v4742_v7 }
 0x547   : > { %6224 = vmatprep.subr.msk.bf16.mxu0 %vm8989_vm2, %v6222_v17 }
 0x548   : > { %6008 = vmatmul.mubr.msk.f32.vlgmr.msra.gmra.mrb[28].mxu1 %vm1409_vm4, %v6002_v10  ;;  %6227 = vmatpush3.bf16.xpose.msk.msra.mxu0 %vm8989_vm2, %v6222_v17 }
 0x549   : > { %6213 = vmatpush3.bf16.xpose.msra.mxu1 %v8973_v35  ;;  %6014 = vmatprep.mubr.f32.mxu1 %v8958_v42 }
 0x54a   : > { %6229 = vmatprep.subr.bf16.mxu0 %v8982_v19  ;;  %6233 = vmatprep.subr.bf16.mxu1 %v8938_v6 }
 0x54f   : > { %6033 = vmatmul.mubr.msk.f32.vlgmr.msra.gmra.mrb[24].mxu0 %vm1409_vm4, %v6027_v20 }
 0x550   : > { %6015 = vmatmul.mubr.f32.vlgmr.msra.gmra.mrb[28].mxu1 %v8969_v56  ;;  %6231 = vmatpush3.bf16.xpose.msra.mxu0 %v8982_v19 }
 0x551   : > { %6039 = vmatprep.mubr.f32.mxu0 %v8960_v34  ;;  %6235 = vmatpush3.bf16.msra.mxu1 %v8938_v6  ;;  %v4637_v6 = vstv %s4636_s19  ;;  %s6459_s19 = smov 112  }
 0x552   : > { %6050 = vmatprep.mubr.msk.f32.mxu1 %vm3199_vm8, %v9814_v32  ;;  %6251 = vmatprep.subr.bf16.mxu0 %v8956_v26  ;;  %v4638_v56 = vmul.f32 %v4637_v6, %v9079_v31 }
 0x553   : > { %6237 = vmatprep.subr.bf16.mxu1 %v8967_v36 }
 0x555   : > { %6239 = vmatpush3.bf16.msra.mxu1 %v8967_v36 }
 0x557   : > { %6040 = vmatmul.mubr.f32.vlgmr.msra.gmra.mrb[24].mxu0 %v8975_v39 }
 0x558   : > { %6051 = vmatmul.mubr.msk.f32.vlgmr.msra.gmra.mrb[30].mxu1 %vm3199_vm8, %v9815_v21  ;;  %6253 = vmatpush3.bf16.msra.mxu0 %v8956_v26  ;;  %v4639_v26 = vmul.f32 %v4637_v6, %v9074_v1 }
 0x559   : > { %6075 = vmatprep.mubr.msk.f32.mxu0 %vm3199_vm8, %v9814_v32  ;;  %6255 = vmatprep.subr.bf16.mxu0 %v8985_v49 }
 0x55c   : > { %6257 = vmatpush3.bf16.msra.mxu0 %v8985_v49  ;;  %v4931_v49 = vstv %s4930_s15 }
 0x55d   : > { %v4932_v55 = vmul.f32 %v4931_v49, %v9079_v31 }
 0x55f   : > { %6076 = vmatmul.mubr.msk.f32.vlgmr.msra.gmra.mrb[26].mxu0 %vm3199_vm8, %v9815_v21  ;;  %v4933_v21 = vmul.f32 %v4931_v49, %v9074_v1 }
 0x5ab   : > { %v5537_v57 = vpop.permute.xlu1 %5536 }
 0x5af   : > { %v5535_v11 = vpop.permute.xlu1 %5534 }
 0x5b0   : > { %v5582_v40 = vsel %vm3199_vm8, %v5580_v44, %v5535_v11 }
 0x5b3   : > { %v5545_v14 = vpop.permute.xlu1 %5544 }
 0x5b4   : > { %v5543_v53 = vpop.permute.xlu0 %5542 }
 0x623   : > { %v6016_v42 = vpop.f32.mrb[28].mxu1 }
 0x624   : > { %v4635_v34 = vmul.f32 0.007480315, %v6016_v42  ;;  %v4604_v36 = vpop.f32.mrb[29].mxu1 }
 0x625   : > { %v4634_v35 = vmul.f32 0.007480315, %v4604_v36 }
 0x626   : > { %v4641_v39 = vadd.f32 %v4639_v26, %v4635_v34 }
 0x627   : > { %v4640_v19 = vadd.f32 %v4638_v56, %v4634_v35 }
 0x628   : > { %5552 = vrot.lane.b32.xlu1 %v4641_v39, %s6456_s25 }
 0x629   : > { %5550 = vrot.lane.b32.xlu0 %v4640_v19, %s6456_s25 }
 0x62a   : > { %v6041_v32 = vpop.f32.mrb[24].mxu0 }
 0x62b   : > { %v4929_v54 = vmul.f32 0.007480315, %v6041_v32  ;;  %v4898_v27 = vpop.f32.mrb[25].mxu0  ;;  %v6052_v59 = vpop.f32.mrb[30].mxu1 }
 0x62c   : > { %v4928_v4 = vmul.f32 0.007480315, %v4898_v27  ;;  %v5036_v38 = vpop.f32.mrb[31].mxu1 }
 0x62d   : > { %v4935_v48 = vadd.f32 %v4933_v21, %v4929_v54  ;;  %v6240_v9 = vpack.c.bf16 %v6052_v59, %v5036_v38  ;;  %6057 = vmatprep.mubr.msk.f32.mxu1 %vm1409_vm4, %v5036_v38 }
 0x62e   : > { %v4934_v3 = vadd.f32 %v4932_v55, %v4928_v4 }
 0x62f   : > { %6242 = vmatprep.subr.msk.bf16.mxu1 %vm8989_vm2, %v6240_v9  ;;  %5560 = vrot.lane.b32.xlu1 %v4935_v48, %s6457_s26 }
 0x630   : > { %6245 = vmatpush3.bf16.xpose.msk.msra.mxu1 %vm8989_vm2, %v6240_v9  ;;  %5558 = vrot.lane.b32.xlu0 %v4934_v3, %s6457_s26  ;;  %s5609_s26 = scalar_lea.vmem (%p6532_p4), %s9225_s9, %s6536_s18 }
 0x631   : > { %6247 = vmatprep.subr.bf16.mxu1 %v9060_v47 }
 0x632   : > { %v6077_v18 = vpop.f32.mrb[26].mxu0 }
 0x633   : > { %v5330_v60 = vpop.f32.mrb[27].mxu0 }
 0x634   : > { %v6258_v28 = vpack.c.bf16 %v6077_v18, %v5330_v60  ;;  %6082 = vmatprep.mubr.msk.f32.mxu0 %vm1409_vm4, %v5330_v60 }
 0x636   : > { %6260 = vmatprep.subr.msk.bf16.mxu0 %vm8989_vm2, %v6258_v28 }
 0x637   : > { %6058 = vmatmul.mubr.msk.f32.vlgmr.msra.gmra.mrb[32].mxu1 %vm1409_vm4, %v6052_v59  ;;  %6263 = vmatpush3.bf16.xpose.msk.msra.mxu0 %vm8989_vm2, %v6258_v28 }
 0x638   : > { %6249 = vmatpush3.bf16.xpose.msra.mxu1 %v9060_v47  ;;  %6064 = vmatprep.mubr.f32.mxu1 %v9052_v51  ;;  %v5227_v47 = vmul.f32 %v5225_v41, %v9074_v1 }
 0x639   : > { %6265 = vmatprep.subr.bf16.mxu0 %v9066_v8 }
 0x63e   : > { %6083 = vmatmul.mubr.msk.f32.vlgmr.msra.gmra.mrb[28].mxu0 %vm1409_vm4, %v6077_v18  ;;  %vm5584_vm4 = vcmask 392192  }
 0x63f   : > { %6065 = vmatmul.mubr.f32.vlgmr.msra.gmra.mrb[32].mxu1 %v9056_v2  ;;  %6267 = vmatpush3.bf16.xpose.msra.mxu0 %v9066_v8  ;;  %v5226_v8 = vmul.f32 %v5225_v41, %v9079_v31  ;;  %v5585_v20 = vsel %vm5584_vm4, %v5582_v40, %v5543_v53 }
 0x640   : > { %6089 = vmatprep.mubr.f32.mxu0 %v9054_v15 }
 0x646   : > { %6090 = vmatmul.mubr.f32.vlgmr.msra.gmra.mrb[28].mxu0 %v9062_v25  ;;  %v5519_v25 = vstv %s5518_s23 }
 0x647   : > { %v5521_v22 = vmul.f32 %v5519_v25, %v9074_v1  ;;  %v5520_v0 = vmul.f32 %v5519_v25, %v9079_v31  ;;  %v5581_v31 = vsel %vm9816_vm5, %v9083_v50, %v5529_v13 }
 0x648   : > { %v5583_v5 = vsel %vm3199_vm8, %v5581_v31, %v5537_v57 }
 0x649   : > { %v5586_v63 = vsel %vm5584_vm4, %v5583_v5, %v5545_v14 }
 0x69a   : > { %v5553_v46 = vpop.permute.xlu1 %5552 }
 0x69b   : > { %v5551_v61 = vpop.permute.xlu0 %5550  ;;  %v5589_v7 = vsel %vm5587_vm15, %v5586_v63, %v5553_v46 }
 0x69c   : > { %v5588_v17 = vsel %vm5587_vm15, %v5585_v20, %v5551_v61 }
 0x6a1   : > { %v5561_v1 = vpop.permute.xlu1 %5560 }
 0x6a2   : > { %v5559_v10 = vpop.permute.xlu0 %5558  ;;  %v5592_v6 = vsel %vm5590_vm7, %v5589_v7, %v5561_v1 }
 0x6a3   : > { %v5591_v50 = vsel %vm5590_vm7, %v5588_v17, %v5559_v10 }
 0x712   : > { %v6066_v51 = vpop.f32.mrb[32].mxu1 }
 0x713   : > { %v5223_v29 = vmul.f32 0.007480315, %v6066_v51  ;;  %v5192_v2 = vpop.f32.mrb[33].mxu1 }
 0x714   : > { %v5222_v12 = vmul.f32 0.007480315, %v5192_v2 }
 0x715   : > { %v5229_v15 = vadd.f32 %v5227_v47, %v5223_v29 }
 0x716   : > { %v5228_v30 = vadd.f32 %v5226_v8, %v5222_v12 }
 0x717   : > { %5568 = vrot.lane.b32.xlu1 %v5229_v15, %s6458_s14 }
 0x718   : > { %5566 = vrot.lane.b32.xlu0 %v5228_v30, %s6458_s14 }
 0x719   : > { %v6091_v37 = vpop.f32.mrb[28].mxu0 }
 0x71a   : > { %v5517_v62 = vmul.f32 0.007480315, %v6091_v37  ;;  %v5486_v16 = vpop.f32.mrb[29].mxu0 }
 0x71b   : > { %v5516_v58 = vmul.f32 0.007480315, %v5486_v16 }
 0x71c   : > { %v5523_v23 = vadd.f32 %v5521_v22, %v5517_v62 }
 0x71d   : > { %v5522_v24 = vadd.f32 %v5520_v0, %v5516_v58 }
 0x71e   : > { %5576 = vrot.lane.b32.xlu1 %v5523_v23, %s6459_s19 }
 0x71f   : > { %5574 = vrot.lane.b32.xlu0 %v5522_v24, %s6459_s19 }
 0x789   : > { %v5569_v33 = vpop.permute.xlu1 %5568 }
 0x78a   : > { %v5567_v52 = vpop.permute.xlu0 %5566  ;;  %v5595_v42 = vsel %vm5593_vm13, %v5592_v6, %v5569_v33 }
 0x78b   : > { %v5594_v34 = vsel %vm5593_vm13, %v5591_v50, %v5567_v52 }
 0x78d   : > { %5607 = sbr.rel (!%p6532_p4) target bundleno = 1948 (0x79c), region = 60 }
 0x790   : > { %v5577_v26 = vpop.permute.xlu1 %5576 }
 0x791   : > { %v5598_v43 = vsel %vm5596_vm6, %v5595_v42, %v5577_v26  ;;  %v5575_v36 = vpop.permute.xlu0 %5574 }
 0x792   : > { %5600 = vst [vmem:[%s322_s30 + $0x8] sm:$0xff] %v5598_v43  ;;  %v5597_v56 = vsel %vm5596_vm6, %v5594_v34, %v5575_v36 }
 0x793   : > { %5599 = vst [vmem:[%s322_s30] sm:$0xff] %v5597_v56 }
 0x799   : > { %v5641_v39 = vld [vmem:[%s322_s30 + $0x8] sm:$0xff] }
 0x79a   : > { %v5639_v35 = vld [vmem:[%s322_s30] sm:$0xff]  ;;  %5642 = vst [vmem:[%s5609_s26 + $0x10] sm:$0xff] %v5641_v39 }
 0x79b   : > { %5640 = vst [vmem:[%s5609_s26] sm:$0xff] %v5639_v35 }
 0x79c PF: > { %p16_p8 = scmp.ge.s32.totalorder %s6523_s13, 4   ;;  %s9818_s30 = smov %s6431_s10 }
 0x79d   : > { %s9819_s10 = smov %s6530_s16  ;;  %s9820_s11 = smov %s6523_s13 }
 0x79e   :  { %18 = sbr.rel (!%p16_p8) target bundleno = 2 (0x2), region = 124 }

</bundles_post_ra>
